<compile_context>
chip_gen: v7x
topology: tpu7x:2x2x1
jax: 0.10.0
libtpu: 0.0.40
codegen_flags: <defaults>
</compile_context>

<pallas_src>
import jax
import jax.numpy as jnp
from jax import lax
from jax.experimental import pallas as pl
from jax.experimental.pallas import tpu as pltpu

_ACT_DT = jnp.bfloat16  # activation / weight storage dtype for the MXU
_FRONT = 16             # bf16-tile aligned front halo (conv zero-pad lives here)
_BACK = 16              # back halo (>= 2 * max dilation = 8), keeps buffer tile-sized


# ----------------------------------------------------------------------------
# Fused kernel
# ----------------------------------------------------------------------------
def _ecg_kernel(x1_ref, w1_ref, b1_ref,
                w2_ref, g2_ref, be2_ref,
                w3_ref, g3_ref, be3_ref,
                w4_ref, g4_ref, be4_ref,
                w5_ref,
                o_ref,
                y1_ref, y2_ref, y3_ref):
    B, L1, _ = x1_ref.shape
    f32 = jnp.float32
    F = _FRONT

    # Zero the halo rows (they ARE the conv zero-pads).  Both halos are 16-row,
    # tile-aligned slabs -> unmasked full-tile stores.
    for ref in (y1_ref, y2_ref, y3_ref):
        c = ref.shape[-1]
        ref[:, 0:F, :] = jnp.zeros((B, F, c), _ACT_DT)
        ref[:, F + L1:F + L1 + _BACK, :] = jnp.zeros((B, _BACK, c), _ACT_DT)

    # ---- layer 1: Conv1d(1, 64, k=4, s=2, p=1) + bias + Tanh (true grid, len L1)
    a1 = jnp.dot(x1_ref[...].reshape(B * L1, 4), w1_ref[...],
                 preferred_element_type=f32)
    a1 = jnp.tanh(a1 + b1_ref[...])
    y1_ref[:, F:F + L1, :] = a1.reshape(B, L1, 64).astype(_ACT_DT)   # aligned store

    # ---- Conv1d(k=4, s=2, p=1) + BatchNorm1d + Tanh as a dilated ("a trous") conv.
    # out_atrous[u] = sum_k W[k] @ prev_atrous[u + d*(k-1)]; valid rows u % m == 0.
    def block(prev_ref, w_ref, g_ref, be_ref, d, m, fuse_taps, zero_invalid):
        cin = prev_ref.shape[-1]
        cout = w_ref.shape[-1]

        def tap(k):  # contiguous VMEM slice holding the k-th dilated tap
            s = F + d * (k - 1)
            return prev_ref[:, s:s + L1, :]

        if fuse_taps:
            # Lane-concat im2col: a single K = 4*cin MXU pass (cin=64 -> K=256).
            col = jnp.concatenate([tap(k) for k in range(4)], axis=-1)
            acc = jnp.dot(col.reshape(B * L1, 4 * cin), w_ref[...],
                          preferred_element_type=f32)
        else:
            # 4 accumulating dots with per-tap weight slices: no (B*L1, 4*cin)
            # col materialization; per-tap K (128/256) still fills the MXU.
            acc = jnp.dot(tap(0).reshape(B * L1, cin), w_ref[0:cin, :],
                          preferred_element_type=f32)
            for k in range(1, 4):
                acc = acc + jnp.dot(tap(k).reshape(B * L1, cin),
                                    w_ref[k * cin:(k + 1) * cin, :],
                                    preferred_element_type=f32)

        # Training-mode BatchNorm1d statistics over the *valid* rows only (the
        # true stride-2 output positions), biased variance, eps=1e-5.
        row = lax.broadcasted_iota(jnp.int32, (B * L1, 1), 0)
        valid = (row % m) == 0
        n_valid = float(B * (L1 // m))
        masked = jnp.where(valid, acc, 0.0)
        s1 = jnp.sum(masked, axis=0, keepdims=True)          # sum   over valid rows
        s2 = jnp.sum(masked * acc, axis=0, keepdims=True)    # sum^2 over valid rows
        mean = s1 * (1.0 / n_valid)
        var = s2 * (1.0 / n_valid) - mean * mean
        y = jnp.tanh((acc - mean) * lax.rsqrt(var + 1e-5) * g_ref[...] + be_ref[...])
        if zero_invalid:
            y = jnp.where(valid, y, 0.0)                     # reuse mask for the head
        return y.astype(_ACT_DT).reshape(B, L1, cout)

    y2_ref[:, F:F + L1, :] = block(y1_ref, w2_ref, g2_ref, be2_ref,
                                   d=1, m=2, fuse_taps=True, zero_invalid=False)
    y3_ref[:, F:F + L1, :] = block(y2_ref, w3_ref, g3_ref, be3_ref,
                                   d=2, m=4, fuse_taps=False, zero_invalid=False)
    # Block-4 output stays bf16; invalid rows already zeroed inside the block.
    z4 = block(y3_ref, w4_ref, g4_ref, be4_ref,
               d=4, m=8, fuse_taps=False, zero_invalid=True)   # (B, L1, 512) bf16

    # ---- head: ConstantPad1d((0,1)) + Conv1d(512,4,k4,p1,no bias) + AvgPool(1)
    # mean_t conv(z)[t] = (1/T) * sum_k (shifted-window-sum_k of z) @ V_k, where
    # z[j] = z4 at valid rows u = 8j; invalid rows are zero so full-row sums work.
    T = L1 // 8
    zsum = jnp.sum(z4, axis=1, dtype=f32)                                    # sum_j z[j]
    z_first = jnp.sum(z4[:, 0:1, :], axis=1, dtype=f32)                      # z[0]
    z_second = jnp.sum(z4[:, 8:9, :], axis=1, dtype=f32)                     # z[1]
    z_last = jnp.sum(z4[:, 8 * (T - 1):8 * (T - 1) + 1, :], axis=1, dtype=f32)  # z[T-1]
    t0 = zsum - z_last                       # tap 0 window (shift -1)
    t1 = zsum                                # tap 1 window
    t2 = zsum - z_first                      # tap 2 window (shift +1)
    t3 = zsum - z_first - z_second           # tap 3 window (shift +2)
    gcat = jnp.concatenate([t0, t1, t2, t3], axis=-1).astype(w5_ref.dtype)
    o_ref[...] = jnp.dot(gcat, w5_ref[...],
                         preferred_element_type=f32) * (1.0 / T)


# ----------------------------------------------------------------------------
# Wrapper
# ----------------------------------------------------------------------------
def _full_spec(shape):
    zeros = (0,) * len(shape)
    return pl.BlockSpec(shape, lambda i, _z=zeros: _z)


def _vmem_limit_bytes():
    cap = 64 << 20                           # conservative fallback (v7x physical)
    if hasattr(pltpu, "get_tpu_info"):
        try:
            cap = int(pltpu.get_tpu_info().vmem_capacity_bytes)
        except Exception:
            pass
    # explicit limit with headroom; this kernel only needs ~2 MB at toy sizes.
    return int(max(32 << 20, min(cap - (16 << 20), 96 << 20)))


def model_forward(x_ncl, params):
    """x_ncl: (B, 1, L) float32 (PyTorch NCL).  Returns (B, 4) float32."""
    B, C, L = x_ncl.shape
    assert C == 1, "model expects a single input channel"
    assert L % 32 == 0 and L >= 32, "sequence length must be a multiple of 32 (>= 32)"
    L1 = L // 2

    # Layer-1 im2col on the raw (tiny) input: taps x_pad[2t + k], k = 0..3.
    # TODO(synk): x1 is lane-sparse (last dim 4 tile-pads to 128 in VMEM); at real
    # ECG lengths run layer 1 as a cheap XLA conv outside the kernel instead.
    xp = jnp.pad(x_ncl[:, 0, :].astype(jnp.float32), ((0, 0), (1, 1)))  # (B, L+2)
    pairs = xp.reshape(B, L1 + 1, 2)
    x1 = jnp.stack([pairs[:, 0:L1, 0], pairs[:, 0:L1, 1],
                    pairs[:, 1:L1 + 1, 0], pairs[:, 1:L1 + 1, 1]],
                   axis=-1).astype(_ACT_DT)                              # (B, L1, 4)

    args = (x1,
            params["w1"], params["b1"],
            params["w2"], params["g2"], params["be2"],
            params["w3"], params["g3"], params["be3"],
            params["w4"], params["g4"], params["be4"],
            params["w5"])

    rows = L1 + _FRONT + _BACK
    # TODO(synk): at realistic B*L add a batch grid axis (parallel for v7x's two
    # TensorCores, with a two-phase BN partial-sum combine) and compact the
    # stride-2 rows after each block instead of the a-trous full-resolution compute.
    return pl.pallas_call(
        _ecg_kernel,
        out_shape=jax.ShapeDtypeStruct((B, 4), jnp.float32),
        grid=(1,),
        in_specs=[_full_spec(a.shape) for a in args],
        out_specs=_full_spec((B, 4)),
        scratch_shapes=[
            pltpu.VMEM((B, rows, 64), _ACT_DT),    # layer-1 output + aligned halos
            pltpu.VMEM((B, rows, 128), _ACT_DT),   # layer-2 output + aligned halos
            pltpu.VMEM((B, rows, 256), _ACT_DT),   # layer-3 output + aligned halos
        ],
        compiler_params=pltpu.CompilerParams(
            dimension_semantics=("arbitrary",),
            vmem_limit_bytes=_vmem_limit_bytes()),
    )(*args)


# ----------------------------------------------------------------------------
# Deterministic parameter construction (shapes from Model.__init__)
# ----------------------------------------------------------------------------
def init_params(key):
    ks = jax.random.split(key, 6)

    def conv_w(k, cin, cout):
        # (K=4, Cin, Cout) -> flattened tap-major (4*Cin, Cout), bf16 for the MXU.
        fan_in = cin * 4
        w = jax.random.normal(k, (4, cin, cout), jnp.float32) / jnp.sqrt(float(fan_in))
        return w.reshape(4 * cin, cout).astype(_ACT_DT)

    p = {
        "w1": conv_w(ks[0], 1, 64),                                   # (4, 64)
        "b1": 0.01 * jax.random.normal(ks[1], (1, 64), jnp.float32),
        "w2": conv_w(ks[2], 64, 128),                                 # (256, 128)
        "g2": jnp.ones((1, 128), jnp.float32),
        "be2": jnp.zeros((1, 128), jnp.float32),
        "w3": conv_w(ks[3], 128, 256),                                # (512, 256)
        "g3": jnp.ones((1, 256), jnp.float32),
        "be3": jnp.zeros((1, 256), jnp.float32),
        "w4": conv_w(ks[4], 256, 512),                                # (1024, 512)
        "g4": jnp.ones((1, 512), jnp.float32),
        "be4": jnp.zeros((1, 512), jnp.float32),
        "w5": conv_w(ks[5], 512, 4),                                  # (2048, 4)
    }
    # NOTE: conv biases for blocks 2-4 are intentionally absent: with
    # training-mode BatchNorm they are exactly cancelled by the mean
    # subtraction, so the forward pass is identical without them.
    return p


if __name__ == "__main__":
    key = jax.random.PRNGKey(0)
    pkey, xkey = jax.random.split(key)
    params = init_params(pkey)

    B, L = 2, 128                          # (B, 1, L): small ECG-like input
    x = jax.random.normal(xkey, (B, 1, L), jnp.float32)

    out = jax.jit(model_forward)(x, params)
    out = jax.block_until_ready(out)
    assert out.shape == (B, 4), out.shape
    assert bool(jnp.all(jnp.isfinite(out)))
    print("KERNEL_OK")
</pallas_src>

<mosaic_0001>
module attributes {stable_mosaic.version = 11 : i64} {
  func.func @_ecg_kernel(%arg0: i32, %arg1: memref<2x64x4xbf16, #tpu.memory_space<vmem>>, %arg2: memref<4x64xbf16, #tpu.memory_space<vmem>>, %arg3: memref<1x64xf32, #tpu.memory_space<vmem>>, %arg4: memref<256x128xbf16, #tpu.memory_space<vmem>>, %arg5: memref<1x128xf32, #tpu.memory_space<vmem>>, %arg6: memref<1x128xf32, #tpu.memory_space<vmem>>, %arg7: memref<512x256xbf16, #tpu.memory_space<vmem>>, %arg8: memref<1x256xf32, #tpu.memory_space<vmem>>, %arg9: memref<1x256xf32, #tpu.memory_space<vmem>>, %arg10: memref<1024x512xbf16, #tpu.memory_space<vmem>>, %arg11: memref<1x512xf32, #tpu.memory_space<vmem>>, %arg12: memref<1x512xf32, #tpu.memory_space<vmem>>, %arg13: memref<2048x4xbf16, #tpu.memory_space<vmem>>, %arg14: memref<2x4xf32, #tpu.memory_space<vmem>>, %arg15: memref<2x96x64xbf16, #tpu.memory_space<vmem>>, %arg16: memref<2x96x128xbf16, #tpu.memory_space<vmem>>, %arg17: memref<2x96x256xbf16, #tpu.memory_space<vmem>>) attributes {dimension_semantics = [#tpu.dimension_semantics<arbitrary>], iteration_bounds = array<i64: 1>, scalar_prefetch = 0 : i64, scratch_operands = 3 : i64, tpu.core_type = #tpu.core_type<tc>, window_params = [{pipeline_mode = #tpu.pipeline_mode<synchronous>, transform_indices = @transform_0, window_bounds = array<i64: 2, 64, 4>}, {pipeline_mode = #tpu.pipeline_mode<synchronous>, transform_indices = @transform_1, window_bounds = array<i64: 4, 64>}, {pipeline_mode = #tpu.pipeline_mode<synchronous>, transform_indices = @transform_2, window_bounds = array<i64: 1, 64>}, {pipeline_mode = #tpu.pipeline_mode<synchronous>, transform_indices = @transform_3, window_bounds = array<i64: 256, 128>}, {pipeline_mode = #tpu.pipeline_mode<synchronous>, transform_indices = @transform_4, window_bounds = array<i64: 1, 128>}, {pipeline_mode = #tpu.pipeline_mode<synchronous>, transform_indices = @transform_5, window_bounds = array<i64: 1, 128>}, {pipeline_mode = #tpu.pipeline_mode<synchronous>, transform_indices = @transform_6, window_bounds = array<i64: 512, 256>}, {pipeline_mode = #tpu.pipeline_mode<synchronous>, transform_indices = @transform_7, window_bounds = array<i64: 1, 256>}, {pipeline_mode = #tpu.pipeline_mode<synchronous>, transform_indices = @transform_8, window_bounds = array<i64: 1, 256>}, {pipeline_mode = #tpu.pipeline_mode<synchronous>, transform_indices = @transform_9, window_bounds = array<i64: 1024, 512>}, {pipeline_mode = #tpu.pipeline_mode<synchronous>, transform_indices = @transform_10, window_bounds = array<i64: 1, 512>}, {pipeline_mode = #tpu.pipeline_mode<synchronous>, transform_indices = @transform_11, window_bounds = array<i64: 1, 512>}, {pipeline_mode = #tpu.pipeline_mode<synchronous>, transform_indices = @transform_12, window_bounds = array<i64: 2048, 4>}, {pipeline_mode = #tpu.pipeline_mode<synchronous>, transform_indices = @transform_13, window_bounds = array<i64: 2, 4>}]} {
    %cst = arith.constant 0.000000e+00 : bf16
    %0 = vector.broadcast %cst : bf16 to vector<2x16x64xbf16>
    %c0 = arith.constant 0 : index
    %c0_0 = arith.constant 0 : index
    %c0_1 = arith.constant 0 : index
    %1 = vector.load %arg15[%c0, %c0_0, %c0_1] : memref<2x96x64xbf16, #tpu.memory_space<vmem>>, vector<2x16x64xbf16>
    tpu.vector_store %arg15[%c0, %c0_0, %c0_1], %0 {strides = array<i32>} : memref<2x96x64xbf16, #tpu.memory_space<vmem>>, vector<2x16x64xbf16>,
    %cst_2 = arith.constant 0.000000e+00 : bf16
    %2 = vector.broadcast %cst_2 : bf16 to vector<2x16x64xbf16>
    %c0_3 = arith.constant 0 : index
    %c80 = arith.constant 80 : index
    %c0_4 = arith.constant 0 : index
    %3 = vector.load %arg15[%c0_3, %c80, %c0_4] : memref<2x96x64xbf16, #tpu.memory_space<vmem>>, vector<2x16x64xbf16>
    tpu.vector_store %arg15[%c0_3, %c80, %c0_4], %2 {strides = array<i32>} : memref<2x96x64xbf16, #tpu.memory_space<vmem>>, vector<2x16x64xbf16>,
    %cst_5 = arith.constant 0.000000e+00 : bf16
    %4 = vector.broadcast %cst_5 : bf16 to vector<2x16x128xbf16>
    %c0_6 = arith.constant 0 : index
    %c0_7 = arith.constant 0 : index
    %c0_8 = arith.constant 0 : index
    %5 = vector.load %arg16[%c0_6, %c0_7, %c0_8] : memref<2x96x128xbf16, #tpu.memory_space<vmem>>, vector<2x16x128xbf16>
    tpu.vector_store %arg16[%c0_6, %c0_7, %c0_8], %4 {strides = array<i32>} : memref<2x96x128xbf16, #tpu.memory_space<vmem>>, vector<2x16x128xbf16>,
    %cst_9 = arith.constant 0.000000e+00 : bf16
    %6 = vector.broadcast %cst_9 : bf16 to vector<2x16x128xbf16>
    %c0_10 = arith.constant 0 : index
    %c80_11 = arith.constant 80 : index
    %c0_12 = arith.constant 0 : index
    %7 = vector.load %arg16[%c0_10, %c80_11, %c0_12] : memref<2x96x128xbf16, #tpu.memory_space<vmem>>, vector<2x16x128xbf16>
    tpu.vector_store %arg16[%c0_10, %c80_11, %c0_12], %6 {strides = array<i32>} : memref<2x96x128xbf16, #tpu.memory_space<vmem>>, vector<2x16x128xbf16>,
    %cst_13 = arith.constant 0.000000e+00 : bf16
    %8 = vector.broadcast %cst_13 : bf16 to vector<2x16x256xbf16>
    %c0_14 = arith.constant 0 : index
    %c0_15 = arith.constant 0 : index
    %c0_16 = arith.constant 0 : index
    %9 = vector.load %arg17[%c0_14, %c0_15, %c0_16] : memref<2x96x256xbf16, #tpu.memory_space<vmem>>, vector<2x16x256xbf16>
    tpu.vector_store %arg17[%c0_14, %c0_15, %c0_16], %8 {strides = array<i32>} : memref<2x96x256xbf16, #tpu.memory_space<vmem>>, vector<2x16x256xbf16>,
    %cst_17 = arith.constant 0.000000e+00 : bf16
    %10 = vector.broadcast %cst_17 : bf16 to vector<2x16x256xbf16>
    %c0_18 = arith.constant 0 : index
    %c80_19 = arith.constant 80 : index
    %c0_20 = arith.constant 0 : index
    %11 = vector.load %arg17[%c0_18, %c80_19, %c0_20] : memref<2x96x256xbf16, #tpu.memory_space<vmem>>, vector<2x16x256xbf16>
    tpu.vector_store %arg17[%c0_18, %c80_19, %c0_20], %10 {strides = array<i32>} : memref<2x96x256xbf16, #tpu.memory_space<vmem>>, vector<2x16x256xbf16>,
    %c0_21 = arith.constant 0 : index
    %c0_22 = arith.constant 0 : index
    %c0_23 = arith.constant 0 : index
    %12 = vector.load %arg1[%c0_21, %c0_22, %c0_23] : memref<2x64x4xbf16, #tpu.memory_space<vmem>>, vector<2x64x4xbf16>
    %13 = vector.shape_cast %12 : vector<2x64x4xbf16> to vector<128x4xbf16>
    %c0_24 = arith.constant 0 : index
    %c0_25 = arith.constant 0 : index
    %14 = vector.load %arg2[%c0_24, %c0_25] : memref<4x64xbf16, #tpu.memory_space<vmem>>, vector<4x64xbf16>
    %cst_26 = arith.constant dense<0.000000e+00> : vector<128x64xf32>
    %15 = tpu.matmul %13, %14, %cst_26 {dimension_numbers = #tpu.dot_dimension_numbers<[1], [0], [0], [1], [0, 0, 1, 1], [], []>} : vector<128x4xbf16>, vector<4x64xbf16>, vector<128x64xf32> -> vector<128x64xf32>
    %c0_27 = arith.constant 0 : index
    %c0_28 = arith.constant 0 : index
    %16 = vector.load %arg3[%c0_27, %c0_28] : memref<1x64xf32, #tpu.memory_space<vmem>>, vector<1x64xf32>
    %17 = vector.broadcast %16 : vector<1x64xf32> to vector<128x64xf32>
    %18 = arith.addf %15, %17 : vector<128x64xf32>
    %19 = math.tanh %18 : vector<128x64xf32>
    %20 = vector.shape_cast %19 : vector<128x64xf32> to vector<2x64x64xf32>
    %21 = arith.truncf %20 : vector<2x64x64xf32> to vector<2x64x64xbf16>
    %c0_29 = arith.constant 0 : index
    %c16 = arith.constant 16 : index
    %c0_30 = arith.constant 0 : index
    %22 = vector.load %arg15[%c0_29, %c16, %c0_30] : memref<2x96x64xbf16, #tpu.memory_space<vmem>>, vector<2x64x64xbf16>
    tpu.vector_store %arg15[%c0_29, %c16, %c0_30], %21 {strides = array<i32>} : memref<2x96x64xbf16, #tpu.memory_space<vmem>>, vector<2x64x64xbf16>,
    %c0_31 = arith.constant 0 : index
    %c15 = arith.constant 15 : index
    %c0_32 = arith.constant 0 : index
    %23 = vector.load %arg15[%c0_31, %c15, %c0_32] : memref<2x96x64xbf16, #tpu.memory_space<vmem>>, vector<2x64x64xbf16>
    %c0_33 = arith.constant 0 : index
    %c16_34 = arith.constant 16 : index
    %c0_35 = arith.constant 0 : index
    %24 = vector.load %arg15[%c0_33, %c16_34, %c0_35] : memref<2x96x64xbf16, #tpu.memory_space<vmem>>, vector<2x64x64xbf16>
    %c0_36 = arith.constant 0 : index
    %c17 = arith.constant 17 : index
    %c0_37 = arith.constant 0 : index
    %25 = vector.load %arg15[%c0_36, %c17, %c0_37] : memref<2x96x64xbf16, #tpu.memory_space<vmem>>, vector<2x64x64xbf16>
    %c0_38 = arith.constant 0 : index
    %c18 = arith.constant 18 : index
    %c0_39 = arith.constant 0 : index
    %26 = vector.load %arg15[%c0_38, %c18, %c0_39] : memref<2x96x64xbf16, #tpu.memory_space<vmem>>, vector<2x64x64xbf16>
    %27 = tpu.concatenate %23, %24, %25, %26 in 2 : vector<2x64x64xbf16>, vector<2x64x64xbf16>, vector<2x64x64xbf16>, vector<2x64x64xbf16> -> vector<2x64x256xbf16>
    %28 = vector.shape_cast %27 : vector<2x64x256xbf16> to vector<128x256xbf16>
    %c0_40 = arith.constant 0 : index
    %c0_41 = arith.constant 0 : index
    %29 = vector.load %arg4[%c0_40, %c0_41] : memref<256x128xbf16, #tpu.memory_space<vmem>>, vector<256x128xbf16>
    %cst_42 = arith.constant dense<0.000000e+00> : vector<128x128xf32>
    %30 = tpu.matmul %28, %29, %cst_42 {dimension_numbers = #tpu.dot_dimension_numbers<[1], [0], [0], [1], [0, 0, 1, 1], [], []>} : vector<128x256xbf16>, vector<256x128xbf16>, vector<128x128xf32> -> vector<128x128xf32>
    %31 = tpu.iota {dimensions = array<i32: 0>} : vector<128x1xi32>
    %c2_i32 = arith.constant 2 : i32
    %c0_i32 = arith.constant 0 : i32
    %32 = arith.cmpi eq, %c2_i32, %c0_i32 : i32
    %c1_i32 = arith.constant 1 : i32
    %33 = arith.select %32, %c1_i32, %c2_i32 : i32
    %34 = vector.broadcast %33 : i32 to vector<128x1xi32>
    %35 = arith.remsi %31, %34 : vector<128x1xi32>
    %c0_i32_43 = arith.constant 0 : i32
    %36 = vector.broadcast %c0_i32_43 : i32 to vector<128x1xi32>
    %37 = arith.cmpi ne, %35, %36 : vector<128x1xi32>
    %c0_i32_44 = arith.constant 0 : i32
    %38 = vector.broadcast %c0_i32_44 : i32 to vector<128x1xi32>
    %39 = arith.cmpi slt, %35, %38 : vector<128x1xi32>
    %c0_i32_45 = arith.constant 0 : i32
    %40 = arith.cmpi slt, %33, %c0_i32_45 : i32
    %41 = vector.broadcast %40 : i1 to vector<128x1xi1>
    %42 = vector.broadcast %41 : vector<128x1xi1> to vector<128x1xi1>
    %43 = arith.xori %39, %42 : vector<128x1xi1>
    %44 = arith.andi %43, %37 : vector<128x1xi1>
    %45 = vector.broadcast %33 : i32 to vector<128x1xi32>
    %46 = arith.addi %35, %45 : vector<128x1xi32>
    %47 = arith.select %44, %46, %35 : vector<128x1xi1>, vector<128x1xi32>
    %c0_i32_46 = arith.constant 0 : i32
    %48 = vector.broadcast %c0_i32_46 : i32 to vector<128x1xi32>
    %49 = arith.cmpi eq, %47, %48 : vector<128x1xi32>
    %cst_47 = arith.constant 0.000000e+00 : f32
    %50 = vector.shape_cast %49 : vector<128x1xi1> to vector<128x1xi1>
    %51 = vector.broadcast %50 : vector<128x1xi1> to vector<128x128xi1>
    %52 = vector.broadcast %cst_47 : f32 to vector<128x128xf32>
    %53 = arith.select %51, %30, %52 : vector<128x128xi1>, vector<128x128xf32>
    %cst_48 = arith.constant dense<0.000000e+00> : vector<128xf32>
    %54 = vector.multi_reduction <add>, %53, %cst_48 [0] : vector<128x128xf32> to vector<128xf32>
    %55 = vector.shape_cast %54 : vector<128xf32> to vector<1x128xf32>
    %56 = arith.mulf %53, %30 : vector<128x128xf32>
    %cst_49 = arith.constant dense<0.000000e+00> : vector<128xf32>
    %57 = vector.multi_reduction <add>, %56, %cst_49 [0] : vector<128x128xf32> to vector<128xf32>
    %58 = vector.shape_cast %57 : vector<128xf32> to vector<1x128xf32>
    %cst_50 = arith.constant 1.562500e-02 : f32
    %59 = vector.broadcast %cst_50 : f32 to vector<1x128xf32>
    %60 = arith.mulf %55, %59 : vector<1x128xf32>
    %cst_51 = arith.constant 1.562500e-02 : f32
    %61 = vector.broadcast %cst_51 : f32 to vector<1x128xf32>
    %62 = arith.mulf %58, %61 : vector<1x128xf32>
    %63 = arith.mulf %60, %60 : vector<1x128xf32>
    %64 = arith.subf %62, %63 : vector<1x128xf32>
    %65 = vector.broadcast %60 : vector<1x128xf32> to vector<128x128xf32>
    %66 = arith.subf %30, %65 : vector<128x128xf32>
    %cst_52 = arith.constant 9.99999974E-6 : f32
    %67 = vector.broadcast %cst_52 : f32 to vector<1x128xf32>
    %68 = arith.addf %64, %67 : vector<1x128xf32>
    %69 = math.rsqrt %68 : vector<1x128xf32>
    %70 = vector.broadcast %69 : vector<1x128xf32> to vector<128x128xf32>
    %71 = arith.mulf %66, %70 : vector<128x128xf32>
    %c0_53 = arith.constant 0 : index
    %c0_54 = arith.constant 0 : index
    %72 = vector.load %arg5[%c0_53, %c0_54] : memref<1x128xf32, #tpu.memory_space<vmem>>, vector<1x128xf32>
    %73 = vector.broadcast %72 : vector<1x128xf32> to vector<128x128xf32>
    %74 = arith.mulf %71, %73 : vector<128x128xf32>
    %c0_55 = arith.constant 0 : index
    %c0_56 = arith.constant 0 : index
    %75 = vector.load %arg6[%c0_55, %c0_56] : memref<1x128xf32, #tpu.memory_space<vmem>>, vector<1x128xf32>
    %76 = vector.broadcast %75 : vector<1x128xf32> to vector<128x128xf32>
    %77 = arith.addf %74, %76 : vector<128x128xf32>
    %78 = math.tanh %77 : vector<128x128xf32>
    %79 = arith.truncf %78 : vector<128x128xf32> to vector<128x128xbf16>
    %80 = vector.shape_cast %79 : vector<128x128xbf16> to vector<2x64x128xbf16>
    %c0_57 = arith.constant 0 : index
    %c16_58 = arith.constant 16 : index
    %c0_59 = arith.constant 0 : index
    %81 = vector.load %arg16[%c0_57, %c16_58, %c0_59] : memref<2x96x128xbf16, #tpu.memory_space<vmem>>, vector<2x64x128xbf16>
    tpu.vector_store %arg16[%c0_57, %c16_58, %c0_59], %80 {strides = array<i32>} : memref<2x96x128xbf16, #tpu.memory_space<vmem>>, vector<2x64x128xbf16>,
    %c0_60 = arith.constant 0 : index
    %c14 = arith.constant 14 : index
    %c0_61 = arith.constant 0 : index
    %82 = vector.load %arg16[%c0_60, %c14, %c0_61] : memref<2x96x128xbf16, #tpu.memory_space<vmem>>, vector<2x64x128xbf16>
    %83 = vector.shape_cast %82 : vector<2x64x128xbf16> to vector<128x128xbf16>
    %c0_62 = arith.constant 0 : index
    %c0_63 = arith.constant 0 : index
    %84 = vector.load %arg7[%c0_62, %c0_63] : memref<512x256xbf16, #tpu.memory_space<vmem>>, vector<128x256xbf16>
    %cst_64 = arith.constant dense<0.000000e+00> : vector<128x256xf32>
    %85 = tpu.matmul %83, %84, %cst_64 {dimension_numbers = #tpu.dot_dimension_numbers<[1], [0], [0], [1], [0, 0, 1, 1], [], []>} : vector<128x128xbf16>, vector<128x256xbf16>, vector<128x256xf32> -> vector<128x256xf32>
    %c0_65 = arith.constant 0 : index
    %c16_66 = arith.constant 16 : index
    %c0_67 = arith.constant 0 : index
    %86 = vector.load %arg16[%c0_65, %c16_66, %c0_67] : memref<2x96x128xbf16, #tpu.memory_space<vmem>>, vector<2x64x128xbf16>
    %87 = vector.shape_cast %86 : vector<2x64x128xbf16> to vector<128x128xbf16>
    %c128 = arith.constant 128 : index
    %c0_68 = arith.constant 0 : index
    %88 = vector.load %arg7[%c128, %c0_68] : memref<512x256xbf16, #tpu.memory_space<vmem>>, vector<128x256xbf16>
    %cst_69 = arith.constant dense<0.000000e+00> : vector<128x256xf32>
    %89 = tpu.matmul %87, %88, %cst_69 {dimension_numbers = #tpu.dot_dimension_numbers<[1], [0], [0], [1], [0, 0, 1, 1], [], []>} : vector<128x128xbf16>, vector<128x256xbf16>, vector<128x256xf32> -> vector<128x256xf32>
    %90 = arith.addf %85, %89 : vector<128x256xf32>
    %c0_70 = arith.constant 0 : index
    %c18_71 = arith.constant 18 : index
    %c0_72 = arith.constant 0 : index
    %91 = vector.load %arg16[%c0_70, %c18_71, %c0_72] : memref<2x96x128xbf16, #tpu.memory_space<vmem>>, vector<2x64x128xbf16>
    %92 = vector.shape_cast %91 : vector<2x64x128xbf16> to vector<128x128xbf16>
    %c256 = arith.constant 256 : index
    %c0_73 = arith.constant 0 : index
    %93 = vector.load %arg7[%c256, %c0_73] : memref<512x256xbf16, #tpu.memory_space<vmem>>, vector<128x256xbf16>
    %cst_74 = arith.constant dense<0.000000e+00> : vector<128x256xf32>
    %94 = tpu.matmul %92, %93, %cst_74 {dimension_numbers = #tpu.dot_dimension_numbers<[1], [0], [0], [1], [0, 0, 1, 1], [], []>} : vector<128x128xbf16>, vector<128x256xbf16>, vector<128x256xf32> -> vector<128x256xf32>
    %95 = arith.addf %90, %94 : vector<128x256xf32>
    %c0_75 = arith.constant 0 : index
    %c20 = arith.constant 20 : index
    %c0_76 = arith.constant 0 : index
    %96 = vector.load %arg16[%c0_75, %c20, %c0_76] : memref<2x96x128xbf16, #tpu.memory_space<vmem>>, vector<2x64x128xbf16>
    %97 = vector.shape_cast %96 : vector<2x64x128xbf16> to vector<128x128xbf16>
    %c384 = arith.constant 384 : index
    %c0_77 = arith.constant 0 : index
    %98 = vector.load %arg7[%c384, %c0_77] : memref<512x256xbf16, #tpu.memory_space<vmem>>, vector<128x256xbf16>
    %cst_78 = arith.constant dense<0.000000e+00> : vector<128x256xf32>
    %99 = tpu.matmul %97, %98, %cst_78 {dimension_numbers = #tpu.dot_dimension_numbers<[1], [0], [0], [1], [0, 0, 1, 1], [], []>} : vector<128x128xbf16>, vector<128x256xbf16>, vector<128x256xf32> -> vector<128x256xf32>
    %100 = arith.addf %95, %99 : vector<128x256xf32>
    %101 = tpu.iota {dimensions = array<i32: 0>} : vector<128x1xi32>
    %c4_i32 = arith.constant 4 : i32
    %c0_i32_79 = arith.constant 0 : i32
    %102 = arith.cmpi eq, %c4_i32, %c0_i32_79 : i32
    %c1_i32_80 = arith.constant 1 : i32
    %103 = arith.select %102, %c1_i32_80, %c4_i32 : i32
    %104 = vector.broadcast %103 : i32 to vector<128x1xi32>
    %105 = arith.remsi %101, %104 : vector<128x1xi32>
    %c0_i32_81 = arith.constant 0 : i32
    %106 = vector.broadcast %c0_i32_81 : i32 to vector<128x1xi32>
    %107 = arith.cmpi ne, %105, %106 : vector<128x1xi32>
    %c0_i32_82 = arith.constant 0 : i32
    %108 = vector.broadcast %c0_i32_82 : i32 to vector<128x1xi32>
    %109 = arith.cmpi slt, %105, %108 : vector<128x1xi32>
    %c0_i32_83 = arith.constant 0 : i32
    %110 = arith.cmpi slt, %103, %c0_i32_83 : i32
    %111 = vector.broadcast %110 : i1 to vector<128x1xi1>
    %112 = vector.broadcast %111 : vector<128x1xi1> to vector<128x1xi1>
    %113 = arith.xori %109, %112 : vector<128x1xi1>
    %114 = arith.andi %113, %107 : vector<128x1xi1>
    %115 = vector.broadcast %103 : i32 to vector<128x1xi32>
    %116 = arith.addi %105, %115 : vector<128x1xi32>
    %117 = arith.select %114, %116, %105 : vector<128x1xi1>, vector<128x1xi32>
    %c0_i32_84 = arith.constant 0 : i32
    %118 = vector.broadcast %c0_i32_84 : i32 to vector<128x1xi32>
    %119 = arith.cmpi eq, %117, %118 : vector<128x1xi32>
    %cst_85 = arith.constant 0.000000e+00 : f32
    %120 = vector.shape_cast %119 : vector<128x1xi1> to vector<128x1xi1>
    %121 = vector.broadcast %120 : vector<128x1xi1> to vector<128x256xi1>
    %122 = vector.broadcast %cst_85 : f32 to vector<128x256xf32>
    %123 = arith.select %121, %100, %122 : vector<128x256xi1>, vector<128x256xf32>
    %cst_86 = arith.constant dense<0.000000e+00> : vector<256xf32>
    %124 = vector.multi_reduction <add>, %123, %cst_86 [0] : vector<128x256xf32> to vector<256xf32>
    %125 = vector.shape_cast %124 : vector<256xf32> to vector<1x256xf32>
    %126 = arith.mulf %123, %100 : vector<128x256xf32>
    %cst_87 = arith.constant dense<0.000000e+00> : vector<256xf32>
    %127 = vector.multi_reduction <add>, %126, %cst_87 [0] : vector<128x256xf32> to vector<256xf32>
    %128 = vector.shape_cast %127 : vector<256xf32> to vector<1x256xf32>
    %cst_88 = arith.constant 3.125000e-02 : f32
    %129 = vector.broadcast %cst_88 : f32 to vector<1x256xf32>
    %130 = arith.mulf %125, %129 : vector<1x256xf32>
    %cst_89 = arith.constant 3.125000e-02 : f32
    %131 = vector.broadcast %cst_89 : f32 to vector<1x256xf32>
    %132 = arith.mulf %128, %131 : vector<1x256xf32>
    %133 = arith.mulf %130, %130 : vector<1x256xf32>
    %134 = arith.subf %132, %133 : vector<1x256xf32>
    %135 = vector.broadcast %130 : vector<1x256xf32> to vector<128x256xf32>
    %136 = arith.subf %100, %135 : vector<128x256xf32>
    %cst_90 = arith.constant 9.99999974E-6 : f32
    %137 = vector.broadcast %cst_90 : f32 to vector<1x256xf32>
    %138 = arith.addf %134, %137 : vector<1x256xf32>
    %139 = math.rsqrt %138 : vector<1x256xf32>
    %140 = vector.broadcast %139 : vector<1x256xf32> to vector<128x256xf32>
    %141 = arith.mulf %136, %140 : vector<128x256xf32>
    %c0_91 = arith.constant 0 : index
    %c0_92 = arith.constant 0 : index
    %142 = vector.load %arg8[%c0_91, %c0_92] : memref<1x256xf32, #tpu.memory_space<vmem>>, vector<1x256xf32>
    %143 = vector.broadcast %142 : vector<1x256xf32> to vector<128x256xf32>
    %144 = arith.mulf %141, %143 : vector<128x256xf32>
    %c0_93 = arith.constant 0 : index
    %c0_94 = arith.constant 0 : index
    %145 = vector.load %arg9[%c0_93, %c0_94] : memref<1x256xf32, #tpu.memory_space<vmem>>, vector<1x256xf32>
    %146 = vector.broadcast %145 : vector<1x256xf32> to vector<128x256xf32>
    %147 = arith.addf %144, %146 : vector<128x256xf32>
    %148 = math.tanh %147 : vector<128x256xf32>
    %149 = arith.truncf %148 : vector<128x256xf32> to vector<128x256xbf16>
    %150 = vector.shape_cast %149 : vector<128x256xbf16> to vector<2x64x256xbf16>
    %c0_95 = arith.constant 0 : index
    %c16_96 = arith.constant 16 : index
    %c0_97 = arith.constant 0 : index
    %151 = vector.load %arg17[%c0_95, %c16_96, %c0_97] : memref<2x96x256xbf16, #tpu.memory_space<vmem>>, vector<2x64x256xbf16>
    tpu.vector_store %arg17[%c0_95, %c16_96, %c0_97], %150 {strides = array<i32>} : memref<2x96x256xbf16, #tpu.memory_space<vmem>>, vector<2x64x256xbf16>,
    %c0_98 = arith.constant 0 : index
    %c12 = arith.constant 12 : index
    %c0_99 = arith.constant 0 : index
    %152 = vector.load %arg17[%c0_98, %c12, %c0_99] : memref<2x96x256xbf16, #tpu.memory_space<vmem>>, vector<2x64x256xbf16>
    %153 = vector.shape_cast %152 : vector<2x64x256xbf16> to vector<128x256xbf16>
    %c0_100 = arith.constant 0 : index
    %c0_101 = arith.constant 0 : index
    %154 = vector.load %arg10[%c0_100, %c0_101] : memref<1024x512xbf16, #tpu.memory_space<vmem>>, vector<256x512xbf16>
    %cst_102 = arith.constant dense<0.000000e+00> : vector<128x512xf32>
    %155 = tpu.matmul %153, %154, %cst_102 {dimension_numbers = #tpu.dot_dimension_numbers<[1], [0], [0], [1], [0, 0, 1, 1], [], []>} : vector<128x256xbf16>, vector<256x512xbf16>, vector<128x512xf32> -> vector<128x512xf32>
    %c0_103 = arith.constant 0 : index
    %c16_104 = arith.constant 16 : index
    %c0_105 = arith.constant 0 : index
    %156 = vector.load %arg17[%c0_103, %c16_104, %c0_105] : memref<2x96x256xbf16, #tpu.memory_space<vmem>>, vector<2x64x256xbf16>
    %157 = vector.shape_cast %156 : vector<2x64x256xbf16> to vector<128x256xbf16>
    %c256_106 = arith.constant 256 : index
    %c0_107 = arith.constant 0 : index
    %158 = vector.load %arg10[%c256_106, %c0_107] : memref<1024x512xbf16, #tpu.memory_space<vmem>>, vector<256x512xbf16>
    %cst_108 = arith.constant dense<0.000000e+00> : vector<128x512xf32>
    %159 = tpu.matmul %157, %158, %cst_108 {dimension_numbers = #tpu.dot_dimension_numbers<[1], [0], [0], [1], [0, 0, 1, 1], [], []>} : vector<128x256xbf16>, vector<256x512xbf16>, vector<128x512xf32> -> vector<128x512xf32>
    %160 = arith.addf %155, %159 : vector<128x512xf32>
    %c0_109 = arith.constant 0 : index
    %c20_110 = arith.constant 20 : index
    %c0_111 = arith.constant 0 : index
    %161 = vector.load %arg17[%c0_109, %c20_110, %c0_111] : memref<2x96x256xbf16, #tpu.memory_space<vmem>>, vector<2x64x256xbf16>
    %162 = vector.shape_cast %161 : vector<2x64x256xbf16> to vector<128x256xbf16>
    %c512 = arith.constant 512 : index
    %c0_112 = arith.constant 0 : index
    %163 = vector.load %arg10[%c512, %c0_112] : memref<1024x512xbf16, #tpu.memory_space<vmem>>, vector<256x512xbf16>
    %cst_113 = arith.constant dense<0.000000e+00> : vector<128x512xf32>
    %164 = tpu.matmul %162, %163, %cst_113 {dimension_numbers = #tpu.dot_dimension_numbers<[1], [0], [0], [1], [0, 0, 1, 1], [], []>} : vector<128x256xbf16>, vector<256x512xbf16>, vector<128x512xf32> -> vector<128x512xf32>
    %165 = arith.addf %160, %164 : vector<128x512xf32>
    %c0_114 = arith.constant 0 : index
    %c24 = arith.constant 24 : index
    %c0_115 = arith.constant 0 : index
    %166 = vector.load %arg17[%c0_114, %c24, %c0_115] : memref<2x96x256xbf16, #tpu.memory_space<vmem>>, vector<2x64x256xbf16>
    %167 = vector.shape_cast %166 : vector<2x64x256xbf16> to vector<128x256xbf16>
    %c768 = arith.constant 768 : index
    %c0_116 = arith.constant 0 : index
    %168 = vector.load %arg10[%c768, %c0_116] : memref<1024x512xbf16, #tpu.memory_space<vmem>>, vector<256x512xbf16>
    %cst_117 = arith.constant dense<0.000000e+00> : vector<128x512xf32>
    %169 = tpu.matmul %167, %168, %cst_117 {dimension_numbers = #tpu.dot_dimension_numbers<[1], [0], [0], [1], [0, 0, 1, 1], [], []>} : vector<128x256xbf16>, vector<256x512xbf16>, vector<128x512xf32> -> vector<128x512xf32>
    %170 = arith.addf %165, %169 : vector<128x512xf32>
    %171 = tpu.iota {dimensions = array<i32: 0>} : vector<128x1xi32>
    %c8_i32 = arith.constant 8 : i32
    %c0_i32_118 = arith.constant 0 : i32
    %172 = arith.cmpi eq, %c8_i32, %c0_i32_118 : i32
    %c1_i32_119 = arith.constant 1 : i32
    %173 = arith.select %172, %c1_i32_119, %c8_i32 : i32
    %174 = vector.broadcast %173 : i32 to vector<128x1xi32>
    %175 = arith.remsi %171, %174 : vector<128x1xi32>
    %c0_i32_120 = arith.constant 0 : i32
    %176 = vector.broadcast %c0_i32_120 : i32 to vector<128x1xi32>
    %177 = arith.cmpi ne, %175, %176 : vector<128x1xi32>
    %c0_i32_121 = arith.constant 0 : i32
    %178 = vector.broadcast %c0_i32_121 : i32 to vector<128x1xi32>
    %179 = arith.cmpi slt, %175, %178 : vector<128x1xi32>
    %c0_i32_122 = arith.constant 0 : i32
    %180 = arith.cmpi slt, %173, %c0_i32_122 : i32
    %181 = vector.broadcast %180 : i1 to vector<128x1xi1>
    %182 = vector.broadcast %181 : vector<128x1xi1> to vector<128x1xi1>
    %183 = arith.xori %179, %182 : vector<128x1xi1>
    %184 = arith.andi %183, %177 : vector<128x1xi1>
    %185 = vector.broadcast %173 : i32 to vector<128x1xi32>
    %186 = arith.addi %175, %185 : vector<128x1xi32>
    %187 = arith.select %184, %186, %175 : vector<128x1xi1>, vector<128x1xi32>
    %c0_i32_123 = arith.constant 0 : i32
    %188 = vector.broadcast %c0_i32_123 : i32 to vector<128x1xi32>
    %189 = arith.cmpi eq, %187, %188 : vector<128x1xi32>
    %cst_124 = arith.constant 0.000000e+00 : f32
    %190 = vector.shape_cast %189 : vector<128x1xi1> to vector<128x1xi1>
    %191 = vector.broadcast %190 : vector<128x1xi1> to vector<128x512xi1>
    %192 = vector.broadcast %cst_124 : f32 to vector<128x512xf32>
    %193 = arith.select %191, %170, %192 : vector<128x512xi1>, vector<128x512xf32>
    %cst_125 = arith.constant dense<0.000000e+00> : vector<512xf32>
    %194 = vector.multi_reduction <add>, %193, %cst_125 [0] : vector<128x512xf32> to vector<512xf32>
    %195 = vector.shape_cast %194 : vector<512xf32> to vector<1x512xf32>
    %196 = arith.mulf %193, %170 : vector<128x512xf32>
    %cst_126 = arith.constant dense<0.000000e+00> : vector<512xf32>
    %197 = vector.multi_reduction <add>, %196, %cst_126 [0] : vector<128x512xf32> to vector<512xf32>
    %198 = vector.shape_cast %197 : vector<512xf32> to vector<1x512xf32>
    %cst_127 = arith.constant 6.250000e-02 : f32
    %199 = vector.broadcast %cst_127 : f32 to vector<1x512xf32>
    %200 = arith.mulf %195, %199 : vector<1x512xf32>
    %cst_128 = arith.constant 6.250000e-02 : f32
    %201 = vector.broadcast %cst_128 : f32 to vector<1x512xf32>
    %202 = arith.mulf %198, %201 : vector<1x512xf32>
    %203 = arith.mulf %200, %200 : vector<1x512xf32>
    %204 = arith.subf %202, %203 : vector<1x512xf32>
    %205 = vector.broadcast %200 : vector<1x512xf32> to vector<128x512xf32>
    %206 = arith.subf %170, %205 : vector<128x512xf32>
    %cst_129 = arith.constant 9.99999974E-6 : f32
    %207 = vector.broadcast %cst_129 : f32 to vector<1x512xf32>
    %208 = arith.addf %204, %207 : vector<1x512xf32>
    %209 = math.rsqrt %208 : vector<1x512xf32>
    %210 = vector.broadcast %209 : vector<1x512xf32> to vector<128x512xf32>
    %211 = arith.mulf %206, %210 : vector<128x512xf32>
    %c0_130 = arith.constant 0 : index
    %c0_131 = arith.constant 0 : index
    %212 = vector.load %arg11[%c0_130, %c0_131] : memref<1x512xf32, #tpu.memory_space<vmem>>, vector<1x512xf32>
    %213 = vector.broadcast %212 : vector<1x512xf32> to vector<128x512xf32>
    %214 = arith.mulf %211, %213 : vector<128x512xf32>
    %c0_132 = arith.constant 0 : index
    %c0_133 = arith.constant 0 : index
    %215 = vector.load %arg12[%c0_132, %c0_133] : memref<1x512xf32, #tpu.memory_space<vmem>>, vector<1x512xf32>
    %216 = vector.broadcast %215 : vector<1x512xf32> to vector<128x512xf32>
    %217 = arith.addf %214, %216 : vector<128x512xf32>
    %218 = math.tanh %217 : vector<128x512xf32>
    %cst_134 = arith.constant 0.000000e+00 : f32
    %219 = vector.shape_cast %189 : vector<128x1xi1> to vector<128x1xi1>
    %220 = vector.broadcast %219 : vector<128x1xi1> to vector<128x512xi1>
    %221 = vector.broadcast %cst_134 : f32 to vector<128x512xf32>
    %222 = arith.select %220, %218, %221 : vector<128x512xi1>, vector<128x512xf32>
    %223 = arith.truncf %222 : vector<128x512xf32> to vector<128x512xbf16>
    %224 = vector.shape_cast %223 : vector<128x512xbf16> to vector<2x64x512xbf16>
    %225 = arith.extf %224 : vector<2x64x512xbf16> to vector<2x64x512xf32>
    %cst_135 = arith.constant dense<0.000000e+00> : vector<2x512xf32>
    %226 = vector.multi_reduction <add>, %225, %cst_135 [1] : vector<2x64x512xf32> to vector<2x512xf32>
    %227 = vector.extract_strided_slice %224 {offsets = [0, 0, 0], sizes = [2, 1, 512], strides = [1, 1, 1]} : vector<2x64x512xbf16> to vector<2x1x512xbf16>
    %228 = arith.extf %227 : vector<2x1x512xbf16> to vector<2x1x512xf32>
    %cst_136 = arith.constant dense<0.000000e+00> : vector<2x512xf32>
    %229 = vector.multi_reduction <add>, %228, %cst_136 [1] : vector<2x1x512xf32> to vector<2x512xf32>
    %230 = vector.extract_strided_slice %224 {offsets = [0, 8, 0], sizes = [2, 1, 512], strides = [1, 1, 1]} : vector<2x64x512xbf16> to vector<2x1x512xbf16>
    %231 = arith.extf %230 : vector<2x1x512xbf16> to vector<2x1x512xf32>
    %cst_137 = arith.constant dense<0.000000e+00> : vector<2x512xf32>
    %232 = vector.multi_reduction <add>, %231, %cst_137 [1] : vector<2x1x512xf32> to vector<2x512xf32>
    %233 = vector.extract_strided_slice %224 {offsets = [0, 56, 0], sizes = [2, 1, 512], strides = [1, 1, 1]} : vector<2x64x512xbf16> to vector<2x1x512xbf16>
    %234 = arith.extf %233 : vector<2x1x512xbf16> to vector<2x1x512xf32>
    %cst_138 = arith.constant dense<0.000000e+00> : vector<2x512xf32>
    %235 = vector.multi_reduction <add>, %234, %cst_138 [1] : vector<2x1x512xf32> to vector<2x512xf32>
    %236 = arith.subf %226, %235 : vector<2x512xf32>
    %237 = arith.subf %226, %229 : vector<2x512xf32>
    %238 = arith.subf %226, %229 : vector<2x512xf32>
    %239 = arith.subf %238, %232 : vector<2x512xf32>
    %240 = tpu.concatenate %236, %226, %237, %239 in 1 : vector<2x512xf32>, vector<2x512xf32>, vector<2x512xf32>, vector<2x512xf32> -> vector<2x2048xf32>
    %241 = arith.truncf %240 : vector<2x2048xf32> to vector<2x2048xbf16>
    %c0_139 = arith.constant 0 : index
    %c0_140 = arith.constant 0 : index
    %242 = vector.load %arg13[%c0_139, %c0_140] : memref<2048x4xbf16, #tpu.memory_space<vmem>>, vector<2048x4xbf16>
    %cst_141 = arith.constant dense<0.000000e+00> : vector<2x4xf32>
    %243 = tpu.matmul %241, %242, %cst_141 {dimension_numbers = #tpu.dot_dimension_numbers<[1], [0], [0], [1], [0, 0, 1, 1], [], []>} : vector<2x2048xbf16>, vector<2048x4xbf16>, vector<2x4xf32> -> vector<2x4xf32>
    %cst_142 = arith.constant 1.250000e-01 : f32
    %244 = vector.broadcast %cst_142 : f32 to vector<2x4xf32>
    %245 = arith.mulf %243, %244 : vector<2x4xf32>
    %c0_143 = arith.constant 0 : index
    %c0_144 = arith.constant 0 : index
    %246 = vector.load %arg14[%c0_143, %c0_144] : memref<2x4xf32, #tpu.memory_space<vmem>>, vector<2x4xf32>
    tpu.vector_store %arg14[%c0_143, %c0_144], %245 {strides = array<i32>} : memref<2x4xf32, #tpu.memory_space<vmem>>, vector<2x4xf32>,
    return
  }
  func.func @transform_0(%arg0: i32) -> (i32, i32, i32) {
    %c0_i32 = arith.constant 0 : i32
    %c0_i32_0 = arith.constant 0 : i32
    %c0_i32_1 = arith.constant 0 : i32
    %c0_i32_2 = arith.constant 0 : i32
    return %c0_i32, %c0_i32_0, %c0_i32_1 : i32, i32, i32
  }
  func.func @transform_1(%arg0: i32) -> (i32, i32) {
    %c0_i32 = arith.constant 0 : i32
    %c0_i32_0 = arith.constant 0 : i32
    %c0_i32_1 = arith.constant 0 : i32
    return %c0_i32, %c0_i32_0 : i32, i32
  }
  func.func @transform_2(%arg0: i32) -> (i32, i32) {
    %c0_i32 = arith.constant 0 : i32
    %c0_i32_0 = arith.constant 0 : i32
    %c0_i32_1 = arith.constant 0 : i32
    return %c0_i32, %c0_i32_0 : i32, i32
  }
  func.func @transform_3(%arg0: i32) -> (i32, i32) {
    %c0_i32 = arith.constant 0 : i32
    %c0_i32_0 = arith.constant 0 : i32
    %c0_i32_1 = arith.constant 0 : i32
    return %c0_i32, %c0_i32_0 : i32, i32
  }
  func.func @transform_4(%arg0: i32) -> (i32, i32) {
    %c0_i32 = arith.constant 0 : i32
    %c0_i32_0 = arith.constant 0 : i32
    %c0_i32_1 = arith.constant 0 : i32
    return %c0_i32, %c0_i32_0 : i32, i32
  }
  func.func @transform_5(%arg0: i32) -> (i32, i32) {
    %c0_i32 = arith.constant 0 : i32
    %c0_i32_0 = arith.constant 0 : i32
    %c0_i32_1 = arith.constant 0 : i32
    return %c0_i32, %c0_i32_0 : i32, i32
  }
  func.func @transform_6(%arg0: i32) -> (i32, i32) {
    %c0_i32 = arith.constant 0 : i32
    %c0_i32_0 = arith.constant 0 : i32
    %c0_i32_1 = arith.constant 0 : i32
    return %c0_i32, %c0_i32_0 : i32, i32
  }
  func.func @transform_7(%arg0: i32) -> (i32, i32) {
    %c0_i32 = arith.constant 0 : i32
    %c0_i32_0 = arith.constant 0 : i32
    %c0_i32_1 = arith.constant 0 : i32
    return %c0_i32, %c0_i32_0 : i32, i32
  }
  func.func @transform_8(%arg0: i32) -> (i32, i32) {
    %c0_i32 = arith.constant 0 : i32
    %c0_i32_0 = arith.constant 0 : i32
    %c0_i32_1 = arith.constant 0 : i32
    return %c0_i32, %c0_i32_0 : i32, i32
  }
  func.func @transform_9(%arg0: i32) -> (i32, i32) {
    %c0_i32 = arith.constant 0 : i32
    %c0_i32_0 = arith.constant 0 : i32
    %c0_i32_1 = arith.constant 0 : i32
    return %c0_i32, %c0_i32_0 : i32, i32
  }
  func.func @transform_10(%arg0: i32) -> (i32, i32) {
    %c0_i32 = arith.constant 0 : i32
    %c0_i32_0 = arith.constant 0 : i32
    %c0_i32_1 = arith.constant 0 : i32
    return %c0_i32, %c0_i32_0 : i32, i32
  }
  func.func @transform_11(%arg0: i32) -> (i32, i32) {
    %c0_i32 = arith.constant 0 : i32
    %c0_i32_0 = arith.constant 0 : i32
    %c0_i32_1 = arith.constant 0 : i32
    return %c0_i32, %c0_i32_0 : i32, i32
  }
  func.func @transform_12(%arg0: i32) -> (i32, i32) {
    %c0_i32 = arith.constant 0 : i32
    %c0_i32_0 = arith.constant 0 : i32
    %c0_i32_1 = arith.constant 0 : i32
    return %c0_i32, %c0_i32_0 : i32, i32
  }
  func.func @transform_13(%arg0: i32) -> (i32, i32) {
    %c0_i32 = arith.constant 0 : i32
    %c0_i32_0 = arith.constant 0 : i32
    %c0_i32_1 = arith.constant 0 : i32
    return %c0_i32, %c0_i32_0 : i32, i32
  }
}

</mosaic_0001>

<bundles_post_ra>
// kernel: model_forward.1
= control target key start
LH: loop header
LB: loop body
LE: loop exit
PB: predicated region body
PF: predicated region fallthrough
CT: control target
= control target key end

     0   :  { %18 = vsyncpa [#allocation6], 0  ;;  %s14200_s0 = inlined_call_operand.vmem [shape: bf16[2,64,4], index: 0, kind: input, shape index: {}]   ;;  %s14201_s1 = inlined_call_operand.vmem [shape: bf16[4,64], index: 1, kind: input, shape index: {}]   ;;  %s14202_s2 = inlined_call_operand.vmem [shape: f32[1,64], index: 2, kind: input, shape index: {}]   ;;  %s14203_s3 = inlined_call_operand.vmem [shape: bf16[256,128], index: 3, kind: input, shape index: {}]   ;;  %s14204_s4 = inlined_call_operand.vmem [shape: f32[1,128], index: 4, kind: input, shape index: {}]   ;;  %s14205_s5 = inlined_call_operand.vmem [shape: f32[1,128], index: 5, kind: input, shape index: {}]   ;;  %s14206_s6 = inlined_call_operand.vmem [shape: bf16[512,256], index: 6, kind: input, shape index: {}]   ;;  %s14207_s7 = inlined_call_operand.vmem [shape: f32[1,256], index: 7, kind: input, shape index: {}]   ;;  %s14208_s8 = inlined_call_operand.vmem [shape: f32[1,256], index: 8, kind: input, shape index: {}]   ;;  %s14209_s9 = inlined_call_operand.hbm [shape: bf16[1024,512], index: 9, kind: input, shape index: {}]   ;;  %s14210_s10 = inlined_call_operand.vmem [shape: f32[1,512], index: 10, kind: input, shape index: {}]   ;;  %s14211_s11 = inlined_call_operand.vmem [shape: f32[1,512], index: 11, kind: input, shape index: {}]   ;;  %s14212_s12 = inlined_call_operand.vmem [shape: bf16[2048,4], index: 12, kind: input, shape index: {}]   ;;  %s14213_s13 = inlined_call_operand.hbm [shape: f32[2,4], index: 13, kind: output, shape index: {}]  }
   0x1   :  { %19 = vsyncpa [#allocation7], 0  ;;  %s10666_s25 = smov [#allocation5]   ;;  %s10618_s29 = scalar_lea.hbm %s14209_s9, 32768 }
   0x2   :  { %s43_s26 = sshll.u32 %s10666_s25, 4  ;;  %p10619_p0 = scmp.ne.s32.totalorder %s14209_s9, %s10618_s29  ;;  %s44_s26 = int_to_ptr.vmem [resolvable:$true] %s43_s26 }
   0x3   :  { %p10622_p1 = scmp.lt.u32.totalorder %s10618_s29, %s14209_s9 }
   0x5   :  { %p10624_p2 = pnand %p10622_p1, %p10619_p0 }
   0x7   :  { %10627 = shalt.err (!%p10624_p2)
}
   0x8   :  { %s10628_s17 = scalar_lea.vmem %s44_s26, 32768  ;;  %p10633_p4 = scmp.lt.s32.totalorder %s44_s26, %s44_s26 }
   0x9   :  { %p10629_p3 = scmp.ne.s32.totalorder %s44_s26, %s10628_s17  ;;  %p10634_p5 = scmp.lt.s32.totalorder %s10628_s17, %s10628_s17 }
   0xb   :  { %p10635_p6 = por %p10634_p5, %p10633_p4 }
   0xd   :  { %p10636_p7 = pnand %p10635_p6, %p10629_p3 }
   0xf   :  { %10639 = shalt.err (!%p10636_p7)
}
  0x10   :  { %s10667_s18 = smov 256   ;;  %s10668_s19 = smov 16  }
  0x11   :  { %49 = dma.hbm_to_vmem [thread:$0]  %s14209_s9, 32768, %s44_s26, [#allocation6], %s10667_s18, %s10667_s18, %s10668_s19  }
  0x12   :  { %10662 = dma.done.wait [#allocation6], 32768  }
  0x13   :  { %10663 = vsyncadd [#allocation6], 4294934528  ;;  %vm166_vm0 = vcmask 1041408   ;;  %vm141_vm1 = vcmask 31744   ;;  %v93_v0 = vld [vmem:[%s14201_s1] sm:$0x3] }
  0x14   :  { %9666 = vmatprep.subr.msk.bf16.mxu0 %vm166_vm0, %v93_v0  ;;  %v168_v1 = vsel %vm166_vm0, %v93_v0, 0  ;;  %v9683_v2 = vld [vmem:[%s14200_s0] sm:$0xff]   ;;  %v9684_v3 = vld [vmem:[%s14200_s0 + $0x8] sm:$0xff]   ;;  %v9685_v4 = vld [vmem:[%s14200_s0 + $0x10] sm:$0xff]   ;;  %vm60_vm2 = vcmask 523264   ;;  %v10669_v10 = vmov 0  }
  0x15   :  { %9329 = vmatpush3.bf16.msra.mxu0 %v168_v1  ;;  %9330 = vmatprep.mubr.msk.bf16.mxu0 %vm141_vm1, %v9683_v2  ;;  %v9686_v5 = vld [vmem:[%s14200_s0 + $0x18] sm:$0xff]   ;;  %v9687_v6 = vld [vmem:[%s14200_s0 + $0x20] sm:$0xff]   ;;  %v9688_v7 = vld [vmem:[%s14200_s0 + $0x28] sm:$0xff]   ;;  %63 = vst.msk [vmem:[#allocation2 + $0x28] sm:$0xff] %vm60_vm2, %v10669_v10  ;;  %vm425_vm3 = vsmask.f32 6400 }
  0x16   :  { %v9689_v8 = vld [vmem:[%s14200_s0 + $0x30] sm:$0xff]   ;;  %v9690_v9 = vld [vmem:[%s14200_s0 + $0x38] sm:$0xff]   ;;  %61 = vst.msk [vmem:[#allocation2] sm:$0xff] %vm60_vm2, %v10669_v10  ;;  %62 = vst.msk [vmem:[#allocation2 + $0x30] sm:$0xff] %vm60_vm2, %v10669_v10  ;;  %vm313_vm4 = vsmask.f32 7424 }
  0x17   :  { %64 = vst.msk [vmem:[#allocation2 + $0x58] sm:$0xff] %vm60_vm2, %v10669_v10  ;;  %65 = vst [vmem:[#allocation3] sm:$0xff] %v10669_v10  ;;  %v9691_v11 = vld [vmem:[%s14203_s3 + $0x40] sm:$0xff]   ;;  %v9693_v13 = vld [vmem:[%s14203_s3 + $0x48] sm:$0xff]   ;;  %s10670_s14 = smov 64   ;;  %vm406_vm5 = vcmask 1046528  }
  0x18   :  { %9331 = vmatmul.mubr.msk.bf16.vlgmr.msra.gmra.mrb[0].mxu0 %vm141_vm1, %v9684_v3  ;;  %66 = vst [vmem:[#allocation3 + $0x30] sm:$0xff] %v10669_v10  ;;  %67 = vst [vmem:[#allocation3 + $0x28] sm:$0xff] %v10669_v10  ;;  %v9692_v12 = vld [vmem:[%s14203_s3] sm:$0xff]   ;;  %9088 = vmatprep.subr.bf16.mxu1 %v9691_v11  ;;  %v9694_v14 = vld [vmem:[%s14203_s3 + $0x8] sm:$0xff]   ;;  %vm556_vm6 = vsmask.f32 256 }
  0x19   :  { %9334 = vmatprep.mubr.msk.bf16.mxu0 %vm141_vm1, %v9685_v4  ;;  %68 = vst [vmem:[#allocation3 + $0x58] sm:$0xff] %v10669_v10  ;;  %69 = vst [vmem:[#allocation4] sm:$0xff] %v10669_v10  ;;  %9089 = vmatpush3.bf16.msra.mxu1 %v9692_v12  ;;  %v9695_v15 = vld [vmem:[%s14203_s3 + $0x50] sm:$0xff]   ;;  %v9697_v17 = vld [vmem:[%s14203_s3 + $0x58] sm:$0xff]  }
  0x1a   :  { %70 = vst [vmem:[#allocation4 + $0x8] sm:$0xff] %v10669_v10  ;;  %71 = vst [vmem:[#allocation4 + $0x60] sm:$0xff] %v10669_v10  ;;  %9090 = vmatprep.subr.bf16.mxu1 %v9693_v13  ;;  %v9696_v16 = vld [vmem:[%s14203_s3 + $0x10] sm:$0xff]   ;;  %v9698_v18 = vld [vmem:[%s14203_s3 + $0x18] sm:$0xff]  }
  0x1b   :  { %72 = vst [vmem:[#allocation4 + $0x68] sm:$0xff] %v10669_v10  ;;  %73 = vst [vmem:[#allocation4 + $0x50] sm:$0xff] %v10669_v10  ;;  %v9699_v19 = vld [vmem:[%s14203_s3 + $0x60] sm:$0xff]   ;;  %v9701_v58 = vld [vmem:[%s14203_s3 + $0x68] sm:$0xff]  }
  0x1c   :  { %74 = vst [vmem:[#allocation4 + $0x58] sm:$0xff] %v10669_v10  ;;  %75 = vst [vmem:[#allocation4 + $0xb0] sm:$0xff] %v10669_v10  ;;  %v9700_v20 = vld [vmem:[%s14203_s3 + $0x20] sm:$0xff]   ;;  %v9702_v63 = vld [vmem:[%s14203_s3 + $0x28] sm:$0xff]  }
  0x1d   :  { %76 = vst [vmem:[#allocation4 + $0xb8] sm:$0xff] %v10669_v10  ;;  %9091 = vmatpush3.bf16.msra.mxu1 %v9694_v14  ;;  %v10828_v21 = vld [vmem:[%s14202_s2] ss:$0 sm:$0xff]  ;;  %v9703_v12 = vld [vmem:[%s14203_s3 + $0x70] sm:$0xff]  }
  0x1e   :  { %9092 = vmatprep.subr.bf16.mxu1 %v9695_v15 }
  0x20   :  { %9335 = vmatmul.mubr.msk.bf16.gmra.mrb[4].mxu0 %vm141_vm1, %v9686_v5 }
  0x21   :  { %9338 = vmatprep.mubr.msk.bf16.mxu0 %vm141_vm1, %v9687_v6  ;;  %9093 = vmatpush3.bf16.msra.mxu1 %v9696_v16 }
  0x22   :  { %9094 = vmatprep.subr.bf16.mxu1 %v9697_v17  ;;  %v9704_v17 = vld [vmem:[%s14203_s3 + $0x30] sm:$0xff]  }
  0x25   :  { %9095 = vmatpush3.bf16.msra.mxu1 %v9698_v18 }
  0x26   :  { %9096 = vmatprep.subr.bf16.mxu1 %v9699_v19 }
  0x28   :  { %9339 = vmatmul.mubr.msk.bf16.gmra.mrb[8].mxu0 %vm141_vm1, %v9688_v7 }
  0x29   :  { %9342 = vmatprep.mubr.msk.bf16.mxu0 %vm141_vm1, %v9689_v8  ;;  %9097 = vmatpush3.bf16.msra.mxu1 %v9700_v20 }
  0x2a   :  { %9098 = vmatprep.subr.bf16.mxu1 %v9701_v58 }
  0x2d   :  { %9099 = vmatpush3.bf16.msra.mxu1 %v9702_v63 }
  0x2e   :  { %9100 = vmatprep.subr.bf16.mxu1 %v9703_v12 }
  0x30   :  { %9343 = vmatmul.mubr.msk.bf16.gmra.mrb[12].mxu0 %vm141_vm1, %v9690_v9 }
  0x31   :  { %1562 = vmatprep.mubr.bf16.mxu0 %v10669_v10  ;;  %9101 = vmatpush3.bf16.msra.mxu1 %v9704_v17 }
  0xeb   :  { %v9332_v22 = vpop.f32.mrb[0].mxu0 }
  0xec   :  { %v213_v23 = vadd.f32 %v9332_v22, %v10828_v21  ;;  %v204_v24 = vpop.f32.mrb[1].mxu0 }
  0xed   :  { %v205_v25 = vadd.f32 %v10828_v21, %v204_v24  ;;  %v9333_v26 = vpop.f32.mrb[2].mxu0 }
  0xee   :  { %10315 = vtanh.f32 %v213_v23  ;;  %v216_v27 = vadd.f32 %v9333_v26, %v10828_v21  ;;  %v207_v28 = vpop.f32.mrb[3].mxu0 }
  0xef   :  { %10317 = vtanh.f32 %v205_v25  ;;  %v208_v29 = vadd.f32 %v10828_v21, %v207_v28  ;;  %v10872_v28 = vld [vmem:[#allocation2 + $0x28] sm:$0x1] }
  0xf0   :  { %10319 = vtanh.f32 %v216_v27 }
  0xf1   :  { %10321 = vtanh.f32 %v208_v29  ;;  %v9705_v29 = vld [vmem:[%s14203_s3 + $0x78] sm:$0xff]  }
  0xf2   :  { %9102 = vmatprep.subr.bf16.mxu1 %v9705_v29 }
  0xf3   :  { %v9336_v30 = vpop.f32.mrb[4].mxu0 }
  0xf4   :  { %v229_v31 = vadd.f32 %v9336_v30, %v10828_v21  ;;  %v220_v32 = vpop.f32.mrb[5].mxu0 }
  0xf5   :  { %v221_v33 = vadd.f32 %v10828_v21, %v220_v32  ;;  %v9337_v34 = vpop.f32.mrb[6].mxu0  ;;  %v9706_v32 = vld [vmem:[%s14203_s3 + $0x38] sm:$0xff]  }
  0xf6   :  { %10323 = vtanh.f32 %v229_v31  ;;  %v232_v35 = vadd.f32 %v9337_v34, %v10828_v21  ;;  %v223_v36 = vpop.f32.mrb[7].mxu0  ;;  %9103 = vmatpush3.bf16.msra.mxu1 %v9706_v32 }
  0xf7   :  { %10325 = vtanh.f32 %v221_v33  ;;  %v224_v37 = vadd.f32 %v10828_v21, %v223_v36 }
  0xf8   :  { %v10316_v38 = vpop.eup %10315  ;;  %10327 = vtanh.f32 %v232_v35 }
  0xf9   :  { %v10318_v39 = vpop.eup %10317  ;;  %10329 = vtanh.f32 %v224_v37 }
  0xfa   :  { %v10320_v40 = vpop.eup %10319 }
  0xfb   :  { %v10322_v41 = vpop.eup %10321  ;;  %v284_v42 = vpack.c.bf16 %v10320_v40, %v10316_v38  ;;  %v9340_v43 = vpop.f32.mrb[8].mxu0  ;;  %v447_v40 = vshrl.u32 %v10872_v28, 16 }
  0xfc   :  { %v283_v44 = vpack.c.bf16 %v10322_v41, %v10318_v39  ;;  %v245_v45 = vadd.f32 %v9340_v43, %v10828_v21  ;;  %v236_v46 = vpop.f32.mrb[9].mxu0  ;;  %v450_v41 = vshll.u32 %v10872_v28, 16 }
  0xfd   :  { %292 = vst.msk [vmem:[#allocation2 + $0x10] sm:$0xff] %vm60_vm2, %v284_v42  ;;  %v237_v47 = vadd.f32 %v10828_v21, %v236_v46  ;;  %v9341_v48 = vpop.f32.mrb[10].mxu0 }
  0xfe   :  { %291 = vst.msk [vmem:[#allocation2 + $0x8] sm:$0xff] %vm60_vm2, %v283_v44  ;;  %10331 = vtanh.f32 %v245_v45  ;;  %v248_v49 = vadd.f32 %v9341_v48, %v10828_v21  ;;  %v239_v50 = vpop.f32.mrb[11].mxu0 }
  0xff   :  { %10333 = vtanh.f32 %v237_v47  ;;  %v240_v51 = vadd.f32 %v10828_v21, %v239_v50 }
 0x100   :  { %v10324_v52 = vpop.eup %10323  ;;  %10335 = vtanh.f32 %v248_v49 }
 0x101   :  { %v10326_v53 = vpop.eup %10325  ;;  %10337 = vtanh.f32 %v240_v51 }
 0x102   :  { %v10328_v54 = vpop.eup %10327 }
 0x103   :  { %v10330_v55 = vpop.eup %10329  ;;  %v286_v56 = vpack.c.bf16 %v10328_v54, %v10324_v52  ;;  %v9344_v57 = vpop.f32.mrb[12].mxu0  ;;  %v452_v54 = vrot.slane %v450_v41, 2 }
 0x104   :  { %v285_v59 = vpack.c.bf16 %v10330_v55, %v10326_v53  ;;  %v261_v60 = vadd.f32 %v9344_v57, %v10828_v21  ;;  %v252_v61 = vpop.f32.mrb[13].mxu0  ;;  %v10848_v62 = vld [vmem:[#allocation2 + $0x10] sm:$0xff]  ;;  %v449_v53 = vrot.slane %v447_v40, 1 }
 0x105   :  { %294 = vst.msk [vmem:[#allocation2 + $0x20] sm:$0xff] %vm60_vm2, %v286_v56  ;;  %v253_v0 = vadd.f32 %v10828_v21, %v252_v61  ;;  %v9345_v1 = vpop.f32.mrb[14].mxu0  ;;  %v10855_v2 = vld [vmem:[#allocation2 + $0x8] sm:$0xff]  ;;  %v322_v4 = vshll.u32 %v10848_v62, 16  ;;  %v326_v5 = vshrl.u32 %v10848_v62, 16 }
 0x106   :  { %v311_v3 = vld [vmem:[#allocation2 + $0x8] sm:$0xfe]  ;;  %293 = vst.msk [vmem:[#allocation2 + $0x18] sm:$0xff] %vm60_vm2, %v285_v59  ;;  %10339 = vtanh.f32 %v261_v60  ;;  %v264_v6 = vadd.f32 %v9345_v1, %v10828_v21  ;;  %v255_v7 = vpop.f32.mrb[15].mxu0  ;;  %v315_v8 = vshll.u32 %v10855_v2, 16  ;;  %v318_v25 = vshrl.u32 %v10855_v2, 16 }
 0x107   :  { %10341 = vtanh.f32 %v253_v0  ;;  %v256_v9 = vadd.f32 %v10828_v21, %v255_v7  ;;  %v427_v10 = vshll.u32 %v311_v3, 16  ;;  %v430_v11 = vshrl.u32 %v311_v3, 16 }
 0x108   :  { %v10332_v13 = vpop.eup %10331  ;;  %10343 = vtanh.f32 %v264_v6  ;;  %v317_v14 = vrot.slane %v315_v8, 1  ;;  %v434_v15 = vrot.slane %v326_v5, 1  ;;  %v435_v16 = vrot.slane %v322_v4, 2 }
 0x109   :  { %v10334_v18 = vpop.eup %10333  ;;  %10345 = vtanh.f32 %v256_v9  ;;  %v429_v19 = vrot.slane %v427_v10, 2  ;;  %v432_v20 = vrot.slane %v430_v11, 1  ;;  %v324_v42 = vrot.slane %v322_v4, 1 }
 0x10a   :  { %v10336_v21 = vpop.eup %10335  ;;  %v436_v22 = vor.u32 %v435_v16, %v434_v15  ;;  %v320_v33 = vor.u32 %v318_v25, %v317_v14  ;;  %v453_v6 = vor.u32 %v452_v54, %v449_v53 }
 0x10b   :  { %v10338_v23 = vpop.eup %10337  ;;  %v288_v24 = vpack.c.bf16 %v10336_v21, %v10332_v13  ;;  %v9673_v26 = vpack.i.bf16 %v317_v14, %v429_v19  ;;  %v433_v27 = vor.u32 %v432_v20, %v429_v19  ;;  %v328_v57 = vor.u32 %v326_v5, %v324_v42 }
 0x10c   :  { %v287_v30 = vpack.c.bf16 %v10338_v23, %v10334_v18  ;;  %v10877_v31 = vld [vmem:[#allocation2 + $0x20] sm:$0xff]  ;;  %v325_v49 = vsel %vm313_vm4, %v320_v33, %v324_v42  ;;  %v10917_v23 = vld [vmem:[#allocation2 + $0x58] sm:$0x1] }
 0x10d   :  { %296 = vst.msk [vmem:[#allocation2 + $0x40] sm:$0xff] %vm60_vm2, %v288_v24  ;;  %9674 = vrot.lane.b32.xlu1 %v9673_v26, %s10670_s14  ;;  %v437_v34 = vsel %vm425_vm3, %v433_v27, %v436_v22  ;;  %v10885_v35 = vld [vmem:[#allocation2 + $0x18] sm:$0xff]  ;;  %v338_v36 = vshll.u32 %v10877_v31, 16  ;;  %v342_v37 = vshrl.u32 %v10877_v31, 16  ;;  %v479_v40 = vshll.u32 %v10917_v23, 16 }
 0x10e   :  { %295 = vst.msk [vmem:[#allocation2 + $0x38] sm:$0xff] %vm60_vm2, %v287_v30  ;;  %486 = vrot.lane.b32.xlu0 %v437_v34, %s10670_s14  ;;  %v330_v38 = vshll.u32 %v10885_v35, 16  ;;  %v334_v39 = vshrl.u32 %v10885_v35, 16 }
 0x10f   :  { %v442_v46 = vrot.slane %v342_v37, 1  ;;  %v443_v47 = vrot.slane %v338_v36, 2  ;;  %v340_v10 = vrot.slane %v338_v36, 1  ;;  %v476_v36 = vshrl.u32 %v10917_v23, 16 }
 0x110   :  { %v10340_v43 = vpop.eup %10339  ;;  %v438_v44 = vrot.slane %v334_v39, 1  ;;  %v439_v45 = vrot.slane %v330_v38, 2  ;;  %v332_v50 = vrot.slane %v330_v38, 1 }
 0x111   :  { %v10342_v48 = vpop.eup %10341  ;;  %v444_v60 = vor.u32 %v443_v47, %v442_v46  ;;  %v344_v24 = vor.u32 %v342_v37, %v340_v10  ;;  %v478_v46 = vrot.slane %v476_v36, 1  ;;  %v481_v47 = vrot.slane %v479_v40, 2 }
 0x112   :  { %v10344_v51 = vpop.eup %10343  ;;  %378 = vrot.lane.b32.xlu0 %v325_v49, %s10670_s14  ;;  %v440_v52 = vor.u32 %v439_v45, %v438_v44  ;;  %v333_v63 = vsel %vm313_vm4, %v328_v57, %v332_v50  ;;  %v336_v0 = vor.u32 %v334_v39, %v332_v50 }
 0x113   :  { %v10346_v55 = vpop.eup %10345  ;;  %v290_v56 = vpack.c.bf16 %v10344_v51, %v10340_v43  ;;  %v454_v25 = vsel %vm425_vm3, %v444_v60, %v453_v6  ;;  %v482_v54 = vor.u32 %v481_v47, %v478_v46 }
 0x114   :  { %v289_v58 = vpack.c.bf16 %v10346_v55, %v10342_v48  ;;  %v441_v59 = vsel %vm425_vm3, %v436_v22, %v440_v52  ;;  %v10900_v61 = vld [vmem:[#allocation2 + $0x40] sm:$0xff]  ;;  %v445_v14 = vsel %vm425_vm3, %v440_v52, %v444_v60  ;;  %v341_v18 = vsel %vm313_vm4, %v336_v0, %v340_v10 }
 0x115   :  { %298 = vst.msk [vmem:[#allocation2 + $0x50] sm:$0xff] %vm60_vm2, %v290_v56  ;;  %488 = vrot.lane.b32.xlu1 %v441_v59, %s10670_s14  ;;  %v10905_v1 = vld [vmem:[#allocation2 + $0x38] sm:$0xff]  ;;  %v353_v3 = vshll.u32 %v10900_v61, 16  ;;  %v357_v5 = vshrl.u32 %v10900_v61, 16  ;;  %v408_v59 = vrot.slane %v10848_v62, 1  ;;  %v407_v60 = vrot.slane %v10855_v2, 1 }
 0x116   :  { %v312_v4 = vld [vmem:[#allocation2 + $0x38] sm:$0xfe]  ;;  %297 = vst.msk [vmem:[#allocation2 + $0x48] sm:$0xff] %vm60_vm2, %v289_v58  ;;  %380 = vrot.lane.b32.xlu0 %v333_v63, %s10670_s14  ;;  %v346_v7 = vshll.u32 %v10905_v1, 16  ;;  %v349_v11 = vshrl.u32 %v10905_v1, 16 }
 0x117   :  { %v456_v8 = vshll.u32 %v312_v4, 16  ;;  %v459_v9 = vshrl.u32 %v312_v4, 16  ;;  %v463_v12 = vrot.slane %v357_v5, 1  ;;  %v464_v13 = vrot.slane %v353_v3, 2  ;;  %v299_v4 = vld [vmem:[#allocation2] sm:$0x80] }
 0x118   :  { %v348_v15 = vrot.slane %v346_v7, 1  ;;  %v355_v22 = vrot.slane %v353_v3, 1  ;;  %v409_v6 = vsel %vm406_vm5, %v407_v60, %v408_v59 }
 0x119   :  { %v458_v16 = vrot.slane %v456_v8, 2  ;;  %v461_v17 = vrot.slane %v459_v9, 1  ;;  %490 = vrot.lane.b32.xlu1 %v445_v14, %s10670_s14  ;;  %v465_v20 = vor.u32 %v464_v13, %v463_v12 }
 0x11a   :  { %382 = vrot.lane.b32.xlu0 %v341_v18, %s10670_s14  ;;  %v351_v21 = vor.u32 %v349_v11, %v348_v15  ;;  %v359_v49 = vor.u32 %v357_v5, %v355_v22  ;;  %v410_v11 = vrot.slane %v10885_v35, 1 }
 0x11b   :  { %v462_v19 = vor.u32 %v461_v17, %v458_v16  ;;  %v9678_v43 = vpack.i.bf16 %v348_v15, %v458_v16 }
 0x11c   :  { %v10920_v26 = vld [vmem:[#allocation2 + $0x50] sm:$0xff]  ;;  %v356_v37 = vsel %vm313_vm4, %v351_v21, %v355_v22  ;;  %v411_v21 = vsel %vm406_vm5, %v408_v59, %v410_v11 }
 0x11d   :  { %492 = vrot.lane.b32.xlu1 %v454_v25, %s10670_s14  ;;  %v10923_v27 = vld [vmem:[#allocation2 + $0x48] sm:$0xff]  ;;  %v369_v29 = vshll.u32 %v10920_v26, 16  ;;  %v373_v30 = vshrl.u32 %v10920_v26, 16  ;;  %v466_v32 = vsel %vm425_vm3, %v462_v19, %v465_v20 }
 0x11e   :  { %384 = vrot.lane.b32.xlu0 %v344_v24, %s10670_s14  ;;  %v361_v33 = vshll.u32 %v10923_v27, 16  ;;  %v365_v34 = vshrl.u32 %v10923_v27, 16  ;;  %v412_v24 = vrot.slane %v10877_v31, 1 }
 0x11f   :  { %v471_v38 = vrot.slane %v373_v30, 1  ;;  %v472_v39 = vrot.slane %v369_v29, 2  ;;  %v371_v52 = vrot.slane %v369_v29, 1 }
 0x120   :  { %v467_v41 = vrot.slane %v365_v34, 1  ;;  %v468_v42 = vrot.slane %v361_v33, 2  ;;  %v363_v50 = vrot.slane %v361_v33, 1 }
 0x121   :  { %496 = vrot.lane.b32.xlu1 %v466_v32, %s10670_s14  ;;  %v473_v45 = vor.u32 %v472_v39, %v471_v38  ;;  %v375_v58 = vor.u32 %v373_v30, %v371_v52 }
 0x122   :  { %388 = vrot.lane.b32.xlu0 %v356_v37, %s10670_s14  ;;  %v469_v44 = vor.u32 %v468_v42, %v467_v41  ;;  %v367_v51 = vor.u32 %v365_v34, %v363_v50  ;;  %v364_v55 = vsel %vm313_vm4, %v359_v49, %v363_v50  ;;  %v413_v41 = vsel %vm406_vm5, %v410_v11, %v412_v24 }
 0x123   :  { %v483_v57 = vsel %vm425_vm3, %v473_v45, %v482_v54 }
 0x124   :  { %v470_v48 = vsel %vm425_vm3, %v465_v20, %v469_v44  ;;  %v474_v53 = vsel %vm425_vm3, %v469_v44, %v473_v45  ;;  %v372_v56 = vsel %vm313_vm4, %v367_v51, %v371_v52 }
 0x125   :  { %9679 = vrot.lane.b32.xlu1 %v9678_v43, %s10670_s14  ;;  %v414_v43 = vrot.slane %v10872_v28, 1 }
 0x126   :  { %498 = vrot.lane.b32.xlu0 %v470_v48, %s10670_s14 }
 0x127   :  { %v415_v54 = vsel %vm406_vm5, %v412_v24, %v414_v43 }
 0x129   :  { %390 = vrot.lane.b32.xlu1 %v364_v55, %s10670_s14 }
 0x12a   :  { %500 = vrot.lane.b32.xlu0 %v474_v53, %s10670_s14 }
 0x12d   :  { %392 = vrot.lane.b32.xlu1 %v372_v56, %s10670_s14 }
 0x12e   :  { %502 = vrot.lane.b32.xlu0 %v483_v57, %s10670_s14 }
 0x131   :  { %394 = vrot.lane.b32.xlu1 %v375_v58, %s10670_s14 }
 0x17f   :  { %v9675_v63 = vpop.permute.xlu1 %9674 }
 0x180   :  { %v9677_v0 = vunpack.i.h.bf16 %v9675_v63  ;;  %v9676_v3 = vunpack.i.l.bf16 %v9675_v63  ;;  %v487_v5 = vpop.permute.xlu0 %486  ;;  %v416_v63 = vrot.slane %v10905_v1, 1 }
 0x181   :  { %v531_v7 = vsel %vm60_vm2, %v409_v6, %v487_v5 }
 0x182   :  { %v570_v8 = vshrl.u32 %v531_v7, 16  ;;  %v528_v9 = vsel %vm60_vm2, %v407_v60, %v9676_v3  ;;  %v506_v10 = vsel %vm60_vm2, %v299_v4, %v9677_v0  ;;  %v573_v14 = vshll.u32 %v531_v7, 16 }
 0x183   :  { %v567_v12 = vshrl.u32 %v528_v9, 16  ;;  %v557_v18 = vshrl.u32 %v506_v10, 16 }
 0x184   :  { %v572_v13 = vrot.slane %v570_v8, 7  ;;  %v379_v15 = vpop.permute.xlu0 %378 }
 0x185   :  { %v508_v16 = vsel %vm60_vm2, %v10855_v2, %v379_v15  ;;  %v569_v17 = vrot.slane %v567_v12, 7  ;;  %v559_v38 = vrot.slane %v557_v18, 7  ;;  %v419_v18 = vrot.slane %v10923_v27, 1 }
 0x186   :  { %v560_v19 = vshrl.u32 %v508_v16, 16  ;;  %v575_v20 = vor.u32 %v573_v14, %v572_v13  ;;  %v563_v29 = vshll.u32 %v508_v16, 16 }
 0x187   :  { %v489_v22 = vpop.permute.xlu1 %488 }
 0x188   :  { %v562_v25 = vrot.slane %v560_v19, 7  ;;  %v534_v30 = vsel %vm60_vm2, %v411_v21, %v489_v22  ;;  %v381_v32 = vpop.permute.xlu0 %380  ;;  %v576_v33 = vsel %vm556_vm6, %v569_v17, %v575_v20 }
 0x189   :  { %v584_v34 = vshrl.u32 %v534_v30, 16  ;;  %v510_v2 = vsel %vm60_vm2, %v10848_v62, %v381_v32  ;;  %857 = vmatprep.mubr.bf16.mxu1 %v576_v33  ;;  %v587_v40 = vshll.u32 %v534_v30, 16 }
 0x18a   :  { %v565_v36 = vor.u32 %v563_v29, %v562_v25  ;;  %v577_v37 = vshrl.u32 %v510_v2, 16  ;;  %v580_v50 = vshll.u32 %v510_v2, 16 }
 0x18b   :  { %v586_v39 = vrot.slane %v584_v34, 7  ;;  %v491_v42 = vpop.permute.xlu1 %490  ;;  %v304_v34 = vld [vmem:[#allocation2 + $0x30] sm:$0x80] }
 0x18c   :  { %v579_v44 = vrot.slane %v577_v37, 7  ;;  %v537_v45 = vsel %vm60_vm2, %v413_v41, %v491_v42  ;;  %v383_v46 = vpop.permute.xlu0 %382  ;;  %v566_v47 = vsel %vm556_vm6, %v559_v38, %v565_v36  ;;  %v421_v38 = vrot.slane %v10920_v26, 1 }
 0x18d   :  { %v589_v48 = vor.u32 %v587_v40, %v586_v39  ;;  %v598_v49 = vshrl.u32 %v537_v45, 16  ;;  %v512_v62 = vsel %vm60_vm2, %v10885_v35, %v383_v46  ;;  %858 = vmatmul.mubr.bf16.vlgmr.msra.gmra.mrb[0].mxu1 %v566_v47  ;;  %v601_v52 = vshll.u32 %v537_v45, 16 }
 0x18e   :  { %v582_v55 = vor.u32 %v580_v50, %v579_v44  ;;  %v591_v56 = vshrl.u32 %v512_v62, 16  ;;  %v417_v35 = vrot.slane %v10900_v61, 1  ;;  %v594_v9 = vshll.u32 %v512_v62, 16 }
 0x18f   :  { %v600_v51 = vrot.slane %v598_v49, 7  ;;  %v493_v53 = vpop.permute.xlu1 %492  ;;  %v590_v28 = vsel %vm556_vm6, %v572_v13, %v589_v48  ;;  %v422_v62 = vsel %vm406_vm5, %v419_v18, %v421_v38 }
 0x190   :  { %v385_v57 = vpop.permute.xlu0 %384  ;;  %v540_v58 = vsel %vm60_vm2, %v415_v54, %v493_v53  ;;  %865 = vmatprep.mubr.bf16.mxu1 %v590_v28  ;;  %v593_v4 = vrot.slane %v591_v56, 7  ;;  %v583_v5 = vsel %vm556_vm6, %v562_v25, %v582_v55  ;;  %v418_v11 = vsel %vm406_vm5, %v416_v63, %v417_v35 }
 0x191   :  { %v603_v59 = vor.u32 %v601_v52, %v600_v51  ;;  %v612_v60 = vshrl.u32 %v540_v58, 16  ;;  %v514_v6 = vsel %vm60_vm2, %v10877_v31, %v385_v57  ;;  %v615_v10 = vshll.u32 %v540_v58, 16 }
 0x192   :  { %v596_v13 = vor.u32 %v594_v9, %v593_v4  ;;  %v605_v14 = vshrl.u32 %v514_v6, 16  ;;  %v420_v24 = vsel %vm406_vm5, %v417_v35, %v419_v18  ;;  %v608_v32 = vshll.u32 %v514_v6, 16 }
 0x193   :  { %v497_v0 = vpop.permute.xlu1 %496  ;;  %v604_v3 = vsel %vm556_vm6, %v586_v39, %v603_v59  ;;  %v614_v7 = vrot.slane %v612_v60, 7  ;;  %v423_v58 = vrot.slane %v10917_v23, 1 }
 0x194   :  { %v389_v8 = vpop.permute.xlu0 %388  ;;  %v546_v15 = vsel %vm60_vm2, %v418_v11, %v497_v0  ;;  %v607_v21 = vrot.slane %v605_v14, 7  ;;  %v597_v22 = vsel %vm556_vm6, %v579_v44, %v596_v13 }
 0x195   :  { %866 = vmatmul.mubr.bf16.gmra.mrb[4].mxu1 %v583_v5  ;;  %v617_v17 = vor.u32 %v615_v10, %v614_v7  ;;  %v632_v19 = vshrl.u32 %v546_v15, 16  ;;  %v519_v2 = vsel %vm60_vm2, %v10905_v1, %v389_v8  ;;  %v635_v39 = vshll.u32 %v546_v15, 16 }
 0x196   :  { %873 = vmatprep.mubr.bf16.mxu1 %v604_v3  ;;  %v610_v37 = vor.u32 %v608_v32, %v607_v21  ;;  %v622_v43 = vshrl.u32 %v519_v2, 16  ;;  %v625_v54 = vshll.u32 %v519_v2, 16  ;;  %v424_v3 = vsel %vm406_vm5, %v421_v38, %v423_v58  ;;  %v9707_v32 = vld [vmem:[%s14206_s6 + $0x80] ss:$8 sps:$4 sm:$0xff]   ;;  %v9715_v2 = vld [vmem:[%s14206_s6 + $0xa4] ss:$8 sps:$4 sm:$0xff]  }
 0x197   :  { %v9680_v12 = vpop.permute.xlu1 %9679  ;;  %v618_v30 = vsel %vm556_vm6, %v600_v51, %v617_v17  ;;  %v634_v36 = vrot.slane %v632_v19, 7  ;;  %v9716_v38 = vld [vmem:[%s14206_s6 + $0xb0] ss:$8 sps:$4 sm:$0xff]  }
 0x198   :  { %v9681_v16 = vunpack.i.l.bf16 %v9680_v12  ;;  %v499_v20 = vpop.permute.xlu0 %498  ;;  %v9682_v25 = vunpack.i.h.bf16 %v9680_v12  ;;  %v611_v48 = vsel %vm556_vm6, %v593_v4, %v610_v37  ;;  %v624_v51 = vrot.slane %v622_v43, 7  ;;  %v9718_v37 = vld [vmem:[%s14206_s6 + $0xb4] ss:$8 sps:$4 sm:$0xff]   ;;  %v9727_v43 = vld [vmem:[%s14206_s6 + $0xe4] ss:$8 sps:$4 sm:$0xff]  }
 0x199   :  { %v549_v33 = vsel %vm60_vm2, %v420_v24, %v499_v20  ;;  %v637_v45 = vor.u32 %v635_v39, %v634_v36  ;;  %v9721_v39 = vld [vmem:[%s14206_s6 + $0xc4] ss:$8 sps:$4 sm:$0xff]  }
 0x19a   :  { %v543_v31 = vsel %vm60_vm2, %v416_v63, %v9681_v16  ;;  %v646_v40 = vshrl.u32 %v549_v33, 16  ;;  %v517_v41 = vsel %vm60_vm2, %v304_v34, %v9682_v25  ;;  %v649_v53 = vshll.u32 %v549_v33, 16  ;;  %v9712_v33 = vld [vmem:[%s14206_s6 + $0x94] ss:$8 sps:$4 sm:$0xff]   ;;  %v9710_v34 = vld [vmem:[%s14206_s6 + $0x90] ss:$8 sps:$4 sm:$0xff]  }
 0x19b   :  { %v629_v29 = vshrl.u32 %v543_v31, 16  ;;  %v391_v44 = vpop.permute.xlu1 %390  ;;  %v619_v47 = vshrl.u32 %v517_v41, 16  ;;  %v627_v59 = vor.u32 %v625_v54, %v624_v51  ;;  %v9724_v41 = vld [vmem:[%s14206_s6 + $0xd4] ss:$8 sps:$4 sm:$0xff]  }
 0x19c   :  { %v501_v46 = vpop.permute.xlu0 %500  ;;  %v648_v49 = vrot.slane %v646_v40, 7  ;;  %v521_v1 = vsel %vm60_vm2, %v10900_v61, %v391_v44  ;;  %v9719_v40 = vld [vmem:[%s14206_s6 + $0xc0] ss:$8 sps:$4 sm:$0xff]  }
 0x19d   :  { %874 = vmatmul.mubr.bf16.gmra.mrb[8].mxu1 %v597_v22  ;;  %v631_v42 = vrot.slane %v629_v29, 7  ;;  %v552_v52 = vsel %vm60_vm2, %v422_v62, %v501_v46  ;;  %v639_v28 = vshrl.u32 %v521_v1, 16  ;;  %v621_v55 = vrot.slane %v619_v47, 7  ;;  %v9725_v44 = vld [vmem:[%s14206_s6 + $0xe0] ss:$8 sps:$4 sm:$0xff]  }
 0x19e   :  { %881 = vmatprep.mubr.bf16.mxu1 %v618_v30  ;;  %v651_v56 = vor.u32 %v649_v53, %v648_v49  ;;  %v660_v57 = vshrl.u32 %v552_v52, 16  ;;  %v642_v6 = vshll.u32 %v521_v1, 16  ;;  %v663_v23 = vshll.u32 %v552_v52, 16  ;;  %v9709_v30 = vld [vmem:[%s14206_s6 + $0x84] ss:$8 sps:$4 sm:$0xff]  }
 0x19f   :  { %v638_v50 = vsel %vm556_vm6, %v631_v42, %v637_v45  ;;  %v393_v60 = vpop.permute.xlu1 %392  ;;  %v641_v35 = vrot.slane %v639_v28, 7  ;;  %v628_v61 = vsel %vm556_vm6, %v621_v55, %v627_v59  ;;  %1530 = vmatprep.subr.bf16.mxu0 %v9709_v30  ;;  %v9722_v42 = vld [vmem:[%s14206_s6 + $0xd0] ss:$8 sps:$4 sm:$0xff]   ;;  %v9730_v45 = vld [vmem:[%s14206_s6 + $0xf4] ss:$8 sps:$4 sm:$0xff]   ;;  %v922_v47 = vlaneseq }
 0x1a0   :  { %v503_v63 = vpop.permute.xlu0 %502  ;;  %v662_v0 = vrot.slane %v660_v57, 7  ;;  %v523_v4 = vsel %vm60_vm2, %v10923_v27, %v393_v60  ;;  %v652_v5 = vsel %vm556_vm6, %v634_v36, %v651_v56  ;;  %1531 = vmatpush1.bf16.msra.mxu0 %v9707_v32  ;;  %v9713_v36 = vld [vmem:[%s14206_s6 + $0xa0] ss:$8 sps:$4 sm:$0xff]   ;;  %v9728_v46 = vld [vmem:[%s14206_s6 + $0xf0] ss:$8 sps:$4 sm:$0xff]  }
 0x1a1   :  { %v555_v7 = vsel %vm60_vm2, %v424_v3, %v503_v63  ;;  %v644_v8 = vor.u32 %v642_v6, %v641_v35  ;;  %v653_v9 = vshrl.u32 %v523_v4, 16  ;;  %v656_v17 = vshll.u32 %v523_v4, 16  ;;  %1532 = vmatprep.subr.bf16.mxu0 %v9712_v33 }
 0x1a2   :  { %v665_v10 = vor.u32 %v663_v23, %v662_v0  ;;  %v674_v11 = vshrl.u32 %v555_v7, 16  ;;  %v677_v18 = vshll.u32 %v555_v7, 16 }
 0x1a3   :  { %v395_v12 = vpop.permute.xlu1 %394  ;;  %v655_v13 = vrot.slane %v653_v9, 7  ;;  %v645_v14 = vsel %vm556_vm6, %v624_v51, %v644_v8 }
 0x1a4   :  { %v676_v15 = vrot.slane %v674_v11, 7  ;;  %v525_v27 = vsel %vm60_vm2, %v10920_v26, %v395_v12  ;;  %v666_v16 = vsel %vm556_vm6, %v648_v49, %v665_v10  ;;  %1533 = vmatpush1.bf16.msra.mxu0 %v9710_v34  ;;  %v11061_v49 = vshrl.u32 %v922_v47, 7 }
 0x1a5   :  { %882 = vmatmul.mubr.bf16.gmra.mrb[12].mxu1 %v611_v48  ;;  %v658_v19 = vor.u32 %v656_v17, %v655_v13  ;;  %v667_v20 = vshrl.u32 %v525_v27, 16  ;;  %v670_v25 = vshll.u32 %v525_v27, 16  ;;  %1534 = vmatprep.subr.bf16.mxu0 %v9715_v2  ;;  %v9733_v48 = vld [vmem:[%s14206_s6 + $0x4] ss:$8 sps:$4 sm:$0xff]  }
 0x1a6   :  { %889 = vmatprep.mubr.bf16.mxu1 %v638_v50  ;;  %v679_v31 = vor.u32 %v677_v18, %v676_v15  ;;  %v11064_v62 = vadd.s32 8, %v11061_v49  ;;  %v943_v1 = vand.u32 1, %v11061_v49  ;;  %v11069_v53 = vadd.s32 16, %v11061_v49 }
 0x1a7   :  { %v669_v21 = vrot.slane %v667_v20, 7  ;;  %v659_v22 = vsel %vm556_vm6, %v641_v35, %v658_v19  ;;  %v11074_v56 = vadd.s32 24, %v11061_v49  ;;  %v11085_v6 = vadd.s32 32, %v11061_v49 }
 0x1a8   :  { %v680_v24 = vsel %vm556_vm6, %v662_v0, %v679_v31  ;;  %1535 = vmatpush1.bf16.msra.mxu0 %v9713_v36  ;;  %v950_v50 = vand.u32 1, %v11064_v62  ;;  %vm1131_vm7 = vcmp.eq.s32.totalorder %v943_v1, 0  ;;  %v957_v59 = vand.u32 1, %v11069_v53 }
 0x1a9   :  { %v672_v29 = vor.u32 %v670_v25, %v669_v21  ;;  %1536 = vmatprep.subr.bf16.mxu0 %v9718_v37  ;;  %v964_v0 = vand.u32 1, %v11074_v56  ;;  %v11090_v9 = vadd.s32 40, %v11061_v49  ;;  %v11101_v21 = vadd.s32 48, %v11061_v49 }
 0x1aa   :  { %vm1132_vm8 = vcmp.eq.s32.totalorder %v950_v50, 0  ;;  %vm1133_vm9 = vcmp.eq.s32.totalorder %v957_v59, 0  ;;  %v11122_v47 = vadd.s32 72, %v11061_v49 }
 0x1ab   :  { %v673_v26 = vsel %vm556_vm6, %v655_v13, %v672_v29  ;;  %vm1134_vm10 = vcmp.eq.s32.totalorder %v964_v0, 0  ;;  %14306 = vst [vmem:[#allocation11_spill] sm:$0xff] %v11090_v9  ;;  %v978_v18 = vand.u32 1, %v11090_v9  ;;  %14307 = vst [vmem:[#allocation12_spill] sm:$0xff] %v11101_v21  ;;  %v11106_v29 = vadd.s32 56, %v11061_v49 }
 0x1ac   :  { %1537 = vmatpush1.bf16.msra.mxu0 %v9716_v38  ;;  %v985_v34 = vand.u32 1, %v11101_v21  ;;  %14310 = vst [vmem:[#allocation15_spill] sm:$0xff] %v11122_v47  ;;  %v11133_v0 = vadd.s32 80, %v11061_v49 }
 0x1ad   :  { %890 = vmatmul.mubr.bf16.gmra.mrb[16].mxu1 %v628_v61  ;;  %1538 = vmatprep.subr.bf16.mxu0 %v9721_v39  ;;  %vm1136_vm12 = vcmp.eq.s32.totalorder %v978_v18, 0  ;;  %14308 = vst [vmem:[#allocation13_spill] sm:$0xff] %v11106_v29  ;;  %v992_v39 = vand.u32 1, %v11106_v29 }
 0x1ae   :  { %897 = vmatprep.mubr.bf16.mxu1 %v652_v5  ;;  %vm1137_vm13 = vcmp.eq.s32.totalorder %v985_v34, 0  ;;  %14311 = vst [vmem:[#allocation16_spill] sm:$0xff] %v11133_v0 }
 0x1af   :  { %vm1138_vm14 = vcmp.eq.s32.totalorder %v992_v39, 0 }
 0x1b0   :  { %1539 = vmatpush1.bf16.msra.mxu0 %v9719_v40 }
 0x1b1   :  { %1540 = vmatprep.subr.bf16.mxu0 %v9724_v41 }
 0x1b4   :  { %1541 = vmatpush1.bf16.msra.mxu0 %v9722_v42 }
 0x1b5   :  { %898 = vmatmul.mubr.bf16.gmra.mrb[20].mxu1 %v645_v14  ;;  %1542 = vmatprep.subr.bf16.mxu0 %v9727_v43  ;;  %v971_v14 = vand.u32 1, %v11085_v6  ;;  %v11117_v43 = vadd.s32 64, %v11061_v49 }
 0x1b6   :  { %905 = vmatprep.mubr.bf16.mxu1 %v666_v16 }
 0x1b7   :  { %vm1135_vm11 = vcmp.eq.s32.totalorder %v971_v14, 0  ;;  %14309 = vst [vmem:[#allocation14_spill] sm:$0xff] %v11117_v43  ;;  %v1013_v14 = vand.u32 1, %v11133_v0 }
 0x1b8   :  { %1543 = vmatpush1.bf16.msra.mxu0 %v9725_v44 }
 0x1b9   :  { %1544 = vmatprep.subr.bf16.mxu0 %v9730_v45  ;;  %vm1141_vm2 = vcmp.eq.s32.totalorder %v1013_v14, 0 }
 0x1bc   :  { %1545 = vmatpush1.bf16.msra.mxu0 %v9728_v46 }
 0x1bd   :  { %906 = vmatmul.mubr.bf16.gmra.mrb[24].mxu1 %v659_v22  ;;  %1723 = vmatprep.subr.bf16.mxu0 %v9733_v48 }
 0x1be   :  { %913 = vmatprep.mubr.bf16.mxu1 %v680_v24 }
 0x1c5   :  { %914 = vmatmul.mubr.bf16.gmra.mrb[28].mxu1 %v673_v26 }
 0x260   :  { %v9104_v51 = vpop.f32.mrb[0].mxu1 }
 0x261   :  { %v9105_v52 = vpop.f32.mrb[1].mxu1 }
 0x262   :  { %v11071_v54 = vadd.f32 %v9105_v52, %v9104_v51  ;;  %v9107_v28 = vpop.f32.mrb[2].mxu1  ;;  %v999_v52 = vand.u32 1, %v11117_v43 }
 0x263   :  { %v9108_v55 = vpop.f32.mrb[3].mxu1 }
 0x264   :  { %v1179_v57 = vsel %vm1131_vm7, %v11071_v54, 0.0  ;;  %v11077_v58 = vadd.f32 %v9108_v55, %v9107_v28  ;;  %vm1139_vm15 = vcmp.eq.s32.totalorder %v999_v52, 0 }
 0x265   :  { %v1216_v63 = vmul.f32 %v11071_v54, %v1179_v57 }
 0x266   :  { %v1180_v60 = vsel %vm1132_vm8, %v11077_v58, 0.0 }
 0x267   :  { %v1195_v35 = vadd.f32 %v1180_v60, %v1179_v57  ;;  %v1217_v61 = vmul.f32 %v11077_v58, %v1180_v60  ;;  %v1006_v60 = vand.u32 1, %v11122_v47 }
 0x268   :  { %v9110_v3 = vpop.f32.mrb[4].mxu1 }
 0x269   :  { %v1232_v4 = vadd.f32 %v1217_v61, %v1216_v63  ;;  %v9111_v5 = vpop.f32.mrb[5].mxu1  ;;  %vm1140_vm1 = vcmp.eq.s32.totalorder %v1006_v60, 0 }
 0x26a   :  { %v11087_v7 = vadd.f32 %v9111_v5, %v9110_v3  ;;  %v9113_v23 = vpop.f32.mrb[6].mxu1 }
 0x26b   :  { %v9114_v8 = vpop.f32.mrb[7].mxu1 }
 0x26c   :  { %v1181_v10 = vsel %vm1133_vm9, %v11087_v7, 0.0  ;;  %v11093_v11 = vadd.f32 %v9114_v8, %v9113_v23  ;;  %v11138_v23 = vadd.s32 88, %v11061_v49  ;;  %vm1389_vm9 = vcmask 1040384  }
 0x26d   :  { %v1196_v12 = vadd.f32 %v1195_v35, %v1181_v10  ;;  %v1218_v13 = vmul.f32 %v11087_v7, %v1181_v10 }
 0x26e   :  { %v1182_v15 = vsel %vm1134_vm10, %v11093_v11, 0.0  ;;  %14312 = vst [vmem:[#allocation17_spill] sm:$0xff] %v11138_v23  ;;  %v1020_v18 = vand.u32 1, %v11138_v23  ;;  %vm2131_vm10 = vcmask 1045504  }
 0x26f   :  { %v1233_v27 = vadd.f32 %v1232_v4, %v1218_v13  ;;  %v1197_v16 = vadd.f32 %v1196_v12, %v1182_v15  ;;  %v1219_v17 = vmul.f32 %v11093_v11, %v1182_v15 }
 0x270   :  { %v9116_v19 = vpop.f32.mrb[8].mxu1  ;;  %vm1142_vm3 = vcmp.eq.s32.totalorder %v1020_v18, 0 }
 0x271   :  { %v1234_v20 = vadd.f32 %v1233_v27, %v1219_v17  ;;  %v9117_v31 = vpop.f32.mrb[9].mxu1 }
 0x272   :  { %v11103_v22 = vadd.f32 %v9117_v31, %v9116_v19  ;;  %v9119_v24 = vpop.f32.mrb[10].mxu1 }
 0x273   :  { %v9120_v25 = vpop.f32.mrb[11].mxu1 }
 0x274   :  { %v1183_v26 = vsel %vm1135_vm11, %v11103_v22, 0.0  ;;  %v11109_v30 = vadd.f32 %v9120_v25, %v9119_v24  ;;  %v11149_v24 = vadd.s32 96, %v11061_v49 }
 0x275   :  { %v1198_v32 = vadd.f32 %v1197_v16, %v1183_v26  ;;  %v1220_v33 = vmul.f32 %v11103_v22, %v1183_v26 }
 0x276   :  { %v1184_v2 = vsel %vm1136_vm12, %v11109_v30, 0.0  ;;  %14313 = vst [vmem:[#allocation18_spill] sm:$0xff] %v11149_v24 }
 0x277   :  { %v1235_v36 = vadd.f32 %v1234_v20, %v1220_v33  ;;  %v1199_v37 = vadd.f32 %v1198_v32, %v1184_v2  ;;  %v1221_v38 = vmul.f32 %v11109_v30, %v1184_v2  ;;  %v11154_v33 = vadd.s32 104, %v11061_v49 }
 0x278   :  { %v9122_v40 = vpop.f32.mrb[12].mxu1 }
 0x279   :  { %v1236_v41 = vadd.f32 %v1235_v36, %v1221_v38  ;;  %v9123_v42 = vpop.f32.mrb[13].mxu1  ;;  %14314 = vst [vmem:[#allocation19_spill] sm:$0xff] %v11154_v33  ;;  %v1027_v38 = vand.u32 1, %v11149_v24 }
 0x27a   :  { %v11119_v44 = vadd.f32 %v9123_v42, %v9122_v40  ;;  %v9125_v45 = vpop.f32.mrb[14].mxu1 }
 0x27b   :  { %v9126_v46 = vpop.f32.mrb[15].mxu1  ;;  %vm1143_vm4 = vcmp.eq.s32.totalorder %v1027_v38, 0 }
 0x27c   :  { %v1185_v48 = vsel %vm1137_vm13, %v11119_v44, 0.0  ;;  %v11125_v1 = vadd.f32 %v9126_v46, %v9125_v45  ;;  %v1034_v45 = vand.u32 1, %v11154_v33 }
 0x27d   :  { %v1200_v50 = vadd.f32 %v1199_v37, %v1185_v48  ;;  %v1222_v51 = vmul.f32 %v11119_v44, %v1185_v48 }
 0x27e   :  { %v1186_v28 = vsel %vm1138_vm14, %v11125_v1, 0.0  ;;  %vm1144_vm6 = vcmp.eq.s32.totalorder %v1034_v45, 0 }
 0x27f   :  { %v1237_v55 = vadd.f32 %v1236_v41, %v1222_v51  ;;  %v1201_v57 = vadd.f32 %v1200_v50, %v1186_v28  ;;  %v1223_v59 = vmul.f32 %v11125_v1, %v1186_v28  ;;  %v11165_v51 = vadd.s32 112, %v11061_v49 }
 0x280   :  { %v9128_v63 = vpop.f32.mrb[16].mxu1 }
 0x281   :  { %v1238_v35 = vadd.f32 %v1237_v55, %v1223_v59  ;;  %v9129_v61 = vpop.f32.mrb[17].mxu1  ;;  %14315 = vst [vmem:[#allocation20_spill] sm:$0xff] %v11165_v51 }
 0x282   :  { %v11135_v3 = vadd.f32 %v9129_v61, %v9128_v63  ;;  %v9131_v4 = vpop.f32.mrb[18].mxu1  ;;  %v1041_v61 = vand.u32 1, %v11165_v51 }
 0x283   :  { %v9132_v5 = vpop.f32.mrb[19].mxu1 }
 0x284   :  { %v1187_v8 = vsel %vm1139_vm15, %v11135_v3, 0.0  ;;  %v11141_v10 = vadd.f32 %v9132_v5, %v9131_v4  ;;  %vm1145_vm7 = vcmp.eq.s32.totalorder %v1041_v61, 0 }
 0x285   :  { %v1202_v12 = vadd.f32 %v1201_v57, %v1187_v8  ;;  %v1224_v13 = vmul.f32 %v11135_v3, %v1187_v8  ;;  %v11170_v57 = vadd.s32 120, %v11061_v49 }
 0x286   :  { %v1188_v15 = vsel %vm1140_vm1, %v11141_v10, 0.0 }
 0x287   :  { %v1239_v27 = vadd.f32 %v1238_v35, %v1224_v13  ;;  %v1203_v16 = vadd.f32 %v1202_v12, %v1188_v15  ;;  %v1225_v17 = vmul.f32 %v11141_v10, %v1188_v15  ;;  %14316 = vst [vmem:[#allocation21_spill] sm:$0xff] %v11170_v57  ;;  %v1048_v13 = vand.u32 1, %v11170_v57 }
 0x288   :  { %v9134_v19 = vpop.f32.mrb[20].mxu1 }
 0x289   :  { %v1240_v20 = vadd.f32 %v1239_v27, %v1225_v17  ;;  %v9135_v31 = vpop.f32.mrb[21].mxu1  ;;  %vm1146_vm8 = vcmp.eq.s32.totalorder %v1048_v13, 0 }
 0x28a   :  { %v11151_v25 = vadd.f32 %v9135_v31, %v9134_v19  ;;  %v9137_v26 = vpop.f32.mrb[22].mxu1 }
 0x28b   :  { %v9138_v32 = vpop.f32.mrb[23].mxu1 }
 0x28c   :  { %v1189_v34 = vsel %vm1141_vm2, %v11151_v25, 0.0  ;;  %v11157_v2 = vadd.f32 %v9138_v32, %v9137_v26 }
 0x28d   :  { %v1204_v36 = vadd.f32 %v1203_v16, %v1189_v34  ;;  %v1226_v37 = vmul.f32 %v11151_v25, %v1189_v34 }
 0x28e   :  { %v1190_v39 = vsel %vm1142_vm3, %v11157_v2, 0.0 }
 0x28f   :  { %v1241_v40 = vadd.f32 %v1240_v20, %v1226_v37  ;;  %v1205_v41 = vadd.f32 %v1204_v36, %v1190_v39  ;;  %v1227_v42 = vmul.f32 %v11157_v2, %v1190_v39 }
 0x290   :  { %v9140_v46 = vpop.f32.mrb[24].mxu1 }
 0x291   :  { %v1242_v48 = vadd.f32 %v1241_v40, %v1227_v42  ;;  %v9141_v50 = vpop.f32.mrb[25].mxu1 }
 0x292   :  { %v11167_v52 = vadd.f32 %v9141_v50, %v9140_v46  ;;  %v9143_v28 = vpop.f32.mrb[26].mxu1 }
 0x293   :  { %v9144_v55 = vpop.f32.mrb[27].mxu1 }
 0x294   :  { %v1191_v59 = vsel %vm1143_vm4, %v11167_v52, 0.0  ;;  %v11173_v60 = vadd.f32 %v9144_v55, %v9143_v28 }
 0x295   :  { %v1206_v63 = vadd.f32 %v1205_v41, %v1191_v59  ;;  %v1228_v35 = vmul.f32 %v11167_v52, %v1191_v59 }
 0x296   :  { %v1192_v4 = vsel %vm1144_vm6, %v11173_v60, 0.0 }
 0x297   :  { %v1243_v5 = vadd.f32 %v1242_v48, %v1228_v35  ;;  %v1207_v8 = vadd.f32 %v1206_v63, %v1192_v4  ;;  %v1229_v12 = vmul.f32 %v11173_v60, %v1192_v4 }
 0x298   :  { %v9146_v14 = vpop.f32.mrb[28].mxu1 }
 0x299   :  { %v1244_v15 = vadd.f32 %v1243_v5, %v1229_v12  ;;  %v9147_v27 = vpop.f32.mrb[29].mxu1 }
 0x29a   :  { %v9148_v16 = vadd.f32 %v9147_v27, %v9146_v14  ;;  %v9149_v17 = vpop.f32.mrb[30].mxu1 }
 0x29b   :  { %v9150_v18 = vpop.f32.mrb[31].mxu1 }
 0x29c   :  { %v1193_v19 = vsel %vm1145_vm7, %v9148_v16, 0.0  ;;  %v9151_v20 = vadd.f32 %v9150_v18, %v9149_v17 }
 0x29d   :  { %v1208_v31 = vadd.f32 %v1207_v8, %v1193_v19  ;;  %v1230_v26 = vmul.f32 %v9148_v16, %v1193_v19 }
 0x29e   :  { %v1194_v32 = vsel %vm1146_vm8, %v9151_v20, 0.0 }
 0x29f   :  { %v1245_v34 = vadd.f32 %v1244_v15, %v1230_v26  ;;  %v1209_v36 = vadd.f32 %v1208_v31, %v1194_v32  ;;  %v1231_v37 = vmul.f32 %v9151_v20, %v1194_v32 }
 0x2a1   :  { %v1210_v38 = vrot.slane %v1209_v36, 4  ;;  %v1246_v39 = vadd.f32 %v1245_v34, %v1231_v37 }
 0x2a3   :  { %v1211_v40 = vadd.f32 %v1210_v38, %v1209_v36  ;;  %v1247_v41 = vrot.slane %v1246_v39, 4 }
 0x2a5   :  { %v1212_v42 = vrot.slane %v1211_v40, 2  ;;  %v1248_v45 = vadd.f32 %v1247_v41, %v1246_v39 }
 0x2a7   :  { %v1213_v46 = vadd.f32 %v1212_v42, %v1211_v40  ;;  %v1249_v48 = vrot.slane %v1248_v45, 2 }
 0x2a9   :  { %v1214_v50 = vrot.slane %v1213_v46, 1  ;;  %v1250_v28 = vadd.f32 %v1249_v48, %v1248_v45 }
 0x2ab   :  { %v1215_v55 = vadd.f32 %v1214_v50, %v1213_v46  ;;  %v1251_v59 = vrot.slane %v1250_v28, 1 }
 0x2ad   :  { %v1252_v63 = vadd.f32 %v1251_v59, %v1250_v28  ;;  %v11180_v35 = vmul.f32 0.015625, %v1215_v55 }
 0x2af   :  { %v1254_v61 = vmul.f32 0.015625, %v1252_v63  ;;  %v1255_v4 = vmul.f32 %v11180_v35, %v11180_v35  ;;  %v1271_v5 = vsub.f32 %v9148_v16, %v11180_v35  ;;  %v1272_v8 = vsub.f32 %v9151_v20, %v11180_v35 }
 0x2b0   :  { %v1257_v12 = vsub.f32 %v11071_v54, %v11180_v35  ;;  %v1258_v13 = vsub.f32 %v11077_v58, %v11180_v35  ;;  %v1259_v14 = vsub.f32 %v11087_v7, %v11180_v35  ;;  %v1260_v15 = vsub.f32 %v11093_v11, %v11180_v35 }
 0x2b1   :  { %v1256_v27 = vsub.f32 %v1254_v61, %v1255_v4  ;;  %v1261_v17 = vsub.f32 %v11103_v22, %v11180_v35  ;;  %v1262_v16 = vsub.f32 %v11109_v30, %v11180_v35  ;;  %v1263_v18 = vsub.f32 %v11119_v44, %v11180_v35 }
 0x2b2   :  { %v1264_v54 = vsub.f32 %v11125_v1, %v11180_v35  ;;  %v1265_v58 = vsub.f32 %v11135_v3, %v11180_v35  ;;  %v1266_v7 = vsub.f32 %v11141_v10, %v11180_v35  ;;  %v1267_v11 = vsub.f32 %v11151_v25, %v11180_v35  ;;  %v8629_v3 = vld [vmem:[%s14204_s4] ss:$0 sm:$0xff] }
 0x2b3   :  { %v1273_v19 = vadd.f32 1e-05, %v1256_v27  ;;  %v1268_v22 = vsub.f32 %v11157_v2, %v11180_v35  ;;  %v1269_v30 = vsub.f32 %v11167_v52, %v11180_v35  ;;  %v1270_v44 = vsub.f32 %v11173_v60, %v11180_v35  ;;  %v8630_v2 = vld [vmem:[%s14205_s5] ss:$0 sm:$0xff] }
 0x2b5   :  { %10347 = vrsqrt.f32 %v1273_v19 }
 0x2bf   :  { %v10348_v1 = vpop.eup %10347 }
 0x2c0   :  { %v1289_v10 = vmul.f32 %v10348_v1, %v1271_v5  ;;  %v1290_v20 = vmul.f32 %v10348_v1, %v1272_v8  ;;  %v1275_v31 = vmul.f32 %v10348_v1, %v1257_v12  ;;  %v1276_v25 = vmul.f32 %v10348_v1, %v1258_v13 }
 0x2c1   :  { %v1277_v26 = vmul.f32 %v10348_v1, %v1259_v14  ;;  %v1278_v32 = vmul.f32 %v10348_v1, %v1260_v15  ;;  %v1279_v52 = vmul.f32 %v10348_v1, %v1261_v17  ;;  %v1280_v34 = vmul.f32 %v10348_v1, %v1262_v16 }
 0x2c2   :  { %v1312_v36 = vmul.f32 %v8629_v3, %v1289_v10  ;;  %v1313_v60 = vmul.f32 %v8629_v3, %v1290_v20  ;;  %v1298_v37 = vmul.f32 %v8629_v3, %v1275_v31  ;;  %v1299_v38 = vmul.f32 %v8629_v3, %v1276_v25 }
 0x2c3   :  { %v1300_v39 = vmul.f32 %v8629_v3, %v1277_v26  ;;  %v1301_v40 = vmul.f32 %v8629_v3, %v1278_v32  ;;  %v1302_v41 = vmul.f32 %v8629_v3, %v1279_v52  ;;  %v1303_v48 = vmul.f32 %v8629_v3, %v1280_v34 }
 0x2c4   :  { %v1335_v42 = vadd.f32 %v8630_v2, %v1312_v36  ;;  %v1336_v45 = vadd.f32 %v8630_v2, %v1313_v60  ;;  %v1321_v46 = vadd.f32 %v8630_v2, %v1298_v37  ;;  %v1322_v50 = vadd.f32 %v8630_v2, %v1299_v38  ;;  %v9736_v60 = vld [vmem:[%s14206_s6 + $0x14] ss:$8 sps:$4 sm:$0xff]  }
 0x2c5   :  { %v1323_v28 = vadd.f32 %v8630_v2, %v1300_v39  ;;  %v1324_v55 = vadd.f32 %v8630_v2, %v1301_v40  ;;  %v1325_v59 = vadd.f32 %v8630_v2, %v1302_v41  ;;  %v1281_v63 = vmul.f32 %v10348_v1, %v1263_v18  ;;  %v11236_v41 = vld [vmem:[#allocation3] sm:$0xff] }
 0x2c6   :  { %10349 = vtanh.f32 %v1335_v42  ;;  %v1282_v35 = vmul.f32 %v10348_v1, %v1264_v54  ;;  %v1283_v61 = vmul.f32 %v10348_v1, %v1265_v58  ;;  %v1284_v4 = vmul.f32 %v10348_v1, %v1266_v7  ;;  %v9734_v42 = vld [vmem:[%s14206_s6 + $0x10] ss:$8 sps:$4 sm:$0xff]  }
 0x2c7   :  { %10351 = vtanh.f32 %v1336_v45  ;;  %v1285_v5 = vmul.f32 %v10348_v1, %v1267_v11  ;;  %v1286_v8 = vmul.f32 %v10348_v1, %v1268_v22  ;;  %v1304_v12 = vmul.f32 %v8629_v3, %v1281_v63 }
 0x2c8   :  { %10353 = vtanh.f32 %v1321_v46  ;;  %v1305_v13 = vmul.f32 %v8629_v3, %v1282_v35  ;;  %v1306_v14 = vmul.f32 %v8629_v3, %v1283_v61  ;;  %v1326_v15 = vadd.f32 %v8630_v2, %v1303_v48  ;;  %v9739_v48 = vld [vmem:[%s14206_s6 + $0x24] ss:$8 sps:$4 sm:$0xff]  }
 0x2c9   :  { %10355 = vtanh.f32 %v1322_v50  ;;  %v1307_v27 = vmul.f32 %v8629_v3, %v1284_v4  ;;  %v1327_v17 = vadd.f32 %v8630_v2, %v1304_v12  ;;  %v1308_v16 = vmul.f32 %v8629_v3, %v1285_v5  ;;  %v9737_v12 = vld [vmem:[%s14206_s6 + $0x20] ss:$8 sps:$4 sm:$0xff]  }
 0x2ca   :  { %10357 = vtanh.f32 %v1323_v28  ;;  %v1328_v19 = vadd.f32 %v8630_v2, %v1305_v13  ;;  %v1309_v10 = vmul.f32 %v8629_v3, %v1286_v8  ;;  %v1329_v18 = vadd.f32 %v8630_v2, %v1306_v14 }
 0x2cb   :  { %10359 = vtanh.f32 %v1324_v55  ;;  %v1287_v54 = vmul.f32 %v10348_v1, %v1269_v30  ;;  %v1288_v58 = vmul.f32 %v10348_v1, %v1270_v44  ;;  %v1330_v7 = vadd.f32 %v8630_v2, %v1307_v27  ;;  %v9731_v44 = vld [vmem:[%s14206_s6] ss:$8 sps:$4 sm:$0xff]  }
 0x2cc   :  { %10361 = vtanh.f32 %v1325_v59  ;;  %v1331_v11 = vadd.f32 %v8630_v2, %v1308_v16  ;;  %v1332_v31 = vadd.f32 %v8630_v2, %v1309_v10 }
 0x2cd   :  { %10363 = vtanh.f32 %v1326_v15  ;;  %v1310_v22 = vmul.f32 %v8629_v3, %v1287_v54  ;;  %v1311_v20 = vmul.f32 %v8629_v3, %v1288_v58  ;;  %v9742_v15 = vld [vmem:[%s14206_s6 + $0x34] ss:$8 sps:$4 sm:$0xff]  }
 0x2ce   :  { %10365 = vtanh.f32 %v1327_v17 }
 0x2cf   :  { %10367 = vtanh.f32 %v1328_v19  ;;  %v1333_v26 = vadd.f32 %v8630_v2, %v1310_v22  ;;  %v1334_v52 = vadd.f32 %v8630_v2, %v1311_v20  ;;  %v9740_v20 = vld [vmem:[%s14206_s6 + $0x30] ss:$8 sps:$4 sm:$0xff]  }
 0x2d0   :  { %v10350_v25 = vpop.eup %10349  ;;  %10369 = vtanh.f32 %v1329_v18 }
 0x2d1   :  { %v10352_v32 = vpop.eup %10351  ;;  %10371 = vtanh.f32 %v1330_v7 }
 0x2d2   :  { %v10354_v34 = vpop.eup %10353  ;;  %v11220_v36 = vpack.c.bf16 %v10352_v32, %v10350_v25  ;;  %10373 = vtanh.f32 %v1331_v11 }
 0x2d3   :  { %v10356_v30 = vpop.eup %10355  ;;  %10375 = vtanh.f32 %v1332_v31 }
 0x2d4   :  { %v10358_v1 = vpop.eup %10357  ;;  %1368 = vst [vmem:[#allocation3 + $0x50] sm:$0xff] %v11220_v36  ;;  %v11226_v3 = vpack.c.bf16 %v10356_v30, %v10354_v34  ;;  %10377 = vtanh.f32 %v1333_v26  ;;  %v9745_v26 = vld [vmem:[%s14206_s6 + $0x44] ss:$8 sps:$4 sm:$0xff]   ;;  %v1870_v30 = vrot.slane %v11220_v36, 1 }
 0x2d5   :  { %v10360_v2 = vpop.eup %10359  ;;  %10379 = vtanh.f32 %v1334_v52 }
 0x2d6   :  { %v10362_v37 = vpop.eup %10361  ;;  %1361 = vst [vmem:[#allocation3 + $0x8] sm:$0xff] %v11226_v3  ;;  %v1391_v38 = vrot.slane %v11226_v3, 7  ;;  %1563 = vmatmul.mubr.bf16.vlgmr.msra.gmra.mrb[16].mxu0 %v11226_v3  ;;  %v11234_v39 = vpack.c.bf16 %v10360_v2, %v10358_v1  ;;  %v2146_v1 = vrot.slane %v11220_v36, 2  ;;  %v9761_v3 = vld [vmem:[%s14206_s6 + $0x120] ss:$8 sps:$4 sm:$0xff]  }
 0x2d7   :  { %v10364_v40 = vpop.eup %10363  ;;  %1724 = vmatpush1.bf16.msra.mxu0 %v9731_v44  ;;  %1572 = vmatprep.mubr.bf16.mxu0 %v11236_v41 }
 0x2d8   :  { %v10366_v45 = vpop.eup %10365  ;;  %1725 = vmatprep.subr.bf16.mxu0 %v9736_v60  ;;  %v1393_v46 = vrot.slane %v11234_v39, 7  ;;  %v11246_v50 = vpack.c.bf16 %v10364_v40, %v10362_v37  ;;  %v1857_v28 = vrot.slane %v11234_v39, 1  ;;  %v2133_v59 = vrot.slane %v11234_v39, 2 }
 0x2d9   :  { %v10368_v55 = vpop.eup %10367 }
 0x2da   :  { %v10370_v63 = vpop.eup %10369  ;;  %v1395_v35 = vrot.slane %v11246_v50, 7  ;;  %v11251_v61 = vpack.c.bf16 %v10368_v55, %v10366_v45  ;;  %v11256_v4 = vsel %vm1389_vm9, %v1391_v38, %v1393_v46  ;;  %v1859_v5 = vrot.slane %v11246_v50, 1  ;;  %v9748_v45 = vld [vmem:[%s14206_s6 + $0x54] ss:$8 sps:$4 sm:$0xff]  }
 0x2db   :  { %v10372_v8 = vpop.eup %10371  ;;  %1726 = vmatpush1.bf16.msra.mxu0 %v9734_v42  ;;  %v2135_v13 = vrot.slane %v11246_v50, 2  ;;  %v9743_v42 = vld [vmem:[%s14206_s6 + $0x40] ss:$8 sps:$4 sm:$0xff]  }
 0x2dc   :  { %v10374_v14 = vpop.eup %10373  ;;  %1727 = vmatprep.subr.bf16.mxu0 %v9739_v48  ;;  %1364 = vst [vmem:[#allocation3 + $0x20] sm:$0xff] %v11251_v61  ;;  %v11267_v27 = vpack.c.bf16 %v10372_v8, %v10370_v63  ;;  %v11272_v17 = vsel %vm1389_vm9, %v1393_v46, %v1395_v35  ;;  %v11277_v16 = vsel %vm406_vm5, %v1857_v28, %v1859_v5  ;;  %v1861_v10 = vrot.slane %v11251_v61, 1  ;;  %v9746_v8 = vld [vmem:[%s14206_s6 + $0x50] ss:$8 sps:$4 sm:$0xff]  }
 0x2dd   :  { %v10376_v19 = vpop.eup %10375  ;;  %v11283_v18 = vsel %vm2131_vm10, %v2133_v59, %v2135_v13  ;;  %v2137_v54 = vrot.slane %v11251_v61, 2 }
 0x2de   :  { %v10378_v58 = vpop.eup %10377  ;;  %1573 = vmatmul.mubr.bf16.gmra.mrb[20].mxu0 %v11234_v39  ;;  %1365 = vst [vmem:[#allocation3 + $0x38] sm:$0xff] %v11267_v27  ;;  %v1400_v7 = vrot.slane %v11267_v27, 7  ;;  %v11289_v11 = vpack.c.bf16 %v10376_v19, %v10374_v14  ;;  %v11298_v31 = vsel %vm406_vm5, %v1859_v5, %v1861_v10  ;;  %v9754_v14 = vld [vmem:[%s14206_s6 + $0x74] ss:$8 sps:$4 sm:$0xff]   ;;  %v9757_v19 = vld [vmem:[%s14206_s6 + $0x104] ss:$8 sps:$4 sm:$0xff]  }
 0x2df   :  { %v10380_v22 = vpop.eup %10379  ;;  %1582 = vmatprep.mubr.bf16.mxu0 %v11236_v41  ;;  %1728 = vmatpush1.bf16.msra.mxu0 %v9737_v12  ;;  %v11303_v25 = vsel %vm2131_vm10, %v2135_v13, %v2137_v54  ;;  %v9751_v12 = vld [vmem:[%s14206_s6 + $0x64] ss:$8 sps:$4 sm:$0xff]   ;;  %v9749_v13 = vld [vmem:[%s14206_s6 + $0x60] ss:$8 sps:$4 sm:$0xff]  }
 0x2e0   :  { %1729 = vmatprep.subr.bf16.mxu0 %v9742_v15  ;;  %v1402_v32 = vrot.slane %v11289_v11, 7  ;;  %v11309_v52 = vpack.c.bf16 %v10380_v22, %v10378_v58  ;;  %v1866_v34 = vrot.slane %v11289_v11, 1  ;;  %v2142_v44 = vrot.slane %v11289_v11, 2  ;;  %v9752_v15 = vld [vmem:[%s14206_s6 + $0x70] ss:$8 sps:$4 sm:$0xff]  }
 0x2e1   :  { %v1369_v58 = vld [vmem:[#allocation3] sm:$0x80] }
 0x2e2   :  { %v1404_v60 = vrot.slane %v11309_v52, 7  ;;  %v11319_v2 = vsel %vm1389_vm9, %v1400_v7, %v1402_v32  ;;  %v1868_v37 = vrot.slane %v11309_v52, 1  ;;  %v2144_v40 = vrot.slane %v11309_v52, 2 }
 0x2e3   :  { %1730 = vmatpush1.bf16.msra.mxu0 %v9740_v20  ;;  %v1390_v22 = vrot.slane %v1369_v58, 7  ;;  %v9755_v20 = vld [vmem:[%s14206_s6 + $0x100] ss:$8 sps:$4 sm:$0xff]  }
 0x2e4   :  { %1731 = vmatprep.subr.bf16.mxu0 %v9745_v26  ;;  %v11332_v46 = vsel %vm1389_vm9, %v1402_v32, %v1404_v60  ;;  %v11337_v48 = vsel %vm406_vm5, %v1866_v34, %v1868_v37  ;;  %v11342_v55 = vsel %vm406_vm5, %v1868_v37, %v1870_v30  ;;  %v11347_v63 = vsel %vm2131_vm10, %v2142_v44, %v2144_v40  ;;  %v9760_v26 = vld [vmem:[%s14206_s6 + $0x114] ss:$8 sps:$4 sm:$0xff]   ;;  %v9758_v37 = vld [vmem:[%s14206_s6 + $0x110] ss:$8 sps:$4 sm:$0xff]  }
 0x2e5   :  { %v11352_v5 = vsel %vm2131_vm10, %v2144_v40, %v2146_v1  ;;  %v1392_v32 = vsel %vm1389_vm9, %v1390_v22, %v1391_v38  ;;  %v9763_v40 = vld [vmem:[%s14206_s6 + $0x124] ss:$8 sps:$4 sm:$0xff]   ;;  %v9766_v38 = vld [vmem:[%s14206_s6 + $0x134] ss:$8 sps:$4 sm:$0xff]  }
 0x2e6   :  { %1583 = vmatmul.mubr.bf16.gmra.mrb[24].mxu0 %v11246_v50  ;;  %v1374_v22 = vld [vmem:[#allocation3 + $0x30] sm:$0x80]  ;;  %v2125_v39 = vld [vmem:[#allocation3 + $0x38] sm:$0xfc] }
 0x2e7   :  { %1592 = vmatprep.mubr.bf16.mxu0 %v11236_v41  ;;  %1732 = vmatpush1.bf16.msra.mxu0 %v9743_v42  ;;  %v9764_v42 = vld [vmem:[%s14206_s6 + $0x130] ss:$8 sps:$4 sm:$0xff]  }
 0x2e8   :  { %1733 = vmatprep.subr.bf16.mxu0 %v9748_v45  ;;  %v9769_v45 = vld [vmem:[%s14206_s6 + $0x144] ss:$8 sps:$4 sm:$0xff]  }
 0x2eb   :  { %1734 = vmatpush1.bf16.msra.mxu0 %v9746_v8  ;;  %v9767_v8 = vld [vmem:[%s14206_s6 + $0x140] ss:$8 sps:$4 sm:$0xff]  }
 0x2ec   :  { %1735 = vmatprep.subr.bf16.mxu0 %v9751_v12  ;;  %v1373_v12 = vld [vmem:[#allocation3 + $0x20] sm:$0x7f] }
 0x2ee   :  { %1593 = vmatmul.mubr.bf16.gmra.mrb[28].mxu0 %v11251_v61  ;;  %v2126_v61 = vld [vmem:[#allocation3 + $0x58] sm:$0x3] }
 0x2ef   :  { %1602 = vmatprep.mubr.bf16.mxu0 %v11236_v41  ;;  %1736 = vmatpush1.bf16.msra.mxu0 %v9749_v13  ;;  %v9770_v13 = vld [vmem:[%s14206_s6 + $0x150] ss:$8 sps:$4 sm:$0xff]  }
 0x2f0   :  { %1737 = vmatprep.subr.bf16.mxu0 %v9754_v14  ;;  %v9775_v14 = vld [vmem:[%s14206_s6 + $0x164] ss:$8 sps:$4 sm:$0xff]  }
 0x2f3   :  { %1738 = vmatpush1.bf16.msra.mxu0 %v9752_v15  ;;  %v1397_v15 = vrot.slane %v1373_v12, 7  ;;  %v9794_v12 = vld [vmem:[%s14206_s6 + $0x1d0] ss:$8 sps:$4 sm:$0xff]  }
 0x2f4   :  { %1978 = vmatprep.subr.bf16.mxu0 %v9757_v19  ;;  %v9773_v19 = vld [vmem:[%s14206_s6 + $0x160] ss:$8 sps:$4 sm:$0xff]  }
 0x2f5   :  { %v1398_v58 = vsel %vm1389_vm9, %v1395_v35, %v1397_v15  ;;  %v1378_v35 = vld [vmem:[#allocation3 + $0x50] sm:$0x7f]  ;;  %v9797_v15 = vld [vmem:[%s14206_s6 + $0x1e0] ss:$8 sps:$4 sm:$0xff]  }
 0x2f6   :  { %1603 = vmatmul.mubr.bf16.gmra.mrb[32].mxu0 %v11267_v27  ;;  %v1836_v27 = vld [vmem:[#allocation3 + $0x8] sm:$0xfe] }
 0x2f7   :  { %1612 = vmatprep.mubr.bf16.mxu0 %v11236_v41 }
 0x2fe   :  { %1613 = vmatmul.mubr.bf16.gmra.mrb[36].mxu0 %v11289_v11  ;;  %v9803_v11 = vld [vmem:[#allocation5 + $0x200] ss:$16 sps:$4 sm:$0xff]  }
 0x2ff   :  { %1622 = vmatprep.mubr.bf16.mxu0 %v11236_v41 }
 0x306   :  { %1623 = vmatmul.mubr.bf16.gmra.mrb[40].mxu0 %v11309_v52  ;;  %v9782_v52 = vld [vmem:[%s14206_s6 + $0x190] ss:$8 sps:$4 sm:$0xff]  }
 0x307   :  { %1632 = vmatprep.mubr.bf16.mxu0 %v11236_v41 }
 0x30e   :  { %1633 = vmatmul.mubr.bf16.gmra.mrb[44].mxu0 %v11220_v36  ;;  %v9818_v36 = vld [vmem:[#allocation5 + $0x260] ss:$16 sps:$4 sm:$0xff]  }
 0x30f   :  { %1755 = vmatprep.mubr.bf16.mxu0 %v11236_v41 }
 0x316   :  { %1756 = vmatmul.mubr.bf16.vlgmr.msra.gmra.mrb[16].mxu0 %v1392_v32  ;;  %v1399_v32 = vrot.slane %v1374_v22, 7 }
 0x317   :  { %1979 = vmatpush1.bf16.msra.mxu0 %v9755_v20  ;;  %1765 = vmatprep.mubr.bf16.mxu0 %v11236_v41  ;;  %v9776_v20 = vld [vmem:[%s14206_s6 + $0x170] ss:$8 sps:$4 sm:$0xff]  }
 0x318   :  { %1980 = vmatprep.subr.bf16.mxu0 %v9760_v26  ;;  %v9781_v26 = vld [vmem:[%s14206_s6 + $0x184] ss:$8 sps:$4 sm:$0xff]   ;;  %v1401_v50 = vsel %vm1389_vm9, %v1399_v32, %v1400_v7  ;;  %v1856_v7 = vrot.slane %v1836_v27, 1  ;;  %v9812_v27 = vld [vmem:[#allocation5 + $0x240] ss:$16 sps:$4 sm:$0xff]  }
 0x31b   :  { %1981 = vmatpush1.bf16.msra.mxu0 %v9758_v37  ;;  %v1406_v37 = vrot.slane %v1378_v35, 7 }
 0x31c   :  { %1982 = vmatprep.subr.bf16.mxu0 %v9763_v40 }
 0x31d   :  { %v1407_v40 = vsel %vm1389_vm9, %v1404_v60, %v1406_v37  ;;  %v9787_v60 = vld [vmem:[%s14206_s6 + $0x1a4] ss:$8 sps:$4 sm:$0xff]  }
 0x31e   :  { %1766 = vmatmul.mubr.bf16.gmra.mrb[20].mxu0 %v11256_v4  ;;  %v9772_v4 = vld [vmem:[%s14206_s6 + $0x154] ss:$8 sps:$4 sm:$0xff]  }
 0x31f   :  { %1775 = vmatprep.mubr.bf16.mxu0 %v11236_v41  ;;  %1983 = vmatpush1.bf16.msra.mxu0 %v9761_v3  ;;  %v1858_v3 = vsel %vm406_vm5, %v1856_v7, %v1857_v28  ;;  %v9790_v28 = vld [vmem:[%s14206_s6 + $0x1b4] ss:$8 sps:$4 sm:$0xff]  }
 0x320   :  { %1984 = vmatprep.subr.bf16.mxu0 %v9766_v38  ;;  %v9785_v38 = vld [vmem:[%s14206_s6 + $0x1a0] ss:$8 sps:$4 sm:$0xff]   ;;  %v9808_v37 = vld [vmem:[#allocation5 + $0x224] ss:$16 sps:$4 sm:$0xff]  }
 0x321   :  { %v9820_v7 = vld [vmem:[#allocation5 + $0x264] ss:$16 sps:$4 sm:$0xff]  }
 0x323   :  { %1985 = vmatpush1.bf16.msra.mxu0 %v9764_v42  ;;  %v9788_v42 = vld [vmem:[%s14206_s6 + $0x1b0] ss:$8 sps:$4 sm:$0xff]  }
 0x324   :  { %1986 = vmatprep.subr.bf16.mxu0 %v9769_v45  ;;  %v9793_v45 = vld [vmem:[%s14206_s6 + $0x1c4] ss:$8 sps:$4 sm:$0xff]  }
 0x326   :  { %1776 = vmatmul.mubr.bf16.gmra.mrb[24].mxu0 %v11272_v17  ;;  %v9778_v17 = vld [vmem:[%s14206_s6 + $0x174] ss:$8 sps:$4 sm:$0xff]  }
 0x327   :  { %1785 = vmatprep.mubr.bf16.mxu0 %v11236_v41  ;;  %1987 = vmatpush1.bf16.msra.mxu0 %v9767_v8  ;;  %v9791_v8 = vld [vmem:[%s14206_s6 + $0x1c0] ss:$8 sps:$4 sm:$0xff]  }
 0x328   :  { %1988 = vmatprep.subr.bf16.mxu0 %v9772_v4  ;;  %v1840_v4 = vld [vmem:[#allocation3 + $0x28] sm:$0x1] }
 0x32b   :  { %1989 = vmatpush1.bf16.msra.mxu0 %v9770_v13  ;;  %v9799_v13 = vld [vmem:[%s14206_s6 + $0x1e4] ss:$8 sps:$4 sm:$0xff]  }
 0x32c   :  { %1990 = vmatprep.subr.bf16.mxu0 %v9775_v14  ;;  %v1863_v14 = vrot.slane %v1840_v4, 1  ;;  %v9835_v4 = vld [vmem:[#allocation5 + $0x68c] ss:$16 sps:$4 sm:$0xff]  }
 0x32e   :  { %1786 = vmatmul.mubr.bf16.gmra.mrb[28].mxu0 %v1398_v58  ;;  %v9800_v58 = vld [vmem:[%s14206_s6 + $0x1f0] ss:$8 sps:$4 sm:$0xff]  }
 0x32f   :  { %1795 = vmatprep.mubr.bf16.mxu0 %v11236_v41  ;;  %1991 = vmatpush1.bf16.msra.mxu0 %v9773_v19  ;;  %v1864_v19 = vsel %vm406_vm5, %v1861_v10, %v1863_v14  ;;  %v1845_v10 = vld [vmem:[#allocation3 + $0x58] sm:$0x1]  ;;  %v9842_v14 = vld [vmem:[#allocation5 + $0x2e0] ss:$16 sps:$4 sm:$0xff]  }
 0x330   :  { %1992 = vmatprep.subr.bf16.mxu0 %v9778_v17  ;;  %v1841_v17 = vld [vmem:[#allocation3 + $0x38] sm:$0xfe] }
 0x331   :  { %v1865_v22 = vrot.slane %v1841_v17, 1  ;;  %v9850_v17 = vld [vmem:[#allocation5 + $0x304] ss:$16 sps:$4 sm:$0xff]  }
 0x333   :  { %1993 = vmatpush1.bf16.msra.mxu0 %v9776_v20  ;;  %v1867_v20 = vsel %vm406_vm5, %v1865_v22, %v1866_v34  ;;  %v9845_v22 = vld [vmem:[#allocation5 + $0x6c8] ss:$16 sps:$4 sm:$0xff]  }
 0x334   :  { %2254 = vmatprep.subr.bf16.mxu0 %v9781_v26  ;;  %v1872_v26 = vrot.slane %v1845_v10, 1  ;;  %v9854_v10 = vld [vmem:[#allocation5 + $0x320] ss:$16 sps:$4 sm:$0xff]  }
 0x336   :  { %1796 = vmatmul.mubr.bf16.gmra.mrb[32].mxu0 %v1401_v50  ;;  %v1873_v32 = vsel %vm406_vm5, %v1870_v30, %v1872_v26  ;;  %v2123_v50 = vld [vmem:[#allocation3 + $0x8] sm:$0xfc] }
 0x337   :  { %1805 = vmatprep.mubr.bf16.mxu0 %v11236_v41  ;;  %v2132_v34 = vrot.slane %v2123_v50, 2  ;;  %v9853_v26 = vld [vmem:[#allocation5 + $0x6ec] ss:$16 sps:$4 sm:$0xff]   ;;  %v9862_v50 = vld [vmem:[#allocation5 + $0x344] ss:$16 sps:$4 sm:$0xff]  }
 0x33e   :  { %1806 = vmatmul.mubr.bf16.gmra.mrb[36].mxu0 %v11319_v2  ;;  %v9779_v2 = vld [vmem:[%s14206_s6 + $0x180] ss:$8 sps:$4 sm:$0xff]  }
 0x33f   :  { %1815 = vmatprep.mubr.bf16.mxu0 %v11236_v41 }
 0x346   :  { %1816 = vmatmul.mubr.bf16.gmra.mrb[40].mxu0 %v11332_v46  ;;  %v9784_v46 = vld [vmem:[%s14206_s6 + $0x194] ss:$8 sps:$4 sm:$0xff]  }
 0x347   :  { %1825 = vmatprep.mubr.bf16.mxu0 %v11236_v41 }
 0x34e   :  { %1826 = vmatmul.mubr.bf16.gmra.mrb[44].mxu0 %v1407_v40  ;;  %v9806_v40 = vld [vmem:[#allocation5 + $0x220] ss:$16 sps:$4 sm:$0xff]  }
 0x34f   :  { %2010 = vmatprep.mubr.bf16.mxu0 %v11236_v41 }
 0x356   :  { %2011 = vmatmul.mubr.bf16.vlgmr.msra.gmra.mrb[16].mxu0 %v1858_v3  ;;  %v9824_v3 = vld [vmem:[#allocation5 + $0x280] ss:$16 sps:$4 sm:$0xff]  }
 0x357   :  { %2255 = vmatpush1.bf16.msra.mxu0 %v9779_v2  ;;  %2020 = vmatprep.mubr.bf16.mxu0 %v11236_v41  ;;  %v9815_v2 = vld [vmem:[#allocation5 + $0x628] ss:$16 sps:$4 sm:$0xff]  }
 0x358   :  { %2256 = vmatprep.subr.bf16.mxu0 %v9784_v46  ;;  %v9826_v46 = vld [vmem:[#allocation5 + $0x284] ss:$16 sps:$4 sm:$0xff]  }
 0x35b   :  { %2257 = vmatpush1.bf16.msra.mxu0 %v9782_v52  ;;  %v9823_v52 = vld [vmem:[#allocation5 + $0x64c] ss:$16 sps:$4 sm:$0xff]  }
 0x35c   :  { %2258 = vmatprep.subr.bf16.mxu0 %v9787_v60  ;;  %v9821_v60 = vld [vmem:[#allocation5 + $0x648] ss:$16 sps:$4 sm:$0xff]  }
 0x35e   :  { %2021 = vmatmul.mubr.bf16.gmra.mrb[20].mxu0 %v11277_v16  ;;  %v9796_v16 = vld [vmem:[%s14206_s6 + $0x1d4] ss:$8 sps:$4 sm:$0xff]  }
 0x35f   :  { %2030 = vmatprep.mubr.bf16.mxu0 %v11236_v41  ;;  %2259 = vmatpush1.bf16.msra.mxu0 %v9785_v38  ;;  %v9832_v38 = vld [vmem:[#allocation5 + $0x2a4] ss:$16 sps:$4 sm:$0xff]  }
 0x360   :  { %2260 = vmatprep.subr.bf16.mxu0 %v9790_v28  ;;  %v9830_v28 = vld [vmem:[#allocation5 + $0x2a0] ss:$16 sps:$4 sm:$0xff]  }
 0x363   :  { %2261 = vmatpush1.bf16.msra.mxu0 %v9788_v42  ;;  %v9829_v42 = vld [vmem:[#allocation5 + $0x66c] ss:$16 sps:$4 sm:$0xff]  }
 0x364   :  { %2262 = vmatprep.subr.bf16.mxu0 %v9793_v45  ;;  %v9827_v45 = vld [vmem:[#allocation5 + $0x668] ss:$16 sps:$4 sm:$0xff]  }
 0x366   :  { %2031 = vmatmul.mubr.bf16.gmra.mrb[24].mxu0 %v11298_v31  ;;  %v9802_v31 = vld [vmem:[%s14206_s6 + $0x1f4] ss:$8 sps:$4 sm:$0xff]  }
 0x367   :  { %2040 = vmatprep.mubr.bf16.mxu0 %v11236_v41  ;;  %2263 = vmatpush1.bf16.msra.mxu0 %v9791_v8  ;;  %v9838_v8 = vld [vmem:[#allocation5 + $0x2c4] ss:$16 sps:$4 sm:$0xff]  }
 0x368   :  { %2264 = vmatprep.subr.bf16.mxu0 %v9796_v16  ;;  %v9836_v16 = vld [vmem:[#allocation5 + $0x2c0] ss:$16 sps:$4 sm:$0xff]  }
 0x36b   :  { %2265 = vmatpush1.bf16.msra.mxu0 %v9794_v12  ;;  %v9833_v12 = vld [vmem:[#allocation5 + $0x688] ss:$16 sps:$4 sm:$0xff]  }
 0x36c   :  { %2266 = vmatprep.subr.bf16.mxu0 %v9799_v13  ;;  %v9844_v13 = vld [vmem:[#allocation5 + $0x2e4] ss:$16 sps:$4 sm:$0xff]  }
 0x36e   :  { %2041 = vmatmul.mubr.bf16.gmra.mrb[28].mxu0 %v1864_v19  ;;  %v9848_v19 = vld [vmem:[#allocation5 + $0x300] ss:$16 sps:$4 sm:$0xff]  }
 0x36f   :  { %2050 = vmatprep.mubr.bf16.mxu0 %v11236_v41  ;;  %2267 = vmatpush1.bf16.msra.mxu0 %v9797_v15  ;;  %v9841_v15 = vld [vmem:[#allocation5 + $0x6ac] ss:$16 sps:$4 sm:$0xff]  }
 0x370   :  { %2268 = vmatprep.subr.bf16.mxu0 %v9802_v31  ;;  %v9839_v31 = vld [vmem:[#allocation5 + $0x6a8] ss:$16 sps:$4 sm:$0xff]  }
 0x373   :  { %2269 = vmatpush1.bf16.msra.mxu0 %v9800_v58  ;;  %v9847_v58 = vld [vmem:[#allocation5 + $0x6cc] ss:$16 sps:$4 sm:$0xff]  }
 0x376   :  { %2051 = vmatmul.mubr.bf16.gmra.mrb[32].mxu0 %v1867_v20  ;;  %v9856_v20 = vld [vmem:[#allocation5 + $0x324] ss:$16 sps:$4 sm:$0xff]  }
 0x377   :  { %2060 = vmatprep.mubr.bf16.mxu0 %v11236_v41 }
 0x37e   :  { %2061 = vmatmul.mubr.bf16.gmra.mrb[36].mxu0 %v11337_v48  ;;  %v2134_v48 = vsel %vm2131_vm10, %v2132_v34, %v2133_v59  ;;  %v2141_v59 = vrot.slane %v2125_v39, 2  ;;  %v9860_v34 = vld [vmem:[#allocation5 + $0x340] ss:$16 sps:$4 sm:$0xff]   ;;  %v9865_v39 = vld [vmem:[#allocation5 + $0x72c] ss:$16 sps:$4 sm:$0xff]  }
 0x37f   :  { %2070 = vmatprep.mubr.bf16.mxu0 %v11236_v41 }
 0x386   :  { %2071 = vmatmul.mubr.bf16.gmra.mrb[40].mxu0 %v11342_v55  ;;  %v2124_v55 = vld [vmem:[#allocation3 + $0x28] sm:$0x3] }
 0x387   :  { %2080 = vmatprep.mubr.bf16.mxu0 %v11236_v41  ;;  %v2139_v30 = vrot.slane %v2124_v55, 2  ;;  %v9857_v55 = vld [vmem:[#allocation5 + $0x708] ss:$16 sps:$4 sm:$0xff]  }
 0x389   :  { %v2140_v35 = vsel %vm2131_vm10, %v2137_v54, %v2139_v30  ;;  %v2148_v54 = vrot.slane %v2126_v61, 2  ;;  %v9868_v30 = vld [vmem:[#allocation5 + $0x364] ss:$16 sps:$4 sm:$0xff]   ;;  %v9872_v61 = vld [vmem:[#allocation5 + $0x380] ss:$16 sps:$4 sm:$0xff]  }
 0x38e   :  { %2081 = vmatmul.mubr.bf16.gmra.mrb[44].mxu0 %v1873_v32  ;;  %v9851_v32 = vld [vmem:[#allocation5 + $0x6e8] ss:$16 sps:$4 sm:$0xff]  }
 0x38f   :  { %2286 = vmatprep.mubr.bf16.mxu0 %v11236_v41 }
 0x396   :  { %2287 = vmatmul.mubr.bf16.vlgmr.msra.gmra.mrb[16].mxu0 %v2134_v48  ;;  %v9859_v48 = vld [vmem:[#allocation5 + $0x70c] ss:$16 sps:$4 sm:$0xff]  }
 0x397   :  { %2296 = vmatprep.mubr.bf16.mxu0 %v11236_v41 }
 0x39e   :  { %2297 = vmatmul.mubr.bf16.gmra.mrb[20].mxu0 %v11283_v18  ;;  %v2143_v18 = vsel %vm2131_vm10, %v2141_v59, %v2142_v44  ;;  %v9805_v44 = vld [vmem:[#allocation5 + $0x204] ss:$16 sps:$4 sm:$0xff]   ;;  %v9863_v59 = vld [vmem:[#allocation5 + $0x728] ss:$16 sps:$4 sm:$0xff]  }
 0x39f   :  { %2306 = vmatprep.mubr.bf16.mxu0 %v11236_v41  ;;  %3560 = vmatprep.subr.bf16.mxu1 %v9805_v44  ;;  %v9878_v44 = vld [vmem:[#allocation5 + $0x3a0] ss:$16 sps:$4 sm:$0xff]  }
 0x3a0   :  { %3561 = vmatpush1.bf16.msra.mxu1 %v9803_v11  ;;  %v9880_v11 = vld [vmem:[#allocation5 + $0x3a4] ss:$16 sps:$4 sm:$0xff]  }
 0x3a1   :  { %3562 = vmatprep.subr.bf16.mxu1 %v9808_v37  ;;  %v9875_v37 = vld [vmem:[#allocation5 + $0x768] ss:$16 sps:$4 sm:$0xff]  }
 0x3a4   :  { %3563 = vmatpush1.bf16.msra.mxu1 %v9806_v40  ;;  %v9877_v40 = vld [vmem:[#allocation5 + $0x76c] ss:$16 sps:$4 sm:$0xff]  }
 0x3a6   :  { %2307 = vmatmul.mubr.bf16.gmra.mrb[24].mxu0 %v11303_v25  ;;  %v2149_v25 = vsel %vm2131_vm10, %v2146_v1, %v2148_v54  ;;  %v9817_v1 = vld [vmem:[#allocation5 + $0x62c] ss:$16 sps:$4 sm:$0xff]  }
 0x3a7   :  { %2316 = vmatprep.mubr.bf16.mxu0 %v11236_v41  ;;  %v9871_v54 = vld [vmem:[#allocation5 + $0x74c] ss:$16 sps:$4 sm:$0xff]  }
 0x3ae   :  { %2317 = vmatmul.mubr.bf16.gmra.mrb[28].mxu0 %v2140_v35  ;;  %v9866_v35 = vld [vmem:[#allocation5 + $0x360] ss:$16 sps:$4 sm:$0xff]  }
 0x3af   :  { %2326 = vmatprep.mubr.bf16.mxu0 %v11236_v41 }
 0x3b6   :  { %2327 = vmatmul.mubr.bf16.gmra.mrb[32].mxu0 %v2143_v18  ;;  %v9874_v18 = vld [vmem:[#allocation5 + $0x384] ss:$16 sps:$4 sm:$0xff]  }
 0x3b7   :  { %2336 = vmatprep.mubr.bf16.mxu0 %v11236_v41 }
 0x3be   :  { %2337 = vmatmul.mubr.bf16.gmra.mrb[36].mxu0 %v11347_v63  ;;  %v9814_v63 = vld [vmem:[#allocation5 + $0x244] ss:$16 sps:$4 sm:$0xff]  }
 0x3bf   :  { %2346 = vmatprep.mubr.bf16.mxu0 %v11236_v41  ;;  %3564 = vmatprep.subr.bf16.mxu1 %v9814_v63  ;;  %v9883_v63 = vld [vmem:[#allocation5 + $0x78c] ss:$16 sps:$4 sm:$0xff]  }
 0x3c0   :  { %3565 = vmatpush1.bf16.msra.mxu1 %v9812_v27  ;;  %v9886_v27 = vld [vmem:[#allocation5 + $0x3c4] ss:$16 sps:$4 sm:$0xff]  }
 0x3c1   :  { %3566 = vmatprep.subr.bf16.mxu1 %v9820_v7  ;;  %v9881_v7 = vld [vmem:[#allocation5 + $0x788] ss:$16 sps:$4 sm:$0xff]  }
 0x3c4   :  { %3567 = vmatpush1.bf16.msra.mxu1 %v9818_v36  ;;  %v9889_v36 = vld [vmem:[#allocation5 + $0x7ac] ss:$16 sps:$4 sm:$0xff]  }
 0x3c5   :  { %3568 = vmatprep.subr.bf16.mxu1 %v9826_v46  ;;  %v9898_v46 = vld [vmem:[#allocation5 + $0x20c] ss:$16 sps:$4 sm:$0xff]  }
 0x3c6   :  { %2347 = vmatmul.mubr.bf16.gmra.mrb[40].mxu0 %v11352_v5  ;;  %v9811_v5 = vld [vmem:[#allocation5 + $0x60c] ss:$16 sps:$4 sm:$0xff]  }
 0x3c7   :  { %2356 = vmatprep.mubr.bf16.mxu0 %v11236_v41  ;;  %v9809_v41 = vld [vmem:[#allocation5 + $0x608] ss:$16 sps:$4 sm:$0xff]   ;;  %5664 = vmatprep.subr.bf16.mxu0 %v9811_v5  ;;  %v9884_v5 = vld [vmem:[#allocation5 + $0x3c0] ss:$16 sps:$4 sm:$0xff]  }
 0x3c8   :  { %5665 = vmatpush1.bf16.msra.mxu0 %v9809_v41  ;;  %3569 = vmatpush1.bf16.msra.mxu1 %v9824_v3  ;;  %v9892_v41 = vld [vmem:[#allocation5 + $0x3e4] ss:$16 sps:$4 sm:$0xff]   ;;  %v9887_v3 = vld [vmem:[#allocation5 + $0x7a8] ss:$16 sps:$4 sm:$0xff]  }
 0x3c9   :  { %5666 = vmatprep.subr.bf16.mxu0 %v9817_v1  ;;  %3570 = vmatprep.subr.bf16.mxu1 %v9832_v38  ;;  %v9890_v1 = vld [vmem:[#allocation5 + $0x3e0] ss:$16 sps:$4 sm:$0xff]   ;;  %v9893_v38 = vld [vmem:[#allocation5 + $0x7c8] ss:$16 sps:$4 sm:$0xff]  }
 0x3cc   :  { %5667 = vmatpush1.bf16.msra.mxu0 %v9815_v2  ;;  %3571 = vmatpush1.bf16.msra.mxu1 %v9830_v28  ;;  %v2403_v2 = vand.u32 3, %v11061_v49 }
 0x3cd   :  { %5668 = vmatprep.subr.bf16.mxu0 %v9823_v52  ;;  %3572 = vmatprep.subr.bf16.mxu1 %v9838_v8  ;;  %v2410_v52 = vand.u32 3, %v11064_v62 }
 0x3ce   :  { %2357 = vmatmul.mubr.bf16.gmra.mrb[44].mxu0 %v2149_v25  ;;  %v9869_v25 = vld [vmem:[#allocation5 + $0x748] ss:$16 sps:$4 sm:$0xff]   ;;  %vm2591_vm5 = vcmp.eq.s32.totalorder %v2403_v2, 0 }
 0x3cf   :  { %vm11552_vm11 = vcmp.eq.s32.totalorder %v2410_v52, 0 }
 0x3d0   :  { %5669 = vmatpush1.bf16.msra.mxu0 %v9821_v60  ;;  %3573 = vmatpush1.bf16.msra.mxu1 %v9836_v16  ;;  %v9895_v60 = vld [vmem:[#allocation5 + $0x7cc] ss:$16 sps:$4 sm:$0xff]  }
 0x3d1   :  { %5670 = vmatprep.subr.bf16.mxu0 %v9829_v42  ;;  %3574 = vmatprep.subr.bf16.mxu1 %v9844_v13  ;;  %v2417_v13 = vand.u32 3, %v11069_v53 }
 0x3d3   :  { %vm2593_vm12 = vcmp.eq.s32.totalorder %v2417_v13, 0  ;;  %v2445_v13 = vand.u32 3, %v11101_v21 }
 0x3d4   :  { %5671 = vmatpush1.bf16.msra.mxu0 %v9827_v45  ;;  %3575 = vmatpush1.bf16.msra.mxu1 %v9842_v14  ;;  %v9901_v45 = vld [vmem:[#allocation5 + $0x7ec] ss:$16 sps:$4 sm:$0xff]  }
 0x3d5   :  { %5672 = vmatprep.subr.bf16.mxu0 %v9835_v4  ;;  %3576 = vmatprep.subr.bf16.mxu1 %v9850_v17  ;;  %vm2597_vm1 = vcmp.eq.s32.totalorder %v2445_v13, 0 }
 0x3d8   :  { %5673 = vmatpush1.bf16.msra.mxu0 %v9833_v12  ;;  %3577 = vmatpush1.bf16.msra.mxu1 %v9848_v19  ;;  %v9899_v19 = vld [vmem:[#allocation5 + $0x7e8] ss:$16 sps:$4 sm:$0xff]  }
 0x3d9   :  { %5674 = vmatprep.subr.bf16.mxu0 %v9841_v15  ;;  %3578 = vmatprep.subr.bf16.mxu1 %v9856_v20 }
 0x3dc   :  { %5675 = vmatpush1.bf16.msra.mxu0 %v9839_v31  ;;  %3579 = vmatpush1.bf16.msra.mxu1 %v9854_v10  ;;  %v2424_v31 = vand.u32 3, %v11074_v56 }
 0x3dd   :  { %5676 = vmatprep.subr.bf16.mxu0 %v9847_v58  ;;  %3580 = vmatprep.subr.bf16.mxu1 %v9862_v50 }
 0x3de   :  { %vm11578_vm13 = vcmp.eq.s32.totalorder %v2424_v31, 0 }
 0x3e0   :  { %5677 = vmatpush1.bf16.msra.mxu0 %v9845_v22  ;;  %3581 = vmatpush1.bf16.msra.mxu1 %v9860_v34 }
 0x3e1   :  { %5678 = vmatprep.subr.bf16.mxu0 %v9853_v26  ;;  %3582 = vmatprep.subr.bf16.mxu1 %v9868_v30 }
 0x3e4   :  { %5679 = vmatpush1.bf16.msra.mxu0 %v9851_v32  ;;  %3583 = vmatpush1.bf16.msra.mxu1 %v9866_v35 }
 0x3e5   :  { %5680 = vmatprep.subr.bf16.mxu0 %v9859_v48  ;;  %3584 = vmatprep.subr.bf16.mxu1 %v9874_v18 }
 0x3e8   :  { %5681 = vmatpush1.bf16.msra.mxu0 %v9857_v55  ;;  %3585 = vmatpush1.bf16.msra.mxu1 %v9872_v61 }
 0x3e9   :  { %5682 = vmatprep.subr.bf16.mxu0 %v9865_v39  ;;  %3586 = vmatprep.subr.bf16.mxu1 %v9880_v11 }
 0x3ec   :  { %5683 = vmatpush1.bf16.msra.mxu0 %v9863_v59  ;;  %3587 = vmatpush1.bf16.msra.mxu1 %v9878_v44 }
 0x3ed   :  { %5684 = vmatprep.subr.bf16.mxu0 %v9871_v54  ;;  %3588 = vmatprep.subr.bf16.mxu1 %v9886_v27  ;;  %v2431_v54 = vand.u32 3, %v11085_v6 }
 0x3ef   :  { %vm2595_vm14 = vcmp.eq.s32.totalorder %v2431_v54, 0 }
 0x3f0   :  { %5685 = vmatpush1.bf16.msra.mxu0 %v9869_v25  ;;  %3589 = vmatpush1.bf16.msra.mxu1 %v9884_v5 }
 0x3f1   :  { %5686 = vmatprep.subr.bf16.mxu0 %v9877_v40  ;;  %3590 = vmatprep.subr.bf16.mxu1 %v9892_v41  ;;  %v2438_v40 = vand.u32 3, %v11090_v9 }
 0x3f3   :  { %vm11604_vm15 = vcmp.eq.s32.totalorder %v2438_v40, 0 }
 0x3f4   :  { %5687 = vmatpush1.bf16.msra.mxu0 %v9875_v37  ;;  %3591 = vmatpush1.bf16.msra.mxu1 %v9890_v1 }
 0x3f5   :  { %5688 = vmatprep.subr.bf16.mxu0 %v9883_v63  ;;  %3673 = vmatprep.subr.bf16.mxu1 %v9898_v46 }
 0x3f8   :  { %5689 = vmatpush1.bf16.msra.mxu0 %v9881_v7 }
 0x3f9   :  { %5690 = vmatprep.subr.bf16.mxu0 %v9889_v36 }
 0x3fc   :  { %5691 = vmatpush1.bf16.msra.mxu0 %v9887_v3 }
 0x3fd   :  { %5692 = vmatprep.subr.bf16.mxu0 %v9895_v60 }
 0x400   :  { %5693 = vmatpush1.bf16.msra.mxu0 %v9893_v38 }
 0x401   :  { %5694 = vmatprep.subr.bf16.mxu0 %v9901_v45 }
 0x404   :  { %5695 = vmatpush1.bf16.msra.mxu0 %v9899_v19 }
 0x469   :  { %v11550_v28 = vpop.f32.mrb[16].mxu0 }
 0x46a   :  { %v2639_v8 = vsel %vm2591_vm5, %v11550_v28, 0.0  ;;  %v11557_v16 = vpop.f32.mrb[17].mxu0 }
 0x46b   :  { %v2640_v4 = vsel %vm2591_vm5, %v11557_v16, 0.0  ;;  %v11560_v12 = vpop.f32.mrb[18].mxu0  ;;  %v2713_v17 = vmul.f32 %v2639_v8, %v11550_v28 }
 0x46c   :  { %v2641_v14 = vsel %vm11552_vm11, %v11560_v12, 0.0  ;;  %v11566_v15 = vpop.f32.mrb[19].mxu0  ;;  %v2714_v10 = vmul.f32 %v2640_v4, %v11557_v16 }
 0x46d   :  { %v2671_v58 = vadd.f32 %v2641_v14, %v2639_v8  ;;  %v2715_v22 = vmul.f32 %v2641_v14, %v11560_v12  ;;  %v2642_v20 = vsel %vm11552_vm11, %v11566_v15, 0.0 }
 0x46e   :  { %v2692_v26 = vadd.f32 %v2642_v20, %v2640_v4  ;;  %v2716_v32 = vmul.f32 %v2642_v20, %v11566_v15 }
 0x46f   :  { %v2745_v50 = vadd.f32 %v2715_v22, %v2713_v17 }
 0x470   :  { %v2766_v34 = vadd.f32 %v2716_v32, %v2714_v10 }
 0x471   :  { %v11576_v48 = vpop.f32.mrb[20].mxu0 }
 0x472   :  { %v2643_v30 = vsel %vm2593_vm12, %v11576_v48, 0.0  ;;  %v11583_v35 = vpop.f32.mrb[21].mxu0 }
 0x473   :  { %v2672_v39 = vadd.f32 %v2671_v58, %v2643_v30  ;;  %v2717_v59 = vmul.f32 %v2643_v30, %v11576_v48  ;;  %v2644_v18 = vsel %vm2593_vm12, %v11583_v35, 0.0  ;;  %v11587_v61 = vpop.f32.mrb[22].mxu0  ;;  %v2452_v58 = vand.u32 3, %v11106_v29 }
 0x474   :  { %v2693_v25 = vadd.f32 %v2692_v26, %v2644_v18  ;;  %v2718_v11 = vmul.f32 %v2644_v18, %v11583_v35  ;;  %v2645_v44 = vsel %vm11578_vm13, %v11587_v61, 0.0  ;;  %v11594_v37 = vpop.f32.mrb[23].mxu0  ;;  %vm5114_vm12 = vcmask 1043456  }
 0x475   :  { %v2746_v63 = vadd.f32 %v2745_v50, %v2717_v59  ;;  %v2673_v27 = vadd.f32 %v2672_v39, %v2645_v44  ;;  %v2719_v5 = vmul.f32 %v2645_v44, %v11587_v61  ;;  %v2646_v41 = vsel %vm11578_vm13, %v11594_v37, 0.0 }
 0x476   :  { %v2767_v7 = vadd.f32 %v2766_v34, %v2718_v11  ;;  %v2694_v36 = vadd.f32 %v2693_v25, %v2646_v41  ;;  %v2720_v1 = vmul.f32 %v2646_v41, %v11594_v37  ;;  %vm11630_vm2 = vcmp.eq.s32.totalorder %v2452_v58, 0 }
 0x477   :  { %v2747_v2 = vadd.f32 %v2746_v63, %v2719_v5  ;;  %v2459_v63 = vand.u32 3, %v11117_v43  ;;  %v2480_v59 = vand.u32 3, %v11138_v23 }
 0x478   :  { %v2768_v46 = vadd.f32 %v2767_v7, %v2720_v1 }
 0x479   :  { %v11602_v3 = vpop.f32.mrb[24].mxu0  ;;  %vm2599_vm3 = vcmp.eq.s32.totalorder %v2459_v63, 0  ;;  %vm11682_vm7 = vcmp.eq.s32.totalorder %v2480_v59, 0 }
 0x47a   :  { %v2647_v60 = vsel %vm2595_vm14, %v11602_v3, 0.0  ;;  %v11609_v38 = vpop.f32.mrb[25].mxu0 }
 0x47b   :  { %v2674_v42 = vadd.f32 %v2673_v27, %v2647_v60  ;;  %v2721_v45 = vmul.f32 %v2647_v60, %v11602_v3  ;;  %v2648_v8 = vsel %vm2595_vm14, %v11609_v38, 0.0  ;;  %v11613_v4 = vpop.f32.mrb[26].mxu0 }
 0x47c   :  { %v2695_v14 = vadd.f32 %v2694_v36, %v2648_v8  ;;  %v2722_v31 = vmul.f32 %v2648_v8, %v11609_v38  ;;  %v2649_v19 = vsel %vm11604_vm15, %v11613_v4, 0.0  ;;  %v11620_v17 = vpop.f32.mrb[27].mxu0  ;;  %v2466_v36 = vand.u32 3, %v11122_v47 }
 0x47d   :  { %v2748_v22 = vadd.f32 %v2747_v2, %v2721_v45  ;;  %v2675_v20 = vadd.f32 %v2674_v42, %v2649_v19  ;;  %v2723_v10 = vmul.f32 %v2649_v19, %v11613_v4  ;;  %v2650_v26 = vsel %vm11604_vm15, %v11620_v17, 0.0 }
 0x47e   :  { %v2769_v32 = vadd.f32 %v2768_v46, %v2722_v31  ;;  %v2696_v50 = vadd.f32 %v2695_v14, %v2650_v26  ;;  %v2724_v34 = vmul.f32 %v2650_v26, %v11620_v17  ;;  %vm11656_vm4 = vcmp.eq.s32.totalorder %v2466_v36, 0 }
 0x47f   :  { %v2749_v55 = vadd.f32 %v2748_v22, %v2723_v10 }
 0x480   :  { %v2770_v30 = vadd.f32 %v2769_v32, %v2724_v34  ;;  %v2473_v32 = vand.u32 3, %v11133_v0 }
 0x481   :  { %v11628_v39 = vpop.f32.mrb[28].mxu0 }
 0x482   :  { %v2651_v18 = vsel %vm2597_vm1, %v11628_v39, 0.0  ;;  %v11635_v54 = vpop.f32.mrb[29].mxu0  ;;  %vm2601_vm6 = vcmp.eq.s32.totalorder %v2473_v32, 0 }
 0x483   :  { %v2676_v25 = vadd.f32 %v2675_v20, %v2651_v18  ;;  %v2725_v11 = vmul.f32 %v2651_v18, %v11628_v39  ;;  %v2652_v44 = vsel %vm2597_vm1, %v11635_v54, 0.0  ;;  %v11639_v40 = vpop.f32.mrb[30].mxu0 }
 0x484   :  { %v2697_v27 = vadd.f32 %v2696_v50, %v2652_v44  ;;  %v2726_v5 = vmul.f32 %v2652_v44, %v11635_v54  ;;  %v2653_v41 = vsel %vm11630_vm2, %v11639_v40, 0.0  ;;  %v11646_v7 = vpop.f32.mrb[31].mxu0 }
 0x485   :  { %v2750_v1 = vadd.f32 %v2749_v55, %v2725_v11  ;;  %v2677_v2 = vadd.f32 %v2676_v25, %v2653_v41  ;;  %v2727_v46 = vmul.f32 %v2653_v41, %v11639_v40  ;;  %v2654_v52 = vsel %vm11630_vm2, %v11646_v7, 0.0 }
 0x486   :  { %v2771_v60 = vadd.f32 %v2770_v30, %v2726_v5  ;;  %v2698_v42 = vadd.f32 %v2697_v27, %v2654_v52  ;;  %v2728_v45 = vmul.f32 %v2654_v52, %v11646_v7 }
 0x487   :  { %v2751_v8 = vadd.f32 %v2750_v1, %v2727_v46 }
 0x488   :  { %v2772_v13 = vadd.f32 %v2771_v60, %v2728_v45 }
 0x489   :  { %v11654_v14 = vpop.f32.mrb[32].mxu0 }
 0x48a   :  { %v2655_v19 = vsel %vm2599_vm3, %v11654_v14, 0.0  ;;  %v11661_v58 = vpop.f32.mrb[33].mxu0 }
 0x48b   :  { %v2678_v22 = vadd.f32 %v2677_v2, %v2655_v19  ;;  %v2729_v20 = vmul.f32 %v2655_v19, %v11654_v14  ;;  %v2656_v10 = vsel %vm2599_vm3, %v11661_v58, 0.0  ;;  %v11665_v26 = vpop.f32.mrb[34].mxu0 }
 0x48c   :  { %v2699_v50 = vadd.f32 %v2698_v42, %v2656_v10  ;;  %v2730_v34 = vmul.f32 %v2656_v10, %v11661_v58  ;;  %v2657_v55 = vsel %vm11656_vm4, %v11665_v26, 0.0  ;;  %v11672_v30 = vpop.f32.mrb[35].mxu0  ;;  %v2494_v10 = vand.u32 3, %v11154_v33 }
 0x48d   :  { %v2752_v18 = vadd.f32 %v2751_v8, %v2729_v20  ;;  %v2679_v25 = vadd.f32 %v2678_v22, %v2657_v55  ;;  %v2731_v11 = vmul.f32 %v2657_v55, %v11665_v26  ;;  %v2658_v44 = vsel %vm11656_vm4, %v11672_v30, 0.0 }
 0x48e   :  { %v2773_v63 = vadd.f32 %v2772_v13, %v2730_v34  ;;  %v2700_v27 = vadd.f32 %v2699_v50, %v2658_v44  ;;  %v2732_v5 = vmul.f32 %v2658_v44, %v11672_v30  ;;  %v2487_v13 = vand.u32 3, %v11149_v24 }
 0x48f   :  { %v2753_v41 = vadd.f32 %v2752_v18, %v2731_v11  ;;  %vm11708_vm9 = vcmp.eq.s32.totalorder %v2494_v10, 0 }
 0x490   :  { %v2774_v36 = vadd.f32 %v2773_v63, %v2732_v5  ;;  %vm2603_vm8 = vcmp.eq.s32.totalorder %v2487_v13, 0 }
 0x491   :  { %v11680_v1 = vpop.f32.mrb[36].mxu0 }
 0x492   :  { %v2659_v46 = vsel %vm2601_vm6, %v11680_v1, 0.0  ;;  %v11687_v52 = vpop.f32.mrb[37].mxu0 }
 0x493   :  { %v2680_v60 = vadd.f32 %v2679_v25, %v2659_v46  ;;  %v2733_v42 = vmul.f32 %v2659_v46, %v11680_v1  ;;  %v2660_v45 = vsel %vm2601_vm6, %v11687_v52, 0.0  ;;  %v11691_v8 = vpop.f32.mrb[38].mxu0 }
 0x494   :  { %v2701_v31 = vadd.f32 %v2700_v27, %v2660_v45  ;;  %v2734_v19 = vmul.f32 %v2660_v45, %v11687_v52  ;;  %v2661_v22 = vsel %vm11682_vm7, %v11691_v8, 0.0  ;;  %v11698_v20 = vpop.f32.mrb[39].mxu0 }
 0x495   :  { %v2754_v32 = vadd.f32 %v2753_v41, %v2733_v42  ;;  %v2681_v50 = vadd.f32 %v2680_v60, %v2661_v22  ;;  %v2735_v34 = vmul.f32 %v2661_v22, %v11691_v8  ;;  %v2662_v55 = vsel %vm11682_vm7, %v11698_v20, 0.0 }
 0x496   :  { %v2775_v59 = vadd.f32 %v2774_v36, %v2734_v19  ;;  %v2702_v18 = vadd.f32 %v2701_v31, %v2662_v55  ;;  %v2736_v25 = vmul.f32 %v2662_v55, %v11698_v20  ;;  %v2501_v42 = vand.u32 3, %v11165_v51 }
 0x497   :  { %v2755_v11 = vadd.f32 %v2754_v32, %v2735_v34  ;;  %v2508_v22 = vand.u32 3, %v11170_v57 }
 0x498   :  { %v2776_v44 = vadd.f32 %v2775_v59, %v2736_v25  ;;  %vm2605_vm5 = vcmp.eq.s32.totalorder %v2501_v42, 0 }
 0x499   :  { %v11706_v63 = vpop.f32.mrb[40].mxu0  ;;  %vm2606_vm11 = vcmp.eq.s32.totalorder %v2508_v22, 0 }
 0x49a   :  { %v2663_v5 = vsel %vm2603_vm8, %v11706_v63, 0.0  ;;  %v11713_v41 = vpop.f32.mrb[41].mxu0 }
 0x49b   :  { %v2682_v46 = vadd.f32 %v2681_v50, %v2663_v5  ;;  %v2737_v2 = vmul.f32 %v2663_v5, %v11706_v63  ;;  %v2664_v36 = vsel %vm2603_vm8, %v11713_v41, 0.0  ;;  %v11717_v60 = vpop.f32.mrb[42].mxu0 }
 0x49c   :  { %v2703_v45 = vadd.f32 %v2702_v18, %v2664_v36  ;;  %v2738_v13 = vmul.f32 %v2664_v36, %v11713_v41  ;;  %v2665_v31 = vsel %vm11708_vm9, %v11717_v60, 0.0  ;;  %v11724_v19 = vpop.f32.mrb[43].mxu0 }
 0x49d   :  { %v2756_v10 = vadd.f32 %v2755_v11, %v2737_v2  ;;  %v2683_v32 = vadd.f32 %v2682_v46, %v2665_v31  ;;  %v2739_v50 = vmul.f32 %v2665_v31, %v11717_v60  ;;  %v2666_v34 = vsel %vm11708_vm9, %v11724_v19, 0.0 }
 0x49e   :  { %v2777_v55 = vadd.f32 %v2776_v44, %v2738_v13  ;;  %v2704_v59 = vadd.f32 %v2703_v45, %v2666_v34  ;;  %v2740_v18 = vmul.f32 %v2666_v34, %v11724_v19 }
 0x49f   :  { %v2757_v25 = vadd.f32 %v2756_v10, %v2739_v50 }
 0x4a0   :  { %v2778_v5 = vadd.f32 %v2777_v55, %v2740_v18 }
 0x4a1   :  { %v11732_v36 = vpop.f32.mrb[44].mxu0 }
 0x4a2   :  { %v2667_v57 = vsel %vm2605_vm5, %v11732_v36, 0.0  ;;  %v11735_v11 = vpop.f32.mrb[45].mxu0 }
 0x4a3   :  { %v2684_v46 = vadd.f32 %v2683_v32, %v2667_v57  ;;  %v2741_v2 = vmul.f32 %v2667_v57, %v11732_v36  ;;  %v2668_v27 = vsel %vm2605_vm5, %v11735_v11, 0.0  ;;  %v11739_v31 = vpop.f32.mrb[46].mxu0 }
 0x4a4   :  { %v2705_v44 = vadd.f32 %v2704_v59, %v2668_v27  ;;  %v2742_v45 = vmul.f32 %v2668_v27, %v11735_v11  ;;  %v2669_v42 = vsel %vm2606_vm11, %v11739_v31, 0.0  ;;  %v11743_v13 = vpop.f32.mrb[47].mxu0 }
 0x4a5   :  { %v2758_v10 = vadd.f32 %v2757_v25, %v2741_v2  ;;  %v2685_v22 = vadd.f32 %v2684_v46, %v2669_v42  ;;  %v2743_v50 = vmul.f32 %v2669_v42, %v11739_v31  ;;  %v2670_v34 = vsel %vm2606_vm11, %v11743_v13, 0.0 }
 0x4a6   :  { %v2779_v32 = vadd.f32 %v2778_v5, %v2742_v45  ;;  %v2706_v55 = vadd.f32 %v2705_v44, %v2670_v34  ;;  %v2744_v57 = vmul.f32 %v2670_v34, %v11743_v13 }
 0x4a7   :  { %v2686_v18 = vrot.slane %v2685_v22, 4  ;;  %v2759_v51 = vadd.f32 %v2758_v10, %v2743_v50 }
 0x4a8   :  { %v2707_v33 = vrot.slane %v2706_v55, 4  ;;  %v2780_v59 = vadd.f32 %v2779_v32, %v2744_v57 }
 0x4a9   :  { %v2687_v24 = vadd.f32 %v2686_v18, %v2685_v22  ;;  %v2760_v27 = vrot.slane %v2759_v51, 4 }
 0x4aa   :  { %v2708_v23 = vadd.f32 %v2707_v33, %v2706_v55  ;;  %v2781_v0 = vrot.slane %v2780_v59, 4 }
 0x4ab   :  { %v2688_v47 = vrot.slane %v2687_v24, 2  ;;  %v2761_v43 = vadd.f32 %v2760_v27, %v2759_v51 }
 0x4ac   :  { %v2709_v25 = vrot.slane %v2708_v23, 2  ;;  %v2782_v46 = vadd.f32 %v2781_v0, %v2780_v59 }
 0x4ad   :  { %v2689_v2 = vadd.f32 %v2688_v47, %v2687_v24  ;;  %v2762_v42 = vrot.slane %v2761_v43, 2 }
 0x4ae   :  { %v2710_v29 = vadd.f32 %v2709_v25, %v2708_v23  ;;  %v2783_v21 = vrot.slane %v2782_v46, 2 }
 0x4af   :  { %v2690_v5 = vrot.slane %v2689_v2, 1  ;;  %v2763_v44 = vadd.f32 %v2762_v42, %v2761_v43 }
 0x4b0   :  { %v2711_v45 = vrot.slane %v2710_v29, 1  ;;  %v2784_v34 = vadd.f32 %v2783_v21, %v2782_v46 }
 0x4b1   :  { %v2691_v9 = vadd.f32 %v2690_v5, %v2689_v2  ;;  %v2764_v10 = vrot.slane %v2763_v44, 1 }
 0x4b2   :  { %v2712_v50 = vadd.f32 %v2711_v45, %v2710_v29  ;;  %v2785_v32 = vrot.slane %v2784_v34, 1 }
 0x4b3   :  { %v2765_v22 = vadd.f32 %v2764_v10, %v2763_v44  ;;  %v11748_v57 = vmul.f32 0.03125, %v2691_v9 }
 0x4b4   :  { %v2786_v33 = vadd.f32 %v2785_v32, %v2784_v34  ;;  %v11750_v55 = vmul.f32 0.03125, %v2712_v50 }
 0x4b5   :  { %v2789_v51 = vmul.f32 0.03125, %v2765_v22  ;;  %v2791_v47 = vmul.f32 %v11748_v57, %v11748_v57  ;;  %v2823_v0 = vsub.f32 %v11732_v36, %v11748_v57  ;;  %v2825_v21 = vsub.f32 %v11739_v31, %v11748_v57 }
 0x4b6   :  { %v2790_v43 = vmul.f32 0.03125, %v2786_v33  ;;  %v2792_v29 = vmul.f32 %v11750_v55, %v11750_v55  ;;  %v2824_v9 = vsub.f32 %v11735_v11, %v11750_v55  ;;  %v2826_v23 = vsub.f32 %v11743_v13, %v11750_v55 }
 0x4b7   :  { %v2793_v24 = vsub.f32 %v2789_v51, %v2791_v47  ;;  %v2796_v18 = vsub.f32 %v11557_v16, %v11750_v55  ;;  %v2798_v36 = vsub.f32 %v11566_v15, %v11750_v55  ;;  %v2795_v31 = vsub.f32 %v11550_v28, %v11748_v57 }
 0x4b8   :  { %v2794_v59 = vsub.f32 %v2790_v43, %v2792_v29  ;;  %v2797_v27 = vsub.f32 %v11560_v12, %v11748_v57  ;;  %v2800_v11 = vsub.f32 %v11583_v35, %v11750_v55  ;;  %v2802_v13 = vsub.f32 %v11594_v37, %v11750_v55  ;;  %v2907_v43 = vld [vmem:[%s14208_s8] sm:$0x3] }
 0x4b9   :  { %v2827_v25 = vadd.f32 1e-05, %v2793_v24  ;;  %v2799_v16 = vsub.f32 %v11576_v48, %v11748_v57  ;;  %v2801_v15 = vsub.f32 %v11587_v61, %v11748_v57  ;;  %v2804_v28 = vsub.f32 %v11609_v38, %v11750_v55 }
 0x4ba   :  { %v2828_v46 = vadd.f32 1e-05, %v2794_v59  ;;  %v2806_v12 = vsub.f32 %v11620_v17, %v11750_v55  ;;  %v2803_v2 = vsub.f32 %v11602_v3, %v11748_v57  ;;  %v2805_v42 = vsub.f32 %v11613_v4, %v11748_v57 }
 0x4bb   :  { %10381 = vrsqrt.f32 %v2827_v25  ;;  %v2808_v48 = vsub.f32 %v11635_v54, %v11750_v55  ;;  %v11821_v59 = vsub.s32 0, %v11061_v49  ;;  %v2863_v25 = vld [vmem:[%s14207_s7] sm:$0x3]  ;;  %v14334_v3 = vsub.f32 %v11628_v39, %v11748_v57 }
 0x4bc   :  { %10383 = vrsqrt.f32 %v2828_v46  ;;  %v11827_v46 = vsub.s32 1, %v11061_v49  ;;  %v14335_v4 = vsub.f32 %v11639_v40, %v11748_v57 }
 0x4bd   :  { %14331 = vst [vmem:[#allocation22_spill] sm:$0xff] %v11821_v59  ;;  %v11833_v47 = vrot.slane %v2863_v25, %v11821_v59  ;;  %v11838_v24 = vrot.slane %v2907_v43, %v11821_v59  ;;  %v10102_v59 = vld [vmem:[#allocation5 + $0x46c] ss:$16 sps:$4 sm:$0xff]  }
 0x4be   :  { %14332 = vst [vmem:[#allocation23_spill] sm:$0xff] %v11827_v46  ;;  %v11841_v51 = vrot.slane %v2863_v25, %v11827_v46  ;;  %v11844_v33 = vrot.slane %v2907_v43, %v11827_v46 }
 0x4c5   :  { %v11835_v29 = vpop.eup %10381 }
 0x4c6   :  { %v11846_v22 = vpop.eup %10383  ;;  %v2859_v32 = vmul.f32 %v11835_v29, %v2823_v0  ;;  %v2861_v50 = vmul.f32 %v11835_v29, %v2825_v21  ;;  %v2831_v10 = vmul.f32 %v11835_v29, %v2795_v31  ;;  %v2833_v34 = vmul.f32 %v11835_v29, %v2797_v27 }
 0x4c7   :  { %v2860_v45 = vmul.f32 %v11846_v22, %v2824_v9  ;;  %v2862_v17 = vmul.f32 %v11846_v22, %v2826_v23  ;;  %v2832_v25 = vmul.f32 %v11846_v22, %v2796_v18  ;;  %v2834_v44 = vmul.f32 %v11846_v22, %v2798_v36 }
 0x4c8   :  { %v2903_v43 = vmul.f32 %v11833_v47, %v2859_v32  ;;  %v2905_v5 = vmul.f32 %v11833_v47, %v2861_v50  ;;  %v2875_v0 = vmul.f32 %v11833_v47, %v2831_v10  ;;  %v2877_v21 = vmul.f32 %v11833_v47, %v2833_v34 }
 0x4c9   :  { %v2904_v31 = vmul.f32 %v11841_v51, %v2860_v45  ;;  %v2906_v27 = vmul.f32 %v11841_v51, %v2862_v17  ;;  %v2876_v9 = vmul.f32 %v11841_v51, %v2832_v25  ;;  %v2878_v23 = vmul.f32 %v11841_v51, %v2834_v44 }
 0x4ca   :  { %v2947_v18 = vadd.f32 %v11838_v24, %v2903_v43  ;;  %v2949_v36 = vadd.f32 %v11838_v24, %v2905_v5  ;;  %v2919_v32 = vadd.f32 %v11838_v24, %v2875_v0  ;;  %v2921_v50 = vadd.f32 %v11838_v24, %v2877_v21 }
 0x4cb   :  { %v2948_v10 = vadd.f32 %v11844_v33, %v2904_v31  ;;  %v2950_v34 = vadd.f32 %v11844_v33, %v2906_v27  ;;  %v2920_v45 = vadd.f32 %v11844_v33, %v2876_v9  ;;  %v2922_v17 = vadd.f32 %v11844_v33, %v2878_v23 }
 0x4cc   :  { %10385 = vtanh.f32 %v2947_v18  ;;  %v2836_v44 = vmul.f32 %v11846_v22, %v2800_v11  ;;  %v2838_v5 = vmul.f32 %v11846_v22, %v2802_v13  ;;  %v2835_v25 = vmul.f32 %v11835_v29, %v2799_v16 }
 0x4cd   :  { %10387 = vtanh.f32 %v2949_v36  ;;  %v2837_v43 = vmul.f32 %v11835_v29, %v2801_v15  ;;  %v2840_v35 = vmul.f32 %v11846_v22, %v2804_v28  ;;  %v2842_v11 = vmul.f32 %v11846_v22, %v2806_v12 }
 0x4ce   :  { %10389 = vtanh.f32 %v2948_v10  ;;  %v2880_v37 = vmul.f32 %v11841_v51, %v2836_v44  ;;  %v2882_v13 = vmul.f32 %v11841_v51, %v2838_v5  ;;  %v2879_v16 = vmul.f32 %v11833_v47, %v2835_v25 }
 0x4cf   :  { %10391 = vtanh.f32 %v2950_v34  ;;  %v2881_v0 = vmul.f32 %v11833_v47, %v2837_v43  ;;  %v2884_v61 = vmul.f32 %v11841_v51, %v2840_v35  ;;  %v2886_v15 = vmul.f32 %v11841_v51, %v2842_v11 }
 0x4d0   :  { %10393 = vtanh.f32 %v2920_v45  ;;  %v2924_v38 = vadd.f32 %v11844_v33, %v2880_v37  ;;  %v2926_v28 = vadd.f32 %v11844_v33, %v2882_v13  ;;  %v2923_v12 = vadd.f32 %v11838_v24, %v2879_v16 }
 0x4d1   :  { %10395 = vtanh.f32 %v2922_v17  ;;  %v2925_v21 = vadd.f32 %v11838_v24, %v2881_v0  ;;  %v2928_v31 = vadd.f32 %v11844_v33, %v2884_v61  ;;  %v2930_v27 = vadd.f32 %v11844_v33, %v2886_v15 }
 0x4d2   :  { %10397 = vtanh.f32 %v2919_v32  ;;  %v2839_v9 = vmul.f32 %v11835_v29, %v2803_v2  ;;  %v2841_v23 = vmul.f32 %v11835_v29, %v2805_v42  ;;  %v2844_v18 = vmul.f32 %v11846_v22, %v2808_v48 }
 0x4d3   :  { %10399 = vtanh.f32 %v2921_v50  ;;  %v14333_v36 = vsub.f32 %v11646_v7, %v11750_v55  ;;  %v2843_v2 = vmul.f32 %v11835_v29, %v14334_v3  ;;  %v2845_v42 = vmul.f32 %v11835_v29, %v14335_v4  ;;  %v9896_v4 = vld [vmem:[#allocation5 + $0x208] ss:$16 sps:$4 sm:$0xff]  }
 0x4d4   :  { %10401 = vtanh.f32 %v2924_v38  ;;  %v2883_v54 = vmul.f32 %v11833_v47, %v2839_v9  ;;  %v2885_v48 = vmul.f32 %v11833_v47, %v2841_v23  ;;  %v2888_v50 = vmul.f32 %v11841_v51, %v2844_v18 }
 0x4d5   :  { %v2846_v32 = vmul.f32 %v11846_v22, %v14333_v36  ;;  %10403 = vtanh.f32 %v2926_v28  ;;  %v2887_v10 = vmul.f32 %v11833_v47, %v2843_v2  ;;  %v2889_v39 = vmul.f32 %v11833_v47, %v2845_v42 }
 0x4d6   :  { %v10386_v34 = vpop.eup %10385  ;;  %10405 = vtanh.f32 %v2923_v12  ;;  %v2927_v40 = vadd.f32 %v11838_v24, %v2883_v54  ;;  %v2929_v45 = vadd.f32 %v11838_v24, %v2885_v48  ;;  %v2932_v17 = vadd.f32 %v11844_v33, %v2888_v50  ;;  %v9904_v50 = vld [vmem:[#allocation5 + $0x22c] ss:$16 sps:$4 sm:$0xff]  }
 0x4d7   :  { %v2890_v7 = vmul.f32 %v11841_v51, %v2846_v32  ;;  %v10388_v44 = vpop.eup %10387  ;;  %10407 = vtanh.f32 %v2925_v21  ;;  %v2931_v25 = vadd.f32 %v11838_v24, %v2887_v10  ;;  %v2933_v43 = vadd.f32 %v11838_v24, %v2889_v39 }
 0x4d8   :  { %v10390_v35 = vpop.eup %10389  ;;  %v2997_v11 = vpack.c.bf16 %v10388_v44, %v10386_v34  ;;  %10409 = vtanh.f32 %v2928_v31  ;;  %v14336_v37 = vsub.f32 %v11661_v58, %v11750_v55  ;;  %v14337_v16 = vsub.f32 %v11672_v30, %v11750_v55 }
 0x4d9   :  { %v2934_v5 = vadd.f32 %v11844_v33, %v2890_v7  ;;  %v10392_v61 = vpop.eup %10391  ;;  %10411 = vtanh.f32 %v2930_v27  ;;  %v14338_v15 = vsub.f32 %v11687_v52, %v11750_v55  ;;  %v14339_v28 = vsub.f32 %v11698_v20, %v11750_v55 }
 0x4da   :  { %v2848_v13 = vmul.f32 %v11846_v22, %v14336_v37  ;;  %v2850_v0 = vmul.f32 %v11846_v22, %v14337_v16  ;;  %v14340_v58 = vsub.f32 %v11654_v14, %v11748_v57  ;;  %v10394_v30 = vpop.eup %10393  ;;  %3013 = vst [vmem:[#allocation4 + $0xa0] sm:$0xff] %v2997_v11  ;;  %v2998_v31 = vpack.c.bf16 %v10392_v61, %v10390_v35  ;;  %v9902_v11 = vld [vmem:[#allocation5 + $0x228] ss:$16 sps:$4 sm:$0xff]  }
 0x4db   :  { %v2852_v38 = vmul.f32 %v11846_v22, %v14338_v15  ;;  %v2854_v12 = vmul.f32 %v11846_v22, %v14339_v28  ;;  %10413 = vtanh.f32 %v2927_v40  ;;  %v10396_v9 = vpop.eup %10395  ;;  %v14341_v18 = vsub.f32 %v11665_v26, %v11748_v57  ;;  %v9907_v15 = vld [vmem:[#allocation5 + $0x24c] ss:$16 sps:$4 sm:$0xff]  }
 0x4dc   :  { %v2847_v21 = vmul.f32 %v11835_v29, %v14340_v58  ;;  %v2892_v27 = vmul.f32 %v11841_v51, %v2848_v13  ;;  %v2894_v52 = vmul.f32 %v11841_v51, %v2850_v0  ;;  %10415 = vtanh.f32 %v2929_v45  ;;  %v10398_v36 = vpop.eup %10397  ;;  %3014 = vst [vmem:[#allocation4 + $0xa8] sm:$0xff] %v2998_v31 }
 0x4dd   :  { %v2896_v23 = vmul.f32 %v11841_v51, %v2852_v38  ;;  %v2898_v20 = vmul.f32 %v11841_v51, %v2854_v12  ;;  %v2849_v14 = vmul.f32 %v11835_v29, %v14341_v18  ;;  %v11966_v32 = vpack.c.bf16 %v10396_v9, %v10394_v30  ;;  %v10400_v2 = vpop.eup %10399 }
 0x4de   :  { %10417 = vtanh.f32 %v2932_v17  ;;  %v2936_v3 = vadd.f32 %v11844_v33, %v2892_v27  ;;  %v2938_v42 = vadd.f32 %v11844_v33, %v2894_v52  ;;  %v2891_v54 = vmul.f32 %v11833_v47, %v2847_v21  ;;  %v10402_v48 = vpop.eup %10401  ;;  %v9905_v52 = vld [vmem:[#allocation5 + $0x248] ss:$16 sps:$4 sm:$0xff]  }
 0x4df   :  { %10419 = vtanh.f32 %v2934_v5  ;;  %3000 = vst [vmem:[#allocation4 + $0x18] sm:$0xff] %v11966_v32  ;;  %3592 = vmatprep.mubr.bf16.mxu1 %v11966_v32  ;;  %v11973_v26 = vpack.c.bf16 %v10400_v2, %v10398_v36  ;;  %v2940_v7 = vadd.f32 %v11844_v33, %v2896_v23  ;;  %v2893_v10 = vmul.f32 %v11833_v47, %v2849_v14  ;;  %v10404_v39 = vpop.eup %10403  ;;  %v9910_v36 = vld [vmem:[#allocation5 + $0x26c] ss:$16 sps:$4 sm:$0xff]  }
 0x4e0   :  { %10421 = vtanh.f32 %v2931_v25  ;;  %v2942_v34 = vadd.f32 %v11844_v33, %v2898_v20  ;;  %v14342_v40 = vsub.f32 %v11680_v1, %v11748_v57  ;;  %v14343_v17 = vsub.f32 %v11691_v8, %v11748_v57  ;;  %v10406_v5 = vpop.eup %10405 }
 0x4e1   :  { %10423 = vtanh.f32 %v2933_v43  ;;  %2999 = vst [vmem:[#allocation4 + $0x10] sm:$0xff] %v11973_v26  ;;  %3593 = vmatmul.mubr.bf16.vlgmr.msra.gmra.mrb[32].mxu1 %v11973_v26  ;;  %v11988_v25 = vpack.c.bf16 %v10404_v39, %v10402_v48  ;;  %v2935_v43 = vadd.f32 %v11838_v24, %v2891_v54  ;;  %v2937_v35 = vadd.f32 %v11838_v24, %v2893_v10  ;;  %v10408_v1 = vpop.eup %10407 }
 0x4e2   :  { %v2851_v45 = vmul.f32 %v11835_v29, %v14342_v40  ;;  %v2853_v44 = vmul.f32 %v11835_v29, %v14343_v17  ;;  %10425 = vtanh.f32 %v2936_v3  ;;  %3674 = vmatpush1.bf16.msra.mxu1 %v9896_v4  ;;  %v14344_v13 = vsub.f32 %v11713_v41, %v11750_v55  ;;  %v10410_v0 = vpop.eup %10409  ;;  %v9913_v17 = vld [vmem:[#allocation5 + $0x28c] ss:$16 sps:$4 sm:$0xff]  }
 0x4e3   :  { %10427 = vtanh.f32 %v2938_v42  ;;  %3602 = vmatprep.mubr.bf16.mxu1 %v11988_v25  ;;  %3675 = vmatprep.subr.bf16.mxu1 %v9904_v50  ;;  %v11999_v61 = vpack.c.bf16 %v10408_v1, %v10406_v5  ;;  %v10412_v38 = vpop.eup %10411  ;;  %v14345_v12 = vsub.f32 %v11724_v19, %v11750_v55  ;;  %v14346_v19 = vsub.f32 %v11706_v63, %v11748_v57 }
 0x4e4   :  { %v2895_v8 = vmul.f32 %v11833_v47, %v2851_v45  ;;  %v2897_v37 = vmul.f32 %v11833_v47, %v2853_v44  ;;  %v2856_v16 = vmul.f32 %v11846_v22, %v14344_v13  ;;  %10429 = vtanh.f32 %v2940_v7  ;;  %v9911_v13 = vld [vmem:[#allocation5 + $0x288] ss:$16 sps:$4 sm:$0xff]  }
 0x4e5   :  { %10431 = vtanh.f32 %v2942_v34  ;;  %v2858_v58 = vmul.f32 %v11846_v22, %v14345_v12  ;;  %v10414_v41 = vpop.eup %10413  ;;  %v12006_v21 = vpack.c.bf16 %v10412_v38, %v10410_v0  ;;  %v2855_v55 = vmul.f32 %v11835_v29, %v14346_v19  ;;  %v5101_v19 = vld [vmem:[#allocation4 + $0x58] sm:$0xf] }
 0x4e6   :  { %v2939_v28 = vadd.f32 %v11838_v24, %v2895_v8  ;;  %10433 = vtanh.f32 %v2935_v43  ;;  %v2941_v30 = vadd.f32 %v11838_v24, %v2897_v37  ;;  %v10416_v31 = vpop.eup %10415  ;;  %v5099_v27 = vld [vmem:[#allocation4 + $0x18] sm:$0xf0]  ;;  %3676 = vmatpush1.bf16.msra.mxu1 %v9902_v11  ;;  %v2900_v9 = vmul.f32 %v11841_v51, %v2856_v16 }
 0x4e7   :  { %10435 = vtanh.f32 %v2937_v35  ;;  %v2902_v23 = vmul.f32 %v11841_v51, %v2858_v58  ;;  %v5118_v20 = vrot.slane %v5099_v27, 4  ;;  %v5119_v18 = vrot.slane %v11988_v25, 4  ;;  %3677 = vmatprep.subr.bf16.mxu1 %v9907_v15  ;;  %v9919_v27 = vld [vmem:[#allocation5 + $0x2cc] ss:$16 sps:$4 sm:$0xff]  }
 0x4e8   :  { %v10418_v22 = vpop.eup %10417  ;;  %v5123_v14 = vrot.slane %v12006_v21, 4  ;;  %v12017_v3 = vpack.c.bf16 %v10416_v31, %v10414_v41  ;;  %v5098_v4 = vld [vmem:[#allocation4 + $0x10] sm:$0xf0]  ;;  %10437 = vtanh.f32 %v2939_v28  ;;  %v2944_v51 = vadd.f32 %v11844_v33, %v2900_v9 }
 0x4e9   :  { %v10420_v2 = vpop.eup %10419  ;;  %v2946_v42 = vadd.f32 %v11844_v33, %v2902_v23  ;;  %v14347_v63 = vsub.f32 %v11717_v60, %v11748_v57  ;;  %v12026_v50 = vsel %vm5114_vm12, %v5118_v20, %v5119_v18  ;;  %v5115_v7 = vrot.slane %v5098_v4, 4  ;;  %3603 = vmatmul.mubr.bf16.gmra.mrb[36].mxu1 %v11999_v61  ;;  %v9908_v33 = vld [vmem:[#allocation5 + $0x268] ss:$16 sps:$4 sm:$0xff]  }
 0x4ea   :  { %v10422_v48 = vpop.eup %10421  ;;  %v5116_v10 = vrot.slane %v11999_v61, 4  ;;  %v3060_v34 = vrot.slane %v11966_v32, 6  ;;  %5696 = vmatprep.mubr.bf16.mxu0 %v12026_v50  ;;  %3678 = vmatpush1.bf16.msra.mxu1 %v9905_v52  ;;  %v12032_v40 = vpack.c.bf16 %v10420_v2, %v10418_v22  ;;  %10439 = vtanh.f32 %v2941_v30  ;;  %v9914_v30 = vld [vmem:[#allocation5 + $0x2a8] ss:$16 sps:$4 sm:$0xff]  }
 0x4eb   :  { %v2857_v54 = vmul.f32 %v11835_v29, %v14347_v63  ;;  %v10424_v39 = vpop.eup %10423  ;;  %v2899_v60 = vmul.f32 %v11833_v47, %v2855_v55  ;;  %v3064_v29 = vrot.slane %v11988_v25, 6  ;;  %3612 = vmatprep.mubr.bf16.mxu1 %v12006_v21  ;;  %3679 = vmatprep.subr.bf16.mxu1 %v9910_v36  ;;  %10441 = vtanh.f32 %v2944_v51  ;;  %v9917_v20 = vld [vmem:[#allocation5 + $0x2c8] ss:$16 sps:$4 sm:$0xff]   ;;  %v9922_v36 = vld [vmem:[#allocation5 + $0x2ec] ss:$16 sps:$4 sm:$0xff]  }
 0x4ec   :  { %v10426_v57 = vpop.eup %10425  ;;  %v12037_v45 = vsel %vm5114_vm12, %v5115_v7, %v5116_v10  ;;  %v12040_v44 = vpack.c.bf16 %v10424_v39, %v10422_v48  ;;  %v12046_v43 = vsel %vm5114_vm12, %v5119_v18, %v5123_v14  ;;  %3006 = vst [vmem:[#allocation4 + $0x48] sm:$0xff] %v12032_v40  ;;  %10443 = vtanh.f32 %v2946_v42  ;;  %v9920_v63 = vld [vmem:[#allocation5 + $0x2e8] ss:$16 sps:$4 sm:$0xff]   ;;  %v9925_v48 = vld [vmem:[#allocation5 + $0x30c] ss:$16 sps:$4 sm:$0xff]  }
 0x4ed   :  { %v10428_v5 = vpop.eup %10427  ;;  %5697 = vmatmul.mubr.bf16.vlgmr.msra.gmra.mrb[48].mxu0 %v12037_v45  ;;  %v2901_v35 = vmul.f32 %v11833_v47, %v2857_v54  ;;  %v2943_v1 = vadd.f32 %v11838_v24, %v2899_v60  ;;  %v5121_v15 = vrot.slane %v12017_v3, 4  ;;  %v9916_v47 = vld [vmem:[#allocation5 + $0x2ac] ss:$16 sps:$4 sm:$0xff]   ;;  %v5127_v12 = vrot.slane %v12032_v40, 4  ;;  %v5104_v39 = vld [vmem:[#allocation4 + $0xb0] sm:$0xf] }
 0x4ee   :  { %v10430_v11 = vpop.eup %10429  ;;  %5706 = vmatprep.mubr.bf16.mxu0 %v12046_v43  ;;  %3005 = vst [vmem:[#allocation4 + $0x40] sm:$0xff] %v12040_v44  ;;  %v12053_v8 = vpack.c.bf16 %v10428_v5, %v10426_v57  ;;  %3680 = vmatpush1.bf16.msra.mxu1 %v9908_v33  ;;  %v5125_v18 = vrot.slane %v12040_v44, 4  ;;  %v5131_v51 = vrot.slane %v5101_v19, 4  ;;  %v5100_v60 = vld [vmem:[#allocation4 + $0x50] sm:$0xf]  ;;  %v12104_v5 = vld [vmem:[#allocation4 + $0xa0] sm:$0xff] }
 0x4ef   :  { %v10432_v37 = vpop.eup %10431  ;;  %v2945_v16 = vadd.f32 %v11838_v24, %v2901_v35  ;;  %10445 = vtanh.f32 %v2943_v1  ;;  %3681 = vmatprep.subr.bf16.mxu1 %v9913_v17  ;;  %v12066_v24 = vsel %vm166_vm0, %v3060_v34, %v3064_v29  ;;  %v12073_v31 = vsel %vm5114_vm12, %v5116_v10, %v5121_v15  ;;  %v12096_v10 = vld [vmem:[#allocation4 + $0xa8] sm:$0xff] }
 0x4f0   :  { %v10434_v0 = vpop.eup %10433  ;;  %3008 = vst [vmem:[#allocation4 + $0x78] sm:$0xff] %v12053_v8  ;;  %v12058_v38 = vpack.c.bf16 %v10432_v37, %v10430_v11  ;;  %v12080_v9 = vsel %vm5114_vm12, %v5123_v14, %v5127_v12  ;;  %v5105_v14 = vld [vmem:[#allocation4 + $0xb8] sm:$0xf]  ;;  %v12092_v54 = vsel %vm5114_vm12, %v5121_v15, %v5125_v18  ;;  %v12100_v33 = vsel %vm5114_vm12, %v5127_v12, %v5131_v51 }
 0x4f1   :  { %v10436_v28 = vpop.eup %10435  ;;  %10447 = vtanh.f32 %v2945_v16  ;;  %3613 = vmatmul.mubr.bf16.gmra.mrb[40].mxu1 %v12017_v3  ;;  %v5149_v57 = vrot.slane %v5105_v14, 4  ;;  %v9923_v35 = vld [vmem:[#allocation5 + $0x308] ss:$16 sps:$4 sm:$0xff]   ;;  %v5145_v1 = vrot.slane %v12096_v10, 4  ;;  %v5147_v11 = vrot.slane %v5104_v39, 4 }
 0x4f2   :  { %v12069_v58 = vpack.c.bf16 %v10436_v28, %v10434_v0  ;;  %v10438_v41 = vpop.eup %10437  ;;  %3682 = vmatpush1.bf16.msra.mxu1 %v9911_v13  ;;  %3622 = vmatprep.mubr.bf16.mxu1 %v12032_v40  ;;  %v5129_v37 = vrot.slane %v5100_v60, 4  ;;  %v9928_v13 = vld [vmem:[#allocation5 + $0x32c] ss:$16 sps:$4 sm:$0xff]   ;;  %v5143_v15 = vrot.slane %v12104_v5, 4  ;;  %v5137_v28 = vrot.slane %v12058_v38, 4 }
 0x4f3   :  { %3683 = vmatprep.subr.bf16.mxu1 %v9916_v47  ;;  %v12111_v47 = vsel %vm5114_vm12, %v5145_v1, %v5149_v57  ;;  %v9929_v51 = vld [vmem:[#allocation5 + $0x348] ss:$16 sps:$4 sm:$0xff]   ;;  %v9937_v57 = vld [vmem:[#allocation5 + $0x38c] ss:$16 sps:$4 sm:$0xff]  }
 0x4f4   :  { %3007 = vst [vmem:[#allocation4 + $0x70] sm:$0xff] %v12069_v58  ;;  %v10440_v52 = vpop.eup %10439  ;;  %v9932_v39 = vld [vmem:[#allocation5 + $0x368] ss:$16 sps:$4 sm:$0xff]  }
 0x4f5   :  { %5707 = vmatmul.mubr.bf16.gmra.mrb[52].mxu0 %v12073_v31  ;;  %v10442_v23 = vpop.eup %10441  ;;  %v12083_v55 = vpack.c.bf16 %v10440_v52, %v10438_v41  ;;  %v9926_v41 = vld [vmem:[#allocation5 + $0x328] ss:$16 sps:$4 sm:$0xff]   ;;  %v9931_v52 = vld [vmem:[#allocation5 + $0x34c] ss:$16 sps:$4 sm:$0xff]  }
 0x4f6   :  { %5716 = vmatprep.mubr.bf16.mxu0 %v12080_v9  ;;  %v10444_v22 = vpop.eup %10443  ;;  %3684 = vmatpush1.bf16.msra.mxu1 %v9914_v30  ;;  %v12118_v30 = vsel %vm5114_vm12, %v5143_v15, %v5147_v11  ;;  %v9938_v11 = vld [vmem:[#allocation5 + $0x3a8] ss:$16 sps:$4 sm:$0xff]  }
 0x4f7   :  { %3685 = vmatprep.subr.bf16.mxu1 %v9919_v27  ;;  %v12086_v2 = vpack.c.bf16 %v10444_v22, %v10442_v23  ;;  %v5103_v17 = vld [vmem:[#allocation4 + $0x78] sm:$0xf0]  ;;  %v12121_v27 = vsel %vm5114_vm12, %v5125_v18, %v5129_v37  ;;  %v5134_v18 = vrot.slane %v12083_v55, 4 }
 0x4f8   :  { %v5136_v16 = vrot.slane %v5103_v17, 4  ;;  %v9935_v17 = vld [vmem:[#allocation5 + $0x388] ss:$16 sps:$4 sm:$0xff]   ;;  %v9943_v37 = vld [vmem:[#allocation5 + $0x3cc] ss:$16 sps:$4 sm:$0xff]  }
 0x4f9   :  { %v10446_v4 = vpop.eup %10445  ;;  %3623 = vmatmul.mubr.bf16.gmra.mrb[44].mxu1 %v12040_v44  ;;  %3012 = vst [vmem:[#allocation4 + $0x98] sm:$0xff] %v12086_v2 }
 0x4fa   :  { %3686 = vmatpush1.bf16.msra.mxu1 %v9917_v20  ;;  %3632 = vmatprep.mubr.bf16.mxu1 %v12053_v8  ;;  %v12131_v22 = vsel %vm5114_vm12, %v5136_v16, %v5137_v28  ;;  %v9946_v16 = vld [vmem:[#allocation5 + $0x3ec] ss:$16 sps:$4 sm:$0xff]  }
 0x4fb   :  { %v10448_v42 = vpop.eup %10447  ;;  %3687 = vmatprep.subr.bf16.mxu1 %v9922_v36  ;;  %v5102_v20 = vld [vmem:[#allocation4 + $0x70] sm:$0xf0] }
 0x4fc   :  { %v12094_v7 = vpack.c.bf16 %v10448_v42, %v10446_v4  ;;  %v5133_v14 = vrot.slane %v5102_v20, 4  ;;  %v9934_v42 = vld [vmem:[#allocation5 + $0x36c] ss:$16 sps:$4 sm:$0xff]   ;;  %v9950_v20 = vld [vmem:[#allocation5 + $0x20] ss:$16 sps:$4 sm:$0xff]  }
 0x4fd   :  { %5717 = vmatmul.mubr.bf16.gmra.mrb[56].mxu0 %v12092_v54 }
 0x4fe   :  { %5726 = vmatprep.mubr.bf16.mxu0 %v12100_v33  ;;  %3011 = vst [vmem:[#allocation4 + $0x90] sm:$0xff] %v12094_v7  ;;  %3688 = vmatpush1.bf16.msra.mxu1 %v9920_v63  ;;  %v12147_v60 = vsel %vm5114_vm12, %v5133_v14, %v5134_v18  ;;  %v9956_v14 = vld [vmem:[#allocation5 + $0x60] ss:$16 sps:$4 sm:$0xff]  }
 0x4ff   :  { %3689 = vmatprep.subr.bf16.mxu1 %v9925_v48 }
 0x500   :  { %v12107_v0 = vld [vmem:[#allocation4 + $0x98] sm:$0xff] }
 0x501   :  { %3633 = vmatmul.mubr.bf16.gmra.mrb[48].mxu1 %v12069_v58  ;;  %v5141_v12 = vrot.slane %v12107_v0, 4 }
 0x502   :  { %3690 = vmatpush1.bf16.msra.mxu1 %v9923_v35  ;;  %3642 = vmatprep.mubr.bf16.mxu1 %v12058_v38  ;;  %v9940_v35 = vld [vmem:[#allocation5 + $0x3ac] ss:$16 sps:$4 sm:$0xff]  }
 0x503   :  { %3691 = vmatprep.subr.bf16.mxu1 %v9928_v13  ;;  %v12124_v23 = vsel %vm5114_vm12, %v5137_v28, %v5141_v12  ;;  %v12127_v19 = vsel %vm5114_vm12, %v5141_v12, %v5145_v1  ;;  %v12151_v1 = vld [vmem:[#allocation4 + $0xa8] sm:$0xff]  ;;  %v9949_v12 = vld [vmem:[#allocation5 + $0x4] ss:$16 sps:$4 sm:$0xff]  }
 0x504   :  { %v9941_v13 = vld [vmem:[#allocation5 + $0x3c8] ss:$16 sps:$4 sm:$0xff]  }
 0x505   :  { %5727 = vmatmul.mubr.bf16.gmra.mrb[60].mxu0 %v12121_v27  ;;  %v12133_v36 = vld [vmem:[#allocation4 + $0x90] sm:$0xff]  ;;  %v9944_v28 = vld [vmem:[#allocation5 + $0x3e8] ss:$16 sps:$4 sm:$0xff]  }
 0x506   :  { %5736 = vmatprep.mubr.bf16.mxu0 %v12131_v22  ;;  %v5139_v4 = vrot.slane %v12133_v36, 4  ;;  %3692 = vmatpush1.bf16.msra.mxu1 %v9926_v41  ;;  %v9947_v41 = vld [vmem:[#allocation5] ss:$16 sps:$4 sm:$0xff]  }
 0x507   :  { %3693 = vmatprep.subr.bf16.mxu1 %v9931_v52  ;;  %v9952_v52 = vld [vmem:[#allocation5 + $0x24] ss:$16 sps:$4 sm:$0xff]  }
 0x508   :  { %v12139_v63 = vsel %vm5114_vm12, %v5134_v18, %v5139_v4  ;;  %v12142_v48 = vsel %vm5114_vm12, %v5139_v4, %v5143_v15  ;;  %v12154_v15 = vld [vmem:[#allocation4 + $0xa0] sm:$0xff] }
 0x509   :  { %3643 = vmatmul.mubr.bf16.gmra.mrb[52].mxu1 %v12083_v55  ;;  %v9955_v18 = vld [vmem:[#allocation5 + $0x44] ss:$16 sps:$4 sm:$0xff]   ;;  %v9953_v4 = vld [vmem:[#allocation5 + $0x40] ss:$16 sps:$4 sm:$0xff]  }
 0x50a   :  { %3694 = vmatpush1.bf16.msra.mxu1 %v9929_v51  ;;  %3652 = vmatprep.mubr.bf16.mxu1 %v12086_v2  ;;  %v9958_v51 = vld [vmem:[#allocation5 + $0x64] ss:$16 sps:$4 sm:$0xff]  }
 0x50b   :  { %3695 = vmatprep.subr.bf16.mxu1 %v9934_v42  ;;  %v9961_v42 = vld [vmem:[#allocation5 + $0x84] ss:$16 sps:$4 sm:$0xff]  }
 0x50d   :  { %5737 = vmatmul.mubr.bf16.gmra.mrb[64].mxu0 %v12147_v60 }
 0x50e   :  { %3696 = vmatpush1.bf16.msra.mxu1 %v9932_v39  ;;  %v9959_v39 = vld [vmem:[#allocation5 + $0x80] ss:$16 sps:$4 sm:$0xff]  }
 0x50f   :  { %3697 = vmatprep.subr.bf16.mxu1 %v9937_v57  ;;  %v9964_v57 = vld [vmem:[#allocation5 + $0xa4] ss:$16 sps:$4 sm:$0xff]  }
 0x511   :  { %3653 = vmatmul.mubr.bf16.gmra.mrb[56].mxu1 %v12094_v7 }
 0x512   :  { %3698 = vmatpush1.bf16.msra.mxu1 %v9935_v17  ;;  %3662 = vmatprep.mubr.bf16.mxu1 %v12151_v1  ;;  %v9962_v17 = vld [vmem:[#allocation5 + $0xa0] ss:$16 sps:$4 sm:$0xff]  }
 0x513   :  { %3699 = vmatprep.subr.bf16.mxu1 %v9940_v35  ;;  %v9967_v35 = vld [vmem:[#allocation5 + $0xc4] ss:$16 sps:$4 sm:$0xff]  }
 0x516   :  { %3700 = vmatpush1.bf16.msra.mxu1 %v9938_v11  ;;  %v9965_v11 = vld [vmem:[#allocation5 + $0xc0] ss:$16 sps:$4 sm:$0xff]  }
 0x517   :  { %3701 = vmatprep.subr.bf16.mxu1 %v9943_v37  ;;  %v9970_v37 = vld [vmem:[#allocation5 + $0xe4] ss:$16 sps:$4 sm:$0xff]  }
 0x519   :  { %3663 = vmatmul.mubr.bf16.gmra.mrb[60].mxu1 %v12154_v15 }
 0x51a   :  { %3702 = vmatpush1.bf16.msra.mxu1 %v9941_v13  ;;  %3705 = vmatprep.mubr.bf16.mxu1 %v11966_v32  ;;  %v9968_v13 = vld [vmem:[#allocation5 + $0xe0] ss:$16 sps:$4 sm:$0xff]   ;;  %v9998_v32 = vld [vmem:[#allocation5 + $0x28] ss:$16 sps:$4 sm:$0xff]  }
 0x51b   :  { %3703 = vmatprep.subr.bf16.mxu1 %v9946_v16  ;;  %v9973_v16 = vld [vmem:[#allocation5 + $0x104] ss:$16 sps:$4 sm:$0xff]  }
 0x51e   :  { %3704 = vmatpush1.bf16.msra.mxu1 %v9944_v28  ;;  %v9971_v28 = vld [vmem:[#allocation5 + $0x100] ss:$16 sps:$4 sm:$0xff]  }
 0x51f   :  { %4106 = vmatprep.subr.bf16.mxu1 %v9949_v12  ;;  %v9976_v12 = vld [vmem:[#allocation5 + $0x124] ss:$16 sps:$4 sm:$0xff]  }
 0x521   :  { %3706 = vmatmul.mubr.bf16.vlgmr.msra.gmra.mrb[64].mxu1 %v11973_v26 }
 0x522   :  { %4107 = vmatpush1.bf16.msra.mxu1 %v9947_v41  ;;  %3715 = vmatprep.mubr.bf16.mxu1 %v11988_v25  ;;  %v9974_v41 = vld [vmem:[#allocation5 + $0x120] ss:$16 sps:$4 sm:$0xff]  }
 0x523   :  { %4108 = vmatprep.subr.bf16.mxu1 %v9952_v52  ;;  %v9979_v52 = vld [vmem:[#allocation5 + $0x144] ss:$16 sps:$4 sm:$0xff]  }
 0x526   :  { %4109 = vmatpush1.bf16.msra.mxu1 %v9950_v20  ;;  %v9977_v20 = vld [vmem:[#allocation5 + $0x140] ss:$16 sps:$4 sm:$0xff]  }
 0x527   :  { %4110 = vmatprep.subr.bf16.mxu1 %v9955_v18  ;;  %v9982_v18 = vld [vmem:[#allocation5 + $0x164] ss:$16 sps:$4 sm:$0xff]  }
 0x529   :  { %3716 = vmatmul.mubr.bf16.gmra.mrb[68].mxu1 %v11999_v61 }
 0x52a   :  { %4111 = vmatpush1.bf16.msra.mxu1 %v9953_v4  ;;  %3725 = vmatprep.mubr.bf16.mxu1 %v12006_v21  ;;  %v9980_v4 = vld [vmem:[#allocation5 + $0x160] ss:$16 sps:$4 sm:$0xff]  }
 0x52b   :  { %4112 = vmatprep.subr.bf16.mxu1 %v9958_v51  ;;  %v9985_v51 = vld [vmem:[#allocation5 + $0x184] ss:$16 sps:$4 sm:$0xff]  }
 0x52e   :  { %4113 = vmatpush1.bf16.msra.mxu1 %v9956_v14  ;;  %v9983_v14 = vld [vmem:[#allocation5 + $0x180] ss:$16 sps:$4 sm:$0xff]  }
 0x52f   :  { %4114 = vmatprep.subr.bf16.mxu1 %v9961_v42  ;;  %v9988_v42 = vld [vmem:[#allocation5 + $0x1a4] ss:$16 sps:$4 sm:$0xff]  }
 0x531   :  { %3726 = vmatmul.mubr.bf16.gmra.mrb[72].mxu1 %v12017_v3 }
 0x532   :  { %4115 = vmatpush1.bf16.msra.mxu1 %v9959_v39  ;;  %3735 = vmatprep.mubr.bf16.mxu1 %v12032_v40  ;;  %v9986_v39 = vld [vmem:[#allocation5 + $0x1a0] ss:$16 sps:$4 sm:$0xff]  }
 0x533   :  { %4116 = vmatprep.subr.bf16.mxu1 %v9964_v57  ;;  %v3016_v57 = vld [vmem:[#allocation4 + $0x8] sm:$0xc0] }
 0x536   :  { %4117 = vmatpush1.bf16.msra.mxu1 %v9962_v17  ;;  %v9991_v17 = vld [vmem:[#allocation5 + $0x1c4] ss:$16 sps:$4 sm:$0xff]  }
 0x537   :  { %4118 = vmatprep.subr.bf16.mxu1 %v9967_v35  ;;  %v3059_v35 = vrot.slane %v3016_v57, 6  ;;  %v3024_v57 = vld [vmem:[#allocation4 + $0x48] sm:$0x3f] }
 0x539   :  { %3736 = vmatmul.mubr.bf16.gmra.mrb[76].mxu1 %v12040_v44 }
 0x53a   :  { %4119 = vmatpush1.bf16.msra.mxu1 %v9965_v11  ;;  %3745 = vmatprep.mubr.bf16.mxu1 %v12053_v8  ;;  %v9989_v11 = vld [vmem:[#allocation5 + $0x1c0] ss:$16 sps:$4 sm:$0xff]  }
 0x53b   :  { %4120 = vmatprep.subr.bf16.mxu1 %v9970_v37  ;;  %v9994_v37 = vld [vmem:[#allocation5 + $0x1e4] ss:$16 sps:$4 sm:$0xff]  }
 0x53e   :  { %4121 = vmatpush1.bf16.msra.mxu1 %v9968_v13  ;;  %v12176_v13 = vsel %vm166_vm0, %v3059_v35, %v3060_v34  ;;  %v10003_v34 = vld [vmem:[#allocation5 + $0x4c] ss:$16 sps:$4 sm:$0xff]   ;;  %v3066_v35 = vrot.slane %v12017_v3, 6 }
 0x53f   :  { %4122 = vmatprep.subr.bf16.mxu1 %v9973_v16  ;;  %v3015_v16 = vld [vmem:[#allocation4] sm:$0xc0] }
 0x541   :  { %3746 = vmatmul.mubr.bf16.gmra.mrb[80].mxu1 %v12069_v58 }
 0x542   :  { %4123 = vmatpush1.bf16.msra.mxu1 %v9971_v28  ;;  %3755 = vmatprep.mubr.bf16.mxu1 %v12058_v38  ;;  %v9997_v28 = vld [vmem:[#allocation5 + $0xc] ss:$16 sps:$4 sm:$0xff]  }
 0x543   :  { %4124 = vmatprep.subr.bf16.mxu1 %v9976_v12  ;;  %v3057_v12 = vrot.slane %v11973_v26, 6  ;;  %v3068_v26 = vrot.slane %v12006_v21, 6 }
 0x546   :  { %4125 = vmatpush1.bf16.msra.mxu1 %v9974_v41  ;;  %v3056_v41 = vrot.slane %v3015_v16, 6  ;;  %v10012_v16 = vld [vmem:[#allocation5 + $0xac] ss:$16 sps:$4 sm:$0xff]  }
 0x547   :  { %4126 = vmatprep.subr.bf16.mxu1 %v9979_v52  ;;  %v9995_v52 = vld [vmem:[#allocation5 + $0x8] ss:$16 sps:$4 sm:$0xff]  }
 0x549   :  { %3756 = vmatmul.mubr.bf16.gmra.mrb[84].mxu1 %v12083_v55 }
 0x54a   :  { %4127 = vmatpush1.bf16.msra.mxu1 %v9977_v20  ;;  %3765 = vmatprep.mubr.bf16.mxu1 %v12086_v2  ;;  %v10000_v20 = vld [vmem:[#allocation5 + $0x2c] ss:$16 sps:$4 sm:$0xff]  }
 0x54b   :  { %4128 = vmatprep.subr.bf16.mxu1 %v9982_v18  ;;  %v3062_v18 = vrot.slane %v11999_v61, 6 }
 0x54e   :  { %4129 = vmatpush1.bf16.msra.mxu1 %v9980_v4  ;;  %v10001_v4 = vld [vmem:[#allocation5 + $0x48] ss:$16 sps:$4 sm:$0xff]  }
 0x54f   :  { %4130 = vmatprep.subr.bf16.mxu1 %v9985_v51  ;;  %v10006_v51 = vld [vmem:[#allocation5 + $0x6c] ss:$16 sps:$4 sm:$0xff]  }
 0x551   :  { %3766 = vmatmul.mubr.bf16.gmra.mrb[88].mxu1 %v12094_v7 }
 0x552   :  { %4131 = vmatpush1.bf16.msra.mxu1 %v9983_v14  ;;  %3775 = vmatprep.mubr.bf16.mxu1 %v12151_v1  ;;  %v9992_v1 = vld [vmem:[#allocation5 + $0x1e0] ss:$16 sps:$4 sm:$0xff]   ;;  %v12188_v14 = vsel %vm166_vm0, %v3057_v12, %v3062_v18 }
 0x553   :  { %4132 = vmatprep.subr.bf16.mxu1 %v9988_v42  ;;  %v12194_v42 = vsel %vm166_vm0, %v3064_v29, %v3068_v26 }
 0x556   :  { %4133 = vmatpush1.bf16.msra.mxu1 %v9986_v39  ;;  %v10004_v39 = vld [vmem:[#allocation5 + $0x68] ss:$16 sps:$4 sm:$0xff]  }
 0x557   :  { %4134 = vmatprep.subr.bf16.mxu1 %v9991_v17  ;;  %v10009_v17 = vld [vmem:[#allocation5 + $0x8c] ss:$16 sps:$4 sm:$0xff]  }
 0x559   :  { %3776 = vmatmul.mubr.bf16.gmra.mrb[92].mxu1 %v12154_v15  ;;  %v12181_v15 = vsel %vm166_vm0, %v3056_v41, %v3057_v12  ;;  %v10010_v12 = vld [vmem:[#allocation5 + $0xa8] ss:$16 sps:$4 sm:$0xff]   ;;  %v3026_v41 = vld [vmem:[#allocation4 + $0x68] sm:$0xc0] }
 0x55a   :  { %4135 = vmatpush1.bf16.msra.mxu1 %v9989_v11  ;;  %4138 = vmatprep.mubr.bf16.mxu1 %v12176_v13  ;;  %v3072_v11 = vrot.slane %v3024_v57, 6  ;;  %v10016_v57 = vld [vmem:[#allocation5 + $0xe8] ss:$16 sps:$4 sm:$0xff]  }
 0x55b   :  { %4136 = vmatprep.subr.bf16.mxu1 %v9994_v37  ;;  %v10007_v37 = vld [vmem:[#allocation5 + $0x88] ss:$16 sps:$4 sm:$0xff]  }
 0x55c   :  { %v12203_v29 = vsel %vm166_vm0, %v3068_v26, %v3072_v11 }
 0x55e   :  { %4137 = vmatpush1.bf16.msra.mxu1 %v9992_v1  ;;  %v12199_v1 = vsel %vm166_vm0, %v3062_v18, %v3066_v35  ;;  %v10013_v18 = vld [vmem:[#allocation5 + $0xc8] ss:$16 sps:$4 sm:$0xff]  }
 0x55f   :  { %4219 = vmatprep.subr.bf16.mxu1 %v9997_v28  ;;  %v3023_v28 = vld [vmem:[#allocation4 + $0x40] sm:$0x3f] }
 0x561   :  { %4139 = vmatmul.mubr.bf16.vlgmr.msra.gmra.mrb[32].mxu1 %v12181_v15 }
 0x562   :  { %4220 = vmatpush1.bf16.msra.mxu1 %v9995_v52  ;;  %4148 = vmatprep.mubr.bf16.mxu1 %v12066_v24  ;;  %v10015_v52 = vld [vmem:[#allocation5 + $0xcc] ss:$16 sps:$4 sm:$0xff]  }
 0x563   :  { %4221 = vmatprep.subr.bf16.mxu1 %v10000_v20  ;;  %v3070_v20 = vrot.slane %v3023_v28, 6 }
 0x566   :  { %4222 = vmatpush1.bf16.msra.mxu1 %v9998_v32  ;;  %v3078_v32 = vrot.slane %v12053_v8, 6  ;;  %v10021_v8 = vld [vmem:[#allocation5 + $0x10c] ss:$16 sps:$4 sm:$0xff]  }
 0x567   :  { %4223 = vmatprep.subr.bf16.mxu1 %v10003_v34  ;;  %v3077_v34 = vrot.slane %v3026_v41, 6  ;;  %v10022_v41 = vld [vmem:[#allocation5 + $0x128] ss:$16 sps:$4 sm:$0xff]  }
 0x569   :  { %4149 = vmatmul.mubr.bf16.gmra.mrb[36].mxu1 %v12188_v14  ;;  %v12212_v26 = vsel %vm166_vm0, %v3077_v34, %v3078_v32  ;;  %v10025_v34 = vld [vmem:[#allocation5 + $0x148] ss:$16 sps:$4 sm:$0xff]  }
 0x56a   :  { %4224 = vmatpush1.bf16.msra.mxu1 %v10001_v4  ;;  %4158 = vmatprep.mubr.bf16.mxu1 %v12194_v42  ;;  %v10018_v4 = vld [vmem:[#allocation5 + $0xec] ss:$16 sps:$4 sm:$0xff]  }
 0x56b   :  { %4225 = vmatprep.subr.bf16.mxu1 %v10006_v51  ;;  %v12208_v51 = vsel %vm166_vm0, %v3066_v35, %v3070_v20  ;;  %v10019_v35 = vld [vmem:[#allocation5 + $0x108] ss:$16 sps:$4 sm:$0xff]   ;;  %v3086_v20 = vrot.slane %v12086_v2, 6  ;;  %v3084_v2 = vrot.slane %v12094_v7, 6  ;;  %v10039_v7 = vld [vmem:[#allocation5 + $0x1cc] ss:$16 sps:$4 sm:$0xff]  }
 0x56e   :  { %4226 = vmatpush1.bf16.msra.mxu1 %v10004_v39  ;;  %v3025_v39 = vld [vmem:[#allocation4 + $0x60] sm:$0xc0] }
 0x56f   :  { %4227 = vmatprep.subr.bf16.mxu1 %v10009_v17  ;;  %v3075_v17 = vrot.slane %v12069_v58, 6  ;;  %v3074_v11 = vrot.slane %v3025_v39, 6  ;;  %v10027_v58 = vld [vmem:[#allocation5 + $0x14c] ss:$16 sps:$4 sm:$0xff]   ;;  %v10028_v39 = vld [vmem:[#allocation5 + $0x168] ss:$16 sps:$4 sm:$0xff]  }
 0x571   :  { %4159 = vmatmul.mubr.bf16.gmra.mrb[40].mxu1 %v12199_v1  ;;  %v12218_v28 = vsel %vm166_vm0, %v3074_v11, %v3075_v17 }
 0x572   :  { %4228 = vmatpush1.bf16.msra.mxu1 %v10007_v37  ;;  %4168 = vmatprep.mubr.bf16.mxu1 %v12203_v29  ;;  %v3082_v37 = vrot.slane %v12058_v38, 6 }
 0x573   :  { %4229 = vmatprep.subr.bf16.mxu1 %v10012_v16  ;;  %v10024_v16 = vld [vmem:[#allocation5 + $0x12c] ss:$16 sps:$4 sm:$0xff]  }
 0x576   :  { %4230 = vmatpush1.bf16.msra.mxu1 %v10010_v12  ;;  %v12222_v12 = vsel %vm166_vm0, %v3078_v32, %v3082_v37  ;;  %v12232_v32 = vsel %vm166_vm0, %v3082_v37, %v3086_v20 }
 0x577   :  { %4231 = vmatprep.subr.bf16.mxu1 %v10015_v52  ;;  %v3080_v52 = vrot.slane %v12083_v55, 6 }
 0x579   :  { %4169 = vmatmul.mubr.bf16.gmra.mrb[44].mxu1 %v12208_v51 }
 0x57a   :  { %4232 = vmatpush1.bf16.msra.mxu1 %v10013_v18  ;;  %4178 = vmatprep.mubr.bf16.mxu1 %v12212_v26  ;;  %v10030_v18 = vld [vmem:[#allocation5 + $0x16c] ss:$16 sps:$4 sm:$0xff]  }
 0x57b   :  { %4233 = vmatprep.subr.bf16.mxu1 %v10018_v4  ;;  %v12228_v4 = vsel %vm166_vm0, %v3075_v17, %v3080_v52  ;;  %v10036_v17 = vld [vmem:[#allocation5 + $0x1ac] ss:$16 sps:$4 sm:$0xff]  }
 0x57e   :  { %4234 = vmatpush1.bf16.msra.mxu1 %v10016_v57  ;;  %v3034_v57 = vld [vmem:[#allocation4 + $0xa8] sm:$0x3f] }
 0x57f   :  { %4235 = vmatprep.subr.bf16.mxu1 %v10021_v8  ;;  %v10033_v8 = vld [vmem:[#allocation5 + $0x18c] ss:$16 sps:$4 sm:$0xff]   ;;  %v3090_v11 = vrot.slane %v3034_v57, 6  ;;  %v10045_v57 = vld [vmem:[#allocation5 + $0x404] ss:$16 sps:$4 sm:$0xff]  }
 0x581   :  { %4179 = vmatmul.mubr.bf16.gmra.mrb[48].mxu1 %v12218_v28  ;;  %v12241_v37 = vsel %vm166_vm0, %v3086_v20, %v3090_v11  ;;  %v10040_v20 = vld [vmem:[#allocation5 + $0x1e8] ss:$16 sps:$4 sm:$0xff]   ;;  %v10048_v11 = vld [vmem:[#allocation5 + $0x424] ss:$16 sps:$4 sm:$0xff]  }
 0x582   :  { %4236 = vmatpush1.bf16.msra.mxu1 %v10019_v35  ;;  %4188 = vmatprep.mubr.bf16.mxu1 %v12222_v12  ;;  %v10031_v35 = vld [vmem:[#allocation5 + $0x188] ss:$16 sps:$4 sm:$0xff]  }
 0x583   :  { %4237 = vmatprep.subr.bf16.mxu1 %v10024_v16  ;;  %v12237_v16 = vsel %vm166_vm0, %v3080_v52, %v3084_v2 }
 0x586   :  { %4238 = vmatpush1.bf16.msra.mxu1 %v10022_v41  ;;  %v3033_v41 = vld [vmem:[#allocation4 + $0xa0] sm:$0x3f] }
 0x587   :  { %4239 = vmatprep.subr.bf16.mxu1 %v10027_v58  ;;  %v10034_v58 = vld [vmem:[#allocation5 + $0x1a8] ss:$16 sps:$4 sm:$0xff]  }
 0x589   :  { %4189 = vmatmul.mubr.bf16.gmra.mrb[52].mxu1 %v12228_v4 }
 0x58a   :  { %4240 = vmatpush1.bf16.msra.mxu1 %v10025_v34  ;;  %4198 = vmatprep.mubr.bf16.mxu1 %v12232_v32  ;;  %v3088_v34 = vrot.slane %v3033_v41, 6  ;;  %v10054_v41 = vld [vmem:[#allocation5 + $0x464] ss:$16 sps:$4 sm:$0xff]  }
 0x58b   :  { %4241 = vmatprep.subr.bf16.mxu1 %v10030_v18  ;;  %v10037_v18 = vld [vmem:[#allocation5 + $0x1c8] ss:$16 sps:$4 sm:$0xff]  }
 0x58c   :  { %v12245_v52 = vsel %vm166_vm0, %v3084_v2, %v3088_v34  ;;  %v10051_v2 = vld [vmem:[#allocation5 + $0x444] ss:$16 sps:$4 sm:$0xff]  }
 0x58d   :  { %v10063_v34 = vld [vmem:[#allocation5 + $0x4c4] ss:$16 sps:$4 sm:$0xff]  }
 0x58e   :  { %4242 = vmatpush1.bf16.msra.mxu1 %v10028_v39  ;;  %v10042_v39 = vld [vmem:[#allocation5 + $0x1ec] ss:$16 sps:$4 sm:$0xff]  }
 0x58f   :  { %4243 = vmatprep.subr.bf16.mxu1 %v10033_v8  ;;  %v10043_v8 = vld [vmem:[#allocation5 + $0x400] ss:$16 sps:$4 sm:$0xff]  }
 0x591   :  { %4199 = vmatmul.mubr.bf16.gmra.mrb[56].mxu1 %v12237_v16 }
 0x592   :  { %4244 = vmatpush1.bf16.msra.mxu1 %v10031_v35  ;;  %4208 = vmatprep.mubr.bf16.mxu1 %v12241_v37  ;;  %v10046_v35 = vld [vmem:[#allocation5 + $0x420] ss:$16 sps:$4 sm:$0xff]  }
 0x593   :  { %4245 = vmatprep.subr.bf16.mxu1 %v10036_v17  ;;  %v10049_v17 = vld [vmem:[#allocation5 + $0x440] ss:$16 sps:$4 sm:$0xff]  }
 0x596   :  { %4246 = vmatpush1.bf16.msra.mxu1 %v10034_v58  ;;  %v10057_v58 = vld [vmem:[#allocation5 + $0x484] ss:$16 sps:$4 sm:$0xff]  }
 0x597   :  { %4247 = vmatprep.subr.bf16.mxu1 %v10039_v7  ;;  %v10060_v7 = vld [vmem:[#allocation5 + $0x4a4] ss:$16 sps:$4 sm:$0xff]  }
 0x599   :  { %4209 = vmatmul.mubr.bf16.gmra.mrb[60].mxu1 %v12245_v52 }
 0x59a   :  { %4248 = vmatpush1.bf16.msra.mxu1 %v10037_v18  ;;  %4251 = vmatprep.mubr.bf16.mxu1 %v12176_v13  ;;  %v10052_v13 = vld [vmem:[#allocation5 + $0x460] ss:$16 sps:$4 sm:$0xff]   ;;  %v10066_v18 = vld [vmem:[#allocation5 + $0x4e4] ss:$16 sps:$4 sm:$0xff]  }
 0x59b   :  { %4249 = vmatprep.subr.bf16.mxu1 %v10042_v39  ;;  %v10069_v39 = vld [vmem:[#allocation5 + $0x504] ss:$16 sps:$4 sm:$0xff]  }
 0x59e   :  { %4250 = vmatpush1.bf16.msra.mxu1 %v10040_v20 }
 0x59f   :  { %4808 = vmatprep.subr.bf16.mxu1 %v10045_v57 }
 0x5a1   :  { %4252 = vmatmul.mubr.bf16.vlgmr.msra.gmra.mrb[64].mxu1 %v12181_v15  ;;  %v10055_v15 = vld [vmem:[#allocation5 + $0x480] ss:$16 sps:$4 sm:$0xff]  }
 0x5a2   :  { %4809 = vmatpush1.bf16.msra.mxu1 %v10043_v8  ;;  %4261 = vmatprep.mubr.bf16.mxu1 %v12066_v24  ;;  %v10058_v24 = vld [vmem:[#allocation5 + $0x4a0] ss:$16 sps:$4 sm:$0xff]  }
 0x5a3   :  { %4810 = vmatprep.subr.bf16.mxu1 %v10048_v11 }
 0x5a6   :  { %4811 = vmatpush1.bf16.msra.mxu1 %v10046_v35  ;;  %v10073_v35 = vld [vmem:[#allocation5 + $0x540] ss:$16 sps:$4 sm:$0xff]  }
 0x5a7   :  { %4812 = vmatprep.subr.bf16.mxu1 %v10051_v2 }
 0x5a9   :  { %4262 = vmatmul.mubr.bf16.gmra.mrb[68].mxu1 %v12188_v14  ;;  %v10061_v14 = vld [vmem:[#allocation5 + $0x4c0] ss:$16 sps:$4 sm:$0xff]  }
 0x5aa   :  { %4813 = vmatpush1.bf16.msra.mxu1 %v10049_v17  ;;  %4271 = vmatprep.mubr.bf16.mxu1 %v12194_v42  ;;  %v10064_v42 = vld [vmem:[#allocation5 + $0x4e0] ss:$16 sps:$4 sm:$0xff]   ;;  %v10078_v17 = vld [vmem:[#allocation5 + $0x564] ss:$16 sps:$4 sm:$0xff]  }
 0x5ab   :  { %4814 = vmatprep.subr.bf16.mxu1 %v10054_v41 }
 0x5ae   :  { %4815 = vmatpush1.bf16.msra.mxu1 %v10052_v13 }
 0x5af   :  { %4816 = vmatprep.subr.bf16.mxu1 %v10057_v58  ;;  %v10081_v58 = vld [vmem:[#allocation5 + $0x584] ss:$16 sps:$4 sm:$0xff]  }
 0x5b1   :  { %4272 = vmatmul.mubr.bf16.gmra.mrb[72].mxu1 %v12199_v1  ;;  %v10067_v1 = vld [vmem:[#allocation5 + $0x500] ss:$16 sps:$4 sm:$0xff]  }
 0x5b2   :  { %4817 = vmatpush1.bf16.msra.mxu1 %v10055_v15  ;;  %4281 = vmatprep.mubr.bf16.mxu1 %v12203_v29  ;;  %v10072_v29 = vld [vmem:[#allocation5 + $0x524] ss:$16 sps:$4 sm:$0xff]   ;;  %v10079_v15 = vld [vmem:[#allocation5 + $0x580] ss:$16 sps:$4 sm:$0xff]  }
 0x5b3   :  { %4818 = vmatprep.subr.bf16.mxu1 %v10060_v7 }
 0x5b6   :  { %4819 = vmatpush1.bf16.msra.mxu1 %v10058_v24  ;;  %v10084_v24 = vld [vmem:[#allocation5 + $0x5a4] ss:$16 sps:$4 sm:$0xff]  }
 0x5b7   :  { %4820 = vmatprep.subr.bf16.mxu1 %v10063_v34 }
 0x5b9   :  { %4282 = vmatmul.mubr.bf16.gmra.mrb[76].mxu1 %v12208_v51  ;;  %v10070_v51 = vld [vmem:[#allocation5 + $0x520] ss:$16 sps:$4 sm:$0xff]  }
 0x5ba   :  { %4821 = vmatpush1.bf16.msra.mxu1 %v10061_v14  ;;  %4291 = vmatprep.mubr.bf16.mxu1 %v12212_v26  ;;  %v10075_v26 = vld [vmem:[#allocation5 + $0x544] ss:$16 sps:$4 sm:$0xff]  }
 0x5bb   :  { %4822 = vmatprep.subr.bf16.mxu1 %v10066_v18  ;;  %v4333_v18 = vld [vmem:[#allocation4 + $0x18] sm:$0xfc] }
 0x5be   :  { %4823 = vmatpush1.bf16.msra.mxu1 %v10064_v42  ;;  %v10087_v42 = vld [vmem:[#allocation5 + $0x5c4] ss:$16 sps:$4 sm:$0xff]  }
 0x5bf   :  { %4824 = vmatprep.subr.bf16.mxu1 %v10069_v39  ;;  %v4375_v39 = vrot.slane %v4333_v18, 2  ;;  %v4373_v18 = vrot.slane %v11999_v61, 2  ;;  %v10094_v61 = vld [vmem:[#allocation5 + $0x428] ss:$16 sps:$4 sm:$0xff]  }
 0x5c0   :  { %v12257_v20 = vpop.f32.mrb[48].mxu0 }
 0x5c1   :  { %v12259_v57 = vpop.f32.mrb[49].mxu0  ;;  %4292 = vmatmul.mubr.bf16.gmra.mrb[80].mxu1 %v12218_v28 }
 0x5c2   :  { %v12261_v8 = vpop.f32.mrb[50].mxu0  ;;  %4825 = vmatpush1.bf16.msra.mxu1 %v10067_v1  ;;  %4301 = vmatprep.mubr.bf16.mxu1 %v12222_v12  ;;  %v10076_v12 = vld [vmem:[#allocation5 + $0x560] ss:$16 sps:$4 sm:$0xff]  }
 0x5c3   :  { %v12264_v11 = vpop.f32.mrb[51].mxu0  ;;  %4826 = vmatprep.subr.bf16.mxu1 %v10072_v29  ;;  %v10085_v1 = vld [vmem:[#allocation5 + $0x5c0] ss:$16 sps:$4 sm:$0xff]  }
 0x5c6   :  { %4827 = vmatpush1.bf16.msra.mxu1 %v10070_v51  ;;  %v4376_v51 = vrot.slane %v11988_v25, 2 }
 0x5c7   :  { %4828 = vmatprep.subr.bf16.mxu1 %v10075_v26  ;;  %v10090_v26 = vld [vmem:[#allocation5 + $0x5e4] ss:$16 sps:$4 sm:$0xff]  }
 0x5c8   :  { %v12267_v2 = vpop.f32.mrb[52].mxu0 }
 0x5c9   :  { %v12269_v41 = vpop.f32.mrb[53].mxu0  ;;  %4302 = vmatmul.mubr.bf16.gmra.mrb[84].mxu1 %v12228_v4 }
 0x5ca   :  { %v12271_v13 = vpop.f32.mrb[54].mxu0  ;;  %4829 = vmatpush1.bf16.msra.mxu1 %v10073_v35  ;;  %4311 = vmatprep.mubr.bf16.mxu1 %v12232_v32  ;;  %v10082_v32 = vld [vmem:[#allocation5 + $0x5a0] ss:$16 sps:$4 sm:$0xff]  }
 0x5cb   :  { %v12274_v28 = vpop.f32.mrb[55].mxu0  ;;  %4830 = vmatprep.subr.bf16.mxu1 %v10078_v17  ;;  %v4332_v17 = vld [vmem:[#allocation4 + $0x10] sm:$0xfc] }
 0x5cc   :  { %v4372_v25 = vrot.slane %v4332_v17, 2  ;;  %v10099_v17 = vld [vmem:[#allocation5 + $0x44c] ss:$16 sps:$4 sm:$0xff]  }
 0x5ce   :  { %4831 = vmatpush1.bf16.msra.mxu1 %v10076_v12 }
 0x5cf   :  { %4832 = vmatprep.subr.bf16.mxu1 %v10081_v58  ;;  %v10088_v58 = vld [vmem:[#allocation5 + $0x5e0] ss:$16 sps:$4 sm:$0xff]  }
 0x5d0   :  { %v12277_v7 = vpop.f32.mrb[56].mxu0 }
 0x5d1   :  { %v12279_v34 = vpop.f32.mrb[57].mxu0  ;;  %4312 = vmatmul.mubr.bf16.gmra.mrb[88].mxu1 %v12237_v16 }
 0x5d2   :  { %v12281_v14 = vpop.f32.mrb[58].mxu0  ;;  %4833 = vmatpush1.bf16.msra.mxu1 %v10079_v15  ;;  %4321 = vmatprep.mubr.bf16.mxu1 %v12241_v37  ;;  %v12296_v37 = vsel %vm2131_vm10, %v4375_v39, %v4376_v51  ;;  %v10093_v15 = vld [vmem:[#allocation5 + $0x40c] ss:$16 sps:$4 sm:$0xff]  }
 0x5d3   :  { %v12284_v4 = vpop.f32.mrb[59].mxu0  ;;  %4834 = vmatprep.subr.bf16.mxu1 %v10084_v24  ;;  %v4380_v24 = vrot.slane %v12006_v21, 2 }
 0x5d6   :  { %4835 = vmatpush1.bf16.msra.mxu1 %v10082_v32  ;;  %v10091_v32 = vld [vmem:[#allocation5 + $0x408] ss:$16 sps:$4 sm:$0xff]  }
 0x5d7   :  { %4836 = vmatprep.subr.bf16.mxu1 %v10087_v42  ;;  %v10096_v42 = vld [vmem:[#allocation5 + $0x42c] ss:$16 sps:$4 sm:$0xff]  }
 0x5d8   :  { %v12287_v29 = vpop.f32.mrb[60].mxu0 }
 0x5d9   :  { %v12290_v35 = vpop.f32.mrb[61].mxu0  ;;  %4322 = vmatmul.mubr.bf16.gmra.mrb[92].mxu1 %v12245_v52 }
 0x5da   :  { %v12292_v16 = vpop.f32.mrb[62].mxu0  ;;  %4837 = vmatpush1.bf16.msra.mxu1 %v10085_v1  ;;  %4840 = vmatprep.mubr.bf16.mxu1 %v12296_v37  ;;  %v12308_v1 = vsel %vm2131_vm10, %v4372_v25, %v4373_v18  ;;  %v10097_v25 = vld [vmem:[#allocation5 + $0x448] ss:$16 sps:$4 sm:$0xff]  }
 0x5db   :  { %v12298_v12 = vpop.f32.mrb[63].mxu0  ;;  %4838 = vmatprep.subr.bf16.mxu1 %v10090_v26  ;;  %v12314_v26 = vsel %vm2131_vm10, %v4376_v51, %v4380_v24 }
 0x5dc   :  { %14348 = vst [vmem:[#allocation24_spill] sm:$0xff] %v12298_v12 }
 0x5de   :  { %4839 = vmatpush1.bf16.msra.mxu1 %v10088_v58  ;;  %v4378_v58 = vrot.slane %v12017_v3, 2  ;;  %v10105_v3 = vld [vmem:[#allocation5 + $0x48c] ss:$16 sps:$4 sm:$0xff]  }
 0x5df   :  { %4921 = vmatprep.subr.bf16.mxu1 %v10093_v15  ;;  %v4384_v15 = vrot.slane %v12032_v40, 2  ;;  %v4382_v40 = vrot.slane %v12040_v44, 2  ;;  %v10111_v44 = vld [vmem:[#allocation5 + $0x4cc] ss:$16 sps:$4 sm:$0xff]  }
 0x5e0   :  { %v12303_v52 = vpop.f32.mrb[64].mxu0 }
 0x5e1   :  { %14349 = vst [vmem:[#allocation25_spill] sm:$0xff] %v12303_v52  ;;  %v12305_v39 = vpop.f32.mrb[65].mxu0  ;;  %4841 = vmatmul.mubr.bf16.vlgmr.msra.gmra.mrb[32].mxu1 %v12308_v1  ;;  %v12326_v51 = vsel %vm2131_vm10, %v4380_v24, %v4384_v15  ;;  %v10114_v52 = vld [vmem:[#allocation5 + $0x4ec] ss:$16 sps:$4 sm:$0xff]  }
 0x5e2   :  { %14350 = vst [vmem:[#allocation26_spill] sm:$0xff] %v12305_v39  ;;  %v12310_v46 = vpop.f32.mrb[66].mxu0  ;;  %4922 = vmatpush1.bf16.msra.mxu1 %v10091_v32  ;;  %4850 = vmatprep.mubr.bf16.mxu1 %v12314_v26  ;;  %v10100_v32 = vld [vmem:[#allocation5 + $0x468] ss:$16 sps:$4 sm:$0xff]  }
 0x5e3   :  { %14351 = vst [vmem:[#allocation27_spill] sm:$0xff] %v12310_v46  ;;  %v12316_v21 = vpop.f32.mrb[67].mxu0  ;;  %4923 = vmatprep.subr.bf16.mxu1 %v10096_v42  ;;  %v12322_v46 = vsel %vm2131_vm10, %v4373_v18, %v4378_v58  ;;  %v4341_v42 = vld [vmem:[#allocation4 + $0x58] sm:$0x3]  ;;  %v10108_v18 = vld [vmem:[#allocation5 + $0x4ac] ss:$16 sps:$4 sm:$0xff]  }
 0x5e4   :  { %14352 = vst [vmem:[#allocation28_spill] sm:$0xff] %v12316_v21  ;;  %v12331_v21 = vsel %vm2131_vm10, %v4378_v58, %v4382_v40  ;;  %v4343_v39 = vld [vmem:[#allocation4 + $0x78] sm:$0xfc]  ;;  %v4394_v58 = vrot.slane %v12058_v38, 2 }
 0x5e5   :  { %v10115_v38 = vld [vmem:[#allocation5 + $0x508] ss:$16 sps:$4 sm:$0xff]  }
 0x5e6   :  { %4924 = vmatpush1.bf16.msra.mxu1 %v10094_v61  ;;  %v4388_v61 = vrot.slane %v4341_v42, 2  ;;  %v4393_v42 = vrot.slane %v4343_v39, 2  ;;  %v10117_v39 = vld [vmem:[#allocation5 + $0x50c] ss:$16 sps:$4 sm:$0xff]  }
 0x5e7   :  { %4925 = vmatprep.subr.bf16.mxu1 %v10099_v17  ;;  %v10103_v17 = vld [vmem:[#allocation5 + $0x488] ss:$16 sps:$4 sm:$0xff]  }
 0x5e8   :  { %v12335_v24 = vsel %vm2131_vm10, %v4384_v15, %v4388_v61  ;;  %v12344_v15 = vsel %vm2131_vm10, %v4393_v42, %v4394_v58  ;;  %v4342_v61 = vld [vmem:[#allocation4 + $0x70] sm:$0xfc]  ;;  %v4396_v42 = vrot.slane %v12133_v36, 2  ;;  %v10129_v36 = vld [vmem:[#allocation5 + $0x58c] ss:$16 sps:$4 sm:$0xff]  }
 0x5e9   :  { %4851 = vmatmul.mubr.bf16.gmra.mrb[36].mxu1 %v12322_v46 }
 0x5ea   :  { %4926 = vmatpush1.bf16.msra.mxu1 %v10097_v25  ;;  %4860 = vmatprep.mubr.bf16.mxu1 %v12326_v51  ;;  %v4340_v25 = vld [vmem:[#allocation4 + $0x50] sm:$0x3] }
 0x5eb   :  { %4927 = vmatprep.subr.bf16.mxu1 %v10102_v59  ;;  %v10106_v59 = vld [vmem:[#allocation5 + $0x4a8] ss:$16 sps:$4 sm:$0xff]  }
 0x5ee   :  { %4928 = vmatpush1.bf16.msra.mxu1 %v10100_v32  ;;  %v4386_v32 = vrot.slane %v4340_v25, 2  ;;  %v4398_v25 = vrot.slane %v12107_v0, 2  ;;  %v10123_v0 = vld [vmem:[#allocation5 + $0x54c] ss:$16 sps:$4 sm:$0xff]  }
 0x5ef   :  { %4929 = vmatprep.subr.bf16.mxu1 %v10105_v3  ;;  %v10109_v3 = vld [vmem:[#allocation5 + $0x4c8] ss:$16 sps:$4 sm:$0xff]  }
 0x5f0   :  { %v12340_v12 = vsel %vm2131_vm10, %v4382_v40, %v4386_v32  ;;  %v4391_v40 = vrot.slane %v12083_v55, 2  ;;  %v12354_v32 = vsel %vm2131_vm10, %v4394_v58, %v4398_v25  ;;  %v4402_v55 = vrot.slane %v12096_v10, 2 }
 0x5f1   :  { %4861 = vmatmul.mubr.bf16.gmra.mrb[40].mxu1 %v12331_v21  ;;  %v4400_v10 = vrot.slane %v12104_v5, 2  ;;  %v10135_v5 = vld [vmem:[#allocation5 + $0x5cc] ss:$16 sps:$4 sm:$0xff]  }
 0x5f2   :  { %4930 = vmatpush1.bf16.msra.mxu1 %v10103_v17  ;;  %4870 = vmatprep.mubr.bf16.mxu1 %v12335_v24  ;;  %v10112_v17 = vld [vmem:[#allocation5 + $0x4e8] ss:$16 sps:$4 sm:$0xff]   ;;  %v12364_v58 = vsel %vm2131_vm10, %v4398_v25, %v4402_v55 }
 0x5f3   :  { %4931 = vmatprep.subr.bf16.mxu1 %v10108_v18  ;;  %v4390_v18 = vrot.slane %v4342_v61, 2  ;;  %v10126_v61 = vld [vmem:[#allocation5 + $0x56c] ss:$16 sps:$4 sm:$0xff]  }
 0x5f6   :  { %4932 = vmatpush1.bf16.msra.mxu1 %v10106_v59  ;;  %v10120_v59 = vld [vmem:[#allocation5 + $0x52c] ss:$16 sps:$4 sm:$0xff]  }
 0x5f7   :  { %4933 = vmatprep.subr.bf16.mxu1 %v10111_v44  ;;  %v12350_v44 = vsel %vm2131_vm10, %v4390_v18, %v4391_v40  ;;  %v4351_v18 = vld [vmem:[#allocation4 + $0xb8] sm:$0x3] }
 0x5f9   :  { %4871 = vmatmul.mubr.bf16.gmra.mrb[44].mxu1 %v12340_v12 }
 0x5fa   :  { %4934 = vmatpush1.bf16.msra.mxu1 %v10109_v3  ;;  %4880 = vmatprep.mubr.bf16.mxu1 %v12344_v15  ;;  %v10121_v3 = vld [vmem:[#allocation5 + $0x548] ss:$16 sps:$4 sm:$0xff]  }
 0x5fb   :  { %4935 = vmatprep.subr.bf16.mxu1 %v10114_v52  ;;  %v10118_v52 = vld [vmem:[#allocation5 + $0x528] ss:$16 sps:$4 sm:$0xff]  }
 0x5fe   :  { %4936 = vmatpush1.bf16.msra.mxu1 %v10112_v17  ;;  %v12360_v17 = vsel %vm2131_vm10, %v4391_v40, %v4396_v42  ;;  %v10132_v40 = vld [vmem:[#allocation5 + $0x5ac] ss:$16 sps:$4 sm:$0xff]  }
 0x5ff   :  { %4937 = vmatprep.subr.bf16.mxu1 %v10117_v39  ;;  %v10124_v39 = vld [vmem:[#allocation5 + $0x568] ss:$16 sps:$4 sm:$0xff]  }
 0x601   :  { %4881 = vmatmul.mubr.bf16.gmra.mrb[48].mxu1 %v12350_v44 }
 0x602   :  { %4938 = vmatpush1.bf16.msra.mxu1 %v10115_v38  ;;  %4890 = vmatprep.mubr.bf16.mxu1 %v12354_v32  ;;  %v4406_v38 = vrot.slane %v4351_v18, 2  ;;  %v10138_v18 = vld [vmem:[#allocation5 + $0x5ec] ss:$16 sps:$4 sm:$0xff]  }
 0x603   :  { %4939 = vmatprep.subr.bf16.mxu1 %v10120_v59  ;;  %v10127_v59 = vld [vmem:[#allocation5 + $0x588] ss:$16 sps:$4 sm:$0xff]  }
 0x604   :  { %v12373_v25 = vsel %vm2131_vm10, %v4402_v55, %v4406_v38  ;;  %v10136_v55 = vld [vmem:[#allocation5 + $0x5e8] ss:$16 sps:$4 sm:$0xff]   ;;  %v10139_v38 = vld [vmem:[#allocation5 + $0x600] ss:$16 sps:$4 sm:$0xff]  }
 0x606   :  { %4940 = vmatpush1.bf16.msra.mxu1 %v10118_v52  ;;  %v12369_v52 = vsel %vm2131_vm10, %v4396_v42, %v4400_v10 }
 0x607   :  { %4941 = vmatprep.subr.bf16.mxu1 %v10123_v0  ;;  %v4350_v0 = vld [vmem:[#allocation4 + $0xb0] sm:$0x3] }
 0x609   :  { %4891 = vmatmul.mubr.bf16.gmra.mrb[52].mxu1 %v12360_v17 }
 0x60a   :  { %4942 = vmatpush1.bf16.msra.mxu1 %v10121_v3  ;;  %4900 = vmatprep.mubr.bf16.mxu1 %v12364_v58  ;;  %v10130_v3 = vld [vmem:[#allocation5 + $0x5a8] ss:$16 sps:$4 sm:$0xff]  }
 0x60b   :  { %4943 = vmatprep.subr.bf16.mxu1 %v10126_v61  ;;  %v4404_v61 = vrot.slane %v4350_v0, 2  ;;  %v10145_v0 = vld [vmem:[#allocation5 + $0x640] ss:$16 sps:$4 sm:$0xff]  }
 0x60d   :  { %v12377_v42 = vsel %vm2131_vm10, %v4400_v10, %v4404_v61  ;;  %v10147_v10 = vld [vmem:[#allocation5 + $0x644] ss:$16 sps:$4 sm:$0xff]  }
 0x60e   :  { %4944 = vmatpush1.bf16.msra.mxu1 %v10124_v39  ;;  %v10133_v39 = vld [vmem:[#allocation5 + $0x5c8] ss:$16 sps:$4 sm:$0xff]   ;;  %v10156_v61 = vld [vmem:[#allocation5 + $0x6a4] ss:$16 sps:$4 sm:$0xff]  }
 0x60f   :  { %4945 = vmatprep.subr.bf16.mxu1 %v10129_v36  ;;  %v10141_v36 = vld [vmem:[#allocation5 + $0x604] ss:$16 sps:$4 sm:$0xff]  }
 0x611   :  { %4901 = vmatmul.mubr.bf16.gmra.mrb[56].mxu1 %v12369_v52 }
 0x612   :  { %4946 = vmatpush1.bf16.msra.mxu1 %v10127_v59  ;;  %4910 = vmatprep.mubr.bf16.mxu1 %v12373_v25  ;;  %v10144_v59 = vld [vmem:[#allocation5 + $0x624] ss:$16 sps:$4 sm:$0xff]  }
 0x613   :  { %4947 = vmatprep.subr.bf16.mxu1 %v10132_v40  ;;  %v10142_v40 = vld [vmem:[#allocation5 + $0x620] ss:$16 sps:$4 sm:$0xff]  }
 0x616   :  { %4948 = vmatpush1.bf16.msra.mxu1 %v10130_v3  ;;  %v10150_v3 = vld [vmem:[#allocation5 + $0x664] ss:$16 sps:$4 sm:$0xff]  }
 0x617   :  { %4949 = vmatprep.subr.bf16.mxu1 %v10135_v5  ;;  %v10153_v5 = vld [vmem:[#allocation5 + $0x684] ss:$16 sps:$4 sm:$0xff]  }
 0x619   :  { %4911 = vmatmul.mubr.bf16.gmra.mrb[60].mxu1 %v12377_v42 }
 0x61a   :  { %4950 = vmatpush1.bf16.msra.mxu1 %v10133_v39  ;;  %4953 = vmatprep.mubr.bf16.mxu1 %v12296_v37  ;;  %v10148_v37 = vld [vmem:[#allocation5 + $0x660] ss:$16 sps:$4 sm:$0xff]   ;;  %v10159_v39 = vld [vmem:[#allocation5 + $0x6c4] ss:$16 sps:$4 sm:$0xff]  }
 0x61b   :  { %4951 = vmatprep.subr.bf16.mxu1 %v10138_v18  ;;  %v10162_v18 = vld [vmem:[#allocation5 + $0x6e4] ss:$16 sps:$4 sm:$0xff]  }
 0x61e   :  { %4952 = vmatpush1.bf16.msra.mxu1 %v10136_v55  ;;  %v10165_v55 = vld [vmem:[#allocation5 + $0x704] ss:$16 sps:$4 sm:$0xff]  }
 0x61f   :  { %5551 = vmatprep.subr.bf16.mxu1 %v10141_v36  ;;  %v10168_v36 = vld [vmem:[#allocation5 + $0x724] ss:$16 sps:$4 sm:$0xff]  }
 0x621   :  { %4954 = vmatmul.mubr.bf16.vlgmr.msra.gmra.mrb[64].mxu1 %v12308_v1  ;;  %v10151_v1 = vld [vmem:[#allocation5 + $0x680] ss:$16 sps:$4 sm:$0xff]  }
 0x622   :  { %5552 = vmatpush1.bf16.msra.mxu1 %v10139_v38  ;;  %4963 = vmatprep.mubr.bf16.mxu1 %v12314_v26  ;;  %v10154_v26 = vld [vmem:[#allocation5 + $0x6a0] ss:$16 sps:$4 sm:$0xff]   ;;  %v10171_v38 = vld [vmem:[#allocation5 + $0x744] ss:$16 sps:$4 sm:$0xff]  }
 0x623   :  { %5553 = vmatprep.subr.bf16.mxu1 %v10144_v59  ;;  %v10174_v59 = vld [vmem:[#allocation5 + $0x764] ss:$16 sps:$4 sm:$0xff]  }
 0x626   :  { %5554 = vmatpush1.bf16.msra.mxu1 %v10142_v40  ;;  %v10177_v40 = vld [vmem:[#allocation5 + $0x784] ss:$16 sps:$4 sm:$0xff]  }
 0x627   :  { %5555 = vmatprep.subr.bf16.mxu1 %v10147_v10  ;;  %v10180_v10 = vld [vmem:[#allocation5 + $0x7a4] ss:$16 sps:$4 sm:$0xff]  }
 0x629   :  { %4964 = vmatmul.mubr.bf16.gmra.mrb[68].mxu1 %v12322_v46  ;;  %v10157_v46 = vld [vmem:[#allocation5 + $0x6c0] ss:$16 sps:$4 sm:$0xff]  }
 0x62a   :  { %5556 = vmatpush1.bf16.msra.mxu1 %v10145_v0  ;;  %4973 = vmatprep.mubr.bf16.mxu1 %v12326_v51  ;;  %v10160_v51 = vld [vmem:[#allocation5 + $0x6e0] ss:$16 sps:$4 sm:$0xff]   ;;  %v10183_v0 = vld [vmem:[#allocation5 + $0x7c4] ss:$16 sps:$4 sm:$0xff]  }
 0x62b   :  { %5557 = vmatprep.subr.bf16.mxu1 %v10150_v3  ;;  %v10186_v3 = vld [vmem:[#allocation5 + $0x7e4] ss:$16 sps:$4 sm:$0xff]  }
 0x62e   :  { %5558 = vmatpush1.bf16.msra.mxu1 %v10148_v37  ;;  %v10586_v37 = vld [vmem:[#allocation5 + $0x60c] ss:$16 sps:$4 sm:$0xff]  }
 0x62f   :  { %5559 = vmatprep.subr.bf16.mxu1 %v10153_v5  ;;  %v10589_v5 = vld [vmem:[#allocation5 + $0x628] ss:$16 sps:$4 sm:$0xff]  }
 0x631   :  { %4974 = vmatmul.mubr.bf16.gmra.mrb[72].mxu1 %v12331_v21  ;;  %v10163_v21 = vld [vmem:[#allocation5 + $0x700] ss:$16 sps:$4 sm:$0xff]  }
 0x632   :  { %5560 = vmatpush1.bf16.msra.mxu1 %v10151_v1  ;;  %4983 = vmatprep.mubr.bf16.mxu1 %v12335_v24  ;;  %v10166_v24 = vld [vmem:[#allocation5 + $0x720] ss:$16 sps:$4 sm:$0xff]   ;;  %v10590_v1 = vld [vmem:[#allocation5 + $0x64c] ss:$16 sps:$4 sm:$0xff]  }
 0x633   :  { %5561 = vmatprep.subr.bf16.mxu1 %v10156_v61  ;;  %v10593_v61 = vld [vmem:[#allocation5 + $0x668] ss:$16 sps:$4 sm:$0xff]  }
 0x636   :  { %5562 = vmatpush1.bf16.msra.mxu1 %v10154_v26  ;;  %v10596_v26 = vld [vmem:[#allocation5 + $0x6ac] ss:$16 sps:$4 sm:$0xff]  }
 0x637   :  { %5563 = vmatprep.subr.bf16.mxu1 %v10159_v39  ;;  %v10597_v39 = vld [vmem:[#allocation5 + $0x6a8] ss:$16 sps:$4 sm:$0xff]  }
 0x639   :  { %4984 = vmatmul.mubr.bf16.gmra.mrb[76].mxu1 %v12340_v12  ;;  %v10169_v12 = vld [vmem:[#allocation5 + $0x740] ss:$16 sps:$4 sm:$0xff]  }
 0x63a   :  { %5564 = vmatpush1.bf16.msra.mxu1 %v10157_v46  ;;  %4993 = vmatprep.mubr.bf16.mxu1 %v12344_v15  ;;  %v10172_v15 = vld [vmem:[#allocation5 + $0x760] ss:$16 sps:$4 sm:$0xff]   ;;  %v10600_v46 = vld [vmem:[#allocation5 + $0x6ec] ss:$16 sps:$4 sm:$0xff]  }
 0x63b   :  { %5565 = vmatprep.subr.bf16.mxu1 %v10162_v18  ;;  %v10601_v18 = vld [vmem:[#allocation5 + $0x6e8] ss:$16 sps:$4 sm:$0xff]  }
 0x63e   :  { %5566 = vmatpush1.bf16.msra.mxu1 %v10160_v51  ;;  %v10604_v51 = vld [vmem:[#allocation5 + $0x72c] ss:$16 sps:$4 sm:$0xff]  }
 0x63f   :  { %5567 = vmatprep.subr.bf16.mxu1 %v10165_v55  ;;  %v10605_v55 = vld [vmem:[#allocation5 + $0x728] ss:$16 sps:$4 sm:$0xff]  }
 0x641   :  { %4994 = vmatmul.mubr.bf16.gmra.mrb[80].mxu1 %v12350_v44  ;;  %v10175_v44 = vld [vmem:[#allocation5 + $0x780] ss:$16 sps:$4 sm:$0xff]  }
 0x642   :  { %5568 = vmatpush1.bf16.msra.mxu1 %v10163_v21  ;;  %5003 = vmatprep.mubr.bf16.mxu1 %v12354_v32  ;;  %v10178_v32 = vld [vmem:[#allocation5 + $0x7a0] ss:$16 sps:$4 sm:$0xff]   ;;  %v10608_v21 = vld [vmem:[#allocation5 + $0x76c] ss:$16 sps:$4 sm:$0xff]  }
 0x643   :  { %5569 = vmatprep.subr.bf16.mxu1 %v10168_v36  ;;  %v10609_v36 = vld [vmem:[#allocation5 + $0x768] ss:$16 sps:$4 sm:$0xff]  }
 0x646   :  { %5570 = vmatpush1.bf16.msra.mxu1 %v10166_v24  ;;  %v10611_v24 = vld [vmem:[#allocation5 + $0x788] ss:$16 sps:$4 sm:$0xff]  }
 0x647   :  { %5571 = vmatprep.subr.bf16.mxu1 %v10171_v38  ;;  %v10612_v38 = vld [vmem:[#allocation5 + $0x7ac] ss:$16 sps:$4 sm:$0xff]  }
 0x649   :  { %5004 = vmatmul.mubr.bf16.gmra.mrb[84].mxu1 %v12360_v17  ;;  %v10181_v17 = vld [vmem:[#allocation5 + $0x7c0] ss:$16 sps:$4 sm:$0xff]  }
 0x64a   :  { %5572 = vmatpush1.bf16.msra.mxu1 %v10169_v12  ;;  %5013 = vmatprep.mubr.bf16.mxu1 %v12364_v58  ;;  %v10184_v58 = vld [vmem:[#allocation5 + $0x7e0] ss:$16 sps:$4 sm:$0xff]   ;;  %v10613_v12 = vld [vmem:[#allocation5 + $0x7a8] ss:$16 sps:$4 sm:$0xff]  }
 0x64b   :  { %5573 = vmatprep.subr.bf16.mxu1 %v10174_v59  ;;  %v10614_v59 = vld [vmem:[#allocation5 + $0x7cc] ss:$16 sps:$4 sm:$0xff]  }
 0x64e   :  { %5574 = vmatpush1.bf16.msra.mxu1 %v10172_v15  ;;  %v10615_v15 = vld [vmem:[#allocation5 + $0x7c8] ss:$16 sps:$4 sm:$0xff]  }
 0x64f   :  { %5575 = vmatprep.subr.bf16.mxu1 %v10177_v40  ;;  %v10616_v40 = vld [vmem:[#allocation5 + $0x7ec] ss:$16 sps:$4 sm:$0xff]  }
 0x651   :  { %5014 = vmatmul.mubr.bf16.gmra.mrb[88].mxu1 %v12369_v52  ;;  %v10587_v52 = vld [vmem:[#allocation5 + $0x608] ss:$16 sps:$4 sm:$0xff]  }
 0x652   :  { %5576 = vmatpush1.bf16.msra.mxu1 %v10175_v44  ;;  %5023 = vmatprep.mubr.bf16.mxu1 %v12373_v25  ;;  %v10588_v25 = vld [vmem:[#allocation5 + $0x62c] ss:$16 sps:$4 sm:$0xff]   ;;  %v10617_v44 = vld [vmem:[#allocation5 + $0x7e8] ss:$16 sps:$4 sm:$0xff]  }
 0x653   :  { %5577 = vmatprep.subr.bf16.mxu1 %v10180_v10  ;;  %v5845_v10 = vand.u32 7, %v11061_v49 }
 0x655   :  { %vm12420_vm0 = vcmp.eq.s32.totalorder %v5845_v10, 0 }
 0x656   :  { %5578 = vmatpush1.bf16.msra.mxu1 %v10178_v32  ;;  %v5852_v32 = vand.u32 7, %v11064_v62 }
 0x657   :  { %5579 = vmatprep.subr.bf16.mxu1 %v10183_v0 }
 0x658   :  { %vm12427_vm10 = vcmp.eq.s32.totalorder %v5852_v32, 0 }
 0x659   :  { %5024 = vmatmul.mubr.bf16.gmra.mrb[92].mxu1 %v12377_v42  ;;  %v10592_v42 = vld [vmem:[#allocation5 + $0x66c] ss:$16 sps:$4 sm:$0xff]  }
 0x65a   :  { %5580 = vmatpush1.bf16.msra.mxu1 %v10181_v17  ;;  %5583 = vmatprep.mubr.bf16.mxu1 %v12026_v50  ;;  %v10591_v50 = vld [vmem:[#allocation5 + $0x648] ss:$16 sps:$4 sm:$0xff]  }
 0x65b   :  { %5581 = vmatprep.subr.bf16.mxu1 %v10186_v3 }
 0x65e   :  { %5582 = vmatpush1.bf16.msra.mxu1 %v10184_v58 }
 0x65f   :  { %9346 = vmatprep.subr.bf16.mxu1 %v10586_v37 }
 0x661   :  { %5584 = vmatmul.mubr.bf16.vlgmr.msra.gmra.mrb[32].mxu1 %v12037_v45  ;;  %v10594_v45 = vld [vmem:[#allocation5 + $0x68c] ss:$16 sps:$4 sm:$0xff]  }
 0x662   :  { %5593 = vmatprep.mubr.bf16.mxu1 %v12046_v43  ;;  %9362 = vmatpush1.bf16.msra.mxu1 %v10587_v52  ;;  %v10595_v43 = vld [vmem:[#allocation5 + $0x688] ss:$16 sps:$4 sm:$0xff]  }
 0x663   :  { %9347 = vmatprep.subr.bf16.mxu1 %v10588_v25 }
 0x666   :  { %9363 = vmatpush1.bf16.msra.mxu1 %v10589_v5 }
 0x667   :  { %9348 = vmatprep.subr.bf16.mxu1 %v10590_v1 }
 0x669   :  { %5594 = vmatmul.mubr.bf16.gmra.mrb[36].mxu1 %v12073_v31  ;;  %v10598_v31 = vld [vmem:[#allocation5 + $0x6cc] ss:$16 sps:$4 sm:$0xff]  }
 0x66a   :  { %5603 = vmatprep.mubr.bf16.mxu1 %v12080_v9  ;;  %9364 = vmatpush1.bf16.msra.mxu1 %v10591_v50  ;;  %v10599_v9 = vld [vmem:[#allocation5 + $0x6c8] ss:$16 sps:$4 sm:$0xff]  }
 0x66b   :  { %9349 = vmatprep.subr.bf16.mxu1 %v10592_v42 }
 0x66e   :  { %9365 = vmatpush1.bf16.msra.mxu1 %v10593_v61 }
 0x66f   :  { %9350 = vmatprep.subr.bf16.mxu1 %v10594_v45 }
 0x671   :  { %5604 = vmatmul.mubr.bf16.gmra.mrb[40].mxu1 %v12092_v54  ;;  %v10602_v54 = vld [vmem:[#allocation5 + $0x70c] ss:$16 sps:$4 sm:$0xff]  }
 0x672   :  { %5613 = vmatprep.mubr.bf16.mxu1 %v12100_v33  ;;  %9366 = vmatpush1.bf16.msra.mxu1 %v10595_v43  ;;  %v10603_v33 = vld [vmem:[#allocation5 + $0x708] ss:$16 sps:$4 sm:$0xff]  }
 0x673   :  { %9351 = vmatprep.subr.bf16.mxu1 %v10596_v26 }
 0x676   :  { %9367 = vmatpush1.bf16.msra.mxu1 %v10597_v39  ;;  %v14367_v39 = vmov 0 }
 0x677   :  { %9352 = vmatprep.subr.bf16.mxu1 %v10598_v31 }
 0x679   :  { %5614 = vmatmul.mubr.bf16.gmra.mrb[44].mxu1 %v12121_v27  ;;  %v10606_v27 = vld [vmem:[#allocation5 + $0x74c] ss:$16 sps:$4 sm:$0xff]  }
 0x67a   :  { %5623 = vmatprep.mubr.bf16.mxu1 %v12131_v22  ;;  %9368 = vmatpush1.bf16.msra.mxu1 %v10599_v9  ;;  %v10607_v22 = vld [vmem:[#allocation5 + $0x748] ss:$16 sps:$4 sm:$0xff]  }
 0x67b   :  { %9353 = vmatprep.subr.bf16.mxu1 %v10600_v46  ;;  %v5873_v46 = vand.u32 7, %v11085_v6 }
 0x67d   :  { %vm12496_vm15 = vcmp.eq.s32.totalorder %v5873_v46, 0  ;;  %v14386_v46 = vmov 0 }
 0x67e   :  { %9369 = vmatpush1.bf16.msra.mxu1 %v10601_v18 }
 0x67f   :  { %9354 = vmatprep.subr.bf16.mxu1 %v10602_v54 }
 0x681   :  { %5624 = vmatmul.mubr.bf16.gmra.mrb[48].mxu1 %v12147_v60  ;;  %v10610_v60 = vld [vmem:[#allocation5 + $0x78c] ss:$16 sps:$4 sm:$0xff]  }
 0x682   :  { %5633 = vmatprep.mubr.bf16.mxu1 %v12124_v23  ;;  %9370 = vmatpush1.bf16.msra.mxu1 %v10603_v33 }
 0x683   :  { %9355 = vmatprep.subr.bf16.mxu1 %v10604_v51 }
 0x686   :  { %9371 = vmatpush1.bf16.msra.mxu1 %v10605_v55 }
 0x687   :  { %9356 = vmatprep.subr.bf16.mxu1 %v10606_v27  ;;  %v14373_v27 = vld [vmem:[#allocation11_spill] sm:$0xff] }
 0x688   :  { %v5880_v6 = vand.u32 7, %v14373_v27  ;;  %v14390_v27 = vmov 0 }
 0x689   :  { %5634 = vmatmul.mubr.bf16.gmra.mrb[52].mxu1 %v12139_v63 }
 0x68a   :  { %5643 = vmatprep.mubr.bf16.mxu1 %v12127_v19  ;;  %9372 = vmatpush1.bf16.msra.mxu1 %v10607_v22  ;;  %vm12503_vm1 = vcmp.eq.s32.totalorder %v5880_v6, 0 }
 0x68b   :  { %9357 = vmatprep.subr.bf16.mxu1 %v10608_v21 }
 0x68e   :  { %9373 = vmatpush1.bf16.msra.mxu1 %v10609_v36 }
 0x68f   :  { %9358 = vmatprep.subr.bf16.mxu1 %v10610_v60 }
 0x691   :  { %5644 = vmatmul.mubr.bf16.gmra.mrb[56].mxu1 %v12142_v48 }
 0x692   :  { %5653 = vmatprep.mubr.bf16.mxu1 %v12111_v47  ;;  %9374 = vmatpush1.bf16.msra.mxu1 %v10611_v24 }
 0x693   :  { %9359 = vmatprep.subr.bf16.mxu1 %v10612_v38 }
 0x696   :  { %9375 = vmatpush1.bf16.msra.mxu1 %v10613_v12 }
 0x697   :  { %9360 = vmatprep.subr.bf16.mxu1 %v10614_v59 }
 0x699   :  { %5654 = vmatmul.mubr.bf16.gmra.mrb[60].mxu1 %v12118_v30 }
 0x69a   :  { %9376 = vmatpush1.bf16.msra.mxu1 %v10615_v15  ;;  %5746 = vmatprep.mubr.bf16.mxu1 %v12124_v23  ;;  %v14353_v23 = vmov 0  ;;  %v14374_v15 = vmov 0 }
 0x69b   :  { %9361 = vmatprep.subr.bf16.mxu1 %v10616_v40  ;;  %v14354_v23 = vsel %vm12420_vm0, 4294967295, %v14353_v23  ;;  %v14375_v15 = vsel %vm12496_vm15, 4294967295, %v14374_v15 }
 0x69c   :  { %14355 = vst [vmem:[#allocation29_spill] sm:$0xff] %v14354_v23  ;;  %14376 = vst [vmem:[#allocation11_spill] sm:$0xff] %v14375_v15 }
 0x69e   :  { %9377 = vmatpush1.bf16.msra.mxu1 %v10617_v44 }
 0x6a1   :  { %5747 = vmatmul.mubr.bf16.vlgmr.msra.gmra.mrb[84].mxu1 %v12139_v63 }
 0x6a2   :  { %5756 = vmatprep.mubr.bf16.mxu1 %v12127_v19  ;;  %v14357_v19 = vmov 0 }
 0x6a3   :  { %v14358_v19 = vsel %vm12427_vm10, 4294967295, %v14357_v19 }
 0x6a4   :  { %14359 = vst [vmem:[#allocation31_spill] sm:$0xff] %v14358_v19 }
 0x6a9   :  { %5757 = vmatmul.mubr.bf16.gmra.mrb[88].mxu1 %v12142_v48 }
 0x6aa   :  { %5766 = vmatprep.mubr.bf16.mxu1 %v12111_v47 }
 0x6b1   :  { %5767 = vmatmul.mubr.bf16.gmra.mrb[92].mxu1 %v12118_v30 }
 0x6f4   :  { %v4955_v0 = vpop.f32.mrb[64].mxu1 }
 0x6f5   :  { %v12425_v17 = vadd.f32 %v12257_v20, %v4955_v0  ;;  %v4957_v63 = vpop.f32.mrb[65].mxu1  ;;  %v5859_v20 = vand.u32 7, %v11069_v53 }
 0x6f6   :  { %v12432_v47 = vadd.f32 %v12259_v57, %v4957_v63  ;;  %v4959_v30 = vpop.f32.mrb[66].mxu1  ;;  %v5866_v57 = vand.u32 7, %v11074_v56  ;;  %v14363_v56 = vmov 0  ;;  %v14378_v63 = vmov 0 }
 0x6f7   :  { %14356 = vst [vmem:[#allocation30_spill] sm:$0xff] %v12425_v17  ;;  %v6083_v62 = vsel %vm12420_vm0, %v12425_v17, 0.0  ;;  %v12438_v48 = vadd.f32 %v12261_v8, %v4959_v30  ;;  %v4961_v3 = vpop.f32.mrb[67].mxu1  ;;  %vm12458_vm13 = vcmp.eq.s32.totalorder %v5859_v20, 0  ;;  %v14379_v63 = vsel %vm12503_vm1, 4294967295, %v14378_v63 }
 0x6f8   :  { %14360 = vst [vmem:[#allocation32_spill] sm:$0xff] %v12432_v47  ;;  %v6084_v58 = vsel %vm12420_vm0, %v12432_v47, 0.0  ;;  %v12445_v37 = vadd.f32 %v12264_v11, %v4961_v3  ;;  %v6231_v25 = vmul.f32 %v12425_v17, %v6083_v62  ;;  %v14364_v56 = vsel %vm12458_vm13, 4294967295, %v14363_v56  ;;  %14380 = vst [vmem:[#allocation42_spill] sm:$0xff] %v14379_v63  ;;  %v14382_v3 = vld [vmem:[#allocation12_spill] sm:$0xff] }
 0x6f9   :  { %14361 = vst [vmem:[#allocation33_spill] sm:$0xff] %v12438_v48  ;;  %v6087_v52 = vsel %vm12427_vm10, %v12438_v48, 0.0  ;;  %v6232_v1 = vmul.f32 %v12432_v47, %v6084_v58  ;;  %14365 = vst [vmem:[#allocation35_spill] sm:$0xff] %v14364_v56  ;;  %vm12465_vm14 = vcmp.eq.s32.totalorder %v5866_v57, 0  ;;  %v5887_v20 = vand.u32 7, %v14382_v3 }
 0x6fa   :  { %14362 = vst [vmem:[#allocation34_spill] sm:$0xff] %v12445_v37  ;;  %v6187_v8 = vadd.f32 %v6087_v52, %v6083_v62  ;;  %v6235_v5 = vmul.f32 %v12438_v48, %v6087_v52  ;;  %v6088_v53 = vsel %vm12427_vm10, %v12445_v37, 0.0  ;;  %v14368_v39 = vsel %vm12465_vm14, 4294967295, %v14367_v39 }
 0x6fb   :  { %v6208_v50 = vadd.f32 %v6088_v53, %v6084_v58  ;;  %v6236_v11 = vmul.f32 %v12445_v37, %v6088_v53  ;;  %14369 = vst [vmem:[#allocation37_spill] sm:$0xff] %v14368_v39  ;;  %vm12534_vm2 = vcmp.eq.s32.totalorder %v5887_v20, 0 }
 0x6fc   :  { %v6335_v42 = vadd.f32 %v6235_v5, %v6231_v25  ;;  %v4965_v61 = vpop.f32.mrb[68].mxu1  ;;  %v14385_v5 = vld [vmem:[#allocation13_spill] sm:$0xff]  ;;  %v14387_v46 = vsel %vm12534_vm2, 4294967295, %v14386_v46 }
 0x6fd   :  { %v6356_v45 = vadd.f32 %v6236_v11, %v6232_v1  ;;  %v12463_v43 = vadd.f32 %v12267_v2, %v4965_v61  ;;  %v4967_v26 = vpop.f32.mrb[69].mxu1  ;;  %v5894_v53 = vand.u32 7, %v14385_v5  ;;  %14388 = vst [vmem:[#allocation13_spill] sm:$0xff] %v14387_v46 }
 0x6fe   :  { %v12470_v31 = vadd.f32 %v12269_v41, %v4967_v26  ;;  %v4969_v9 = vpop.f32.mrb[70].mxu1 }
 0x6ff   :  { %14366 = vst [vmem:[#allocation36_spill] sm:$0xff] %v12463_v43  ;;  %v6091_v18 = vsel %vm12458_vm13, %v12463_v43, 0.0  ;;  %v12477_v54 = vadd.f32 %v12271_v13, %v4969_v9  ;;  %v4971_v2 = vpop.f32.mrb[71].mxu1  ;;  %vm12541_vm3 = vcmp.eq.s32.totalorder %v5894_v53, 0 }
 0x700   :  { %14370 = vst [vmem:[#allocation38_spill] sm:$0xff] %v12470_v31  ;;  %v6188_v33 = vadd.f32 %v6187_v8, %v6091_v18  ;;  %v6239_v51 = vmul.f32 %v12463_v43, %v6091_v18  ;;  %v6092_v55 = vsel %vm12458_vm13, %v12470_v31, 0.0  ;;  %v12484_v41 = vadd.f32 %v12274_v28, %v4971_v2 }
 0x701   :  { %14371 = vst [vmem:[#allocation39_spill] sm:$0xff] %v12477_v54  ;;  %v6209_v22 = vadd.f32 %v6208_v50, %v6092_v55  ;;  %v6240_v21 = vmul.f32 %v12470_v31, %v6092_v55  ;;  %v6095_v13 = vsel %vm12465_vm14, %v12477_v54, 0.0  ;;  %v14391_v27 = vsel %vm12541_vm3, 4294967295, %v14390_v27 }
 0x702   :  { %14372 = vst [vmem:[#allocation40_spill] sm:$0xff] %v12484_v41  ;;  %v6336_v36 = vadd.f32 %v6335_v42, %v6239_v51  ;;  %v6189_v60 = vadd.f32 %v6188_v33, %v6095_v13  ;;  %v6243_v24 = vmul.f32 %v12477_v54, %v6095_v13  ;;  %v6096_v38 = vsel %vm12465_vm14, %v12484_v41, 0.0  ;;  %14392 = vst [vmem:[#allocation46_spill] sm:$0xff] %v14391_v27 }
 0x703   :  { %v6357_v12 = vadd.f32 %v6356_v45, %v6240_v21  ;;  %v6210_v28 = vadd.f32 %v6209_v22, %v6096_v38  ;;  %v6244_v59 = vmul.f32 %v12484_v41, %v6096_v38  ;;  %v14394_v21 = vld [vmem:[#allocation14_spill] sm:$0xff]  ;;  %v14432_v41 = vmov 0 }
 0x704   :  { %v6337_v40 = vadd.f32 %v6336_v36, %v6243_v24  ;;  %v4975_v44 = vpop.f32.mrb[72].mxu1  ;;  %v5901_v13 = vand.u32 7, %v14394_v21 }
 0x705   :  { %v6358_v10 = vadd.f32 %v6357_v12, %v6244_v59  ;;  %v12501_v32 = vadd.f32 %v12277_v7, %v4975_v44  ;;  %v4977_v0 = vpop.f32.mrb[73].mxu1  ;;  %v14398_v59 = vld [vmem:[#allocation15_spill] sm:$0xff] }
 0x706   :  { %v12508_v30 = vadd.f32 %v12279_v34, %v4977_v0  ;;  %v4979_v62 = vpop.f32.mrb[74].mxu1  ;;  %vm12572_vm4 = vcmp.eq.s32.totalorder %v5901_v13, 0 }
 0x707   :  { %14377 = vst [vmem:[#allocation41_spill] sm:$0xff] %v12501_v32  ;;  %v6099_v58 = vsel %vm12496_vm15, %v12501_v32, 0.0  ;;  %v12515_v57 = vadd.f32 %v12281_v14, %v4979_v62  ;;  %v4981_v7 = vpop.f32.mrb[75].mxu1 }
 0x708   :  { %14381 = vst [vmem:[#allocation43_spill] sm:$0xff] %v12508_v30  ;;  %v6190_v52 = vadd.f32 %v6189_v60, %v6099_v58  ;;  %v6247_v25 = vmul.f32 %v12501_v32, %v6099_v58  ;;  %v6100_v8 = vsel %vm12496_vm15, %v12508_v30, 0.0  ;;  %v12522_v34 = vadd.f32 %v12284_v4, %v4981_v7 }
 0x709   :  { %14383 = vst [vmem:[#allocation12_spill] sm:$0xff] %v12515_v57  ;;  %v6211_v1 = vadd.f32 %v6210_v28, %v6100_v8  ;;  %v6248_v50 = vmul.f32 %v12508_v30, %v6100_v8  ;;  %v6103_v14 = vsel %vm12503_vm1, %v12515_v57, 0.0 }
 0x70a   :  { %14384 = vst [vmem:[#allocation44_spill] sm:$0xff] %v12522_v34  ;;  %v6338_v11 = vadd.f32 %v6337_v40, %v6247_v25  ;;  %v6191_v42 = vadd.f32 %v6190_v52, %v6103_v14  ;;  %v6251_v61 = vmul.f32 %v12515_v57, %v6103_v14  ;;  %v6104_v45 = vsel %vm12503_vm1, %v12522_v34, 0.0 }
 0x70b   :  { %v6359_v26 = vadd.f32 %v6358_v10, %v6248_v50  ;;  %v6212_v4 = vadd.f32 %v6211_v1, %v6104_v45  ;;  %v6252_v9 = vmul.f32 %v12522_v34, %v6104_v45  ;;  %v5908_v40 = vand.u32 7, %v14398_v59  ;;  %v14402_v1 = vld [vmem:[#allocation25_spill] sm:$0xff] }
 0x70c   :  { %v6339_v18 = vadd.f32 %v6338_v11, %v6251_v61  ;;  %v4985_v2 = vpop.f32.mrb[76].mxu1  ;;  %v14399_v25 = vmov 0  ;;  %v14404_v11 = vmov 0 }
 0x70d   :  { %v6360_v33 = vadd.f32 %v6359_v26, %v6252_v9  ;;  %v12539_v51 = vadd.f32 %v12287_v29, %v4985_v2  ;;  %v4987_v55 = vpop.f32.mrb[77].mxu1  ;;  %v14400_v25 = vsel %vm12572_vm4, 4294967295, %v14399_v25  ;;  %vm12579_vm6 = vcmp.eq.s32.totalorder %v5908_v40, 0 }
 0x70e   :  { %v12546_v6 = vadd.f32 %v12290_v35, %v4987_v55  ;;  %v4989_v22 = vpop.f32.mrb[78].mxu1  ;;  %v14396_v35 = vld [vmem:[#allocation24_spill] sm:$0xff]  ;;  %14401 = vst [vmem:[#allocation15_spill] sm:$0xff] %v14400_v25  ;;  %v14405_v11 = vsel %vm12579_vm6, 4294967295, %v14404_v11 }
 0x70f   :  { %14389 = vst [vmem:[#allocation45_spill] sm:$0xff] %v12539_v51  ;;  %v6107_v36 = vsel %vm12534_vm2, %v12539_v51, 0.0  ;;  %v12553_v60 = vadd.f32 %v12292_v16, %v4989_v22  ;;  %v4991_v29 = vpop.f32.mrb[79].mxu1  ;;  %14406 = vst [vmem:[#allocation48_spill] sm:$0xff] %v14405_v11  ;;  %v14411_v22 = vld [vmem:[#allocation28_spill] sm:$0xff] }
 0x710   :  { %14393 = vst [vmem:[#allocation47_spill] sm:$0xff] %v12546_v6  ;;  %v6192_v24 = vadd.f32 %v6191_v42, %v6107_v36  ;;  %v6255_v38 = vmul.f32 %v12539_v51, %v6107_v36  ;;  %v6108_v12 = vsel %vm12534_vm2, %v12546_v6, 0.0  ;;  %v12560_v28 = vadd.f32 %v14396_v35, %v4991_v29  ;;  %v14407_v42 = vld [vmem:[#allocation26_spill] sm:$0xff] }
 0x711   :  { %14395 = vst [vmem:[#allocation14_spill] sm:$0xff] %v12553_v60  ;;  %v6213_v44 = vadd.f32 %v6212_v4, %v6108_v12  ;;  %v6256_v10 = vmul.f32 %v12546_v6, %v6108_v12  ;;  %v6111_v16 = vsel %vm12541_vm3, %v12553_v60, 0.0  ;;  %v14409_v4 = vld [vmem:[#allocation27_spill] sm:$0xff] }
 0x712   :  { %14397 = vst [vmem:[#allocation24_spill] sm:$0xff] %v12560_v28  ;;  %v6340_v0 = vadd.f32 %v6339_v18, %v6255_v38  ;;  %v6193_v62 = vadd.f32 %v6192_v24, %v6111_v16  ;;  %v6259_v3 = vmul.f32 %v12553_v60, %v6111_v16  ;;  %v6112_v20 = vsel %vm12541_vm3, %v12560_v28, 0.0 }
 0x713   :  { %v6361_v58 = vadd.f32 %v6360_v33, %v6256_v10  ;;  %v6214_v7 = vadd.f32 %v6213_v44, %v6112_v20  ;;  %v6260_v52 = vmul.f32 %v12560_v28, %v6112_v20 }
 0x714   :  { %v6341_v8 = vadd.f32 %v6340_v0, %v6259_v3  ;;  %v4995_v5 = vpop.f32.mrb[80].mxu1 }
 0x715   :  { %v6362_v53 = vadd.f32 %v6361_v58, %v6260_v52  ;;  %v12577_v50 = vadd.f32 %v14402_v1, %v4995_v5  ;;  %v4997_v14 = vpop.f32.mrb[81].mxu1 }
 0x716   :  { %v12584_v61 = vadd.f32 %v14407_v42, %v4997_v14  ;;  %v4999_v45 = vpop.f32.mrb[82].mxu1 }
 0x717   :  { %14403 = vst [vmem:[#allocation25_spill] sm:$0xff] %v12577_v50  ;;  %v6115_v26 = vsel %vm12572_vm4, %v12577_v50, 0.0  ;;  %v12590_v9 = vadd.f32 %v14409_v4, %v4999_v45  ;;  %v5001_v18 = vpop.f32.mrb[83].mxu1  ;;  %v10187_v4 = vld [vmem:[%s14212_s12 + $0x40] sm:$0xff]  }
 0x718   :  { %14408 = vst [vmem:[#allocation26_spill] sm:$0xff] %v12584_v61  ;;  %v6194_v2 = vadd.f32 %v6193_v62, %v6115_v26  ;;  %v6263_v33 = vmul.f32 %v12577_v50, %v6115_v26  ;;  %v6116_v55 = vsel %vm12572_vm4, %v12584_v61, 0.0  ;;  %v12597_v21 = vadd.f32 %v14411_v22, %v5001_v18  ;;  %v10188_v18 = vld [vmem:[%s14212_s12] sm:$0xff]   ;;  %9152 = vmatprep.subr.bf16.mxu0 %v10187_v4  ;;  %v10192_v4 = vld [vmem:[%s14212_s12 + $0x10] sm:$0xff]  }
 0x719   :  { %14410 = vst [vmem:[#allocation27_spill] sm:$0xff] %v12590_v9  ;;  %v6215_v13 = vadd.f32 %v6214_v7, %v6116_v55  ;;  %v6264_v36 = vmul.f32 %v12584_v61, %v6116_v55  ;;  %v6119_v29 = vsel %vm12579_vm6, %v12590_v9, 0.0  ;;  %9153 = vmatpush3.bf16.msra.mxu0 %v10188_v18 }
 0x71a   :  { %14412 = vst [vmem:[#allocation28_spill] sm:$0xff] %v12597_v21  ;;  %v6342_v24 = vadd.f32 %v6341_v8, %v6263_v33  ;;  %v12603_v38 = vadd.f32 %v6194_v2, %v6119_v29  ;;  %v6267_v12 = vmul.f32 %v12590_v9, %v6119_v29  ;;  %v6120_v35 = vsel %vm12579_vm6, %v12597_v21, 0.0  ;;  %v10189_v2 = vld [vmem:[%s14212_s12 + $0x48] sm:$0xff]  }
 0x71b   :  { %v6363_v59 = vadd.f32 %v6362_v53, %v6264_v36  ;;  %v12609_v40 = vadd.f32 %v6215_v13, %v6120_v35  ;;  %v6268_v44 = vmul.f32 %v12597_v21, %v6120_v35  ;;  %v10190_v36 = vld [vmem:[%s14212_s12 + $0x8] sm:$0xff]   ;;  %9154 = vmatprep.subr.bf16.mxu0 %v10189_v2 }
 0x71c   :  { %v12612_v10 = vadd.f32 %v6342_v24, %v6267_v12 }
 0x71d   :  { %v12614_v16 = vadd.f32 %v6363_v59, %v6268_v44  ;;  %v10191_v59 = vld [vmem:[%s14212_s12 + $0x50] sm:$0xff]   ;;  %9155 = vmatpush3.bf16.msra.mxu0 %v10190_v36  ;;  %v10194_v36 = vld [vmem:[%s14212_s12 + $0x18] sm:$0xff]  }
 0x71e   :  { %9156 = vmatprep.subr.bf16.mxu0 %v10191_v59 }
 0x721   :  { %9157 = vmatpush3.bf16.msra.mxu0 %v10192_v4 }
 0x734   :  { %v12616_v0 = vpop.f32.mrb[32].mxu1 }
 0x735   :  { %14413 = vst [vmem:[#allocation49_spill] sm:$0xff] %v12616_v0  ;;  %v6081_v62 = vsel %vm12420_vm0, %v12616_v0, 0.0  ;;  %v12621_v3 = vpop.f32.mrb[33].mxu1 }
 0x736   :  { %v6082_v20 = vsel %vm12420_vm0, %v12621_v3, 0.0  ;;  %v12626_v58 = vpop.f32.mrb[34].mxu1  ;;  %v6229_v8 = vmul.f32 %v6081_v62, %v12616_v0 }
 0x737   :  { %14414 = vst [vmem:[#allocation50_spill] sm:$0xff] %v12626_v58  ;;  %v6085_v7 = vsel %vm12427_vm10, %v12626_v58, 0.0  ;;  %v12631_v52 = vpop.f32.mrb[35].mxu1  ;;  %v6230_v14 = vmul.f32 %v6082_v20, %v12621_v3 }
 0x738   :  { %v6145_v5 = vadd.f32 %v6085_v7, %v6081_v62  ;;  %v6233_v53 = vmul.f32 %v6085_v7, %v12626_v58  ;;  %v6086_v1 = vsel %vm12427_vm10, %v12631_v52, 0.0 }
 0x739   :  { %v6166_v42 = vadd.f32 %v6086_v1, %v6082_v20  ;;  %v6234_v45 = vmul.f32 %v6086_v1, %v12631_v52 }
 0x73a   :  { %v6293_v26 = vadd.f32 %v6233_v53, %v6229_v8 }
 0x73b   :  { %v6314_v33 = vadd.f32 %v6234_v45, %v6230_v14 }
 0x73c   :  { %v12649_v55 = vpop.f32.mrb[36].mxu1 }
 0x73d   :  { %14415 = vst [vmem:[#allocation51_spill] sm:$0xff] %v12649_v55  ;;  %v6089_v22 = vsel %vm12458_vm13, %v12649_v55, 0.0  ;;  %v12654_v13 = vpop.f32.mrb[37].mxu1 }
 0x73e   :  { %v6146_v29 = vadd.f32 %v6145_v5, %v6089_v22  ;;  %v6237_v24 = vmul.f32 %v6089_v22, %v12649_v55  ;;  %v6090_v12 = vsel %vm12458_vm13, %v12654_v13, 0.0  ;;  %v12663_v35 = vpop.f32.mrb[38].mxu1 }
 0x73f   :  { %14416 = vst [vmem:[#allocation52_spill] sm:$0xff] %v12663_v35  ;;  %v6167_v44 = vadd.f32 %v6166_v42, %v6090_v12  ;;  %v6238_v62 = vmul.f32 %v6090_v12, %v12654_v13  ;;  %v6093_v20 = vsel %vm12465_vm14, %v12663_v35, 0.0  ;;  %v12672_v7 = vpop.f32.mrb[39].mxu1 }
 0x740   :  { %v6294_v8 = vadd.f32 %v6293_v26, %v6237_v24  ;;  %v6147_v5 = vadd.f32 %v6146_v29, %v6093_v20  ;;  %v6241_v53 = vmul.f32 %v6093_v20, %v12663_v35  ;;  %v6094_v1 = vsel %vm12465_vm14, %v12672_v7, 0.0  ;;  %v10193_v26 = vld [vmem:[%s14212_s12 + $0x58] sm:$0xff]  }
 0x741   :  { %v6315_v14 = vadd.f32 %v6314_v33, %v6238_v62  ;;  %v6168_v45 = vadd.f32 %v6167_v44, %v6094_v1  ;;  %v6242_v42 = vmul.f32 %v6094_v1, %v12672_v7  ;;  %9158 = vmatprep.subr.bf16.mxu0 %v10193_v26  ;;  %v10195_v62 = vld [vmem:[%s14212_s12 + $0x60] sm:$0xff]  }
 0x742   :  { %v6295_v18 = vadd.f32 %v6294_v8, %v6241_v53  ;;  %9159 = vmatpush3.bf16.msra.mxu0 %v10194_v36  ;;  %v10198_v36 = vld [vmem:[%s14212_s12 + $0x28] sm:$0xff]  }
 0x743   :  { %v6316_v2 = vadd.f32 %v6315_v14, %v6242_v42  ;;  %9160 = vmatprep.subr.bf16.mxu0 %v10195_v62 }
 0x744   :  { %v12685_v22 = vpop.f32.mrb[40].mxu1 }
 0x745   :  { %14417 = vst [vmem:[#allocation53_spill] sm:$0xff] %v12685_v22  ;;  %v6097_v33 = vsel %vm12496_vm15, %v12685_v22, 0.0  ;;  %v12690_v29 = vpop.f32.mrb[41].mxu1 }
 0x746   :  { %v6148_v24 = vadd.f32 %v6147_v5, %v6097_v33  ;;  %v6245_v12 = vmul.f32 %v6097_v33, %v12685_v22  ;;  %v6098_v59 = vsel %vm12496_vm15, %v12690_v29, 0.0  ;;  %v12699_v44 = vpop.f32.mrb[42].mxu1 }
 0x747   :  { %14418 = vst [vmem:[#allocation54_spill] sm:$0xff] %v12699_v44  ;;  %v6169_v20 = vadd.f32 %v6168_v45, %v6098_v59  ;;  %v6246_v8 = vmul.f32 %v6098_v59, %v12690_v29  ;;  %v6101_v5 = vsel %vm12503_vm1, %v12699_v44, 0.0  ;;  %v12708_v53 = vpop.f32.mrb[43].mxu1  ;;  %v10196_v59 = vld [vmem:[%s14212_s12 + $0x20] sm:$0xff]  }
 0x748   :  { %v6296_v1 = vadd.f32 %v6295_v18, %v6245_v12  ;;  %v6149_v14 = vadd.f32 %v6148_v24, %v6101_v5  ;;  %v6249_v42 = vmul.f32 %v6101_v5, %v12699_v44  ;;  %v6102_v4 = vsel %vm12503_vm1, %v12708_v53, 0.0  ;;  %v10197_v18 = vld [vmem:[%s14212_s12 + $0x68] sm:$0xff]   ;;  %9161 = vmatpush3.bf16.msra.mxu0 %v10196_v59 }
 0x749   :  { %v6317_v26 = vadd.f32 %v6316_v2, %v6246_v8  ;;  %v6170_v33 = vadd.f32 %v6169_v20, %v6102_v4  ;;  %v6250_v45 = vmul.f32 %v6102_v4, %v12708_v53  ;;  %9162 = vmatprep.subr.bf16.mxu0 %v10197_v18 }
 0x74a   :  { %v6297_v9 = vadd.f32 %v6296_v1, %v6249_v42  ;;  %v10199_v42 = vld [vmem:[%s14212_s12 + $0x70] sm:$0xff]  }
 0x74b   :  { %v6318_v24 = vadd.f32 %v6317_v26, %v6250_v45 }
 0x74c   :  { %v12721_v12 = vpop.f32.mrb[44].mxu1  ;;  %9163 = vmatpush3.bf16.msra.mxu0 %v10198_v36  ;;  %v10202_v36 = vld [vmem:[%s14212_s12 + $0x38] sm:$0xff]  }
 0x74d   :  { %14419 = vst [vmem:[#allocation55_spill] sm:$0xff] %v12721_v12  ;;  %v6105_v2 = vsel %vm12534_vm2, %v12721_v12, 0.0  ;;  %v12726_v20 = vpop.f32.mrb[45].mxu1  ;;  %9164 = vmatprep.subr.bf16.mxu0 %v10199_v42 }
 0x74e   :  { %v6150_v8 = vadd.f32 %v6149_v14, %v6105_v2  ;;  %v6253_v62 = vmul.f32 %v6105_v2, %v12721_v12  ;;  %v6106_v5 = vsel %vm12534_vm2, %v12726_v20, 0.0  ;;  %v12735_v1 = vpop.f32.mrb[46].mxu1 }
 0x74f   :  { %14420 = vst [vmem:[#allocation56_spill] sm:$0xff] %v12735_v1  ;;  %v6171_v4 = vadd.f32 %v6170_v33, %v6106_v5  ;;  %v6254_v26 = vmul.f32 %v6106_v5, %v12726_v20  ;;  %v6109_v14 = vsel %vm12541_vm3, %v12735_v1, 0.0  ;;  %v12744_v45 = vpop.f32.mrb[47].mxu1  ;;  %v10200_v5 = vld [vmem:[%s14212_s12 + $0x30] sm:$0xff]  }
 0x750   :  { %v6298_v59 = vadd.f32 %v6297_v9, %v6253_v62  ;;  %v6151_v2 = vadd.f32 %v6150_v8, %v6109_v14  ;;  %v6257_v50 = vmul.f32 %v6109_v14, %v12735_v1  ;;  %v6110_v18 = vsel %vm12541_vm3, %v12744_v45, 0.0  ;;  %v10201_v9 = vld [vmem:[%s14212_s12 + $0x78] sm:$0xff]   ;;  %9165 = vmatpush3.bf16.msra.mxu0 %v10200_v5 }
 0x751   :  { %v6319_v60 = vadd.f32 %v6318_v24, %v6254_v26  ;;  %v6172_v51 = vadd.f32 %v6171_v4, %v6110_v18  ;;  %v6258_v33 = vmul.f32 %v6110_v18, %v12744_v45  ;;  %9166 = vmatprep.subr.bf16.mxu0 %v10201_v9  ;;  %v14422_v18 = vld [vmem:[#allocation17_spill] sm:$0xff] }
 0x752   :  { %v6299_v57 = vadd.f32 %v6298_v59, %v6257_v50  ;;  %v14421_v50 = vld [vmem:[#allocation16_spill] sm:$0xff] }
 0x753   :  { %v6320_v8 = vadd.f32 %v6319_v60, %v6258_v33  ;;  %v5915_v42 = vand.u32 7, %v14421_v50  ;;  %v5922_v33 = vand.u32 7, %v14422_v18 }
 0x754   :  { %v12757_v62 = vpop.f32.mrb[48].mxu1  ;;  %9167 = vmatpush3.bf16.msra.mxu0 %v10202_v36 }
 0x755   :  { %v6113_v24 = vsel %vm12572_vm4, %v12757_v62, 0.0  ;;  %v12762_v4 = vpop.f32.mrb[49].mxu1  ;;  %vm12786_vm7 = vcmp.eq.s32.totalorder %v5915_v42, 0  ;;  %vm12790_vm8 = vcmp.eq.s32.totalorder %v5922_v33, 0  ;;  %v14429_v33 = vld [vmem:[#allocation19_spill] sm:$0xff] }
 0x756   :  { %v6152_v26 = vadd.f32 %v6151_v2, %v6113_v24  ;;  %v6261_v14 = vmul.f32 %v6113_v24, %v12757_v62  ;;  %v6114_v60 = vsel %vm12572_vm4, %v12762_v4, 0.0  ;;  %v12772_v59 = vpop.f32.mrb[50].mxu1 }
 0x757   :  { %v6173_v32 = vadd.f32 %v6172_v51, %v6114_v60  ;;  %v6262_v5 = vmul.f32 %v6114_v60, %v12762_v4  ;;  %v6117_v54 = vsel %vm12579_vm6, %v12772_v59, 0.0  ;;  %v12779_v50 = vpop.f32.mrb[51].mxu1  ;;  %v14423_v60 = vmov 0 }
 0x758   :  { %v6300_v2 = vadd.f32 %v6299_v57, %v6261_v14  ;;  %v6153_v24 = vadd.f32 %v6152_v26, %v6117_v54  ;;  %v6265_v43 = vmul.f32 %v6117_v54, %v12772_v59  ;;  %v6118_v48 = vsel %vm12579_vm6, %v12779_v50, 0.0 }
 0x759   :  { %v6321_v9 = vadd.f32 %v6320_v8, %v6262_v5  ;;  %v6174_v17 = vadd.f32 %v6173_v32, %v6118_v48  ;;  %v6266_v51 = vmul.f32 %v6118_v48, %v12779_v50  ;;  %v14424_v60 = vsel %vm12786_vm7, 4294967295, %v14423_v60  ;;  %v14428_v48 = vld [vmem:[#allocation18_spill] sm:$0xff] }
 0x75a   :  { %14425 = vst [vmem:[#allocation16_spill] sm:$0xff] %v14424_v60  ;;  %v6301_v18 = vadd.f32 %v6300_v2, %v6265_v43  ;;  %v5929_v36 = vand.u32 7, %v14428_v48  ;;  %v5936_v5 = vand.u32 7, %v14429_v33 }
 0x75b   :  { %v6322_v21 = vadd.f32 %v6321_v9, %v6266_v51 }
 0x75c   :  { %v12794_v54 = vpop.f32.mrb[52].mxu1  ;;  %vm12820_vm9 = vcmp.eq.s32.totalorder %v5929_v36, 0  ;;  %vm12824_vm5 = vcmp.eq.s32.totalorder %v5936_v5, 0 }
 0x75d   :  { %v6121_v8 = vsel %vm12786_vm7, %v12794_v54, 0.0  ;;  %v12799_v32 = vpop.f32.mrb[53].mxu1  ;;  %v14433_v41 = vsel %vm12824_vm5, 4294967295, %v14432_v41 }
 0x75e   :  { %v6154_v42 = vadd.f32 %v6153_v24, %v6121_v8  ;;  %v6269_v26 = vmul.f32 %v6121_v8, %v12794_v54  ;;  %v6122_v43 = vsel %vm12786_vm7, %v12799_v32, 0.0  ;;  %v12806_v14 = vpop.f32.mrb[54].mxu1 }
 0x75f   :  { %v6175_v2 = vadd.f32 %v6174_v17, %v6122_v43  ;;  %v6270_v9 = vmul.f32 %v6122_v43, %v12799_v32  ;;  %v6125_v51 = vsel %vm12790_vm8, %v12806_v14, 0.0  ;;  %v12813_v61 = vpop.f32.mrb[55].mxu1 }
 0x760   :  { %v6302_v24 = vadd.f32 %v6301_v18, %v6269_v26  ;;  %v6155_v48 = vadd.f32 %v6154_v42, %v6125_v51  ;;  %v6273_v8 = vmul.f32 %v6125_v51, %v12806_v14  ;;  %v6126_v28 = vsel %vm12790_vm8, %v12813_v61, 0.0  ;;  %v14434_v26 = vld [vmem:[#allocation20_spill] sm:$0xff] }
 0x761   :  { %v6323_v6 = vadd.f32 %v6322_v21, %v6270_v9  ;;  %v6176_v34 = vadd.f32 %v6175_v2, %v6126_v28  ;;  %v6274_v17 = vmul.f32 %v6126_v28, %v12813_v61  ;;  %v5943_v28 = vand.u32 7, %v14434_v26  ;;  %v14435_v9 = vld [vmem:[#allocation21_spill] sm:$0xff] }
 0x762   :  { %v6303_v33 = vadd.f32 %v6302_v24, %v6273_v8  ;;  %v5950_v51 = vand.u32 7, %v14435_v9 }
 0x763   :  { %v6324_v30 = vadd.f32 %v6323_v6, %v6274_v17  ;;  %vm12854_vm11 = vcmp.eq.s32.totalorder %v5943_v28, 0 }
 0x764   :  { %v12828_v18 = vpop.f32.mrb[56].mxu1  ;;  %vm12858_vm12 = vcmp.eq.s32.totalorder %v5950_v51, 0 }
 0x765   :  { %v6129_v42 = vsel %vm12820_vm9, %v12828_v18, 0.0  ;;  %v12833_v21 = vpop.f32.mrb[57].mxu1 }
 0x766   :  { %v6156_v36 = vadd.f32 %v6155_v48, %v6129_v42  ;;  %v6277_v2 = vmul.f32 %v6129_v42, %v12828_v18  ;;  %v6130_v6 = vsel %vm12820_vm9, %v12833_v21, 0.0  ;;  %v12840_v5 = vpop.f32.mrb[58].mxu1 }
 0x767   :  { %v6177_v24 = vadd.f32 %v6176_v34, %v6130_v6  ;;  %v6278_v8 = vmul.f32 %v6130_v6, %v12833_v21  ;;  %v6133_v17 = vsel %vm12824_vm5, %v12840_v5, 0.0  ;;  %v12847_v31 = vpop.f32.mrb[59].mxu1  ;;  %v14436_v6 = vmov 0 }
 0x768   :  { %v6304_v48 = vadd.f32 %v6303_v33, %v6277_v2  ;;  %v6157_v26 = vadd.f32 %v6156_v36, %v6133_v17  ;;  %v6281_v42 = vmul.f32 %v6133_v17, %v12840_v5  ;;  %v6134_v27 = vsel %vm12824_vm5, %v12847_v31, 0.0  ;;  %v12882_v17 = vld [vmem:[%s14210_s10] sm:$0xf] }
 0x769   :  { %v6325_v46 = vadd.f32 %v6324_v30, %v6278_v8  ;;  %v6178_v63 = vadd.f32 %v6177_v24, %v6134_v27  ;;  %v6282_v34 = vmul.f32 %v6134_v27, %v12847_v31  ;;  %v14437_v6 = vsel %vm12854_vm11, 4294967295, %v14436_v6 }
 0x76a   :  { %14438 = vst [vmem:[#allocation17_spill] sm:$0xff] %v14437_v6  ;;  %v6305_v9 = vadd.f32 %v6304_v48, %v6281_v42 }
 0x76b   :  { %v6326_v37 = vadd.f32 %v6325_v46, %v6282_v34 }
 0x76c   :  { %v12862_v33 = vpop.f32.mrb[60].mxu1 }
 0x76d   :  { %v6137_v36 = vsel %vm12854_vm11, %v12862_v33, 0.0  ;;  %v12867_v30 = vpop.f32.mrb[61].mxu1 }
 0x76e   :  { %v6158_v2 = vadd.f32 %v6157_v26, %v6137_v36  ;;  %v6285_v27 = vmul.f32 %v6137_v36, %v12862_v33  ;;  %v6138_v28 = vsel %vm12854_vm11, %v12867_v30, 0.0  ;;  %v12873_v46 = vpop.f32.mrb[62].mxu1  ;;  %v6541_v26 = vsub.s32 2, %v11061_v49 }
 0x76f   :  { %v6179_v51 = vadd.f32 %v6178_v63, %v6138_v28  ;;  %v6286_v24 = vmul.f32 %v6138_v28, %v12867_v30  ;;  %v6141_v8 = vsel %vm12858_vm12, %v12873_v46, 0.0  ;;  %v12884_v48 = vpop.f32.mrb[63].mxu1  ;;  %v12891_v63 = vld [vmem:[%s14211_s11] sm:$0xf] }
 0x770   :  { %v6306_v42 = vadd.f32 %v6305_v9, %v6285_v27  ;;  %v6159_v34 = vadd.f32 %v6158_v2, %v6141_v8  ;;  %v6289_v36 = vmul.f32 %v6141_v8, %v12873_v46  ;;  %14441 = vst [vmem:[#allocation18_spill] sm:$0xff] %v12891_v63  ;;  %v6142_v28 = vsel %vm12858_vm12, %v12884_v48, 0.0  ;;  %v10203_v9 = vld [vmem:[%s14212_s12 + $0xc0] sm:$0xff]  }
 0x771   :  { %v6327_v39 = vadd.f32 %v6326_v37, %v6286_v24  ;;  %v6180_v47 = vadd.f32 %v6179_v51, %v6142_v28  ;;  %v6290_v56 = vmul.f32 %v6142_v28, %v12884_v48  ;;  %v14442_v8 = vld [vmem:[#allocation22_spill] sm:$0xff]  ;;  %v14443_v37 = vld [vmem:[#allocation23_spill] sm:$0xff]  ;;  %9174 = vmatprep.subr.bf16.mxu0 %v10203_v9  ;;  %v12919_v44 = vrot.slane %v12882_v17, %v6541_v26 }
 0x772   :  { %v6160_v2 = vrot.slane %v6159_v34, 4  ;;  %v6307_v27 = vadd.f32 %v6306_v42, %v6289_v36  ;;  %v12902_v19 = vrot.slane %v12882_v17, %v14442_v8  ;;  %v12906_v23 = vrot.slane %v12891_v63, %v14442_v8 }
 0x773   :  { %v6181_v1 = vrot.slane %v6180_v47, 4  ;;  %v6328_v12 = vadd.f32 %v6327_v39, %v6290_v56  ;;  %v12910_v51 = vrot.slane %v12882_v17, %v14443_v37  ;;  %v12914_v42 = vrot.slane %v12891_v63, %v14443_v37  ;;  %14445 = vst [vmem:[#allocation20_spill] sm:$0xff] %v12919_v44 }
 0x774   :  { %v6161_v24 = vadd.f32 %v6160_v2, %v6159_v34  ;;  %v6308_v28 = vrot.slane %v6307_v27, 4  ;;  %v12916_v36 = vpop.f32.mrb[84].mxu1  ;;  %v12927_v34 = vrot.slane %v12891_v63, %v6541_v26 }
 0x775   :  { %14444 = vst [vmem:[#allocation19_spill] sm:$0xff] %v12916_v36  ;;  %v6182_v8 = vadd.f32 %v6181_v1, %v6180_v47  ;;  %v6329_v22 = vrot.slane %v6328_v12, 4  ;;  %v6123_v56 = vsel %vm12786_vm7, %v12916_v36, 0.0  ;;  %v12924_v39 = vpop.f32.mrb[85].mxu1 }
 0x776   :  { %14446 = vst [vmem:[#allocation21_spill] sm:$0xff] %v12927_v34  ;;  %v6162_v9 = vrot.slane %v6161_v24, 2  ;;  %v6309_v2 = vadd.f32 %v6308_v28, %v6307_v27  ;;  %v6196_v37 = vadd.f32 %v12603_v38, %v6123_v56  ;;  %v6271_v35 = vmul.f32 %v6123_v56, %v12916_v36  ;;  %v12931_v55 = vpop.f32.mrb[86].mxu1 }
 0x777   :  { %14447 = vst [vmem:[#allocation22_spill] sm:$0xff] %v12931_v55  ;;  %v6183_v58 = vrot.slane %v6182_v8, 2  ;;  %v6330_v47 = vadd.f32 %v6329_v22, %v6328_v12  ;;  %v6124_v1 = vsel %vm12786_vm7, %v12924_v39, 0.0  ;;  %v6127_v0 = vsel %vm12790_vm8, %v12931_v55, 0.0  ;;  %v12939_v26 = vpop.f32.mrb[87].mxu1 }
 0x778   :  { %v6163_v34 = vadd.f32 %v6162_v9, %v6161_v24  ;;  %v6310_v27 = vrot.slane %v6309_v2, 2  ;;  %v6344_v38 = vadd.f32 %v12612_v10, %v6271_v35  ;;  %v6217_v28 = vadd.f32 %v12609_v40, %v6124_v1 }
 0x779   :  { %v6184_v56 = vadd.f32 %v6183_v58, %v6182_v8  ;;  %v6331_v36 = vrot.slane %v6330_v47, 2  ;;  %v6272_v22 = vmul.f32 %v6124_v1, %v12924_v39  ;;  %v6197_v12 = vadd.f32 %v6196_v37, %v6127_v0 }
 0x77a   :  { %v6164_v44 = vrot.slane %v6163_v34, 1  ;;  %v6311_v63 = vadd.f32 %v6310_v27, %v6309_v2  ;;  %v6275_v60 = vmul.f32 %v6127_v0, %v12931_v55  ;;  %v6128_v11 = vsel %vm12790_vm8, %v12939_v26, 0.0 }
 0x77b   :  { %v6185_v25 = vrot.slane %v6184_v56, 1  ;;  %v6332_v24 = vadd.f32 %v6331_v36, %v6330_v47  ;;  %v6365_v9 = vadd.f32 %v12614_v16, %v6272_v22  ;;  %v6218_v10 = vadd.f32 %v6217_v28, %v6128_v11 }
 0x77c   :  { %v6165_v35 = vadd.f32 %v6164_v44, %v6163_v34  ;;  %v6312_v40 = vrot.slane %v6311_v63, 1  ;;  %v6345_v58 = vadd.f32 %v6344_v38, %v6275_v60  ;;  %v6276_v8 = vmul.f32 %v6128_v11, %v12939_v26  ;;  %v12950_v1 = vpop.f32.mrb[88].mxu1 }
 0x77d   :  { %14448 = vst [vmem:[#allocation23_spill] sm:$0xff] %v12950_v1  ;;  %v6186_v37 = vadd.f32 %v6185_v25, %v6184_v56  ;;  %v6333_v2 = vrot.slane %v6332_v24, 1  ;;  %v6131_v0 = vsel %vm12820_vm9, %v12950_v1, 0.0  ;;  %v12955_v27 = vpop.f32.mrb[89].mxu1 }
 0x77e   :  { %14449 = vst [vmem:[#allocation57_spill] sm:$0xff] %v12955_v27  ;;  %v6313_v47 = vadd.f32 %v6312_v40, %v6311_v63  ;;  %v12958_v16 = vmul.f32 0.0625, %v6165_v35  ;;  %v6366_v44 = vadd.f32 %v6365_v9, %v6276_v8  ;;  %v6198_v34 = vadd.f32 %v6197_v12, %v6131_v0  ;;  %v12960_v60 = vpop.f32.mrb[90].mxu1 }
 0x77f   :  { %v6334_v11 = vadd.f32 %v6333_v2, %v6332_v24  ;;  %v12962_v38 = vmul.f32 0.0625, %v6186_v37  ;;  %v6279_v25 = vmul.f32 %v6131_v0, %v12950_v1  ;;  %v6132_v28 = vsel %vm12820_vm9, %v12955_v27, 0.0  ;;  %v12968_v56 = vpop.f32.mrb[91].mxu1 }
 0x780   :  { %v6381_v22 = vmul.f32 0.0625, %v6313_v47  ;;  %v6385_v63 = vmul.f32 %v12958_v16, %v12958_v16  ;;  %v6219_v12 = vadd.f32 %v6218_v10, %v6132_v28  ;;  %v6280_v36 = vmul.f32 %v6132_v28, %v12955_v27 }
 0x781   :  { %v6382_v47 = vmul.f32 0.0625, %v6334_v11  ;;  %v6386_v9 = vmul.f32 %v12962_v38, %v12962_v38  ;;  %v6346_v24 = vadd.f32 %v6345_v58, %v6279_v25 }
 0x782   :  { %v6389_v37 = vsub.f32 %v6381_v22, %v6385_v63  ;;  %v6135_v22 = vsel %vm12824_vm5, %v12960_v60, 0.0  ;;  %v6136_v63 = vsel %vm12824_vm5, %v12968_v56, 0.0  ;;  %v6367_v10 = vadd.f32 %v6366_v44, %v6280_v36 }
 0x783   :  { %v6390_v0 = vsub.f32 %v6382_v47, %v6386_v9  ;;  %v6199_v2 = vadd.f32 %v6198_v34, %v6135_v22  ;;  %v6283_v8 = vmul.f32 %v6135_v22, %v12960_v60  ;;  %v6220_v35 = vadd.f32 %v6219_v12, %v6136_v63 }
 0x784   :  { %v6457_v40 = vadd.f32 1e-05, %v6389_v37  ;;  %v12999_v11 = vpop.f32.mrb[92].mxu1  ;;  %v6284_v25 = vmul.f32 %v6136_v63, %v12968_v56 }
 0x785   :  { %v13002_v58 = vpop.f32.mrb[93].mxu1  ;;  %v6139_v28 = vsel %vm12854_vm11, %v12999_v11, 0.0  ;;  %v6458_v1 = vadd.f32 1e-05, %v6390_v0  ;;  %v6347_v55 = vadd.f32 %v6346_v24, %v6283_v8 }
 0x786   :  { %10449 = vrsqrt.f32 %v6457_v40  ;;  %v13008_v37 = vpop.f32.mrb[94].mxu1  ;;  %v6200_v27 = vadd.f32 %v6199_v2, %v6139_v28  ;;  %v6287_v34 = vmul.f32 %v6139_v28, %v12999_v11  ;;  %v6368_v12 = vadd.f32 %v6367_v10, %v6284_v25 }
 0x787   :  { %v13011_v9 = vpop.f32.mrb[95].mxu1  ;;  %v6140_v36 = vsel %vm12854_vm11, %v13002_v58, 0.0  ;;  %v6143_v44 = vsel %vm12858_vm12, %v13008_v37, 0.0  ;;  %10451 = vrsqrt.f32 %v6458_v1 }
 0x788   :  { %v6144_v40 = vsel %vm12858_vm12, %v13011_v9, 0.0  ;;  %v6348_v24 = vadd.f32 %v6347_v55, %v6287_v34  ;;  %v6221_v8 = vadd.f32 %v6220_v35, %v6140_v36  ;;  %v6288_v2 = vmul.f32 %v6140_v36, %v13002_v58 }
 0x789   :  { %v6201_v0 = vadd.f32 %v6200_v27, %v6143_v44  ;;  %v6291_v47 = vmul.f32 %v6143_v44, %v13008_v37  ;;  %v6292_v22 = vmul.f32 %v6144_v40, %v13011_v9  ;;  %v14450_v27 = vsub.s32 3, %v11061_v49 }
 0x78a   :  { %v6369_v10 = vadd.f32 %v6368_v12, %v6288_v2  ;;  %v6222_v25 = vadd.f32 %v6221_v8, %v6144_v40 }
 0x78b   :  { %v6202_v55 = vrot.slane %v6201_v0, 4  ;;  %v6349_v35 = vadd.f32 %v6348_v24, %v6291_v47  ;;  %v13046_v34 = vrot.slane %v12882_v17, %v14450_v27  ;;  %v14451_v17 = vsub.f32 %v12757_v62, %v12958_v16 }
 0x78c   :  { %v6223_v36 = vrot.slane %v6222_v25, 4  ;;  %v6370_v44 = vadd.f32 %v6369_v10, %v6292_v22  ;;  %v14453_v22 = vsub.f32 %v12794_v54, %v12958_v16  ;;  %v14455_v62 = vsub.f32 %v12828_v18, %v12958_v16 }
 0x78d   :  { %v6203_v8 = vadd.f32 %v6202_v55, %v6201_v0  ;;  %v6350_v2 = vrot.slane %v6349_v35, 4  ;;  %v14457_v54 = vsub.f32 %v12862_v33, %v12958_v16 }
 0x78e   :  { %v6224_v47 = vadd.f32 %v6223_v36, %v6222_v25  ;;  %v14452_v36 = vsub.f32 %v12772_v59, %v12958_v16  ;;  %v14456_v59 = vsub.f32 %v12840_v5, %v12958_v16  ;;  %v6371_v12 = vrot.slane %v6370_v44, 4 }
 0x78f   :  { %v6204_v55 = vrot.slane %v6203_v8, 2  ;;  %v6351_v40 = vadd.f32 %v6350_v2, %v6349_v35  ;;  %v14454_v2 = vsub.f32 %v12806_v14, %v12958_v16  ;;  %v14458_v14 = vsub.f32 %v12873_v46, %v12958_v16 }
 0x790   :  { %v13052_v0 = vpop.eup %10449  ;;  %v6372_v63 = vadd.f32 %v6371_v12, %v6370_v44 }
 0x791   :  { %v6497_v27 = vmul.f32 %v13052_v0, %v14451_v17  ;;  %v6501_v10 = vmul.f32 %v13052_v0, %v14452_v36  ;;  %v6505_v35 = vmul.f32 %v13052_v0, %v14453_v22  ;;  %v6509_v25 = vmul.f32 %v13052_v0, %v14454_v2  ;;  %v13090_v1 = vpop.eup %10451 }
 0x792   :  { %v6513_v17 = vmul.f32 %v13052_v0, %v14455_v62  ;;  %v6517_v36 = vmul.f32 %v13052_v0, %v14456_v59  ;;  %v6521_v22 = vmul.f32 %v13052_v0, %v14457_v54  ;;  %v6525_v2 = vmul.f32 %v13052_v0, %v14458_v14 }
 0x793   :  { %v6583_v18 = vmul.f32 %v12902_v19, %v6497_v27  ;;  %v6587_v62 = vmul.f32 %v12902_v19, %v6501_v10  ;;  %v6591_v5 = vmul.f32 %v12902_v19, %v6505_v35  ;;  %v6595_v59 = vmul.f32 %v12902_v19, %v6509_v25 }
 0x794   :  { %v6599_v24 = vmul.f32 %v12902_v19, %v6513_v17  ;;  %v6603_v33 = vmul.f32 %v12902_v19, %v6517_v36  ;;  %v6607_v54 = vmul.f32 %v12902_v19, %v6521_v22  ;;  %v6611_v46 = vmul.f32 %v12902_v19, %v6525_v2 }
 0x795   :  { %v6669_v14 = vadd.f32 %v12906_v23, %v6583_v18  ;;  %v6673_v28 = vadd.f32 %v12906_v23, %v6587_v62  ;;  %v6677_v27 = vadd.f32 %v12906_v23, %v6591_v5  ;;  %v6681_v10 = vadd.f32 %v12906_v23, %v6595_v59 }
 0x796   :  { %v6685_v35 = vadd.f32 %v12906_v23, %v6599_v24  ;;  %v6689_v25 = vadd.f32 %v12906_v23, %v6603_v33  ;;  %v6693_v17 = vadd.f32 %v12906_v23, %v6607_v54  ;;  %v14459_v36 = vsub.f32 %v12884_v48, %v12962_v38 }
 0x797   :  { %10453 = vtanh.f32 %v6669_v14  ;;  %v6205_v2 = vadd.f32 %v6204_v55, %v6203_v8  ;;  %v6352_v18 = vrot.slane %v6351_v40, 2  ;;  %v6225_v62 = vrot.slane %v6224_v47, 2 }
 0x798   :  { %v6526_v22 = vmul.f32 %v13090_v1, %v14459_v36  ;;  %10455 = vtanh.f32 %v6673_v28  ;;  %v6446_v5 = vsub.f32 %v12847_v31, %v12962_v38  ;;  %v6697_v24 = vadd.f32 %v12906_v23, %v6611_v46 }
 0x799   :  { %10457 = vtanh.f32 %v6677_v27  ;;  %v6206_v59 = vrot.slane %v6205_v2, 1  ;;  %v6353_v33 = vadd.f32 %v6352_v18, %v6351_v40  ;;  %v6226_v54 = vadd.f32 %v6225_v62, %v6224_v47 }
 0x79a   :  { %10459 = vtanh.f32 %v6681_v10  ;;  %v6373_v14 = vrot.slane %v6372_v63, 2  ;;  %v6450_v48 = vsub.f32 %v12867_v30, %v12962_v38  ;;  %v6612_v8 = vmul.f32 %v12910_v51, %v6526_v22 }
 0x79b   :  { %10461 = vtanh.f32 %v6685_v35  ;;  %v6207_v28 = vadd.f32 %v6206_v59, %v6205_v2  ;;  %v6354_v55 = vrot.slane %v6353_v33, 1  ;;  %v6227_v44 = vrot.slane %v6226_v54, 1 }
 0x79c   :  { %10463 = vtanh.f32 %v6689_v25  ;;  %v6374_v12 = vadd.f32 %v6373_v14, %v6372_v63  ;;  %v14460_v46 = vsub.f32 %v12621_v3, %v12962_v38  ;;  %v14461_v30 = vsub.f32 %v12631_v52, %v12962_v38 }
 0x79d   :  { %10465 = vtanh.f32 %v6693_v17  ;;  %v6355_v40 = vadd.f32 %v6354_v55, %v6353_v33  ;;  %v13123_v47 = vmul.f32 0.0625, %v6207_v28  ;;  %v6228_v35 = vadd.f32 %v6227_v44, %v6226_v54 }
 0x79e   :  { %v13121_v27 = vmul.f32 %v13090_v1, %v14460_v46  ;;  %v13129_v10 = vmul.f32 %v13090_v1, %v14461_v30  ;;  %10467 = vtanh.f32 %v6697_v24  ;;  %v6375_v25 = vrot.slane %v6374_v12, 1 }
 0x79f   :  { %v14462_v63 = vsub.f32 %v12654_v13, %v12962_v38  ;;  %v6698_v36 = vadd.f32 %v12914_v42, %v6612_v8  ;;  %v6383_v17 = vmul.f32 0.0625, %v6355_v40  ;;  %v6387_v22 = vmul.f32 %v13123_v47, %v13123_v47 }
 0x7a0   :  { %v6455_v52 = vsub.f32 %v13008_v37, %v13123_v47  ;;  %v6376_v2 = vadd.f32 %v6375_v25, %v6374_v12  ;;  %v13140_v18 = vmul.f32 0.0625, %v6228_v35  ;;  %v14463_v62 = vsub.f32 %v12672_v7, %v12962_v38 }
 0x7a1   :  { %v6474_v3 = vmul.f32 %v13090_v1, %v14462_v63  ;;  %v14464_v13 = vsub.f32 %v12690_v29, %v12962_v38  ;;  %v10454_v33 = vpop.eup %10453  ;;  %v6391_v54 = vsub.f32 %v6383_v17, %v6387_v22  ;;  %v14465_v14 = vsub.f32 %v12708_v53, %v12962_v38 }
 0x7a2   :  { %v6478_v24 = vmul.f32 %v13090_v1, %v14463_v62  ;;  %v14466_v28 = vsub.f32 %v12726_v20, %v12962_v38  ;;  %v14467_v7 = vsub.f32 %v12744_v45, %v12962_v38  ;;  %v10456_v29 = vpop.eup %10455  ;;  %v6797_v46 = vsel %vm12572_vm4, %v10454_v33, 0.0 }
 0x7a3   :  { %v6482_v59 = vmul.f32 %v13090_v1, %v14464_v13  ;;  %v6486_v8 = vmul.f32 %v13090_v1, %v14465_v14  ;;  %v6384_v40 = vmul.f32 0.0625, %v6376_v2  ;;  %v6388_v53 = vmul.f32 %v13140_v18, %v13140_v18  ;;  %v10458_v35 = vpop.eup %10457 }
 0x7a4   :  { %v6490_v55 = vmul.f32 %v13090_v1, %v14466_v28  ;;  %v6494_v44 = vmul.f32 %v13090_v1, %v14467_v7  ;;  %v6801_v25 = vsel %vm12579_vm6, %v10456_v29, 0.0  ;;  %v6459_v63 = vadd.f32 1e-05, %v6391_v54  ;;  %v10460_v62 = vpop.eup %10459 }
 0x7a5   :  { %v14470_v45 = vsub.f32 %v12762_v4, %v12962_v38  ;;  %v14471_v22 = vsub.f32 %v12779_v50, %v12962_v38  ;;  %v6805_v33 = vsel %vm12786_vm7, %v10458_v35, 0.0  ;;  %v13180_v14 = vpack.c.bf16 %v6801_v25, %v6797_v46  ;;  %v10462_v4 = vpop.eup %10461 }
 0x7a6   :  { %v6392_v28 = vsub.f32 %v6384_v40, %v6388_v53  ;;  %v14474_v54 = vsub.f32 %v12799_v32, %v12962_v38  ;;  %v6809_v29 = vsel %vm12790_vm8, %v10460_v62, 0.0  ;;  %10469 = vrsqrt.f32 %v6459_v63  ;;  %v10464_v53 = vpop.eup %10463 }
 0x7a7   :  { %v6498_v17 = vmul.f32 %v13090_v1, %v14470_v45  ;;  %v6502_v2 = vmul.f32 %v13090_v1, %v14471_v22  ;;  %14473 = vst [vmem:[#allocation15_spill] sm:$0xff] %v13180_v14  ;;  %v14475_v50 = vsub.f32 %v12813_v61, %v12962_v38  ;;  %v14476_v46 = vsub.f32 %v12833_v21, %v12962_v38  ;;  %v10466_v63 = vpop.eup %10465 }
 0x7a8   :  { %v6506_v7 = vmul.f32 %v13090_v1, %v14474_v54  ;;  %v6813_v32 = vsel %vm12820_vm9, %v10462_v4, 0.0  ;;  %v6849_v35 = vpack.c.bf16 %v6809_v29, %v6805_v33  ;;  %v14289_v25 = vunpack.c.l.bf16 %v13180_v14 }
 0x7a9   :  { %v6510_v45 = vmul.f32 %v13090_v1, %v14475_v50  ;;  %v6514_v40 = vmul.f32 %v13090_v1, %v14476_v46  ;;  %v6897_v22 = vunpack.c.h.bf16 %v13180_v14  ;;  %v6817_v61 = vsel %vm12824_vm5, %v10464_v53, 0.0  ;;  %v10468_v50 = vpop.eup %10467  ;;  %v14478_v46 = vld [vmem:[#allocation18_spill] sm:$0xff] }
 0x7aa   :  { %v6460_v62 = vadd.f32 1e-05, %v6392_v28  ;;  %v6518_v21 = vmul.f32 %v13090_v1, %v6446_v5  ;;  %v6522_v54 = vmul.f32 %v13090_v1, %v6450_v48  ;;  %v6821_v33 = vsel %vm12854_vm11, %v10466_v63, 0.0 }
 0x7ab   :  { %v6853_v4 = vpack.c.bf16 %v6817_v61, %v6813_v32  ;;  %10471 = vtanh.f32 %v6698_v36  ;;  %v14477_v29 = vsub.s32 3, %v11061_v49  ;;  %v6825_v28 = vsel %vm12858_vm12, %v10468_v50, 0.0 }
 0x7ac   :  { %v6901_v53 = vunpack.c.l.bf16 %v6849_v35  ;;  %v6977_v31 = vadd.f32 %v6897_v22, %v14289_v25  ;;  %10473 = vrsqrt.f32 %v6460_v62  ;;  %v13218_v38 = vpack.c.bf16 %v6825_v28, %v6821_v33 }
 0x7ad   :  { %v13212_v30 = vrot.slane %v14478_v46, %v14477_v29  ;;  %v6905_v1 = vunpack.c.h.bf16 %v6849_v35  ;;  %v6909_v5 = vunpack.c.l.bf16 %v6853_v4  ;;  %v6552_v48 = vmul.f32 %v12910_v51, %v13121_v27 }
 0x7ae   :  { %v6913_v36 = vunpack.c.h.bf16 %v6853_v4  ;;  %v6978_v49 = vadd.f32 %v6977_v31, %v6901_v53  ;;  %v6556_v32 = vmul.f32 %v12910_v51, %v13129_v10  ;;  %v6560_v63 = vmul.f32 %v12910_v51, %v6474_v3 }
 0x7af   :  { %v6917_v61 = vunpack.c.l.bf16 %v13218_v38  ;;  %v6921_v50 = vunpack.c.h.bf16 %v13218_v38  ;;  %v6564_v22 = vmul.f32 %v12910_v51, %v6478_v24  ;;  %v6568_v62 = vmul.f32 %v12910_v51, %v6482_v59 }
 0x7b0   :  { %v6979_v35 = vadd.f32 %v6978_v49, %v6905_v1  ;;  %v6572_v33 = vmul.f32 %v12910_v51, %v6486_v8  ;;  %v6576_v27 = vmul.f32 %v12910_v51, %v6490_v55  ;;  %v6580_v4 = vmul.f32 %v12910_v51, %v6494_v44  ;;  %v13236_v28 = vpop.eup %10469 }
 0x7b1   :  { %v6584_v29 = vmul.f32 %v12910_v51, %v6498_v17  ;;  %v6588_v10 = vmul.f32 %v12910_v51, %v6502_v2  ;;  %v6592_v3 = vmul.f32 %v12910_v51, %v6506_v7  ;;  %v6596_v46 = vmul.f32 %v12910_v51, %v6510_v45 }
 0x7b2   :  { %v6980_v24 = vadd.f32 %v6979_v35, %v6909_v5  ;;  %v6600_v59 = vmul.f32 %v12910_v51, %v6514_v40  ;;  %v6604_v53 = vmul.f32 %v12910_v51, %v6518_v21  ;;  %v6608_v8 = vmul.f32 %v12910_v51, %v6522_v54  ;;  %v14479_v51 = vld [vmem:[#allocation20_spill] sm:$0xff] }
 0x7b3   :  { %v6527_v55 = vmul.f32 %v13236_v28, %v6455_v52  ;;  %v6638_v44 = vadd.f32 %v12914_v42, %v6552_v48  ;;  %v6642_v17 = vadd.f32 %v12914_v42, %v6556_v32  ;;  %v6646_v2 = vadd.f32 %v12914_v42, %v6560_v63  ;;  %v14480_v63 = vld [vmem:[#allocation21_spill] sm:$0xff] }
 0x7b4   :  { %v6981_v7 = vadd.f32 %v6980_v24, %v6913_v36  ;;  %v6650_v45 = vadd.f32 %v12914_v42, %v6564_v22  ;;  %v6654_v40 = vadd.f32 %v12914_v42, %v6568_v62  ;;  %v6658_v21 = vadd.f32 %v12914_v42, %v6572_v33 }
 0x7b5   :  { %v13251_v31 = vpop.eup %10471  ;;  %v6613_v54 = vmul.f32 %v14479_v51, %v6527_v55  ;;  %v6662_v37 = vadd.f32 %v12914_v42, %v6576_v27  ;;  %v6666_v52 = vadd.f32 %v12914_v42, %v6580_v4  ;;  %v6670_v1 = vadd.f32 %v12914_v42, %v6584_v29  ;;  %v14484_v29 = vld [vmem:[#allocation50_spill] sm:$0xff]  ;;  %v14486_v55 = vld [vmem:[#allocation52_spill] sm:$0xff] }
 0x7b6   :  { %v13257_v5 = vpop.eup %10473  ;;  %v6982_v48 = vadd.f32 %v6981_v7, %v6917_v61  ;;  %v6674_v36 = vadd.f32 %v12914_v42, %v6588_v10  ;;  %v6678_v49 = vadd.f32 %v12914_v42, %v6592_v3  ;;  %v6682_v32 = vadd.f32 %v12914_v42, %v6596_v46  ;;  %v14483_v61 = vld [vmem:[#allocation49_spill] sm:$0xff] }
 0x7b7   :  { %v13263_v22 = vadd.f32 %v14480_v63, %v6613_v54  ;;  %v14482_v62 = vsub.f32 %v13011_v9, %v13140_v18  ;;  %v6686_v33 = vadd.f32 %v12914_v42, %v6600_v59  ;;  %10475 = vtanh.f32 %v6638_v44  ;;  %v14485_v9 = vld [vmem:[#allocation51_spill] sm:$0xff] }
 0x7b8   :  { %v6690_v27 = vadd.f32 %v12914_v42, %v6604_v53  ;;  %10477 = vtanh.f32 %v6642_v17  ;;  %v6393_v4 = vsub.f32 %v14483_v61, %v12958_v16  ;;  %v6397_v10 = vsub.f32 %v14484_v29, %v12958_v16  ;;  %v14487_v53 = vld [vmem:[#allocation53_spill] sm:$0xff]  ;;  %v14488_v17 = vld [vmem:[#allocation54_spill] sm:$0xff]  ;;  %v14489_v54 = vld [vmem:[#allocation55_spill] sm:$0xff] }
 0x7b9   :  { %14481 = vst [vmem:[#allocation48_spill] sm:$0xff] %v13263_v22  ;;  %v6528_v35 = vmul.f32 %v13257_v5, %v14482_v62  ;;  %v6694_v46 = vadd.f32 %v12914_v42, %v6608_v8  ;;  %v6401_v24 = vsub.f32 %v14485_v9, %v12958_v16  ;;  %v6405_v59 = vsub.f32 %v14486_v55, %v12958_v16  ;;  %v14490_v42 = vld [vmem:[#allocation56_spill] sm:$0xff]  ;;  %v14508_v22 = vld [vmem:[#allocation43_spill] sm:$0xff] }
 0x7ba   :  { %10479 = vtanh.f32 %v6646_v2  ;;  %v6409_v44 = vsub.f32 %v14487_v53, %v12958_v16  ;;  %v6413_v7 = vsub.f32 %v14488_v17, %v12958_v16  ;;  %v6417_v62 = vsub.f32 %v14489_v54, %v12958_v16 }
 0x7bb   :  { %v6614_v3 = vmul.f32 %v13046_v34, %v6528_v35  ;;  %10481 = vtanh.f32 %v6650_v45  ;;  %v6421_v8 = vsub.f32 %v14490_v42, %v12958_v16  ;;  %v6465_v61 = vmul.f32 %v13052_v0, %v6393_v4 }
 0x7bc   :  { %10483 = vtanh.f32 %v6654_v40  ;;  %v6469_v2 = vmul.f32 %v13052_v0, %v6397_v10  ;;  %v6473_v29 = vmul.f32 %v13052_v0, %v6401_v24  ;;  %v6477_v9 = vmul.f32 %v13052_v0, %v6405_v59 }
 0x7bd   :  { %v6700_v35 = vadd.f32 %v13212_v30, %v6614_v3  ;;  %v6481_v55 = vmul.f32 %v13052_v0, %v6409_v44  ;;  %v6485_v53 = vmul.f32 %v13052_v0, %v6413_v7  ;;  %v6489_v3 = vmul.f32 %v13052_v0, %v6417_v62 }
 0x7be   :  { %v6493_v45 = vmul.f32 %v13052_v0, %v6421_v8  ;;  %v6551_v16 = vmul.f32 %v12902_v19, %v6465_v61  ;;  %v6555_v40 = vmul.f32 %v12902_v19, %v6469_v2  ;;  %v6559_v4 = vmul.f32 %v12902_v19, %v6473_v29 }
 0x7bf   :  { %10485 = vtanh.f32 %v6700_v35  ;;  %v6563_v10 = vmul.f32 %v12902_v19, %v6477_v9  ;;  %v6567_v24 = vmul.f32 %v12902_v19, %v6481_v55  ;;  %v6575_v0 = vmul.f32 %v12902_v19, %v6489_v3 }
 0x7c0   :  { %10487 = vtanh.f32 %v6658_v21  ;;  %v6571_v21 = vmul.f32 %v12902_v19, %v6485_v53  ;;  %v6579_v17 = vmul.f32 %v12902_v19, %v6493_v45  ;;  %v6641_v7 = vadd.f32 %v12906_v23, %v6555_v40  ;;  %v14495_v45 = vld [vmem:[#allocation32_spill] sm:$0xff] }
 0x7c1   :  { %10489 = vtanh.f32 %v6662_v37  ;;  %v10476_v44 = vpop.eup %10475  ;;  %v6637_v37 = vadd.f32 %v12906_v23, %v6551_v16  ;;  %v6645_v35 = vadd.f32 %v12906_v23, %v6559_v4  ;;  %v6649_v42 = vadd.f32 %v12906_v23, %v6563_v10  ;;  %v14502_v16 = vld [vmem:[#allocation38_spill] sm:$0xff] }
 0x7c2   :  { %10491 = vtanh.f32 %v6666_v52  ;;  %v10478_v54 = vpop.eup %10477  ;;  %v6766_v52 = vsel %vm12420_vm0, %v10476_v44, 0.0  ;;  %v6657_v19 = vadd.f32 %v12906_v23, %v6571_v21  ;;  %v6983_v9 = vadd.f32 %v6982_v48, %v6921_v50 }
 0x7c3   :  { %10493 = vtanh.f32 %v6670_v1  ;;  %v6770_v61 = vsel %vm12427_vm10, %v10478_v54, 0.0  ;;  %v6653_v1 = vadd.f32 %v12906_v23, %v6567_v24  ;;  %v13329_v3 = vadd.f32 %v12906_v23, %v6579_v17  ;;  %v14498_v17 = vld [vmem:[#allocation34_spill] sm:$0xff] }
 0x7c4   :  { %10495 = vtanh.f32 %v6674_v36  ;;  %v10480_v2 = vpop.eup %10479  ;;  %v13319_v29 = vpack.c.bf16 %v6770_v61, %v6766_v52  ;;  %v13322_v36 = vadd.f32 %v12906_v23, %v6575_v0  ;;  %v6984_v21 = vrot.slane %v6983_v9, 4 }
 0x7c5   :  { %10497 = vtanh.f32 %v6678_v49  ;;  %v10482_v55 = vpop.eup %10481  ;;  %v6774_v53 = vsel %vm12458_vm13, %v10480_v2, 0.0 }
 0x7c6   :  { %10499 = vtanh.f32 %v6682_v32  ;;  %14493 = vst [vmem:[#allocation16_spill] sm:$0xff] %v13319_v29  ;;  %v10484_v32 = vpop.eup %10483  ;;  %v6778_v4 = vsel %vm12465_vm14, %v10482_v55, 0.0  ;;  %v14290_v10 = vunpack.c.l.bf16 %v13319_v29  ;;  %v6866_v50 = vunpack.c.h.bf16 %v13319_v29 }
 0x7c7   :  { %10501 = vtanh.f32 %v6686_v33  ;;  %v6782_v24 = vsel %vm12496_vm15, %v10484_v32, 0.0  ;;  %v6834_v23 = vpack.c.bf16 %v6778_v4, %v6774_v53 }
 0x7c8   :  { %10503 = vtanh.f32 %v6690_v27  ;;  %v6938_v44 = vadd.f32 %v6866_v50, %v14290_v10  ;;  %v7089_v27 = vrot.slane %v13218_v38, 4  ;;  %v13350_v50 = vadd.f32 %v6984_v21, %v6983_v9 }
 0x7c9   :  { %v13337_v48 = vpop.eup %10485  ;;  %10505 = vtanh.f32 %v6694_v46  ;;  %v6870_v46 = vunpack.c.l.bf16 %v6834_v23  ;;  %v6874_v55 = vunpack.c.h.bf16 %v6834_v23 }
 0x7ca   :  { %v10488_v0 = vpop.eup %10487  ;;  %10507 = vtanh.f32 %v6637_v37 }
 0x7cb   :  { %v10490_v52 = vpop.eup %10489  ;;  %v6786_v2 = vsel %vm12503_vm1, %v10488_v0, 0.0  ;;  %10509 = vtanh.f32 %v6641_v7  ;;  %v6939_v54 = vadd.f32 %v6938_v44, %v6870_v46 }
 0x7cc   :  { %v10492_v32 = vpop.eup %10491  ;;  %v6790_v4 = vsel %vm12534_vm2, %v10490_v52, 0.0  ;;  %v6838_v25 = vpack.c.bf16 %v6786_v2, %v6782_v24  ;;  %10511 = vtanh.f32 %v6645_v35  ;;  %v13358_v52 = vunpack.c.l.bf16 %v7089_v27 }
 0x7cd   :  { %v10494_v37 = vpop.eup %10493  ;;  %v6794_v10 = vsel %vm12541_vm3, %v10492_v32, 0.0  ;;  %10513 = vtanh.f32 %v6649_v42  ;;  %v6940_v21 = vadd.f32 %v6939_v54, %v6874_v55  ;;  %v6986_v32 = vrot.slane %v13350_v50, 2 }
 0x7ce   :  { %v10496_v59 = vpop.eup %10495  ;;  %v6798_v7 = vsel %vm12572_vm4, %v10494_v37, 0.0  ;;  %v6842_v23 = vpack.c.bf16 %v6794_v10, %v6790_v4  ;;  %v6878_v14 = vunpack.c.l.bf16 %v6838_v25  ;;  %v6882_v24 = vunpack.c.h.bf16 %v6838_v25 }
 0x7cf   :  { %v10498_v35 = vpop.eup %10497  ;;  %v6802_v9 = vsel %vm12579_vm6, %v10496_v59, 0.0  ;;  %10515 = vtanh.f32 %v6653_v1 }
 0x7d0   :  { %v10500_v44 = vpop.eup %10499  ;;  %v6806_v42 = vsel %vm12786_vm7, %v10498_v35, 0.0  ;;  %v13364_v2 = vpack.c.bf16 %v6802_v9, %v6798_v7  ;;  %v6886_v46 = vunpack.c.l.bf16 %v6842_v23  ;;  %v6941_v4 = vadd.f32 %v6940_v21, %v6878_v14 }
 0x7d1   :  { %v10502_v10 = vpop.eup %10501  ;;  %v6810_v27 = vsel %vm12790_vm8, %v10500_v44, 0.0  ;;  %v7086_v37 = vrot.slane %v6842_v23, 4  ;;  %10517 = vtanh.f32 %v6657_v19  ;;  %v6890_v9 = vunpack.c.h.bf16 %v6842_v23 }
 0x7d2   :  { %14503 = vst [vmem:[#allocation18_spill] sm:$0xff] %v13364_v2  ;;  %v10504_v59 = vpop.eup %10503  ;;  %v6814_v25 = vsel %vm12820_vm9, %v10502_v10, 0.0  ;;  %v6850_v1 = vpack.c.bf16 %v6810_v27, %v6806_v42  ;;  %v6898_v55 = vunpack.c.h.bf16 %v13364_v2  ;;  %v6942_v0 = vadd.f32 %v6941_v4, %v6882_v24 }
 0x7d3   :  { %v10506_v7 = vpop.eup %10505  ;;  %v6818_v35 = vsel %vm12824_vm5, %v10504_v59, 0.0  ;;  %10519 = vtanh.f32 %v13322_v36  ;;  %v13378_v10 = vunpack.c.l.bf16 %v7086_v37  ;;  %v14504_v27 = vsel %vm12858_vm12, %v13251_v31, 0.0 }
 0x7d4   :  { %v10508_v14 = vpop.eup %10507  ;;  %v6822_v19 = vsel %vm12854_vm11, %v10506_v7, 0.0  ;;  %v6854_v21 = vpack.c.bf16 %v6818_v35, %v6814_v25  ;;  %v6902_v44 = vunpack.c.l.bf16 %v6850_v1  ;;  %v6943_v29 = vadd.f32 %v6942_v0, %v6886_v46 }
 0x7d5   :  { %v10510_v42 = vpop.eup %10509  ;;  %v6858_v54 = vpack.c.bf16 %v14504_v27, %v6822_v19  ;;  %v14505_v23 = vunpack.c.l.bf16 %v13364_v2  ;;  %10521 = vtanh.f32 %v13329_v3  ;;  %v6906_v4 = vunpack.c.h.bf16 %v6850_v1 }
 0x7d6   :  { %v10512_v36 = vpop.eup %10511  ;;  %v6910_v59 = vunpack.c.l.bf16 %v6854_v21  ;;  %v6765_v25 = vsel %vm12420_vm0, %v10508_v14, 0.0  ;;  %v6769_v37 = vsel %vm12427_vm10, %v10510_v42, 0.0  ;;  %v6914_v35 = vunpack.c.h.bf16 %v6854_v21 }
 0x7d7   :  { %v6990_v24 = vadd.f32 %v6898_v55, %v14505_v23  ;;  %v10514_v7 = vpop.eup %10513  ;;  %v6918_v63 = vunpack.c.l.bf16 %v6858_v54  ;;  %v6944_v31 = vadd.f32 %v6943_v29, %v6890_v9  ;;  %v6922_v0 = vunpack.c.h.bf16 %v6858_v54 }
 0x7d8   :  { %v6773_v46 = vsel %vm12458_vm13, %v10512_v36, 0.0  ;;  %v6777_v3 = vsel %vm12465_vm14, %v10514_v7, 0.0  ;;  %v13395_v1 = vpack.c.bf16 %v6769_v37, %v6765_v25  ;;  %v6987_v42 = vadd.f32 %v6986_v32, %v13350_v50  ;;  %v14507_v32 = vld [vmem:[#allocation40_spill] sm:$0xff] }
 0x7d9   :  { %v6991_v19 = vadd.f32 %v6990_v24, %v6902_v44  ;;  %v10516_v55 = vpop.eup %10515  ;;  %v6945_v27 = vrot.slane %v6944_v31, 4  ;;  %v6833_v23 = vpack.c.bf16 %v6777_v3, %v6773_v46  ;;  %v7090_v2 = vrot.slane %v6858_v54, 4 }
 0x7da   :  { %14506 = vst [vmem:[#allocation20_spill] sm:$0xff] %v13395_v1  ;;  %v6781_v29 = vsel %vm12496_vm15, %v10516_v55, 0.0  ;;  %v14297_v9 = vunpack.c.l.bf16 %v13395_v1  ;;  %v6865_v21 = vunpack.c.h.bf16 %v13395_v1  ;;  %v6988_v50 = vrot.slane %v6987_v42, 1 }
 0x7db   :  { %v6992_v14 = vadd.f32 %v6991_v19, %v6906_v4  ;;  %v10518_v44 = vpop.eup %10517  ;;  %v6946_v24 = vadd.f32 %v6945_v27, %v6944_v31  ;;  %v6869_v7 = vunpack.c.l.bf16 %v6833_v23  ;;  %v6873_v25 = vunpack.c.h.bf16 %v6833_v23  ;;  %v14509_v23 = vld [vmem:[#allocation44_spill] sm:$0xff] }
 0x7dc   :  { %v6785_v37 = vsel %vm12503_vm1, %v10518_v44, 0.0  ;;  %v6925_v4 = vadd.f32 %v6865_v21, %v14297_v9  ;;  %v6408_v54 = vsub.f32 %v14507_v32, %v13140_v18  ;;  %v6412_v31 = vsub.f32 %v14508_v22, %v13140_v18 }
 0x7dd   :  { %v6993_v36 = vadd.f32 %v6992_v14, %v6910_v59  ;;  %v10520_v19 = vpop.eup %10519  ;;  %v6947_v46 = vrot.slane %v6946_v24, 2  ;;  %v6837_v55 = vpack.c.bf16 %v6785_v37, %v6781_v29  ;;  %v13412_v14 = vadd.f32 %v6988_v50, %v6987_v42  ;;  %v14511_v50 = vld [vmem:[#allocation24_spill] sm:$0xff] }
 0x7de   :  { %v6789_v59 = vsel %vm12534_vm2, %v10520_v19, 0.0  ;;  %v6926_v27 = vadd.f32 %v6925_v4, %v6869_v7  ;;  %v6416_v21 = vsub.f32 %v14509_v23, %v13140_v18  ;;  %v13416_v32 = vunpack.c.l.bf16 %v7090_v2  ;;  %v14512_v19 = vld [vmem:[#allocation26_spill] sm:$0xff] }
 0x7df   :  { %v6994_v3 = vadd.f32 %v6993_v36, %v6914_v35  ;;  %v10522_v44 = vpop.eup %10521  ;;  %v6948_v9 = vadd.f32 %v6947_v46, %v6946_v24  ;;  %v6877_v6 = vunpack.c.l.bf16 %v6837_v55  ;;  %v7121_v22 = vsub.f32 %v13412_v14, %v13358_v52  ;;  %v14510_v36 = vld [vmem:[#allocation47_spill] sm:$0xff] }
 0x7e0   :  { %v6793_v35 = vsel %vm12541_vm3, %v10522_v44, 0.0  ;;  %v6927_v29 = vadd.f32 %v6926_v27, %v6873_v25  ;;  %v6420_v42 = vsub.f32 %v14510_v36, %v13140_v18  ;;  %v6424_v24 = vsub.f32 %v14511_v50, %v13140_v18 }
 0x7e1   :  { %v6995_v1 = vadd.f32 %v6994_v3, %v6918_v63  ;;  %v6949_v7 = vrot.slane %v6948_v9, 1  ;;  %v6841_v4 = vpack.c.bf16 %v6793_v35, %v6789_v59  ;;  %v6881_v63 = vunpack.c.h.bf16 %v6837_v55  ;;  %v14513_v3 = vld [vmem:[#allocation28_spill] sm:$0xff]  ;;  %v14514_v35 = vld [vmem:[#allocation57_spill] sm:$0xff] }
 0x7e2   :  { %v6928_v2 = vadd.f32 %v6927_v29, %v6877_v6  ;;  %v6428_v46 = vsub.f32 %v14512_v19, %v13140_v18  ;;  %v6432_v25 = vsub.f32 %v14513_v3, %v13140_v18  ;;  %v13432_v44 = vrot.slane %v7121_v22, 7 }
 0x7e3   :  { %v6996_v37 = vadd.f32 %v6995_v1, %v6922_v0  ;;  %v13430_v27 = vadd.f32 %v6949_v7, %v6948_v9  ;;  %v6885_v23 = vunpack.c.l.bf16 %v6841_v4  ;;  %v6889_v36 = vunpack.c.h.bf16 %v6841_v4 }
 0x7e4   :  { %v6929_v0 = vadd.f32 %v6928_v2, %v6881_v63  ;;  %v6436_v1 = vsub.f32 %v12924_v39, %v13140_v18  ;;  %v6440_v6 = vsub.f32 %v12939_v26, %v13140_v18  ;;  %v6444_v9 = vsub.f32 %v14514_v35, %v13140_v18 }
 0x7e5   :  { %v6997_v52 = vrot.slane %v6996_v37, 4  ;;  %v7118_v59 = vsub.f32 %v13430_v27, %v13378_v10  ;;  %v6448_v29 = vsub.f32 %v12968_v56, %v13140_v18  ;;  %v7085_v7 = vrot.slane %v6841_v4, 4 }
 0x7e6   :  { %v6930_v22 = vadd.f32 %v6929_v0, %v6885_v23  ;;  %v6452_v50 = vsub.f32 %v13002_v58, %v13140_v18  ;;  %v14515_v39 = vsub.f32 %v14495_v45, %v13140_v18  ;;  %v14516_v10 = vsub.f32 %v14498_v17, %v13140_v18 }
 0x7e7   :  { %v6998_v55 = vadd.f32 %v6997_v52, %v6996_v37  ;;  %v14517_v2 = vsub.f32 %v14502_v16, %v13140_v18  ;;  %v6480_v4 = vmul.f32 %v13257_v5, %v6408_v54  ;;  %v6484_v58 = vmul.f32 %v13257_v5, %v6412_v31 }
 0x7e8   :  { %v6468_v26 = vmul.f32 %v13257_v5, %v14515_v39  ;;  %v6472_v63 = vmul.f32 %v13257_v5, %v14516_v10  ;;  %v6931_v19 = vadd.f32 %v6930_v22, %v6889_v36  ;;  %v6488_v45 = vmul.f32 %v13257_v5, %v6416_v21 }
 0x7e9   :  { %v6999_v37 = vrot.slane %v6998_v55, 2  ;;  %v6476_v56 = vmul.f32 %v13257_v5, %v14517_v2  ;;  %v6492_v3 = vmul.f32 %v13257_v5, %v6420_v42  ;;  %v6496_v23 = vmul.f32 %v13257_v5, %v6424_v24 }
 0x7ea   :  { %v6500_v17 = vmul.f32 %v13257_v5, %v6428_v46  ;;  %v6504_v0 = vmul.f32 %v13257_v5, %v6432_v25  ;;  %vm14304_vm11 = vcmask 1041409   ;;  %v6932_v18 = vrot.slane %v6931_v19, 4 }
 0x7eb   :  { %v7000_v52 = vadd.f32 %v6999_v37, %v6998_v55  ;;  %v6508_v16 = vmul.f32 %v13257_v5, %v6436_v1  ;;  %v6512_v54 = vmul.f32 %v13257_v5, %v6440_v6  ;;  %v6516_v36 = vmul.f32 %v13257_v5, %v6444_v9 }
 0x7ec   :  { %v7101_v35 = vunpack.c.l.bf16 %v7085_v7  ;;  %v6520_v21 = vmul.f32 %v13257_v5, %v6448_v29  ;;  %v6524_v42 = vmul.f32 %v13257_v5, %v6452_v50  ;;  %v6933_v55 = vadd.f32 %v6932_v18, %v6931_v19 }
 0x7ed   :  { %v7001_v31 = vrot.slane %v7000_v52, 1  ;;  %v6554_v24 = vmul.f32 %v13046_v34, %v6468_v26  ;;  %v6558_v46 = vmul.f32 %v13046_v34, %v6472_v63  ;;  %v6562_v25 = vmul.f32 %v13046_v34, %v6476_v56 }
 0x7ee   :  { %v6566_v1 = vmul.f32 %v13046_v34, %v6480_v4  ;;  %v6570_v6 = vmul.f32 %v13046_v34, %v6484_v58  ;;  %v6574_v9 = vmul.f32 %v13046_v34, %v6488_v45  ;;  %v6934_v7 = vrot.slane %v6933_v55, 2 }
 0x7ef   :  { %v13473_v22 = vadd.f32 %v7001_v31, %v7000_v52  ;;  %v6578_v29 = vmul.f32 %v13046_v34, %v6492_v3  ;;  %v6582_v5 = vmul.f32 %v13046_v34, %v6496_v23  ;;  %v6586_v50 = vmul.f32 %v13046_v34, %v6500_v17 }
 0x7f0   :  { %v6590_v26 = vmul.f32 %v13046_v34, %v6504_v0  ;;  %v6594_v37 = vmul.f32 %v13046_v34, %v6508_v16  ;;  %v6598_v10 = vmul.f32 %v13046_v34, %v6512_v54  ;;  %v6935_v63 = vadd.f32 %v6934_v7, %v6933_v55  ;;  %v14520_v7 = vld [vmem:[#allocation36_spill] sm:$0xff] }
 0x7f1   :  { %v7122_v39 = vsub.f32 %v13473_v22, %v13416_v32  ;;  %v6602_v2 = vmul.f32 %v13046_v34, %v6516_v36  ;;  %v6606_v56 = vmul.f32 %v13046_v34, %v6520_v21  ;;  %v6610_v4 = vmul.f32 %v13046_v34, %v6524_v42 }
 0x7f2   :  { %v6640_v58 = vadd.f32 %v13212_v30, %v6554_v24  ;;  %v6644_v45 = vadd.f32 %v13212_v30, %v6558_v46  ;;  %v6648_v32 = vadd.f32 %v13212_v30, %v6562_v25  ;;  %v6936_v3 = vrot.slane %v6935_v63, 1  ;;  %v14518_v25 = vld [vmem:[#allocation30_spill] sm:$0xff] }
 0x7f3   :  { %v7152_v19 = vrot.slane %v7122_v39, 7  ;;  %v6652_v52 = vadd.f32 %v13212_v30, %v6566_v1  ;;  %v6656_v23 = vadd.f32 %v13212_v30, %v6570_v6  ;;  %v6660_v17 = vadd.f32 %v13212_v30, %v6574_v9  ;;  %v14519_v6 = vld [vmem:[#allocation33_spill] sm:$0xff] }
 0x7f4   :  { %v6664_v18 = vadd.f32 %v13212_v30, %v6578_v29  ;;  %v6668_v34 = vadd.f32 %v13212_v30, %v6582_v5  ;;  %v6672_v16 = vadd.f32 %v13212_v30, %v6586_v50  ;;  %v13499_v36 = vadd.f32 %v6936_v3, %v6935_v63  ;;  %v14521_v5 = vld [vmem:[#allocation39_spill] sm:$0xff]  ;;  %v14522_v39 = vld [vmem:[#allocation41_spill] sm:$0xff] }
 0x7f5   :  { %v7153_v0 = vsel %vm14304_vm11, %v7152_v19, %v7118_v59  ;;  %v6676_v31 = vadd.f32 %v13212_v30, %v6590_v26  ;;  %v6680_v21 = vadd.f32 %v13212_v30, %v6594_v37  ;;  %v6684_v42 = vadd.f32 %v13212_v30, %v6598_v10  ;;  %v14523_v37 = vld [vmem:[#allocation12_spill] sm:$0xff] }
 0x7f6   :  { %v7219_v54 = vpack.c.bf16 %v7153_v0, %v7153_v0  ;;  %v6688_v55 = vadd.f32 %v13212_v30, %v6602_v2  ;;  %v13506_v24 = vadd.f32 %v13212_v30, %v6606_v56  ;;  %10523 = vtanh.f32 %v6640_v58  ;;  %v10205_v2 = vld [vmem:[%s14212_s12 + $0xc8] sm:$0xff]   ;;  %v14524_v56 = vld [vmem:[#allocation45_spill] sm:$0xff] }
 0x7f7   :  { %v7117_v59 = vsub.f32 %v13499_v36, %v7101_v35  ;;  %v13510_v46 = vadd.f32 %v13212_v30, %v6610_v4  ;;  %10525 = vtanh.f32 %v6644_v45  ;;  %v6395_v1 = vsub.f32 %v14518_v25, %v13123_v47  ;;  %v10204_v30 = vld [vmem:[%s14212_s12 + $0x80] sm:$0xff]   ;;  %v14526_v58 = vld [vmem:[#allocation25_spill] sm:$0xff] }
 0x7f8   :  { %8290 = vmatprep.mubr.bf16.mxu0 %v7219_v54  ;;  %10527 = vtanh.f32 %v6648_v32  ;;  %v6399_v9 = vsub.f32 %v14519_v6, %v13123_v47  ;;  %v6403_v29 = vsub.f32 %v14520_v7, %v13123_v47  ;;  %v6407_v50 = vsub.f32 %v14521_v5, %v13123_v47  ;;  %v14525_v4 = vld [vmem:[#allocation14_spill] sm:$0xff]  ;;  %v14527_v32 = vld [vmem:[#allocation27_spill] sm:$0xff] }
 0x7f9   :  { %v7151_v35 = vsel %vm14304_vm11, %v13432_v44, %v7117_v59  ;;  %10529 = vtanh.f32 %v6652_v52  ;;  %v6411_v26 = vsub.f32 %v14522_v39, %v13123_v47  ;;  %v6415_v10 = vsub.f32 %v14523_v37, %v13123_v47  ;;  %v14528_v52 = vld [vmem:[#allocation19_spill] sm:$0xff] }
 0x7fa   :  { %v7218_v63 = vpack.c.bf16 %v7151_v35, %v7151_v35  ;;  %10531 = vtanh.f32 %v6656_v23  ;;  %v6419_v44 = vsub.f32 %v14524_v56, %v13123_v47  ;;  %v6423_v19 = vsub.f32 %v14525_v4, %v13123_v47  ;;  %v14529_v23 = vld [vmem:[#allocation22_spill] sm:$0xff]  ;;  %v14530_v59 = vld [vmem:[#allocation23_spill] sm:$0xff]  ;;  %v10207_v35 = vld [vmem:[%s14212_s12 + $0xd0] sm:$0xff]  }
 0x7fb   :  { %10533 = vtanh.f32 %v6660_v17  ;;  %v6427_v45 = vsub.f32 %v14526_v58, %v13123_v47  ;;  %v6431_v3 = vsub.f32 %v14527_v32, %v13123_v47  ;;  %v6435_v0 = vsub.f32 %v14528_v52, %v13123_v47  ;;  %v10206_v6 = vld [vmem:[%s14212_s12 + $0x88] sm:$0xff]  }
 0x7fc   :  { %8291 = vmatmul.mubr.bf16.vlgmr.msra.gmra.mrb[68].mxu0 %v7218_v63  ;;  %10535 = vtanh.f32 %v6664_v18  ;;  %v6439_v54 = vsub.f32 %v14529_v23, %v13123_v47  ;;  %v6443_v25 = vsub.f32 %v14530_v59, %v13123_v47  ;;  %v6447_v17 = vsub.f32 %v12960_v60, %v13123_v47  ;;  %v10209_v63 = vld [vmem:[%s14212_s12 + $0xd8] sm:$0xff]   ;;  %v10211_v59 = vld [vmem:[%s14212_s12 + $0xe0] sm:$0xff]  }
 0x7fd   :  { %9175 = vmatpush3.bf16.msra.mxu0 %v10204_v30  ;;  %10537 = vtanh.f32 %v6668_v34  ;;  %v6451_v7 = vsub.f32 %v12999_v11, %v13123_v47  ;;  %v6467_v18 = vmul.f32 %v13236_v28, %v6395_v1  ;;  %v6471_v5 = vmul.f32 %v13236_v28, %v6399_v9 }
 0x7fe   :  { %9176 = vmatprep.subr.bf16.mxu0 %v10205_v2  ;;  %10539 = vtanh.f32 %v6672_v16  ;;  %v6475_v60 = vmul.f32 %v13236_v28, %v6403_v29  ;;  %v6479_v30 = vmul.f32 %v13236_v28, %v6407_v50  ;;  %v6483_v39 = vmul.f32 %v13236_v28, %v6411_v26 }
 0x7ff   :  { %10541 = vtanh.f32 %v6676_v31  ;;  %v6487_v34 = vmul.f32 %v13236_v28, %v6415_v10  ;;  %v6491_v11 = vmul.f32 %v13236_v28, %v6419_v44  ;;  %v6495_v47 = vmul.f32 %v13236_v28, %v6423_v19  ;;  %v10208_v31 = vld [vmem:[%s14212_s12 + $0x90] sm:$0xff]  }
 0x800   :  { %v10524_v1 = vpop.eup %10523  ;;  %10543 = vtanh.f32 %v6680_v21  ;;  %v6499_v9 = vmul.f32 %v13236_v28, %v6427_v45  ;;  %v6503_v37 = vmul.f32 %v13236_v28, %v6431_v3  ;;  %v13567_v16 = vmul.f32 %v13236_v28, %v6435_v0  ;;  %v10210_v3 = vld [vmem:[%s14212_s12 + $0x98] sm:$0xff]  }
 0x801   :  { %v10526_v29 = vpop.eup %10525  ;;  %9177 = vmatpush3.bf16.msra.mxu0 %v10206_v6  ;;  %10545 = vtanh.f32 %v6684_v42  ;;  %v6768_v50 = vsel %vm12420_vm0, %v10524_v1, 0.0  ;;  %v13575_v26 = vmul.f32 %v13236_v28, %v6439_v54  ;;  %v13578_v21 = vmul.f32 %v13236_v28, %v6443_v25 }
 0x802   :  { %v10528_v10 = vpop.eup %10527  ;;  %9178 = vmatprep.subr.bf16.mxu0 %v10207_v35  ;;  %10547 = vtanh.f32 %v6688_v55  ;;  %v6772_v2 = vsel %vm12427_vm10, %v10526_v29, 0.0  ;;  %v13586_v42 = vmul.f32 %v13236_v28, %v6447_v17  ;;  %v13589_v56 = vmul.f32 %v13236_v28, %v6451_v7 }
 0x803   :  { %v10530_v44 = vpop.eup %10529  ;;  %10549 = vtanh.f32 %v13506_v24  ;;  %v6776_v4 = vsel %vm12458_vm13, %v10528_v10, 0.0  ;;  %v13594_v19 = vpack.c.bf16 %v6772_v2, %v6768_v50  ;;  %v13597_v58 = vmul.f32 %v14479_v51, %v6467_v18  ;;  %v10212_v50 = vld [vmem:[%s14212_s12 + $0xa0] sm:$0xff]  }
 0x804   :  { %v10532_v55 = vpop.eup %10531  ;;  %10551 = vtanh.f32 %v13510_v46  ;;  %v6780_v45 = vsel %vm12465_vm14, %v10530_v44, 0.0  ;;  %v13603_v28 = vmul.f32 %v14479_v51, %v6471_v5  ;;  %v13606_v32 = vmul.f32 %v14479_v51, %v6475_v60 }
 0x805   :  { %v10534_v24 = vpop.eup %10533  ;;  %9179 = vmatpush3.bf16.msra.mxu0 %v10208_v31  ;;  %v6784_v52 = vsel %vm12496_vm15, %v10532_v55, 0.0  ;;  %v6836_v0 = vpack.c.bf16 %v6780_v45, %v6776_v4  ;;  %v6864_v46 = vunpack.c.l.bf16 %v13594_v19  ;;  %v6868_v23 = vunpack.c.h.bf16 %v13594_v19 }
 0x806   :  { %v10536_v54 = vpop.eup %10535  ;;  %9180 = vmatprep.subr.bf16.mxu0 %v10209_v63  ;;  %v6788_v25 = vsel %vm12503_vm1, %v10534_v24, 0.0  ;;  %v13621_v17 = vmul.f32 %v14479_v51, %v6479_v30  ;;  %v13624_v6 = vmul.f32 %v14479_v51, %v6483_v39  ;;  %v13627_v7 = vmul.f32 %v14479_v51, %v6487_v34 }
 0x807   :  { %v10538_v18 = vpop.eup %10537  ;;  %v6792_v5 = vsel %vm12534_vm2, %v10536_v54, 0.0  ;;  %v6840_v35 = vpack.c.bf16 %v6788_v25, %v6784_v52  ;;  %v6872_v60 = vunpack.c.l.bf16 %v6836_v0  ;;  %v6964_v30 = vadd.f32 %v6868_v23, %v6864_v46 }
 0x808   :  { %v10540_v1 = vpop.eup %10539  ;;  %v6796_v29 = vsel %vm12541_vm3, %v10538_v18, 0.0  ;;  %v13636_v31 = vmul.f32 %v14479_v51, %v6491_v11  ;;  %v13639_v39 = vmul.f32 %v14479_v51, %v6495_v47  ;;  %v6876_v2 = vunpack.c.h.bf16 %v6836_v0  ;;  %v10213_v11 = vld [vmem:[%s14212_s12 + $0xe8] sm:$0xff]  }
 0x809   :  { %v10542_v34 = vpop.eup %10541  ;;  %9181 = vmatpush3.bf16.msra.mxu0 %v10210_v3  ;;  %v6800_v10 = vsel %vm12572_vm4, %v10540_v1, 0.0  ;;  %v13646_v63 = vpack.c.bf16 %v6796_v29, %v6792_v5  ;;  %v6965_v4 = vadd.f32 %v6964_v30, %v6872_v60  ;;  %v6585_v55 = vmul.f32 %v14479_v51, %v6499_v9  ;;  %v10214_v18 = vld [vmem:[%s14212_s12 + $0xa8] sm:$0xff]  }
 0x80a   :  { %v10544_v44 = vpop.eup %10543  ;;  %9182 = vmatprep.subr.bf16.mxu0 %v10211_v59  ;;  %v6804_v47 = vsel %vm12579_vm6, %v10542_v34, 0.0  ;;  %v6589_v45 = vmul.f32 %v14479_v51, %v6503_v37  ;;  %v6828_v52 = vsel %vm12858_vm12, %v13337_v48, 0.0  ;;  %v6880_v59 = vunpack.c.l.bf16 %v6840_v35 }
 0x80b   :  { %v10546_v24 = vpop.eup %10545  ;;  %v6808_v3 = vsel %vm12786_vm7, %v10544_v44, 0.0  ;;  %v13660_v0 = vpack.c.bf16 %v6804_v47, %v6800_v10  ;;  %v6966_v25 = vadd.f32 %v6965_v4, %v6876_v2  ;;  %v6593_v9 = vmul.f32 %v14479_v51, %v13567_v16  ;;  %v10215_v16 = vld [vmem:[%s14212_s12 + $0xf0] sm:$0xff]  }
 0x80c   :  { %v10548_v23 = vpop.eup %10547  ;;  %v6812_v54 = vsel %vm12790_vm8, %v10546_v24, 0.0  ;;  %v6884_v34 = vunpack.c.h.bf16 %v6840_v35  ;;  %v6597_v10 = vmul.f32 %v14479_v51, %v13575_v26  ;;  %v14531_v2 = vld [vmem:[#allocation17_spill] sm:$0xff]  ;;  %v6888_v4 = vunpack.c.l.bf16 %v13646_v63 }
 0x80d   :  { %v10550_v37 = vpop.eup %10549  ;;  %9183 = vmatpush3.bf16.msra.mxu0 %v10212_v50  ;;  %v6816_v48 = vsel %vm12820_vm9, %v10548_v23, 0.0  ;;  %v6852_v5 = vpack.c.bf16 %v6812_v54, %v6808_v3  ;;  %v6896_v60 = vunpack.c.l.bf16 %v13660_v0  ;;  %v6900_v1 = vunpack.c.h.bf16 %v13660_v0  ;;  %v14533_v54 = vld [vmem:[#allocation48_spill] sm:$0xff] }
 0x80e   :  { %v10552_v29 = vpop.eup %10551  ;;  %9184 = vmatprep.subr.bf16.mxu0 %v10213_v11  ;;  %v6820_v30 = vsel %vm12824_vm5, %v10550_v37, 0.0  ;;  %v6967_v50 = vadd.f32 %v6966_v25, %v6880_v59  ;;  %vm14532_vm11 = vnez %v14531_v2  ;;  %v6601_v35 = vmul.f32 %v14479_v51, %v13578_v21  ;;  %v10216_v59 = vld [vmem:[%s14212_s12 + $0xb0] sm:$0xff]  }
 0x80f   :  { %v6824_v44 = vsel %vm14532_vm11, %v10552_v29, 0.0  ;;  %v6856_v47 = vpack.c.bf16 %v6820_v30, %v6816_v48  ;;  %v6904_v24 = vunpack.c.l.bf16 %v6852_v5  ;;  %v7016_v23 = vadd.f32 %v6900_v1, %v6896_v60  ;;  %v14534_v30 = vld [vmem:[#allocation21_spill] sm:$0xff] }
 0x810   :  { %v13683_v11 = vpack.c.bf16 %v6828_v52, %v6824_v44  ;;  %v6968_v3 = vadd.f32 %v6967_v50, %v6884_v34  ;;  %10553 = vtanh.f32 %v14533_v54  ;;  %v6892_v26 = vunpack.c.h.bf16 %v13646_v63 }
 0x811   :  { %9185 = vmatpush3.bf16.msra.mxu0 %v10214_v18  ;;  %v6605_v52 = vmul.f32 %v14479_v51, %v13586_v42  ;;  %v6609_v25 = vmul.f32 %v14479_v51, %v13589_v56  ;;  %v6908_v37 = vunpack.c.h.bf16 %v6852_v5  ;;  %v6912_v48 = vunpack.c.l.bf16 %v6856_v47  ;;  %v10217_v18 = vld [vmem:[%s14212_s12 + $0xf8] sm:$0xff]  }
 0x812   :  { %9186 = vmatprep.subr.bf16.mxu0 %v10215_v16  ;;  %v6969_v1 = vadd.f32 %v6968_v3, %v6888_v4  ;;  %v7017_v21 = vadd.f32 %v7016_v23, %v6904_v24  ;;  %v6916_v29 = vunpack.c.h.bf16 %v6856_v47  ;;  %v6639_v34 = vadd.f32 %v14534_v30, %v13597_v58  ;;  %v10218_v58 = vld [vmem:[%s14212_s12 + $0xb8] sm:$0xff]   ;;  %v10219_v3 = vld [vmem:[%s14212_s12 + $0x140] sm:$0xff]  }
 0x813   :  { %v6643_v50 = vadd.f32 %v14534_v30, %v13603_v28  ;;  %v6647_v42 = vadd.f32 %v14534_v30, %v13606_v32  ;;  %v6651_v5 = vadd.f32 %v14534_v30, %v13621_v17  ;;  %v6655_v16 = vadd.f32 %v14534_v30, %v13624_v6 }
 0x814   :  { %v6970_v51 = vadd.f32 %v6969_v1, %v6892_v26  ;;  %v7018_v56 = vadd.f32 %v7017_v21, %v6908_v37  ;;  %v6920_v44 = vunpack.c.l.bf16 %v13683_v11  ;;  %v6659_v28 = vadd.f32 %v14534_v30, %v13627_v7  ;;  %v14537_v37 = vld [vmem:[#allocation18_spill] sm:$0xff] }
 0x815   :  { %9187 = vmatpush3.bf16.msra.mxu0 %v10216_v59  ;;  %v6663_v32 = vadd.f32 %v14534_v30, %v13636_v31  ;;  %v6667_v47 = vadd.f32 %v14534_v30, %v13639_v39  ;;  %v6671_v6 = vadd.f32 %v14534_v30, %v6585_v55  ;;  %v6675_v24 = vadd.f32 %v14534_v30, %v6589_v45 }
 0x816   :  { %v6971_v17 = vrot.slane %v6970_v51, 4  ;;  %v7019_v4 = vadd.f32 %v7018_v56, %v6912_v48  ;;  %9188 = vmatprep.subr.bf16.mxu0 %v10217_v18  ;;  %v6679_v23 = vadd.f32 %v14534_v30, %v6593_v9  ;;  %v6683_v7 = vadd.f32 %v14534_v30, %v6597_v10 }
 0x817   :  { %v6687_v31 = vadd.f32 %v14534_v30, %v6601_v35  ;;  %v6691_v54 = vadd.f32 %v14534_v30, %v6605_v52  ;;  %v6695_v59 = vadd.f32 %v14534_v30, %v6609_v25  ;;  %10555 = vtanh.f32 %v6639_v34 }
 0x818   :  { %v6972_v39 = vadd.f32 %v6971_v17, %v6970_v51  ;;  %v7020_v26 = vadd.f32 %v7019_v4, %v6916_v29  ;;  %10557 = vtanh.f32 %v6643_v50  ;;  %vm14535_vm11 = vcmask 1041409   ;;  %v14539_v29 = vld [vmem:[#allocation20_spill] sm:$0xff] }
 0x819   :  { %9189 = vmatpush3.bf16.msra.mxu0 %v10218_v58  ;;  %v13734_v55 = vsel %vm14535_vm11, %v13473_v22, %v13430_v27  ;;  %vm14536_vm5 = vmmov %vm14535_vm11  ;;  %v6924_v9 = vunpack.c.h.bf16 %v13683_v11  ;;  %10559 = vtanh.f32 %v6647_v42  ;;  %v7088_v25 = vrot.slane %v13646_v63, 4  ;;  %v14541_v50 = vld [vmem:[#allocation16_spill] sm:$0xff]  ;;  %v14543_v63 = vld [vmem:[#allocation15_spill] sm:$0xff] }
 0x81a   :  { %v13739_v45 = vsel %vm14536_vm5, %v13412_v14, %v13499_v36  ;;  %v6973_v10 = vrot.slane %v6972_v39, 2  ;;  %v7021_v35 = vadd.f32 %v7020_v26, %v6920_v44  ;;  %9196 = vmatprep.subr.bf16.mxu0 %v10219_v3  ;;  %v13742_v52 = vpop.eup %10553  ;;  %10561 = vtanh.f32 %v6651_v5  ;;  %vm14545_vm11 = vmmov %vm14536_vm5 }
 0x81b   :  { %v14538_v48 = vunpack.c.l.bf16 %v14537_v37  ;;  %10563 = vtanh.f32 %v6655_v16  ;;  %v14540_v30 = vunpack.c.l.bf16 %v14539_v29  ;;  %v14542_v42 = vunpack.c.l.bf16 %v14541_v50 }
 0x81c   :  { %v6974_v21 = vadd.f32 %v6973_v10, %v6972_v39  ;;  %v7022_v18 = vadd.f32 %v7021_v35, %v6924_v9  ;;  %10565 = vtanh.f32 %v6659_v28  ;;  %v14544_v5 = vunpack.c.l.bf16 %v14543_v63 }
 0x81d   :  { %v7130_v1 = vsub.f32 %v13473_v22, %v14538_v48  ;;  %v13751_v34 = vsub.f32 %v13499_v36, %v14540_v30  ;;  %v7126_v51 = vsub.f32 %v13430_v27, %v14542_v42  ;;  %10567 = vtanh.f32 %v6663_v32 }
 0x81e   :  { %v13759_v44 = vsub.f32 %v13412_v14, %v14544_v5  ;;  %v6975_v22 = vrot.slane %v6974_v21, 1  ;;  %v7023_v58 = vrot.slane %v7022_v18, 4  ;;  %v7050_v16 = vrot.slane %v14537_v37, 4 }
 0x81f   :  { %v7188_v56 = vrot.slane %v7130_v1, 7  ;;  %v13762_v17 = vunpack.c.l.bf16 %v7088_v25  ;;  %10569 = vtanh.f32 %v6667_v47  ;;  %v7046_v14 = vrot.slane %v14541_v50, 4 }
 0x820   :  { %v7186_v28 = vrot.slane %v13759_v44, 7  ;;  %v13768_v27 = vadd.f32 %v6975_v22, %v6974_v21  ;;  %v7024_v4 = vadd.f32 %v7023_v58, %v7022_v18  ;;  %10571 = vtanh.f32 %v6671_v6 }
 0x821   :  { %v13765_v36 = vsel %vm14536_vm5, %v7188_v56, %v7126_v51  ;;  %10573 = vtanh.f32 %v6675_v24  ;;  %v7066_v3 = vunpack.c.l.bf16 %v7050_v16  ;;  %v10556_v39 = vpop.eup %10555  ;;  %v7092_v47 = vrot.slane %v13683_v11, 4 }
 0x822   :  { %v13773_v32 = vsel %vm14545_vm11, %v7186_v28, %v13751_v34  ;;  %v7025_v26 = vrot.slane %v7024_v4, 2  ;;  %v7120_v9 = vsub.f32 %v13768_v27, %v13762_v17  ;;  %10575 = vtanh.f32 %v6679_v23  ;;  %v10558_v10 = vpop.eup %10557 }
 0x823   :  { %10577 = vtanh.f32 %v6683_v7  ;;  %v6767_v6 = vsel %vm12420_vm0, %v10556_v39, 0.0  ;;  %v13783_v24 = vsub.f32 %v13768_v27, %v6864_v46  ;;  %v7138_v35 = vsub.f32 %v7130_v1, %v7066_v3  ;;  %v10560_v25 = vpop.eup %10559  ;;  %vm14546_vm0 = vmmov %vm14536_vm5 }
 0x824   :  { %v7026_v37 = vadd.f32 %v7025_v26, %v7024_v4  ;;  %10579 = vtanh.f32 %v6687_v31  ;;  %v6771_v11 = vsel %vm12427_vm10, %v10558_v10, 0.0  ;;  %v7062_v48 = vunpack.c.l.bf16 %v7046_v14  ;;  %v10562_v21 = vpop.eup %10561  ;;  %vm14547_vm10 = vmmov %vm14546_vm0 }
 0x825   :  { %10581 = vtanh.f32 %v6691_v54  ;;  %v6775_v23 = vsel %vm12458_vm13, %v10560_v25, 0.0  ;;  %v13789_v62 = vpack.c.bf16 %v6771_v11, %v6767_v6  ;;  %v7208_v7 = vrot.slane %v7138_v35, 7  ;;  %v10564_v18 = vpop.eup %10563  ;;  %vm14548_vm13 = vmmov %vm14546_vm0 }
 0x826   :  { %v7027_v30 = vrot.slane %v7026_v37, 1  ;;  %10583 = vtanh.f32 %v6695_v59  ;;  %v6779_v46 = vsel %vm12465_vm14, %v10562_v21, 0.0  ;;  %v7134_v1 = vsub.f32 %v7126_v51, %v7062_v48  ;;  %v10566_v31 = vpop.eup %10565 }
 0x827   :  { %v6783_v8 = vsel %vm12496_vm15, %v10564_v18, 0.0  ;;  %v6835_v50 = vpack.c.bf16 %v6779_v46, %v6775_v23  ;;  %v6863_v54 = vunpack.c.l.bf16 %v13789_v62  ;;  %v6867_v49 = vunpack.c.h.bf16 %v13789_v62  ;;  %v10568_v42 = vpop.eup %10567 }
 0x828   :  { %v7028_v56 = vadd.f32 %v7027_v30, %v7026_v37  ;;  %v7108_v5 = vunpack.c.l.bf16 %v7092_v47  ;;  %v6787_v22 = vsel %vm12503_vm1, %v10566_v31, 0.0  ;;  %v13800_v59 = vsel %vm14546_vm0, %v7208_v7, %v7134_v1  ;;  %vm14551_vm1 = vmmov %vm14546_vm0 }
 0x829   :  { %v10570_v40 = vpop.eup %10569  ;;  %v6791_v51 = vsel %vm12534_vm2, %v10568_v42, 0.0  ;;  %v6839_v33 = vpack.c.bf16 %v6787_v22, %v6783_v8  ;;  %v6871_v58 = vunpack.c.l.bf16 %v6835_v50  ;;  %v6951_v4 = vadd.f32 %v6867_v49, %v6863_v54  ;;  %vm14552_vm2 = vmmov %vm14546_vm0 }
 0x82a   :  { %v10572_v16 = vpop.eup %10571  ;;  %v7124_v17 = vsub.f32 %v7028_v56, %v7108_v5  ;;  %v6795_v28 = vsel %vm12541_vm3, %v10570_v40, 0.0  ;;  %v13810_v61 = vsel %vm14547_vm10, %v7028_v56, %v13768_v27  ;;  %v6827_v53 = vsel %vm12858_vm12, %v13742_v52, 0.0  ;;  %vm14553_vm3 = vmmov %vm14546_vm0 }
 0x82b   :  { %v10574_v14 = vpop.eup %10573  ;;  %v6799_v3 = vsel %vm12572_vm4, %v10572_v16, 0.0  ;;  %v13817_v39 = vpack.c.bf16 %v6795_v28, %v6791_v51  ;;  %v6875_v10 = vunpack.c.h.bf16 %v6835_v50  ;;  %v6952_v6 = vadd.f32 %v6951_v4, %v6871_v58  ;;  %vm14554_vm4 = vmmov %vm14546_vm0 }
 0x82c   :  { %v10576_v26 = vpop.eup %10575  ;;  %v7156_v38 = vrot.slane %v7124_v17, 7  ;;  %v6803_v47 = vsel %vm12579_vm6, %v10574_v14, 0.0  ;;  %v7045_v12 = vrot.slane %v14539_v29, 4  ;;  %v7049_v15 = vrot.slane %v14543_v63, 4  ;;  %vm14555_vm6 = vmmov %vm14546_vm0 }
 0x82d   :  { %v10578_v35 = vpop.eup %10577  ;;  %v6807_v27 = vsel %vm12786_vm7, %v10576_v26, 0.0  ;;  %v13823_v25 = vpack.c.bf16 %v6803_v47, %v6799_v3  ;;  %v6879_v20 = vunpack.c.l.bf16 %v6839_v33  ;;  %v6953_v48 = vadd.f32 %v6952_v6, %v6875_v10  ;;  %vm14556_vm7 = vmmov %vm14546_vm0 }
 0x82e   :  { %v10580_v52 = vpop.eup %10579  ;;  %v7157_v37 = vsel %vm14548_vm13, %v7156_v38, %v7120_v9  ;;  %v6811_v11 = vsel %vm12790_vm8, %v10578_v35, 0.0  ;;  %vm14549_vm14 = vnez %v14433_v41  ;;  %v6883_v63 = vunpack.c.h.bf16 %v6839_v33  ;;  %vm14557_vm8 = vmmov %vm14546_vm0 }
 0x82f   :  { %v10582_v21 = vpop.eup %10581  ;;  %v7221_v23 = vpack.c.bf16 %v7157_v37, %v7157_v37  ;;  %v6815_v13 = vsel %vm12820_vm9, %v10580_v52, 0.0  ;;  %v6851_v7 = vpack.c.bf16 %v6811_v11, %v6807_v27  ;;  %v6895_v18 = vunpack.c.l.bf16 %v13823_v25 }
 0x830   :  { %v10584_v30 = vpop.eup %10583  ;;  %v6819_v29 = vsel %vm14549_vm14, %v10582_v21, 0.0  ;;  %v6899_v9 = vunpack.c.h.bf16 %v13823_v25  ;;  %v6954_v46 = vadd.f32 %v6953_v48, %v6879_v20  ;;  %vm14550_vm15 = vnez %v14531_v2 }
 0x831   :  { %8330 = vmatprep.mubr.bf16.mxu0 %v7221_v23  ;;  %v6823_v57 = vsel %vm14550_vm15, %v10584_v30, 0.0  ;;  %v6855_v1 = vpack.c.bf16 %v6819_v29, %v6815_v13  ;;  %v6887_v31 = vunpack.c.l.bf16 %v13817_v39  ;;  %v6903_v43 = vunpack.c.l.bf16 %v6851_v7 }
 0x832   :  { %v6859_v8 = vpack.c.bf16 %v6827_v53, %v6823_v57  ;;  %v6955_v50 = vadd.f32 %v6954_v46, %v6883_v63  ;;  %v7003_v49 = vadd.f32 %v6899_v9, %v6895_v18  ;;  %v7132_v41 = vsub.f32 %v7028_v56, %v6896_v60 }
 0x833   :  { %v7065_v42 = vunpack.c.l.bf16 %v7049_v15  ;;  %v6891_v5 = vunpack.c.h.bf16 %v13817_v39  ;;  %v6907_v22 = vunpack.c.h.bf16 %v6851_v7  ;;  %v6911_v2 = vunpack.c.l.bf16 %v6855_v1 }
 0x834   :  { %v6956_v40 = vadd.f32 %v6955_v50, %v6887_v31  ;;  %v7004_v51 = vadd.f32 %v7003_v49, %v6903_v43  ;;  %v7192_v33 = vrot.slane %v7132_v41, 7  ;;  %v7061_v58 = vunpack.c.l.bf16 %v7045_v12 }
 0x835   :  { %v7137_v16 = vsub.f32 %v13759_v44, %v7065_v42  ;;  %v7048_v4 = vrot.slane %v13594_v19, 4  ;;  %v7052_v14 = vrot.slane %v13660_v0, 4  ;;  %v6915_v53 = vunpack.c.h.bf16 %v6855_v1 }
 0x836   :  { %v6957_v17 = vadd.f32 %v6956_v40, %v6891_v5  ;;  %v7005_v28 = vadd.f32 %v7004_v51, %v6907_v22  ;;  %v13849_v60 = vsel %vm14551_vm1, %v7192_v33, %v13783_v24  ;;  %v7133_v56 = vsub.f32 %v13751_v34, %v7061_v58 }
 0x837   :  { %v7206_v3 = vrot.slane %v7137_v16, 7  ;;  %v7064_v47 = vunpack.c.l.bf16 %v7048_v4  ;;  %v7068_v44 = vunpack.c.l.bf16 %v7052_v14  ;;  %v6919_v6 = vunpack.c.l.bf16 %v6859_v8  ;;  %v10225_v4 = vld [vmem:[%s14212_s12 + $0x158] sm:$0xff]  }
 0x838   :  { %v6958_v26 = vrot.slane %v6957_v17, 4  ;;  %v7006_v38 = vadd.f32 %v7005_v28, %v6911_v2  ;;  %v6923_v12 = vunpack.c.h.bf16 %v6859_v8  ;;  %v7087_v20 = vrot.slane %v13817_v39, 4  ;;  %v10223_v28 = vld [vmem:[%s14212_s12 + $0x150] sm:$0xff]   ;;  %v10226_v14 = vld [vmem:[%s14212_s12 + $0x118] sm:$0xff]  }
 0x839   :  { %v13853_v10 = vsel %vm14552_vm2, %v7206_v3, %v7133_v56  ;;  %v7136_v0 = vsub.f32 %v13783_v24, %v7064_v47  ;;  %v7140_v27 = vsub.f32 %v7132_v41, %v7068_v44  ;;  %v7047_v13 = vrot.slane %v13789_v62, 4  ;;  %v10227_v56 = vld [vmem:[%s14212_s12 + $0x160] sm:$0xff]   ;;  %v10232_v47 = vld [vmem:[%s14212_s12 + $0x130] sm:$0xff]   ;;  %v10233_v44 = vld [vmem:[%s14212_s12 + $0x178] sm:$0xff]  }
 0x83a   :  { %v6959_v35 = vadd.f32 %v6958_v26, %v6957_v17  ;;  %v7007_v19 = vadd.f32 %v7006_v38, %v6915_v53  ;;  %v7103_v29 = vunpack.c.l.bf16 %v7087_v20  ;;  %v7091_v1 = vrot.slane %v6859_v8, 4  ;;  %v10220_v8 = vld [vmem:[%s14212_s12 + $0x100] sm:$0xff]   ;;  %v10222_v17 = vld [vmem:[%s14212_s12 + $0x108] sm:$0xff]   ;;  %v10231_v38 = vld [vmem:[%s14212_s12 + $0x170] sm:$0xff]  }
 0x83b   :  { %v7212_v37 = vrot.slane %v7140_v27, 7  ;;  %v7063_v46 = vunpack.c.l.bf16 %v7047_v13  ;;  %v7051_v43 = vrot.slane %v13823_v25, 4  ;;  %v10221_v25 = vld [vmem:[%s14212_s12 + $0x148] sm:$0xff]   ;;  %v10228_v3 = vld [vmem:[%s14212_s12 + $0x120] sm:$0xff]   ;;  %v10248_v13 = vld [vmem:[%s14212_s12 + $0x1b0] sm:$0xff]   ;;  %vm8579_vm9 = vcmask 25600  }
 0x83c   :  { %v6960_v15 = vrot.slane %v6959_v35, 2  ;;  %v7008_v52 = vadd.f32 %v7007_v19, %v6919_v6  ;;  %v7107_v49 = vunpack.c.l.bf16 %v7091_v1  ;;  %v10229_v53 = vld [vmem:[%s14212_s12 + $0x168] sm:$0xff]   ;;  %v10234_v6 = vld [vmem:[%s14212_s12 + $0x138] sm:$0xff]   ;;  %v10236_v19 = vld [vmem:[%s14212_s12 + $0x180] sm:$0xff]  }
 0x83d   :  { %v13858_v48 = vsel %vm14553_vm3, %v7212_v37, %v7136_v0  ;;  %v7067_v22 = vunpack.c.l.bf16 %v7051_v43  ;;  %v10230_v26 = vld [vmem:[%s14212_s12 + $0x128] sm:$0xff]   ;;  %v7222_v0 = vpack.c.bf16 %v13739_v45, %v13739_v45  ;;  %v10239_v45 = vld [vmem:[%s14212_s12 + $0x1d0] sm:$0xff]   ;;  %v10242_v37 = vld [vmem:[%s14212_s12 + $0x198] sm:$0xff]  }
 0x83e   :  { %v6961_v34 = vadd.f32 %v6960_v15, %v6959_v35  ;;  %v7009_v11 = vadd.f32 %v7008_v52, %v6923_v12  ;;  %v10235_v35 = vld [vmem:[%s14212_s12 + $0x1c0] sm:$0xff]   ;;  %v10237_v27 = vld [vmem:[%s14212_s12 + $0x1c8] sm:$0xff]   ;;  %v7225_v12 = vpack.c.bf16 %v13810_v61, %v13810_v61  ;;  %v10240_v52 = vld [vmem:[%s14212_s12 + $0x190] sm:$0xff]  }
 0x83f   :  { %v10238_v15 = vld [vmem:[%s14212_s12 + $0x188] sm:$0xff]   ;;  %v10241_v61 = vld [vmem:[%s14212_s12 + $0x1d8] sm:$0xff]   ;;  %v10255_v1 = vld [vmem:[%s14212_s12 + $0x250] sm:$0xff]  }
 0x840   :  { %v6962_v21 = vrot.slane %v6961_v34, 1  ;;  %v7010_v23 = vrot.slane %v7009_v11, 4  ;;  %v10245_v20 = vld [vmem:[%s14212_s12 + $0x1e8] sm:$0xff]   ;;  %v10259_v43 = vld [vmem:[%s14212_s12 + $0x260] sm:$0xff]  }
 0x842   :  { %v6963_v7 = vadd.f32 %v6962_v21, %v6961_v34  ;;  %v7011_v30 = vadd.f32 %v7010_v23, %v7009_v11  ;;  %v10243_v34 = vld [vmem:[%s14212_s12 + $0x1e0] sm:$0xff]   ;;  %v10246_v21 = vld [vmem:[%s14212_s12 + $0x1a8] sm:$0xff]   ;;  %v10247_v23 = vld [vmem:[%s14212_s12 + $0x1f0] sm:$0xff]  }
 0x843   :  { %v10244_v11 = vld [vmem:[%s14212_s12 + $0x1a0] sm:$0xff]  }
 0x844   :  { %v7012_v24 = vrot.slane %v7011_v30, 2  ;;  %v7119_v63 = vsub.f32 %v6963_v7, %v7103_v29  ;;  %v7127_v9 = vsub.f32 %v6963_v7, %v6863_v54  ;;  %v10251_v29 = vld [vmem:[%s14212_s12 + $0x240] sm:$0xff]  }
 0x846   :  { %v7013_v57 = vadd.f32 %v7012_v24, %v7011_v30  ;;  %v7135_v31 = vsub.f32 %v7127_v9, %v7063_v46  ;;  %v10250_v30 = vld [vmem:[%s14212_s12 + $0x1b8] sm:$0xff]   ;;  %v10252_v24 = vld [vmem:[%s14212_s12 + $0x200] sm:$0xff]   ;;  %v7227_v46 = vpack.c.bf16 %v13765_v36, %v13765_v36 }
 0x847   :  { %v10257_v36 = vld [vmem:[%s14212_s12 + $0x258] sm:$0xff]  }
 0x848   :  { %v7014_v39 = vrot.slane %v7013_v57, 1 }
 0x84a   :  { %v7015_v50 = vadd.f32 %v7014_v39, %v7013_v57  ;;  %v10254_v57 = vld [vmem:[%s14212_s12 + $0x208] sm:$0xff]   ;;  %v10258_v39 = vld [vmem:[%s14212_s12 + $0x218] sm:$0xff]  }
 0x84c   :  { %v7123_v41 = vsub.f32 %v7015_v50, %v7107_v49  ;;  %v13865_v42 = vsel %vm14554_vm4, %v7015_v50, %v6963_v7  ;;  %v7131_v5 = vsub.f32 %v7015_v50, %v6895_v18  ;;  %v7223_v18 = vpack.c.bf16 %v13734_v55, %v13734_v55  ;;  %v10224_v55 = vld [vmem:[%s14212_s12 + $0x110] sm:$0xff]   ;;  %v10249_v7 = vld [vmem:[%s14212_s12 + $0x1f8] sm:$0xff]   ;;  %v10260_v50 = vld [vmem:[%s14212_s12 + $0x220] sm:$0xff]  }
 0x84d   :  { %v10261_v49 = vld [vmem:[%s14212_s12 + $0x268] sm:$0xff]  }
 0x84e   :  { %v7154_v40 = vrot.slane %v7123_v41, 7  ;;  %v7190_v62 = vrot.slane %v7131_v5, 7  ;;  %v7139_v54 = vsub.f32 %v7131_v5, %v7067_v22  ;;  %v10262_v41 = vld [vmem:[%s14212_s12 + $0x228] sm:$0xff]   ;;  %v10264_v5 = vld [vmem:[%s14212_s12 + $0x230] sm:$0xff]   ;;  %v10265_v22 = vld [vmem:[%s14212_s12 + $0x278] sm:$0xff]  }
 0x850   :  { %v7155_v51 = vsel %vm14555_vm6, %v7154_v40, %v7119_v63  ;;  %v13874_v2 = vsel %vm14556_vm7, %v7190_v62, %v7127_v9  ;;  %v7210_v33 = vrot.slane %v7139_v54, 7  ;;  %v7224_v63 = vpack.c.bf16 %v13865_v42, %v13865_v42  ;;  %v10253_v9 = vld [vmem:[%s14212_s12 + $0x248] sm:$0xff]   ;;  %v10263_v42 = vld [vmem:[%s14212_s12 + $0x270] sm:$0xff]   ;;  %v10266_v40 = vld [vmem:[%s14212_s12 + $0x238] sm:$0xff]  }
 0x851   :  { %v7220_v58 = vpack.c.bf16 %v7155_v51, %v7155_v51  ;;  %v10267_v62 = vld [vmem:[%s14212_s12 + $0x2c0] sm:$0xff]   ;;  %v7226_v51 = vpack.c.bf16 %v13773_v32, %v13773_v32  ;;  %v10271_v32 = vld [vmem:[%s14212_s12 + $0x2d0] sm:$0xff]  }
 0x852   :  { %v13882_v16 = vsel %vm14557_vm8, %v7210_v33, %v7135_v31  ;;  %v10256_v31 = vld [vmem:[%s14212_s12 + $0x210] sm:$0xff]   ;;  %v10268_v54 = vld [vmem:[%s14212_s12 + $0x280] sm:$0xff]   ;;  %v7229_v33 = vpack.c.bf16 %v13849_v60, %v13849_v60  ;;  %v10273_v60 = vld [vmem:[%s14212_s12 + $0x2d8] sm:$0xff]  }
 0x853   :  { %8331 = vmatmul.mubr.bf16.vlgmr.msra.gmra.mrb[72].mxu0 %v7220_v58  ;;  %v10270_v58 = vld [vmem:[%s14212_s12 + $0x288] sm:$0xff]  }
 0x854   :  { %9197 = vmatpush3.bf16.msra.mxu0 %v10220_v8  ;;  %8370 = vmatprep.mubr.bf16.mxu0 %v7223_v18  ;;  %v10269_v8 = vld [vmem:[%s14212_s12 + $0x2c8] sm:$0xff]   ;;  %v10274_v18 = vld [vmem:[%s14212_s12 + $0x298] sm:$0xff]  }
 0x855   :  { %9198 = vmatprep.subr.bf16.mxu0 %v10221_v25  ;;  %v10272_v25 = vld [vmem:[%s14212_s12 + $0x290] sm:$0xff]  }
 0x858   :  { %9199 = vmatpush3.bf16.msra.mxu0 %v10222_v17  ;;  %v10275_v17 = vld [vmem:[%s14212_s12 + $0x2e0] sm:$0xff]  }
 0x859   :  { %9200 = vmatprep.subr.bf16.mxu0 %v10223_v28  ;;  %v10276_v28 = vld [vmem:[%s14212_s12 + $0x2a0] sm:$0xff]  }
 0x85c   :  { %9201 = vmatpush3.bf16.msra.mxu0 %v10224_v55  ;;  %v10277_v55 = vld [vmem:[%s14212_s12 + $0x2e8] sm:$0xff]  }
 0x85d   :  { %9202 = vmatprep.subr.bf16.mxu0 %v10225_v4  ;;  %v10278_v4 = vld [vmem:[%s14212_s12 + $0x2a8] sm:$0xff]  }
 0x860   :  { %9203 = vmatpush3.bf16.msra.mxu0 %v10226_v14  ;;  %v10279_v14 = vld [vmem:[%s14212_s12 + $0x2f0] sm:$0xff]  }
 0x861   :  { %9204 = vmatprep.subr.bf16.mxu0 %v10227_v56  ;;  %v10280_v56 = vld [vmem:[%s14212_s12 + $0x2b0] sm:$0xff]  }
 0x864   :  { %9205 = vmatpush3.bf16.msra.mxu0 %v10228_v3  ;;  %v10281_v3 = vld [vmem:[%s14212_s12 + $0x2f8] sm:$0xff]  }
 0x865   :  { %9206 = vmatprep.subr.bf16.mxu0 %v10229_v53  ;;  %v10282_v53 = vld [vmem:[%s14212_s12 + $0x2b8] sm:$0xff]  }
 0x868   :  { %9207 = vmatpush3.bf16.msra.mxu0 %v10230_v26  ;;  %v10283_v26 = vld [vmem:[%s14212_s12 + $0x340] sm:$0xff]  }
 0x869   :  { %9208 = vmatprep.subr.bf16.mxu0 %v10231_v38 }
 0x86c   :  { %9209 = vmatpush3.bf16.msra.mxu0 %v10232_v47  ;;  %v10284_v47 = vld [vmem:[%s14212_s12 + $0x300] sm:$0xff]  }
 0x86d   :  { %9210 = vmatprep.subr.bf16.mxu0 %v10233_v44 }
 0x870   :  { %9211 = vmatpush3.bf16.msra.mxu0 %v10234_v6  ;;  %v7228_v6 = vpack.c.bf16 %v13874_v2, %v13874_v2  ;;  %v10287_v2 = vld [vmem:[%s14212_s12 + $0x350] sm:$0xff]  }
 0x871   :  { %9218 = vmatprep.subr.bf16.mxu0 %v10235_v35  ;;  %v10285_v35 = vld [vmem:[%s14212_s12 + $0x348] sm:$0xff]  }
 0x873   :  { %8371 = vmatmul.mubr.bf16.vlgmr.msra.gmra.mrb[76].mxu0 %v7222_v0 }
 0x874   :  { %9219 = vmatpush3.bf16.msra.mxu0 %v10236_v19  ;;  %8410 = vmatprep.mubr.bf16.mxu0 %v7225_v12 }
 0x875   :  { %9220 = vmatprep.subr.bf16.mxu0 %v10237_v27  ;;  %v7231_v27 = vpack.c.bf16 %v13800_v59, %v13800_v59  ;;  %v10289_v59 = vld [vmem:[%s14212_s12 + $0x358] sm:$0xff]  }
 0x878   :  { %9221 = vmatpush3.bf16.msra.mxu0 %v10238_v15  ;;  %v10286_v15 = vld [vmem:[%s14212_s12 + $0x308] sm:$0xff]  }
 0x879   :  { %9222 = vmatprep.subr.bf16.mxu0 %v10239_v45  ;;  %v10288_v45 = vld [vmem:[%s14212_s12 + $0x310] sm:$0xff]  }
 0x87c   :  { %9223 = vmatpush3.bf16.msra.mxu0 %v10240_v52  ;;  %v10290_v52 = vld [vmem:[%s14212_s12 + $0x318] sm:$0xff]  }
 0x87d   :  { %9224 = vmatprep.subr.bf16.mxu0 %v10241_v61  ;;  %v10291_v61 = vld [vmem:[%s14212_s12 + $0x360] sm:$0xff]  }
 0x880   :  { %9225 = vmatpush3.bf16.msra.mxu0 %v10242_v37  ;;  %v10292_v37 = vld [vmem:[%s14212_s12 + $0x320] sm:$0xff]  }
 0x881   :  { %9226 = vmatprep.subr.bf16.mxu0 %v10243_v34  ;;  %v10293_v34 = vld [vmem:[%s14212_s12 + $0x368] sm:$0xff]  }
 0x884   :  { %9227 = vmatpush3.bf16.msra.mxu0 %v10244_v11  ;;  %v10294_v11 = vld [vmem:[%s14212_s12 + $0x328] sm:$0xff]  }
 0x885   :  { %9228 = vmatprep.subr.bf16.mxu0 %v10245_v20  ;;  %v10295_v20 = vld [vmem:[%s14212_s12 + $0x370] sm:$0xff]  }
 0x888   :  { %9229 = vmatpush3.bf16.msra.mxu0 %v10246_v21  ;;  %v10296_v21 = vld [vmem:[%s14212_s12 + $0x330] sm:$0xff]  }
 0x889   :  { %9230 = vmatprep.subr.bf16.mxu0 %v10247_v23  ;;  %v10297_v23 = vld [vmem:[%s14212_s12 + $0x378] sm:$0xff]  }
 0x88c   :  { %9231 = vmatpush3.bf16.msra.mxu0 %v10248_v13  ;;  %v10298_v13 = vld [vmem:[%s14212_s12 + $0x338] sm:$0xff]  }
 0x88d   :  { %9232 = vmatprep.subr.bf16.mxu0 %v10249_v7  ;;  %v10299_v7 = vld [vmem:[%s14212_s12 + $0x3c0] sm:$0xff]  }
 0x890   :  { %9233 = vmatpush3.bf16.msra.mxu0 %v10250_v30  ;;  %v10300_v30 = vld [vmem:[%s14212_s12 + $0x380] sm:$0xff]  }
 0x891   :  { %9240 = vmatprep.subr.bf16.mxu0 %v10251_v29  ;;  %v7230_v29 = vpack.c.bf16 %v13853_v10, %v13853_v10  ;;  %v10303_v10 = vld [vmem:[%s14212_s12 + $0x3d0] sm:$0xff]  }
 0x893   :  { %8411 = vmatmul.mubr.bf16.vlgmr.msra.gmra.mrb[80].mxu0 %v7224_v63  ;;  %v7233_v63 = vpack.c.bf16 %v13858_v48, %v13858_v48  ;;  %v10305_v48 = vld [vmem:[%s14212_s12 + $0x3d8] sm:$0xff]  }
 0x894   :  { %9241 = vmatpush3.bf16.msra.mxu0 %v10252_v24  ;;  %8450 = vmatprep.mubr.bf16.mxu0 %v7227_v46  ;;  %v10301_v24 = vld [vmem:[%s14212_s12 + $0x3c8] sm:$0xff]   ;;  %v10304_v46 = vld [vmem:[%s14212_s12 + $0x390] sm:$0xff]  }
 0x895   :  { %9242 = vmatprep.subr.bf16.mxu0 %v10253_v9  ;;  %v10302_v9 = vld [vmem:[%s14212_s12 + $0x388] sm:$0xff]  }
 0x898   :  { %9243 = vmatpush3.bf16.msra.mxu0 %v10254_v57  ;;  %v10306_v57 = vld [vmem:[%s14212_s12 + $0x398] sm:$0xff]  }
 0x899   :  { %9244 = vmatprep.subr.bf16.mxu0 %v10255_v1  ;;  %v10307_v1 = vld [vmem:[%s14212_s12 + $0x3e0] sm:$0xff]  }
 0x89c   :  { %9245 = vmatpush3.bf16.msra.mxu0 %v10256_v31  ;;  %v10308_v31 = vld [vmem:[%s14212_s12 + $0x3a0] sm:$0xff]  }
 0x89d   :  { %9246 = vmatprep.subr.bf16.mxu0 %v10257_v36  ;;  %v10309_v36 = vld [vmem:[%s14212_s12 + $0x3e8] sm:$0xff]  }
 0x8a0   :  { %9247 = vmatpush3.bf16.msra.mxu0 %v10258_v39  ;;  %v10310_v39 = vld [vmem:[%s14212_s12 + $0x3a8] sm:$0xff]  }
 0x8a1   :  { %9248 = vmatprep.subr.bf16.mxu0 %v10259_v43  ;;  %v10311_v43 = vld [vmem:[%s14212_s12 + $0x3f0] sm:$0xff]  }
 0x8a4   :  { %9249 = vmatpush3.bf16.msra.mxu0 %v10260_v50  ;;  %v10312_v50 = vld [vmem:[%s14212_s12 + $0x3b0] sm:$0xff]  }
 0x8a5   :  { %9250 = vmatprep.subr.bf16.mxu0 %v10261_v49  ;;  %v10313_v49 = vld [vmem:[%s14212_s12 + $0x3f8] sm:$0xff]  }
 0x8a8   :  { %9251 = vmatpush3.bf16.msra.mxu0 %v10262_v41  ;;  %v10314_v41 = vld [vmem:[%s14212_s12 + $0x3b8] sm:$0xff]   ;;  %s10671_s12 = smov [#allocation8]  }
 0x8a9   :  { %9252 = vmatprep.subr.bf16.mxu0 %v10263_v42  ;;  %v7232_v42 = vpack.c.bf16 %v13882_v16, %v13882_v16  ;;  %s8587_s8 = sshll.u32 %s10671_s12, 4  ;;  %s8588_s8 = int_to_ptr.vmem [resolvable:$true] %s8587_s8 }
 0x8aa   :  { %s10640_s5 = scalar_lea.vmem %s8588_s8, 32  ;;  %p10645_p9 = scmp.lt.s32.totalorder %s8588_s8, %s8588_s8 }
 0x8ab   :  { %p10641_p8 = scmp.ne.s32.totalorder %s8588_s8, %s10640_s5  ;;  %p10646_p10 = scmp.lt.s32.totalorder %s10640_s5, %s10640_s5 }
 0x8ac   :  { %9253 = vmatpush3.bf16.msra.mxu0 %v10264_v5 }
 0x8ad   :  { %9254 = vmatprep.subr.bf16.mxu0 %v10265_v22  ;;  %p10647_p11 = por %p10646_p10, %p10645_p9 }
 0x8af   :  { %p10648_p12 = pnand %p10647_p11, %p10641_p8 }
 0x8b0   :  { %9255 = vmatpush3.bf16.msra.mxu0 %v10266_v40 }
 0x8b1   :  { %9262 = vmatprep.subr.bf16.mxu0 %v10267_v62 }
 0x8b3   :  { %8451 = vmatmul.mubr.bf16.vlgmr.msra.gmra.mrb[84].mxu0 %v7226_v51 }
 0x8b4   :  { %9263 = vmatpush3.bf16.msra.mxu0 %v10268_v54  ;;  %8490 = vmatprep.mubr.bf16.mxu0 %v7229_v33 }
 0x8b5   :  { %9264 = vmatprep.subr.bf16.mxu0 %v10269_v8 }
 0x8b8   :  { %9265 = vmatpush3.bf16.msra.mxu0 %v10270_v58 }
 0x8b9   :  { %9266 = vmatprep.subr.bf16.mxu0 %v10271_v32 }
 0x8bc   :  { %9267 = vmatpush3.bf16.msra.mxu0 %v10272_v25 }
 0x8bd   :  { %9268 = vmatprep.subr.bf16.mxu0 %v10273_v60 }
 0x8c0   :  { %9269 = vmatpush3.bf16.msra.mxu0 %v10274_v18 }
 0x8c1   :  { %9270 = vmatprep.subr.bf16.mxu0 %v10275_v17 }
 0x8c4   :  { %9271 = vmatpush3.bf16.msra.mxu0 %v10276_v28 }
 0x8c5   :  { %9272 = vmatprep.subr.bf16.mxu0 %v10277_v55 }
 0x8c8   :  { %9273 = vmatpush3.bf16.msra.mxu0 %v10278_v4 }
 0x8c9   :  { %9274 = vmatprep.subr.bf16.mxu0 %v10279_v14 }
 0x8cc   :  { %9275 = vmatpush3.bf16.msra.mxu0 %v10280_v56 }
 0x8cd   :  { %9276 = vmatprep.subr.bf16.mxu0 %v10281_v3 }
 0x8cf   :  { %v9168_v38 = vpop.f32.mrb[68].mxu0 }
 0x8d0   :  { %9277 = vmatpush3.bf16.msra.mxu0 %v10282_v53  ;;  %v9169_v44 = vpop.f32.mrb[69].mxu0 }
 0x8d1   :  { %9284 = vmatprep.subr.bf16.mxu0 %v10283_v26  ;;  %v14090_v19 = vadd.f32 %v9169_v44, %v9168_v38  ;;  %v9171_v0 = vpop.f32.mrb[70].mxu0 }
 0x8d2   :  { %v9172_v12 = vpop.f32.mrb[71].mxu0 }
 0x8d3   :  { %8491 = vmatmul.mubr.bf16.vlgmr.msra.gmra.mrb[88].mxu0 %v7228_v6 }
 0x8d4   :  { %9285 = vmatpush3.bf16.msra.mxu0 %v10284_v47  ;;  %8530 = vmatprep.mubr.bf16.mxu0 %v7231_v27 }
 0x8d5   :  { %9286 = vmatprep.subr.bf16.mxu0 %v10285_v35 }
 0x8d8   :  { %9287 = vmatpush3.bf16.msra.mxu0 %v10286_v15 }
 0x8d9   :  { %9288 = vmatprep.subr.bf16.mxu0 %v10287_v2 }
 0x8dc   :  { %9289 = vmatpush3.bf16.msra.mxu0 %v10288_v45 }
 0x8dd   :  { %9290 = vmatprep.subr.bf16.mxu0 %v10289_v59 }
 0x8e0   :  { %9291 = vmatpush3.bf16.msra.mxu0 %v10290_v52 }
 0x8e1   :  { %9292 = vmatprep.subr.bf16.mxu0 %v10291_v61 }
 0x8e4   :  { %9293 = vmatpush3.bf16.msra.mxu0 %v10292_v37 }
 0x8e5   :  { %9294 = vmatprep.subr.bf16.mxu0 %v10293_v34 }
 0x8e8   :  { %9295 = vmatpush3.bf16.msra.mxu0 %v10294_v11 }
 0x8e9   :  { %9296 = vmatprep.subr.bf16.mxu0 %v10295_v20 }
 0x8ec   :  { %9297 = vmatpush3.bf16.msra.mxu0 %v10296_v21 }
 0x8ed   :  { %9298 = vmatprep.subr.bf16.mxu0 %v10297_v23 }
 0x8f0   :  { %9299 = vmatpush3.bf16.msra.mxu0 %v10298_v13 }
 0x8f1   :  { %9306 = vmatprep.subr.bf16.mxu0 %v10299_v7 }
 0x8f3   :  { %8531 = vmatmul.mubr.bf16.vlgmr.msra.gmra.mrb[92].mxu0 %v7230_v29 }
 0x8f4   :  { %9307 = vmatpush3.bf16.msra.mxu0 %v10300_v30  ;;  %8570 = vmatprep.mubr.bf16.mxu0 %v7233_v63 }
 0x8f5   :  { %9308 = vmatprep.subr.bf16.mxu0 %v10301_v24 }
 0x8f8   :  { %9309 = vmatpush3.bf16.msra.mxu0 %v10302_v9 }
 0x8f9   :  { %9310 = vmatprep.subr.bf16.mxu0 %v10303_v10 }
 0x8fc   :  { %9311 = vmatpush3.bf16.msra.mxu0 %v10304_v46 }
 0x8fd   :  { %9312 = vmatprep.subr.bf16.mxu0 %v10305_v48 }
 0x900   :  { %9313 = vmatpush3.bf16.msra.mxu0 %v10306_v57 }
 0x901   :  { %9314 = vmatprep.subr.bf16.mxu0 %v10307_v1 }
 0x904   :  { %9315 = vmatpush3.bf16.msra.mxu0 %v10308_v31 }
 0x905   :  { %9316 = vmatprep.subr.bf16.mxu0 %v10309_v36 }
 0x908   :  { %9317 = vmatpush3.bf16.msra.mxu0 %v10310_v39 }
 0x909   :  { %9318 = vmatprep.subr.bf16.mxu0 %v10311_v43 }
 0x90c   :  { %9319 = vmatpush3.bf16.msra.mxu0 %v10312_v50 }
 0x90d   :  { %9320 = vmatprep.subr.bf16.mxu0 %v10313_v49 }
 0x910   :  { %9321 = vmatpush3.bf16.msra.mxu0 %v10314_v41 }
 0x913   :  { %8571 = vmatmul.mubr.bf16.vlgmr.msra.gmra.mrb[96].mxu0 %v7232_v42 }
 0x926   :  { %v9190_v5 = vpop.f32.mrb[72].mxu0 }
 0x927   :  { %v9191_v22 = vpop.f32.mrb[73].mxu0 }
 0x928   :  { %v9192_v40 = vadd.f32 %v9191_v22, %v9190_v5  ;;  %v9193_v62 = vpop.f32.mrb[74].mxu0 }
 0x929   :  { %v9194_v54 = vpop.f32.mrb[75].mxu0 }
 0x92a   :  { %v8333_v51 = vadd.f32 %v9192_v40, %v14090_v19 }
 0x946   :  { %v9212_v8 = vpop.f32.mrb[76].mxu0 }
 0x947   :  { %v9213_v33 = vpop.f32.mrb[77].mxu0 }
 0x948   :  { %v9214_v58 = vadd.f32 %v9213_v33, %v9212_v8  ;;  %v9215_v32 = vpop.f32.mrb[78].mxu0 }
 0x949   :  { %v9216_v25 = vpop.f32.mrb[79].mxu0 }
 0x94a   :  { %v8373_v60 = vadd.f32 %v9214_v58, %v8333_v51 }
 0x966   :  { %v9234_v18 = vpop.f32.mrb[80].mxu0 }
 0x967   :  { %v9235_v17 = vpop.f32.mrb[81].mxu0 }
 0x968   :  { %v9236_v28 = vadd.f32 %v9235_v17, %v9234_v18  ;;  %v9237_v55 = vpop.f32.mrb[82].mxu0 }
 0x969   :  { %v9238_v4 = vpop.f32.mrb[83].mxu0 }
 0x96a   :  { %v8413_v16 = vadd.f32 %v9236_v28, %v8373_v60 }
 0x986   :  { %v9256_v14 = vpop.f32.mrb[84].mxu0 }
 0x987   :  { %v9257_v56 = vpop.f32.mrb[85].mxu0 }
 0x988   :  { %v9258_v3 = vadd.f32 %v9257_v56, %v9256_v14  ;;  %v9259_v53 = vpop.f32.mrb[86].mxu0 }
 0x989   :  { %v9260_v26 = vpop.f32.mrb[87].mxu0 }
 0x98a   :  { %v8453_v38 = vadd.f32 %v9258_v3, %v8413_v16 }
 0x9a6   :  { %v9278_v47 = vpop.f32.mrb[88].mxu0 }
 0x9a7   :  { %v9279_v44 = vpop.f32.mrb[89].mxu0 }
 0x9a8   :  { %v9280_v6 = vadd.f32 %v9279_v44, %v9278_v47  ;;  %v9281_v35 = vpop.f32.mrb[90].mxu0 }
 0x9a9   :  { %v9282_v19 = vpop.f32.mrb[91].mxu0 }
 0x9aa   :  { %v8493_v0 = vadd.f32 %v9280_v6, %v8453_v38 }
 0x9c6   :  { %v9300_v27 = vpop.f32.mrb[92].mxu0 }
 0x9c7   :  { %v9301_v12 = vpop.f32.mrb[93].mxu0 }
 0x9c8   :  { %v9302_v15 = vadd.f32 %v9301_v12, %v9300_v27  ;;  %v9303_v2 = vpop.f32.mrb[94].mxu0 }
 0x9c9   :  { %v9304_v45 = vpop.f32.mrb[95].mxu0 }
 0x9ca   :  { %v8533_v59 = vadd.f32 %v9302_v15, %v8493_v0 }
 0x9e6   :  { %v9322_v52 = vpop.f32.mrb[96].mxu0 }
 0x9e7   :  { %v9323_v61 = vpop.f32.mrb[97].mxu0 }
 0x9e8   :  { %v9324_v37 = vadd.f32 %v9323_v61, %v9322_v52  ;;  %v9325_v34 = vpop.f32.mrb[98].mxu0 }
 0x9e9   :  { %v9326_v11 = vpop.f32.mrb[99].mxu0 }
 0x9ea   :  { %v8573_v20 = vadd.f32 %v9324_v37, %v8533_v59 }
 0x9ec   :  { %v8578_v21 = vmul.f32 0.125, %v8573_v20 }
 0x9ee   :  { %8580 = vst.msk [vmem:[#allocation8] sm:$0x3] %vm8579_vm9, %v8578_v21 }
 0x9ef   :  { %10651 = shalt.err (!%p10648_p12)
}
 0x9f0   :  { %s10652_s1 = scalar_lea.hbm %s14213_s13, 32 }
 0x9f1   :  { %p10653_p13 = scmp.ne.s32.totalorder %s14213_s13, %s10652_s1  ;;  %p10656_p0 = scmp.lt.u32.totalorder %s10652_s1, %s14213_s13 }
 0x9f3   :  { %p10658_p1 = pnand %p10656_p0, %p10653_p13 }
 0x9f5   :  { %10661 = shalt.err (!%p10658_p1)
}
 0x9f6   :  { %8590 = dma.vmem_to_hbm [thread:$0]  %s8588_s8, 32, %s14213_s13, [#allocation7]  }
 0x9f7   :  { %10664 = dma.done.wait [#allocation7], 32  }
 0x9f8   :  { %10665 = vsyncadd [#allocation7], 4294967264 }
 0x9f9   :  { %8594 = vsyncpa [#allocation6], 1 }
 0x9fa   :  { %8595 = vsyncpa [#allocation7], 1 }

</bundles_post_ra>
